<compile_context>
chip_gen: v6e
topology: v6e:2x2x1
jax: 0.10.0
libtpu: 0.0.40
codegen_flags: <defaults>
</compile_context>

<pallas_src>
import jax
import jax.numpy as jnp
from jax import lax
from jax.experimental import pallas as pl
from jax.experimental.pallas import tpu as pltpu

BN_EPS = 1e-5        # PyTorch BatchNorm2d default eps
BATCH_TILE = 16      # images per grid step (M = 7*B = 112 rows per phase)
LP = 256             # lane-padded slab width (2 vregs); useful lanes = 224


# ------------------------------ Pallas kernel -------------------------------

def _fused_cnn_kernel(xcol_ref, t1_ref, t2_ref, fcw_ref, b1_ref, b2_ref,
                      fcb_ref, out_ref, p1p_ref, l2_ref, fcin_ref):
    """Whole CNNFashion_Mnist forward for one batch tile of B images.

    xcol_ref : (28B, 160) bf16  stage-1 row-im2col LHS, rows ordered (r,a,i,n)
                                lanes = kh*32 + u  (u = padded input column)
    t1_ref   : (2, 160, 256) bf16  conv1(+BN) Toeplitz, [pool col phase b]
    t2_ref   : (2, 1280, 256) bf16 conv2(+BN) Toeplitz, [pool col phase b]
    fcw_ref  : (1792, 128) bf16    fc weight, rows = 256*h + w*32 + o
    b1_ref   : (1, 256) f32        folded conv1+BN bias (lane-tiled, padded)
    b2_ref   : (1, 256) f32        folded conv2+BN bias (lane-tiled, padded)
    fcb_ref  : (1, 128) f32        fc bias (padded)
    out_ref  : (B, 128) f32        logits (only [:, :10] meaningful)
    p1p_ref  : (2, 9B, 256) bf16   scratch: parity-split stage-1 output,
                                   one B-row zero block top+bottom per parity
    l2_ref   : (14B, 1280) bf16    scratch: stage-2 im2col LHS (a stacked on M)
    fcin_ref : (B, 1792) bf16      scratch: per-image FC input
    """
    f32 = jnp.float32
    bf16 = jnp.bfloat16
    B = out_ref.shape[0]
    M1 = 7 * B

    # ---- stage 1: conv1 (BN folded) + ReLU + 2x2 max-pool -------------------
    x = xcol_ref[...]
    s = jnp.maximum(
        jnp.dot(x, t1_ref[0], preferred_element_type=f32),
        jnp.dot(x, t1_ref[1], preferred_element_type=f32))   # max over col phase
    b1 = b1_ref[...]
    zrow = jnp.zeros((B, LP), bf16)
    for r in range(2):                                        # pooled-row parity
        p1 = jnp.maximum(s[(2 * r) * M1:(2 * r + 1) * M1, :],
                         s[(2 * r + 1) * M1:(2 * r + 2) * M1, :])  # row phase
        p1 = jnp.maximum(p1 + b1, 0.0)
        p1p_ref[r, 0:B, :] = zrow                # conv2 top row padding
        p1p_ref[r, B:8 * B, :] = p1.astype(bf16)
        p1p_ref[r, 8 * B:9 * B, :] = zrow        # conv2 bottom row padding

    # ---- stage 2 LHS: concat the 5 row taps along lanes, phases a on M ------
    for a in range(2):
        for kh in range(5):
            e = a + kh
            l2_ref[a * M1:(a + 1) * M1, kh * LP:(kh + 1) * LP] = (
                p1p_ref[e % 2, (e // 2) * B:(e // 2 + 7) * B, :])

    # ---- stage 2: conv2 (BN folded) + ReLU + 2x2 max-pool -------------------
    l2 = l2_ref[...]
    s2 = jnp.maximum(
        jnp.dot(l2, t2_ref[0], preferred_element_type=f32),
        jnp.dot(l2, t2_ref[1], preferred_element_type=f32))  # max over col phase
    p2 = jnp.maximum(s2[:M1, :], s2[M1:, :])                 # max over row phase
    p2 = jnp.maximum(p2 + b2_ref[...], 0.0).astype(bf16)     # (7B, 256), rows (h,n)

    # ---- fc: pack (B, 7*256) then a single MXU matmul -----------------------
    for h in range(7):
        fcin_ref[:, h * LP:(h + 1) * LP] = p2[h * B:(h + 1) * B, :]
    out_ref[...] = (jnp.dot(fcin_ref[...], fcw_ref[...],
                            preferred_element_type=f32) + fcb_ref[...])


# ----------------------- wrapper-side weight folding ------------------------

def _fold_bn(conv_b, gamma, beta, mean, var):
    scale = gamma / jnp.sqrt(var + BN_EPS)
    bias = (conv_b - mean) * scale + beta
    return scale, bias


def _conv1_toeplitz(w1f):
    # T1[b, kh*32+u, j*16+c] = w1f[kh, u-2j-b, c]  (zero outside tap range)
    u = jnp.arange(32)[None, :, None]
    j = jnp.arange(14)[None, None, :]
    b = jnp.arange(2)[:, None, None]
    kw = u - 2 * j - b                                        # (2, 32, 14)
    valid = (kw >= 0) & (kw < 5)
    t1 = w1f[:, jnp.clip(kw, 0, 4), :]                        # (5, 2, 32, 14, 16)
    t1 = jnp.where(valid[None, :, :, :, None], t1, 0.0)
    t1 = jnp.transpose(t1, (1, 0, 2, 3, 4)).reshape(2, 160, 224)
    t1 = jnp.pad(t1, ((0, 0), (0, 0), (0, LP - 224)))
    return t1.astype(jnp.bfloat16)                            # (2, 160, 256)


def _conv2_toeplitz(w2f):
    # T2[b, kh*256 + v*16+c, j*32+o] = w2f[kh, v+2-2j-b, c, o]; K and N padded.
    v = jnp.arange(14)[None, :, None]
    j = jnp.arange(7)[None, None, :]
    b = jnp.arange(2)[:, None, None]
    kw = v + 2 - 2 * j - b                                    # (2, 14, 7)
    valid = (kw >= 0) & (kw < 5)
    t2 = w2f[:, jnp.clip(kw, 0, 4), :, :]                     # (5, 2, 14, 7, 16, 32)
    t2 = jnp.where(valid[None, :, :, :, None, None], t2, 0.0)
    t2 = jnp.transpose(t2, (1, 0, 2, 4, 3, 5)).reshape(2, 5, 224, 224)
    t2 = jnp.pad(t2, ((0, 0), (0, 0), (0, LP - 224), (0, LP - 224)))
    return t2.reshape(2, 5 * LP, LP).astype(jnp.bfloat16)     # (2, 1280, 256)


def _fc_weight(fc_w, fc_b):
    # fc_w rows are indexed o*49 + h*7 + w (PyTorch NCHW flatten of (32,7,7)).
    fcw = fc_w.reshape(32, 7, 7, 10)           # [o, h, w, d]
    fcw = jnp.transpose(fcw, (1, 2, 0, 3))     # [h, w, o, d]
    fcw = fcw.reshape(7, 224, 10)
    fcw = jnp.pad(fcw, ((0, 0), (0, LP - 224), (0, 128 - 10)))
    fcw = fcw.reshape(7 * LP, 128).astype(jnp.bfloat16)       # (1792, 128)
    fcb = jnp.pad(fc_b, (0, 128 - 10)).reshape(1, 128)
    return fcw, fcb


def _stage1_im2col(xp, B):
    """xp: (Npad, 32, 32) f32 -> (Npad/B, 28*B, 160) bf16, rows ordered (r,a,i,n)."""
    npad = xp.shape[0]
    nb = npad // B
    r = jnp.arange(2)[:, None, None, None]
    a = jnp.arange(2)[None, :, None, None]
    i = jnp.arange(7)[None, None, :, None]
    kh = jnp.arange(5)[None, None, None, :]
    rows = 4 * i + 2 * r + a + kh                             # (2, 2, 7, 5)
    xc = xp[:, rows, :]                                       # (Npad, 2,2,7,5,32)
    xc = xc.reshape(nb, B, 2, 2, 7, 160)
    xc = jnp.transpose(xc, (0, 2, 3, 4, 1, 5))                # (nb, 2,2,7,B,160)
    return xc.reshape(nb, 28 * B, 160).astype(jnp.bfloat16)


@jax.jit
def cnn_forward(x_nchw, p):
    B = BATCH_TILE
    N = x_nchw.shape[0]
    npad = ((N + B - 1) // B) * B
    nb = npad // B

    x = x_nchw.astype(jnp.float32).reshape(N, 28, 28)          # Cin == 1
    x = jnp.pad(x, ((0, npad - N), (2, 2), (2, 2)))            # (npad, 32, 32)
    xcol = _stage1_im2col(x, B)                                # (nb, 28B, 160)

    s1, b1f = _fold_bn(p['b1'], p['g1'], p['be1'], p['m1'], p['v1'])
    s2, b2f = _fold_bn(p['b2'], p['g2'], p['be2'], p['m2'], p['v2'])
    w1f = p['w1'][:, :, 0, :] * s1                              # (5, 5, 16)
    w2f = p['w2'] * s2                                          # (5, 5, 16, 32)

    t1 = _conv1_toeplitz(w1f)
    t2 = _conv2_toeplitz(w2f)
    fcw, fcb = _fc_weight(p['fc_w'], p['fc_b'])
    b1t = jnp.pad(jnp.tile(b1f, 14), (0, LP - 224)).reshape(1, LP)
    b2t = jnp.pad(jnp.tile(b2f, 7), (0, LP - 224)).reshape(1, LP)

    M1 = 7 * B
    out = pl.pallas_call(
        _fused_cnn_kernel,
        out_shape=jax.ShapeDtypeStruct((npad, 128), jnp.float32),
        grid=(nb,),
        in_specs=[
            pl.BlockSpec((None, 28 * B, 160), lambda n: (n, 0, 0)),
            pl.BlockSpec((2, 160, LP), lambda n: (0, 0, 0)),
            pl.BlockSpec((2, 5 * LP, LP), lambda n: (0, 0, 0)),
            pl.BlockSpec((7 * LP, 128), lambda n: (0, 0)),
            pl.BlockSpec((1, LP), lambda n: (0, 0)),
            pl.BlockSpec((1, LP), lambda n: (0, 0)),
            pl.BlockSpec((1, 128), lambda n: (0, 0)),
        ],
        out_specs=pl.BlockSpec((B, 128), lambda n: (n, 0)),
        scratch_shapes=[
            pltpu.VMEM((2, 9 * B, LP), jnp.bfloat16),   # parity-split p1 (+pad rows)
            pltpu.VMEM((2 * M1, 5 * LP), jnp.bfloat16), # stage-2 im2col LHS
            pltpu.VMEM((B, 7 * LP), jnp.bfloat16),      # fc input
        ],
        compiler_params=pltpu.CompilerParams(
            dimension_semantics=("parallel",),
            vmem_limit_bytes=32 * 1024 * 1024),
    )(xcol, t1, t2, fcw, b1t, b2t, fcb)
    return out[:N, :10]


# ------------------------- reference (pure JAX/XLA) --------------------------

def reference_forward(x_nchw, p):
    x = jnp.transpose(x_nchw, (0, 2, 3, 1)).astype(jnp.float32)

    def block(x, w, b, g, be, m, v):
        y = lax.conv_general_dilated(
            x, w, (1, 1), [(2, 2), (2, 2)],
            dimension_numbers=('NHWC', 'HWIO', 'NHWC')) + b
        y = (y - m) / jnp.sqrt(v + BN_EPS) * g + be
        y = jnp.maximum(y, 0.0)
        return lax.reduce_window(y, -jnp.inf, lax.max,
                                 (1, 2, 2, 1), (1, 2, 2, 1), 'VALID')

    y = block(x, p['w1'], p['b1'], p['g1'], p['be1'], p['m1'], p['v1'])
    y = block(y, p['w2'], p['b2'], p['g2'], p['be2'], p['m2'], p['v2'])
    flat = jnp.transpose(y, (0, 3, 1, 2)).reshape(y.shape[0], -1)
    return flat @ p['fc_w'] + p['fc_b']


# ------------------------------ params / driver ------------------------------

def init_params(key):
    ks = jax.random.split(key, 14)
    f32 = jnp.float32
    return {
        'w1': 0.10 * jax.random.normal(ks[0], (5, 5, 1, 16), f32),   # HWIO
        'b1': 0.10 * jax.random.normal(ks[1], (16,), f32),
        'g1': 1.0 + 0.10 * jax.random.normal(ks[2], (16,), f32),
        'be1': 0.10 * jax.random.normal(ks[3], (16,), f32),
        'm1': 0.10 * jax.random.normal(ks[4], (16,), f32),
        'v1': jax.random.uniform(ks[5], (16,), f32, 0.5, 1.5),
        'w2': 0.05 * jax.random.normal(ks[6], (5, 5, 16, 32), f32),  # HWIO
        'b2': 0.10 * jax.random.normal(ks[7], (32,), f32),
        'g2': 1.0 + 0.10 * jax.random.normal(ks[8], (32,), f32),
        'be2': 0.10 * jax.random.normal(ks[9], (32,), f32),
        'm2': 0.10 * jax.random.normal(ks[10], (32,), f32),
        'v2': jax.random.uniform(ks[11], (32,), f32, 0.5, 1.5),
        'fc_w': 0.02 * jax.random.normal(ks[12], (7 * 7 * 32, 10), f32),
        'fc_b': 0.10 * jax.random.normal(ks[13], (10,), f32),
    }


if __name__ == "__main__":
    key = jax.random.PRNGKey(0)
    kx, kp = jax.random.split(key)
    params = init_params(kp)
    # Fashion-MNIST sized input, NCHW like PyTorch (28x28 implied by fc dims).
    # N=32 -> 2 batch tiles of 16 -> 2 grid steps (exercises megacore split).
    x = jax.random.normal(kx, (32, 1, 28, 28), jnp.float32)

    out = jax.block_until_ready(cnn_forward(x, params))
    assert out.shape == (32, 10), out.shape

    ref = reference_forward(x, params)
    if not bool(jnp.allclose(out, ref, atol=5e-2, rtol=5e-2)):
        raise AssertionError(
            f"mismatch vs reference, max abs err = {float(jnp.max(jnp.abs(out - ref)))}")
    print("KERNEL_OK")
</pallas_src>

<mosaic_0001>
module attributes {stable_mosaic.version = 11 : i64} {
  func.func @_fused_cnn_kernel(%arg0: i32, %arg1: memref<1x448x160xbf16, #tpu.memory_space<vmem>>, %arg2: memref<2x160x256xbf16, #tpu.memory_space<vmem>>, %arg3: memref<2x1280x256xbf16, #tpu.memory_space<vmem>>, %arg4: memref<1792x128xbf16, #tpu.memory_space<vmem>>, %arg5: memref<1x256xf32, #tpu.memory_space<vmem>>, %arg6: memref<1x256xf32, #tpu.memory_space<vmem>>, %arg7: memref<1x128xf32, #tpu.memory_space<vmem>>, %arg8: memref<16x128xf32, #tpu.memory_space<vmem>>, %arg9: memref<2x144x256xbf16, #tpu.memory_space<vmem>>, %arg10: memref<224x1280xbf16, #tpu.memory_space<vmem>>, %arg11: memref<16x1792xbf16, #tpu.memory_space<vmem>>) attributes {dimension_semantics = [#tpu.dimension_semantics<parallel>], iteration_bounds = array<i64: 2>, scalar_prefetch = 0 : i64, scratch_operands = 3 : i64, tpu.core_type = #tpu.core_type<tc>, window_params = [{transform_indices = @transform_0, window_bounds = array<i64: 1, 448, 160>}, {pipeline_mode = #tpu.pipeline_mode<synchronous>, transform_indices = @transform_1, window_bounds = array<i64: 2, 160, 256>}, {pipeline_mode = #tpu.pipeline_mode<synchronous>, transform_indices = @transform_2, window_bounds = array<i64: 2, 1280, 256>}, {pipeline_mode = #tpu.pipeline_mode<synchronous>, transform_indices = @transform_3, window_bounds = array<i64: 1792, 128>}, {pipeline_mode = #tpu.pipeline_mode<synchronous>, transform_indices = @transform_4, window_bounds = array<i64: 1, 256>}, {pipeline_mode = #tpu.pipeline_mode<synchronous>, transform_indices = @transform_5, window_bounds = array<i64: 1, 256>}, {pipeline_mode = #tpu.pipeline_mode<synchronous>, transform_indices = @transform_6, window_bounds = array<i64: 1, 128>}, {transform_indices = @transform_7, window_bounds = array<i64: 16, 128>}]} {
    %c0 = arith.constant 0 : index
    %c0_0 = arith.constant 0 : index
    %c0_1 = arith.constant 0 : index
    %0 = vector.load %arg1[%c0, %c0_0, %c0_1] : memref<1x448x160xbf16, #tpu.memory_space<vmem>>, vector<1x448x160xbf16>
    %1 = vector.shape_cast %0 : vector<1x448x160xbf16> to vector<448x160xbf16>
    %c0_2 = arith.constant 0 : index
    %c0_3 = arith.constant 0 : index
    %c0_4 = arith.constant 0 : index
    %2 = vector.load %arg2[%c0_2, %c0_3, %c0_4] : memref<2x160x256xbf16, #tpu.memory_space<vmem>>, vector<1x160x256xbf16>
    %3 = vector.shape_cast %2 : vector<1x160x256xbf16> to vector<160x256xbf16>
    %cst = arith.constant dense<0.000000e+00> : vector<448x256xf32>
    %4 = tpu.matmul %1, %3, %cst {dimension_numbers = #tpu.dot_dimension_numbers<[1], [0], [0], [1], [0, 0, 1, 1], [], []>} : vector<448x160xbf16>, vector<160x256xbf16>, vector<448x256xf32> -> vector<448x256xf32>
    %c1 = arith.constant 1 : index
    %c0_5 = arith.constant 0 : index
    %c0_6 = arith.constant 0 : index
    %5 = vector.load %arg2[%c1, %c0_5, %c0_6] : memref<2x160x256xbf16, #tpu.memory_space<vmem>>, vector<1x160x256xbf16>
    %6 = vector.shape_cast %5 : vector<1x160x256xbf16> to vector<160x256xbf16>
    %cst_7 = arith.constant dense<0.000000e+00> : vector<448x256xf32>
    %7 = tpu.matmul %1, %6, %cst_7 {dimension_numbers = #tpu.dot_dimension_numbers<[1], [0], [0], [1], [0, 0, 1, 1], [], []>} : vector<448x160xbf16>, vector<160x256xbf16>, vector<448x256xf32> -> vector<448x256xf32>
    %8 = arith.maximumf %4, %7 : vector<448x256xf32>
    %c0_8 = arith.constant 0 : index
    %c0_9 = arith.constant 0 : index
    %9 = vector.load %arg5[%c0_8, %c0_9] : memref<1x256xf32, #tpu.memory_space<vmem>>, vector<1x256xf32>
    %cst_10 = arith.constant 0.000000e+00 : bf16
    %10 = vector.broadcast %cst_10 : bf16 to vector<16x256xbf16>
    %11 = vector.extract_strided_slice %8 {offsets = [0, 0], sizes = [112, 256], strides = [1, 1]} : vector<448x256xf32> to vector<112x256xf32>
    %12 = vector.extract_strided_slice %8 {offsets = [112, 0], sizes = [112, 256], strides = [1, 1]} : vector<448x256xf32> to vector<112x256xf32>
    %13 = arith.maximumf %11, %12 : vector<112x256xf32>
    %14 = vector.broadcast %9 : vector<1x256xf32> to vector<112x256xf32>
    %15 = arith.addf %13, %14 : vector<112x256xf32>
    %cst_11 = arith.constant 0.000000e+00 : f32
    %16 = vector.broadcast %cst_11 : f32 to vector<112x256xf32>
    %17 = arith.maximumf %15, %16 : vector<112x256xf32>
    %c0_12 = arith.constant 0 : index
    %c0_13 = arith.constant 0 : index
    %c0_14 = arith.constant 0 : index
    %18 = vector.load %arg9[%c0_12, %c0_13, %c0_14] : memref<2x144x256xbf16, #tpu.memory_space<vmem>>, vector<1x16x256xbf16>
    %19 = vector.shape_cast %18 : vector<1x16x256xbf16> to vector<16x256xbf16>
    %20 = vector.shape_cast %10 : vector<16x256xbf16> to vector<1x16x256xbf16>
    tpu.vector_store %arg9[%c0_12, %c0_13, %c0_14], %20 {strides = array<i32>} : memref<2x144x256xbf16, #tpu.memory_space<vmem>>, vector<1x16x256xbf16>,
    %21 = arith.truncf %17 : vector<112x256xf32> to vector<112x256xbf16>
    %c0_15 = arith.constant 0 : index
    %c16 = arith.constant 16 : index
    %c0_16 = arith.constant 0 : index
    %22 = vector.load %arg9[%c0_15, %c16, %c0_16] : memref<2x144x256xbf16, #tpu.memory_space<vmem>>, vector<1x112x256xbf16>
    %23 = vector.shape_cast %22 : vector<1x112x256xbf16> to vector<112x256xbf16>
    %24 = vector.shape_cast %21 : vector<112x256xbf16> to vector<1x112x256xbf16>
    tpu.vector_store %arg9[%c0_15, %c16, %c0_16], %24 {strides = array<i32>} : memref<2x144x256xbf16, #tpu.memory_space<vmem>>, vector<1x112x256xbf16>,
    %c0_17 = arith.constant 0 : index
    %c128 = arith.constant 128 : index
    %c0_18 = arith.constant 0 : index
    %25 = vector.load %arg9[%c0_17, %c128, %c0_18] : memref<2x144x256xbf16, #tpu.memory_space<vmem>>, vector<1x16x256xbf16>
    %26 = vector.shape_cast %25 : vector<1x16x256xbf16> to vector<16x256xbf16>
    %27 = vector.shape_cast %10 : vector<16x256xbf16> to vector<1x16x256xbf16>
    tpu.vector_store %arg9[%c0_17, %c128, %c0_18], %27 {strides = array<i32>} : memref<2x144x256xbf16, #tpu.memory_space<vmem>>, vector<1x16x256xbf16>,
    %28 = vector.extract_strided_slice %8 {offsets = [224, 0], sizes = [112, 256], strides = [1, 1]} : vector<448x256xf32> to vector<112x256xf32>
    %29 = vector.extract_strided_slice %8 {offsets = [336, 0], sizes = [112, 256], strides = [1, 1]} : vector<448x256xf32> to vector<112x256xf32>
    %30 = arith.maximumf %28, %29 : vector<112x256xf32>
    %31 = vector.broadcast %9 : vector<1x256xf32> to vector<112x256xf32>
    %32 = arith.addf %30, %31 : vector<112x256xf32>
    %cst_19 = arith.constant 0.000000e+00 : f32
    %33 = vector.broadcast %cst_19 : f32 to vector<112x256xf32>
    %34 = arith.maximumf %32, %33 : vector<112x256xf32>
    %c1_20 = arith.constant 1 : index
    %c0_21 = arith.constant 0 : index
    %c0_22 = arith.constant 0 : index
    %35 = vector.load %arg9[%c1_20, %c0_21, %c0_22] : memref<2x144x256xbf16, #tpu.memory_space<vmem>>, vector<1x16x256xbf16>
    %36 = vector.shape_cast %35 : vector<1x16x256xbf16> to vector<16x256xbf16>
    %37 = vector.shape_cast %10 : vector<16x256xbf16> to vector<1x16x256xbf16>
    tpu.vector_store %arg9[%c1_20, %c0_21, %c0_22], %37 {strides = array<i32>} : memref<2x144x256xbf16, #tpu.memory_space<vmem>>, vector<1x16x256xbf16>,
    %38 = arith.truncf %34 : vector<112x256xf32> to vector<112x256xbf16>
    %c1_23 = arith.constant 1 : index
    %c16_24 = arith.constant 16 : index
    %c0_25 = arith.constant 0 : index
    %39 = vector.load %arg9[%c1_23, %c16_24, %c0_25] : memref<2x144x256xbf16, #tpu.memory_space<vmem>>, vector<1x112x256xbf16>
    %40 = vector.shape_cast %39 : vector<1x112x256xbf16> to vector<112x256xbf16>
    %41 = vector.shape_cast %38 : vector<112x256xbf16> to vector<1x112x256xbf16>
    tpu.vector_store %arg9[%c1_23, %c16_24, %c0_25], %41 {strides = array<i32>} : memref<2x144x256xbf16, #tpu.memory_space<vmem>>, vector<1x112x256xbf16>,
    %c1_26 = arith.constant 1 : index
    %c128_27 = arith.constant 128 : index
    %c0_28 = arith.constant 0 : index
    %42 = vector.load %arg9[%c1_26, %c128_27, %c0_28] : memref<2x144x256xbf16, #tpu.memory_space<vmem>>, vector<1x16x256xbf16>
    %43 = vector.shape_cast %42 : vector<1x16x256xbf16> to vector<16x256xbf16>
    %44 = vector.shape_cast %10 : vector<16x256xbf16> to vector<1x16x256xbf16>
    tpu.vector_store %arg9[%c1_26, %c128_27, %c0_28], %44 {strides = array<i32>} : memref<2x144x256xbf16, #tpu.memory_space<vmem>>, vector<1x16x256xbf16>,
    %c0_29 = arith.constant 0 : index
    %c0_30 = arith.constant 0 : index
    %c0_31 = arith.constant 0 : index
    %45 = vector.load %arg9[%c0_29, %c0_30, %c0_31] : memref<2x144x256xbf16, #tpu.memory_space<vmem>>, vector<1x112x256xbf16>
    %46 = vector.shape_cast %45 : vector<1x112x256xbf16> to vector<112x256xbf16>
    %c0_32 = arith.constant 0 : index
    %c0_33 = arith.constant 0 : index
    %47 = vector.load %arg10[%c0_32, %c0_33] : memref<224x1280xbf16, #tpu.memory_space<vmem>>, vector<112x256xbf16>
    tpu.vector_store %arg10[%c0_32, %c0_33], %46 {strides = array<i32>} : memref<224x1280xbf16, #tpu.memory_space<vmem>>, vector<112x256xbf16>,
    %c1_34 = arith.constant 1 : index
    %c0_35 = arith.constant 0 : index
    %c0_36 = arith.constant 0 : index
    %48 = vector.load %arg9[%c1_34, %c0_35, %c0_36] : memref<2x144x256xbf16, #tpu.memory_space<vmem>>, vector<1x112x256xbf16>
    %49 = vector.shape_cast %48 : vector<1x112x256xbf16> to vector<112x256xbf16>
    %c0_37 = arith.constant 0 : index
    %c256 = arith.constant 256 : index
    %50 = vector.load %arg10[%c0_37, %c256] : memref<224x1280xbf16, #tpu.memory_space<vmem>>, vector<112x256xbf16>
    tpu.vector_store %arg10[%c0_37, %c256], %49 {strides = array<i32>} : memref<224x1280xbf16, #tpu.memory_space<vmem>>, vector<112x256xbf16>,
    %c0_38 = arith.constant 0 : index
    %c16_39 = arith.constant 16 : index
    %c0_40 = arith.constant 0 : index
    %51 = vector.load %arg9[%c0_38, %c16_39, %c0_40] : memref<2x144x256xbf16, #tpu.memory_space<vmem>>, vector<1x112x256xbf16>
    %52 = vector.shape_cast %51 : vector<1x112x256xbf16> to vector<112x256xbf16>
    %c0_41 = arith.constant 0 : index
    %c512 = arith.constant 512 : index
    %53 = vector.load %arg10[%c0_41, %c512] : memref<224x1280xbf16, #tpu.memory_space<vmem>>, vector<112x256xbf16>
    tpu.vector_store %arg10[%c0_41, %c512], %52 {strides = array<i32>} : memref<224x1280xbf16, #tpu.memory_space<vmem>>, vector<112x256xbf16>,
    %c1_42 = arith.constant 1 : index
    %c16_43 = arith.constant 16 : index
    %c0_44 = arith.constant 0 : index
    %54 = vector.load %arg9[%c1_42, %c16_43, %c0_44] : memref<2x144x256xbf16, #tpu.memory_space<vmem>>, vector<1x112x256xbf16>
    %55 = vector.shape_cast %54 : vector<1x112x256xbf16> to vector<112x256xbf16>
    %c0_45 = arith.constant 0 : index
    %c768 = arith.constant 768 : index
    %56 = vector.load %arg10[%c0_45, %c768] : memref<224x1280xbf16, #tpu.memory_space<vmem>>, vector<112x256xbf16>
    tpu.vector_store %arg10[%c0_45, %c768], %55 {strides = array<i32>} : memref<224x1280xbf16, #tpu.memory_space<vmem>>, vector<112x256xbf16>,
    %c0_46 = arith.constant 0 : index
    %c32 = arith.constant 32 : index
    %c0_47 = arith.constant 0 : index
    %57 = vector.load %arg9[%c0_46, %c32, %c0_47] : memref<2x144x256xbf16, #tpu.memory_space<vmem>>, vector<1x112x256xbf16>
    %58 = vector.shape_cast %57 : vector<1x112x256xbf16> to vector<112x256xbf16>
    %c0_48 = arith.constant 0 : index
    %c1024 = arith.constant 1024 : index
    %59 = vector.load %arg10[%c0_48, %c1024] : memref<224x1280xbf16, #tpu.memory_space<vmem>>, vector<112x256xbf16>
    tpu.vector_store %arg10[%c0_48, %c1024], %58 {strides = array<i32>} : memref<224x1280xbf16, #tpu.memory_space<vmem>>, vector<112x256xbf16>,
    %c1_49 = arith.constant 1 : index
    %c0_50 = arith.constant 0 : index
    %c0_51 = arith.constant 0 : index
    %60 = vector.load %arg9[%c1_49, %c0_50, %c0_51] : memref<2x144x256xbf16, #tpu.memory_space<vmem>>, vector<1x112x256xbf16>
    %61 = vector.shape_cast %60 : vector<1x112x256xbf16> to vector<112x256xbf16>
    %c112 = arith.constant 112 : index
    %c0_52 = arith.constant 0 : index
    %62 = vector.load %arg10[%c112, %c0_52] : memref<224x1280xbf16, #tpu.memory_space<vmem>>, vector<112x256xbf16>
    tpu.vector_store %arg10[%c112, %c0_52], %61 {strides = array<i32>} : memref<224x1280xbf16, #tpu.memory_space<vmem>>, vector<112x256xbf16>,
    %c0_53 = arith.constant 0 : index
    %c16_54 = arith.constant 16 : index
    %c0_55 = arith.constant 0 : index
    %63 = vector.load %arg9[%c0_53, %c16_54, %c0_55] : memref<2x144x256xbf16, #tpu.memory_space<vmem>>, vector<1x112x256xbf16>
    %64 = vector.shape_cast %63 : vector<1x112x256xbf16> to vector<112x256xbf16>
    %c112_56 = arith.constant 112 : index
    %c256_57 = arith.constant 256 : index
    %65 = vector.load %arg10[%c112_56, %c256_57] : memref<224x1280xbf16, #tpu.memory_space<vmem>>, vector<112x256xbf16>
    tpu.vector_store %arg10[%c112_56, %c256_57], %64 {strides = array<i32>} : memref<224x1280xbf16, #tpu.memory_space<vmem>>, vector<112x256xbf16>,
    %c1_58 = arith.constant 1 : index
    %c16_59 = arith.constant 16 : index
    %c0_60 = arith.constant 0 : index
    %66 = vector.load %arg9[%c1_58, %c16_59, %c0_60] : memref<2x144x256xbf16, #tpu.memory_space<vmem>>, vector<1x112x256xbf16>
    %67 = vector.shape_cast %66 : vector<1x112x256xbf16> to vector<112x256xbf16>
    %c112_61 = arith.constant 112 : index
    %c512_62 = arith.constant 512 : index
    %68 = vector.load %arg10[%c112_61, %c512_62] : memref<224x1280xbf16, #tpu.memory_space<vmem>>, vector<112x256xbf16>
    tpu.vector_store %arg10[%c112_61, %c512_62], %67 {strides = array<i32>} : memref<224x1280xbf16, #tpu.memory_space<vmem>>, vector<112x256xbf16>,
    %c0_63 = arith.constant 0 : index
    %c32_64 = arith.constant 32 : index
    %c0_65 = arith.constant 0 : index
    %69 = vector.load %arg9[%c0_63, %c32_64, %c0_65] : memref<2x144x256xbf16, #tpu.memory_space<vmem>>, vector<1x112x256xbf16>
    %70 = vector.shape_cast %69 : vector<1x112x256xbf16> to vector<112x256xbf16>
    %c112_66 = arith.constant 112 : index
    %c768_67 = arith.constant 768 : index
    %71 = vector.load %arg10[%c112_66, %c768_67] : memref<224x1280xbf16, #tpu.memory_space<vmem>>, vector<112x256xbf16>
    tpu.vector_store %arg10[%c112_66, %c768_67], %70 {strides = array<i32>} : memref<224x1280xbf16, #tpu.memory_space<vmem>>, vector<112x256xbf16>,
    %c1_68 = arith.constant 1 : index
    %c32_69 = arith.constant 32 : index
    %c0_70 = arith.constant 0 : index
    %72 = vector.load %arg9[%c1_68, %c32_69, %c0_70] : memref<2x144x256xbf16, #tpu.memory_space<vmem>>, vector<1x112x256xbf16>
    %73 = vector.shape_cast %72 : vector<1x112x256xbf16> to vector<112x256xbf16>
    %c112_71 = arith.constant 112 : index
    %c1024_72 = arith.constant 1024 : index
    %74 = vector.load %arg10[%c112_71, %c1024_72] : memref<224x1280xbf16, #tpu.memory_space<vmem>>, vector<112x256xbf16>
    tpu.vector_store %arg10[%c112_71, %c1024_72], %73 {strides = array<i32>} : memref<224x1280xbf16, #tpu.memory_space<vmem>>, vector<112x256xbf16>,
    %c0_73 = arith.constant 0 : index
    %c0_74 = arith.constant 0 : index
    %75 = vector.load %arg10[%c0_73, %c0_74] : memref<224x1280xbf16, #tpu.memory_space<vmem>>, vector<224x1280xbf16>
    %c0_75 = arith.constant 0 : index
    %c0_76 = arith.constant 0 : index
    %c0_77 = arith.constant 0 : index
    %76 = vector.load %arg3[%c0_75, %c0_76, %c0_77] : memref<2x1280x256xbf16, #tpu.memory_space<vmem>>, vector<1x1280x256xbf16>
    %77 = vector.shape_cast %76 : vector<1x1280x256xbf16> to vector<1280x256xbf16>
    %cst_78 = arith.constant dense<0.000000e+00> : vector<224x256xf32>
    %78 = tpu.matmul %75, %77, %cst_78 {dimension_numbers = #tpu.dot_dimension_numbers<[1], [0], [0], [1], [0, 0, 1, 1], [], []>} : vector<224x1280xbf16>, vector<1280x256xbf16>, vector<224x256xf32> -> vector<224x256xf32>
    %c1_79 = arith.constant 1 : index
    %c0_80 = arith.constant 0 : index
    %c0_81 = arith.constant 0 : index
    %79 = vector.load %arg3[%c1_79, %c0_80, %c0_81] : memref<2x1280x256xbf16, #tpu.memory_space<vmem>>, vector<1x1280x256xbf16>
    %80 = vector.shape_cast %79 : vector<1x1280x256xbf16> to vector<1280x256xbf16>
    %cst_82 = arith.constant dense<0.000000e+00> : vector<224x256xf32>
    %81 = tpu.matmul %75, %80, %cst_82 {dimension_numbers = #tpu.dot_dimension_numbers<[1], [0], [0], [1], [0, 0, 1, 1], [], []>} : vector<224x1280xbf16>, vector<1280x256xbf16>, vector<224x256xf32> -> vector<224x256xf32>
    %82 = arith.maximumf %78, %81 : vector<224x256xf32>
    %83 = vector.extract_strided_slice %82 {offsets = [0, 0], sizes = [112, 256], strides = [1, 1]} : vector<224x256xf32> to vector<112x256xf32>
    %84 = vector.extract_strided_slice %82 {offsets = [112, 0], sizes = [112, 256], strides = [1, 1]} : vector<224x256xf32> to vector<112x256xf32>
    %85 = arith.maximumf %83, %84 : vector<112x256xf32>
    %c0_83 = arith.constant 0 : index
    %c0_84 = arith.constant 0 : index
    %86 = vector.load %arg6[%c0_83, %c0_84] : memref<1x256xf32, #tpu.memory_space<vmem>>, vector<1x256xf32>
    %87 = vector.broadcast %86 : vector<1x256xf32> to vector<112x256xf32>
    %88 = arith.addf %85, %87 : vector<112x256xf32>
    %cst_85 = arith.constant 0.000000e+00 : f32
    %89 = vector.broadcast %cst_85 : f32 to vector<112x256xf32>
    %90 = arith.maximumf %88, %89 : vector<112x256xf32>
    %91 = arith.truncf %90 : vector<112x256xf32> to vector<112x256xbf16>
    %92 = vector.extract_strided_slice %91 {offsets = [0, 0], sizes = [16, 256], strides = [1, 1]} : vector<112x256xbf16> to vector<16x256xbf16>
    %c0_86 = arith.constant 0 : index
    %c0_87 = arith.constant 0 : index
    %93 = vector.load %arg11[%c0_86, %c0_87] : memref<16x1792xbf16, #tpu.memory_space<vmem>>, vector<16x256xbf16>
    tpu.vector_store %arg11[%c0_86, %c0_87], %92 {strides = array<i32>} : memref<16x1792xbf16, #tpu.memory_space<vmem>>, vector<16x256xbf16>,
    %94 = vector.extract_strided_slice %91 {offsets = [16, 0], sizes = [16, 256], strides = [1, 1]} : vector<112x256xbf16> to vector<16x256xbf16>
    %c0_88 = arith.constant 0 : index
    %c256_89 = arith.constant 256 : index
    %95 = vector.load %arg11[%c0_88, %c256_89] : memref<16x1792xbf16, #tpu.memory_space<vmem>>, vector<16x256xbf16>
    tpu.vector_store %arg11[%c0_88, %c256_89], %94 {strides = array<i32>} : memref<16x1792xbf16, #tpu.memory_space<vmem>>, vector<16x256xbf16>,
    %96 = vector.extract_strided_slice %91 {offsets = [32, 0], sizes = [16, 256], strides = [1, 1]} : vector<112x256xbf16> to vector<16x256xbf16>
    %c0_90 = arith.constant 0 : index
    %c512_91 = arith.constant 512 : index
    %97 = vector.load %arg11[%c0_90, %c512_91] : memref<16x1792xbf16, #tpu.memory_space<vmem>>, vector<16x256xbf16>
    tpu.vector_store %arg11[%c0_90, %c512_91], %96 {strides = array<i32>} : memref<16x1792xbf16, #tpu.memory_space<vmem>>, vector<16x256xbf16>,
    %98 = vector.extract_strided_slice %91 {offsets = [48, 0], sizes = [16, 256], strides = [1, 1]} : vector<112x256xbf16> to vector<16x256xbf16>
    %c0_92 = arith.constant 0 : index
    %c768_93 = arith.constant 768 : index
    %99 = vector.load %arg11[%c0_92, %c768_93] : memref<16x1792xbf16, #tpu.memory_space<vmem>>, vector<16x256xbf16>
    tpu.vector_store %arg11[%c0_92, %c768_93], %98 {strides = array<i32>} : memref<16x1792xbf16, #tpu.memory_space<vmem>>, vector<16x256xbf16>,
    %100 = vector.extract_strided_slice %91 {offsets = [64, 0], sizes = [16, 256], strides = [1, 1]} : vector<112x256xbf16> to vector<16x256xbf16>
    %c0_94 = arith.constant 0 : index
    %c1024_95 = arith.constant 1024 : index
    %101 = vector.load %arg11[%c0_94, %c1024_95] : memref<16x1792xbf16, #tpu.memory_space<vmem>>, vector<16x256xbf16>
    tpu.vector_store %arg11[%c0_94, %c1024_95], %100 {strides = array<i32>} : memref<16x1792xbf16, #tpu.memory_space<vmem>>, vector<16x256xbf16>,
    %102 = vector.extract_strided_slice %91 {offsets = [80, 0], sizes = [16, 256], strides = [1, 1]} : vector<112x256xbf16> to vector<16x256xbf16>
    %c0_96 = arith.constant 0 : index
    %c1280 = arith.constant 1280 : index
    %103 = vector.load %arg11[%c0_96, %c1280] : memref<16x1792xbf16, #tpu.memory_space<vmem>>, vector<16x256xbf16>
    tpu.vector_store %arg11[%c0_96, %c1280], %102 {strides = array<i32>} : memref<16x1792xbf16, #tpu.memory_space<vmem>>, vector<16x256xbf16>,
    %104 = vector.extract_strided_slice %91 {offsets = [96, 0], sizes = [16, 256], strides = [1, 1]} : vector<112x256xbf16> to vector<16x256xbf16>
    %c0_97 = arith.constant 0 : index
    %c1536 = arith.constant 1536 : index
    %105 = vector.load %arg11[%c0_97, %c1536] : memref<16x1792xbf16, #tpu.memory_space<vmem>>, vector<16x256xbf16>
    tpu.vector_store %arg11[%c0_97, %c1536], %104 {strides = array<i32>} : memref<16x1792xbf16, #tpu.memory_space<vmem>>, vector<16x256xbf16>,
    %c0_98 = arith.constant 0 : index
    %c0_99 = arith.constant 0 : index
    %106 = vector.load %arg11[%c0_98, %c0_99] : memref<16x1792xbf16, #tpu.memory_space<vmem>>, vector<16x1792xbf16>
    %c0_100 = arith.constant 0 : index
    %c0_101 = arith.constant 0 : index
    %107 = vector.load %arg4[%c0_100, %c0_101] : memref<1792x128xbf16, #tpu.memory_space<vmem>>, vector<1792x128xbf16>
    %cst_102 = arith.constant dense<0.000000e+00> : vector<16x128xf32>
    %108 = tpu.matmul %106, %107, %cst_102 {dimension_numbers = #tpu.dot_dimension_numbers<[1], [0], [0], [1], [0, 0, 1, 1], [], []>} : vector<16x1792xbf16>, vector<1792x128xbf16>, vector<16x128xf32> -> vector<16x128xf32>
    %c0_103 = arith.constant 0 : index
    %c0_104 = arith.constant 0 : index
    %109 = vector.load %arg7[%c0_103, %c0_104] : memref<1x128xf32, #tpu.memory_space<vmem>>, vector<1x128xf32>
    %110 = vector.broadcast %109 : vector<1x128xf32> to vector<16x128xf32>
    %111 = arith.addf %108, %110 : vector<16x128xf32>
    %c0_105 = arith.constant 0 : index
    %c0_106 = arith.constant 0 : index
    %112 = vector.load %arg8[%c0_105, %c0_106] : memref<16x128xf32, #tpu.memory_space<vmem>>, vector<16x128xf32>
    tpu.vector_store %arg8[%c0_105, %c0_106], %111 {strides = array<i32>} : memref<16x128xf32, #tpu.memory_space<vmem>>, vector<16x128xf32>,
    return
  }
  func.func @transform_0(%arg0: i32) -> (i32, i32, i32) {
    %c0_i32 = arith.constant 0 : i32
    %c0_i32_0 = arith.constant 0 : i32
    %c0_i32_1 = arith.constant 0 : i32
    return %arg0, %c0_i32, %c0_i32_0 : i32, i32, i32
  }
  func.func @transform_1(%arg0: i32) -> (i32, i32, i32) {
    %c0_i32 = arith.constant 0 : i32
    %c0_i32_0 = arith.constant 0 : i32
    %c0_i32_1 = arith.constant 0 : i32
    %c0_i32_2 = arith.constant 0 : i32
    return %c0_i32, %c0_i32_0, %c0_i32_1 : i32, i32, i32
  }
  func.func @transform_2(%arg0: i32) -> (i32, i32, i32) {
    %c0_i32 = arith.constant 0 : i32
    %c0_i32_0 = arith.constant 0 : i32
    %c0_i32_1 = arith.constant 0 : i32
    %c0_i32_2 = arith.constant 0 : i32
    return %c0_i32, %c0_i32_0, %c0_i32_1 : i32, i32, i32
  }
  func.func @transform_3(%arg0: i32) -> (i32, i32) {
    %c0_i32 = arith.constant 0 : i32
    %c0_i32_0 = arith.constant 0 : i32
    %c0_i32_1 = arith.constant 0 : i32
    return %c0_i32, %c0_i32_0 : i32, i32
  }
  func.func @transform_4(%arg0: i32) -> (i32, i32) {
    %c0_i32 = arith.constant 0 : i32
    %c0_i32_0 = arith.constant 0 : i32
    %c0_i32_1 = arith.constant 0 : i32
    return %c0_i32, %c0_i32_0 : i32, i32
  }
  func.func @transform_5(%arg0: i32) -> (i32, i32) {
    %c0_i32 = arith.constant 0 : i32
    %c0_i32_0 = arith.constant 0 : i32
    %c0_i32_1 = arith.constant 0 : i32
    return %c0_i32, %c0_i32_0 : i32, i32
  }
  func.func @transform_6(%arg0: i32) -> (i32, i32) {
    %c0_i32 = arith.constant 0 : i32
    %c0_i32_0 = arith.constant 0 : i32
    %c0_i32_1 = arith.constant 0 : i32
    return %c0_i32, %c0_i32_0 : i32, i32
  }
  func.func @transform_7(%arg0: i32) -> (i32, i32) {
    %c0_i32 = arith.constant 0 : i32
    %c0_i32_0 = arith.constant 0 : i32
    return %arg0, %c0_i32 : i32, i32
  }
}

</mosaic_0001>

<bundles_post_ra>
// kernel: tile.13
= control target key start
LH: loop header
LB: loop body
LE: loop exit
PB: predicated region body
PF: predicated region fallthrough
CT: control target
= control target key end

     0   :  { %s28_s0 = inlined_call_operand.vmem [shape: f32[16], index: 0, kind: input, shape index: {}]   ;;  %s29_s1 = inlined_call_operand.vmem [shape: f32[14,16], index: 1, kind: output, shape index: {}]  }
   0x1   :  { %v4_v0 = vld [vmem:[%s28_s0] ss:$0 sm:$0xff] }
   0x2   :  { %5 = vst [vmem:[%s29_s1] sm:$0xff] %v4_v0  ;;  %8 = vst [vmem:[%s29_s1 + $0x8] sm:$0xff] %v4_v0 }

// kernel: tile.14
= control target key start
LH: loop header
LB: loop body
LE: loop exit
PB: predicated region body
PF: predicated region fallthrough
CT: control target
= control target key end

     0   :  { %s19_s8 = smov 3  ;;  %s75_s9 = smov 112   ;;  %vm4_vm0 = vcmask 130048   ;;  %vm10_vm1 = vcmask 1048448   ;;  %vm16_vm2 = vcmask 917248   ;;  %vm23_vm3 = vcmask 786048   ;;  %s119_s0 = inlined_call_operand.vmem [shape: f32[14,16], index: 0, kind: input, shape index: {}]   ;;  %s120_s1 = inlined_call_operand.vmem [shape: f32[224], index: 1, kind: output, shape index: {}]  }
   0x1   :  { %v61_v0 = vld [vmem:[%s119_s0 + $0x7] sm:$0x1]   ;;  %v63_v1 = vld [vmem:[%s119_s0 + $0x5] ss:$8 sm:%s19_s8]   ;;  %s76_s12 = smov 80   ;;  %s26_s15 = smov 3 }
   0x2   :  { %8 = vrot.lane.b32.xlu0 %v61_v0, %s75_s9  ;;  %21 = vrot.lane.b32.xlu1 %v63_v1, %s76_s12  ;;  %v62_v2 = vld [vmem:[%s119_s0 + $0x6] sm:$0x1]   ;;  %s33_s18 = smov 3  ;;  %s40_s19 = smov 3  ;;  %vm30_vm4 = vcmask 654848   ;;  %vm37_vm5 = vcmask 523648  }
   0x3   :  { %v64_v3 = vld [vmem:[%s119_s0 + $0x4] ss:$8 sm:%s26_s15]   ;;  %s77_s20 = smov 96   ;;  %s78_s21 = smov 64   ;;  %v65_v4 = vld [vmem:[%s119_s0 + $0x3] ss:$8 sm:%s33_s18]  }
   0x4   :  { %s2_s24 = smov 3  ;;  %v66_v5 = vld [vmem:[%s119_s0 + $0x2] ss:$8 sm:%s40_s19]   ;;  %s47_s27 = smov 3  ;;  %vm44_vm6 = vcmask 392448   ;;  %vm51_vm7 = vcmask 261248  }
   0x5   :  { %v3_v6 = vld [vmem:[%s119_s0] ss:$8 sm:%s2_s24]   ;;  %s79_s30 = smov 48   ;;  %s80_s2 = smov 32   ;;  %v67_v7 = vld [vmem:[%s119_s0 + $0x1] ss:$8 sm:%s47_s27]  }
   0x6   :  { %14 = vrot.lane.b32.xlu0 %v62_v2, %s77_s20  ;;  %28 = vrot.lane.b32.xlu1 %v64_v3, %s78_s21  ;;  %5 = vst.msk [vmem:[#allocation0] sm:$0x3] %vm4_vm0, %v3_v6   ;;  %s81_s0 = smov 16  }
   0xa   :  { %35 = vrot.lane.b32.xlu0 %v65_v4, %s79_s30  ;;  %42 = vrot.lane.b32.xlu1 %v66_v5, %s80_s2 }
   0xe   :  { %49 = vrot.lane.b32.xlu0 %v67_v7, %s81_s0 }
  0x74   :  { %v9_v8 = vpop.permute.xlu0 %8   ;;  %v22_v9 = vpop.permute.xlu1 %21  }
  0x75   :  { %11 = vst.msk [vmem:[#allocation0] sm:$0x1] %vm10_vm1, %v9_v8  }
  0x78   :  { %v15_v10 = vpop.permute.xlu0 %14   ;;  %v29_v11 = vpop.permute.xlu1 %28  }
  0x79   :  { %17 = vst.msk [vmem:[#allocation0] sm:$0x1] %vm16_vm2, %v15_v10  }
  0x7a   :  { %24 = vst.msk [vmem:[#allocation0] sm:$0x3] %vm23_vm3, %v22_v9  }
  0x7b   :  { %31 = vst.msk [vmem:[#allocation0] sm:$0x3] %vm30_vm4, %v29_v11  }
  0x7c   :  { %v36_v12 = vpop.permute.xlu0 %35   ;;  %v43_v13 = vpop.permute.xlu1 %42  }
  0x7d   :  { %38 = vst.msk [vmem:[#allocation0] sm:$0x3] %vm37_vm5, %v36_v12  }
  0x7e   :  { %45 = vst.msk [vmem:[#allocation0] sm:$0x3] %vm44_vm6, %v43_v13  }
  0x80   :  { %v50_v14 = vpop.permute.xlu0 %49  }
  0x81   :  { %52 = vst.msk [vmem:[#allocation0] sm:$0x3] %vm51_vm7, %v50_v14  }
  0x88   :  { %v57_v15 = vld [vmem:[#allocation0] sm:$0x3] }
  0x89   :  { %60 = vst [vmem:[%s120_s1] sm:$0x3] %v57_v15 }

// kernel: tile.18
= control target key start
LH: loop header
LB: loop body
LE: loop exit
PB: predicated region body
PF: predicated region fallthrough
CT: control target
= control target key end

     0   :  { %s22_s0 = inlined_call_operand.vmem [shape: f32[32], index: 0, kind: input, shape index: {}]   ;;  %s23_s1 = inlined_call_operand.vmem [shape: f32[7,32], index: 1, kind: output, shape index: {}]  }
   0x1   :  { %v4_v0 = vld [vmem:[%s22_s0] ss:$0 sm:$0xff] }
   0x2   :  { %5 = vst [vmem:[%s23_s1] sm:$0xff] %v4_v0 }

// kernel: tile.19
= control target key start
LH: loop header
LB: loop body
LE: loop exit
PB: predicated region body
PF: predicated region fallthrough
CT: control target
= control target key end

     0   :  { %s13_s8 = smov 3  ;;  %s40_s9 = smov 96   ;;  %vm4_vm0 = vcmask 261120   ;;  %vm10_vm1 = vcmask 1048320   ;;  %vm17_vm2 = vcmask 785920   ;;  %vm24_vm3 = vcmask 523520   ;;  %s68_s0 = inlined_call_operand.vmem [shape: f32[7,32], index: 0, kind: input, shape index: {}]   ;;  %s69_s1 = inlined_call_operand.vmem [shape: f32[224], index: 1, kind: output, shape index: {}]  }
   0x1   :  { %v34_v0 = vld [vmem:[%s68_s0 + $0x3] sm:$0x1]   ;;  %s20_s10 = smov 3  ;;  %v35_v1 = vld [vmem:[%s68_s0 + $0x2] ss:$4 sm:%s13_s8]   ;;  %s2_s15 = smov 3 }
   0x2   :  { %8 = vrot.lane.b32.xlu0 %v34_v0, %s40_s9  ;;  %v36_v2 = vld [vmem:[%s68_s0 + $0x1] ss:$4 sm:%s20_s10]   ;;  %s41_s16 = smov 32  }
   0x3   :  { %22 = vrot.lane.b32.xlu1 %v36_v2, %s41_s16  ;;  %v3_v3 = vld [vmem:[%s68_s0] ss:$4 sm:%s2_s15]   ;;  %s42_s0 = smov 64  }
   0x4   :  { %5 = vst.msk [vmem:[#allocation0] sm:$0x3] %vm4_vm0, %v3_v3  }
   0x6   :  { %15 = vrot.lane.b32.xlu0 %v35_v1, %s42_s0 }
  0x74   :  { %v9_v4 = vpop.permute.xlu0 %8  }
  0x75   :  { %11 = vst.msk [vmem:[#allocation0] sm:$0x1] %vm10_vm1, %v9_v4   ;;  %v23_v5 = vpop.permute.xlu1 %22  }
  0x78   :  { %v16_v6 = vpop.permute.xlu0 %15  }
  0x79   :  { %18 = vst.msk [vmem:[#allocation0] sm:$0x3] %vm17_vm2, %v16_v6  }
  0x7a   :  { %25 = vst.msk [vmem:[#allocation0] sm:$0x3] %vm24_vm3, %v23_v5  }
  0x81   :  { %v30_v7 = vld [vmem:[#allocation0] sm:$0x3] }
  0x82   :  { %33 = vst [vmem:[%s69_s1] sm:$0x3] %v30_v7 }

// kernel: cnn_forward.1
= control target key start
LH: loop header
LB: loop body
LE: loop exit
PB: predicated region body
PF: predicated region fallthrough
CT: control target
= control target key end

     0   :  { %s10395_s24 = smov 0   ;;  %s14464_s0 = inlined_call_operand.vmem [shape: bf16[2,448,160], index: 0, kind: input, shape index: {}]   ;;  %s14465_s1 = inlined_call_operand.vmem [shape: bf16[2,160,256], index: 1, kind: input, shape index: {}]   ;;  %s14466_s2 = inlined_call_operand.vmem [shape: bf16[2,1280,256], index: 2, kind: input, shape index: {}]   ;;  %s14467_s3 = inlined_call_operand.vmem [shape: bf16[1792,128], index: 3, kind: input, shape index: {}]   ;;  %s14468_s4 = inlined_call_operand.vmem [shape: f32[1,256], index: 4, kind: input, shape index: {}]   ;;  %s14469_s5 = inlined_call_operand.vmem [shape: f32[1,256], index: 5, kind: input, shape index: {}]   ;;  %s14470_s6 = inlined_call_operand.vmem [shape: f32[1,128], index: 6, kind: input, shape index: {}]   ;;  %s14471_s7 = inlined_call_operand.vmem [shape: f32[32,128], index: 7, kind: output, shape index: {}]  }
   0x1 LB: > { %s10401_s25 = sadd.s32 4294967295, %s10352_s24   ;;  %p8395_p0 = scmp.ge.s32.totalorder %s10352_s24, 1  ;;  %s10352_s24 = sphi %s10395_s24, %s17_s24  }
   0x2   : > { %p237_p1 = scmp.lt.s32.totalorder %s10352_s24, 3 }
   0x4   : > { %p238_p2 = pnand %p8395_p0, %p237_p1 }
   0x6   : > { %241 = sbr.rel (%p238_p2) target bundleno = 1441 (0x5a1), region = 48 }
   0xb   : > { %v9610_v0 = vld [vmem:[%s14465_s1 + $0x74] ss:$8 sps:$4 sm:$0xff]   ;;  %v9614_v2 = vld [vmem:[%s14465_s1 + $0x70] ss:$8 sps:$4 sm:$0xff]   ;;  %v9616_v4 = vld [vmem:[%s14465_s1 + $0x64] ss:$8 sps:$4 sm:$0xff]  }
   0xc   : > { %v9612_v1 = vld [vmem:[%s14465_s1 + $0x114] ss:$8 sps:$4 sm:$0xff]   ;;  %794 = vmatprep.subr.bf16.mxu0 %v9610_v0  ;;  %v9615_v3 = vld [vmem:[%s14465_s1 + $0x110] ss:$8 sps:$4 sm:$0xff]   ;;  %v9618_v5 = vld [vmem:[%s14465_s1 + $0x104] ss:$8 sps:$4 sm:$0xff]  }
   0xd   : > { %1228 = vmatprep.subr.bf16.mxu1 %v9612_v1  ;;  %795 = vmatpush1.bf16.msra.mxu0 %v9614_v2  ;;  %v9620_v6 = vld [vmem:[%s14465_s1 + $0x60] ss:$8 sps:$4 sm:$0xff]   ;;  %v9622_v8 = vld [vmem:[%s14465_s1 + $0x54] ss:$8 sps:$4 sm:$0xff]   ;;  %v9626_v10 = vld [vmem:[%s14465_s1 + $0x50] ss:$8 sps:$4 sm:$0xff]  }
   0xe   : > { %1229 = vmatpush1.bf16.msra.mxu1 %v9615_v3  ;;  %796 = vmatprep.subr.bf16.mxu0 %v9616_v4  ;;  %v9621_v7 = vld [vmem:[%s14465_s1 + $0x100] ss:$8 sps:$4 sm:$0xff]   ;;  %v9624_v9 = vld [vmem:[%s14465_s1 + $0xf4] ss:$8 sps:$4 sm:$0xff]   ;;  %v9627_v11 = vld [vmem:[%s14465_s1 + $0xf0] ss:$8 sps:$4 sm:$0xff]  }
   0xf   : > { %1230 = vmatprep.subr.bf16.mxu1 %v9618_v5  ;;  %v9628_v12 = vld [vmem:[%s14465_s1 + $0x44] ss:$8 sps:$4 sm:$0xff]   ;;  %v9632_v14 = vld [vmem:[%s14465_s1 + $0x40] ss:$8 sps:$4 sm:$0xff]   ;;  %v9634_v16 = vld [vmem:[%s14465_s1 + $0x34] ss:$8 sps:$4 sm:$0xff]  }
  0x10   : > { %v9630_v13 = vld [vmem:[%s14465_s1 + $0xe4] ss:$8 sps:$4 sm:$0xff]   ;;  %v9633_v15 = vld [vmem:[%s14465_s1 + $0xe0] ss:$8 sps:$4 sm:$0xff]   ;;  %p269_p3 = scmp.lt.s32.totalorder %s10401_s25, 1  ;;  %vm709_vm0 = vcmask 261120  }
  0x11   : > { %797 = vmatpush1.bf16.msra.mxu0 %v9620_v6  ;;  %v9636_v17 = vld [vmem:[%s14465_s1 + $0xd4] ss:$8 sps:$4 sm:$0xff]   ;;  %v9638_v18 = vld [vmem:[%s14465_s1 + $0x30] ss:$8 sps:$4 sm:$0xff]   ;;  %v9640_v20 = vld [vmem:[%s14465_s1 + $0x24] ss:$8 sps:$4 sm:$0xff]  }
  0x12   : > { %1231 = vmatpush1.bf16.msra.mxu1 %v9621_v7  ;;  %798 = vmatprep.subr.bf16.mxu0 %v9622_v8  ;;  %v9639_v19 = vld [vmem:[%s14465_s1 + $0xd0] ss:$8 sps:$4 sm:$0xff]   ;;  %s270_s26 = scalar_select %p269_p3, %s10401_s25, 1  ;;  %v9642_v21 = vld [vmem:[%s14465_s1 + $0xc4] ss:$8 sps:$4 sm:$0xff]  }
  0x13   : > { %1232 = vmatprep.subr.bf16.mxu1 %v9624_v9  ;;  %v9644_v22 = vld [vmem:[%s14465_s1 + $0x20] ss:$8 sps:$4 sm:$0xff]   ;;  %v9646_v24 = vld [vmem:[%s14465_s1 + $0x14] ss:$8 sps:$4 sm:$0xff]   ;;  %v9650_v26 = vld [vmem:[%s14465_s1 + $0x10] ss:$8 sps:$4 sm:$0xff]  }
  0x14   : > { %v9645_v23 = vld [vmem:[%s14465_s1 + $0xc0] ss:$8 sps:$4 sm:$0xff]   ;;  %s9600_s12 = smul.u32 448, %s270_s26  ;;  %v9648_v25 = vld [vmem:[%s14465_s1 + $0xb4] ss:$8 sps:$4 sm:$0xff]   ;;  %s8397_s19 = sshll.u32 %s10401_s25, 1 }
  0x15   : > { %799 = vmatpush1.bf16.msra.mxu0 %v9626_v10  ;;  %v9651_v27 = vld [vmem:[%s14465_s1 + $0xb0] ss:$8 sps:$4 sm:$0xff]   ;;  %v9652_v28 = vld [vmem:[%s14465_s1 + $0x4] ss:$8 sps:$4 sm:$0xff]   ;;  %v9656_v30 = vld [vmem:[%s14465_s1] ss:$8 sps:$4 sm:$0xff]  }
  0x16   : > { %1233 = vmatpush1.bf16.msra.mxu1 %v9627_v11  ;;  %800 = vmatprep.subr.bf16.mxu0 %v9628_v12  ;;  %s10497_s23 = scalar_lea.vmem %s14464_s0, %s9600_s12  ;;  %v9654_v29 = vld [vmem:[%s14465_s1 + $0xa4] ss:$8 sps:$4 sm:$0xff]   ;;  %v9657_v31 = vld [vmem:[%s14465_s1 + $0xa0] ss:$8 sps:$4 sm:$0xff]   ;;  %v9658_v33 = vld [vmem:[%s14465_s1 + $0x94] ss:$8 sps:$4 sm:$0xff]  }
  0x17   : > { %1234 = vmatprep.subr.bf16.mxu1 %v9630_v13  ;;  %v9672_v32 = vld [vmem:[%s10497_s23 + $0x4] ss:$8 sps:$4 sm:$0xff]   ;;  %v9660_v34 = vld [vmem:[%s14465_s1 + $0x134] ss:$8 sps:$4 sm:$0xff]   ;;  %v9662_v35 = vld [vmem:[%s14465_s1 + $0x90] ss:$8 sps:$4 sm:$0xff]  }
  0x18   : > { %8475 = vmatprep.mubr.msk.bf16.mxu0 %vm709_vm0, %v9672_v32  ;;  %8543 = vmatprep.mubr.msk.bf16.mxu1 %vm709_vm0, %v9672_v32  ;;  %v9663_v36 = vld [vmem:[%s14465_s1 + $0x130] ss:$8 sps:$4 sm:$0xff]   ;;  %v9664_v37 = vld [vmem:[%s14465_s1 + $0x84] ss:$8 sps:$4 sm:$0xff]   ;;  %v9668_v39 = vld [vmem:[%s14465_s1 + $0x80] ss:$8 sps:$4 sm:$0xff]  }
  0x19   : > { %801 = vmatpush1.bf16.msra.mxu0 %v9632_v14  ;;  %v9666_v38 = vld [vmem:[%s14465_s1 + $0x124] ss:$8 sps:$4 sm:$0xff]   ;;  %v9669_v40 = vld [vmem:[%s14465_s1 + $0x120] ss:$8 sps:$4 sm:$0xff]   ;;  %v9673_v42 = vld [vmem:[%s10497_s23 + $0x14] ss:$8 sps:$4 sm:$0xff]  }
  0x1a   : > { %1235 = vmatpush1.bf16.msra.mxu1 %v9633_v15  ;;  %802 = vmatprep.subr.bf16.mxu0 %v9634_v16  ;;  %v9670_v41 = vld [vmem:[%s10497_s23] ss:$8 sps:$4 sm:$0xff]   ;;  %v9675_v43 = vld [vmem:[%s10497_s23 + $0x10] ss:$8 sps:$4 sm:$0xff]   ;;  %v9676_v44 = vld [vmem:[%s10497_s23 + $0x24] ss:$8 sps:$4 sm:$0xff]  }
  0x1b   : > { %1236 = vmatprep.subr.bf16.mxu1 %v9636_v17  ;;  %v9726_v45 = vld [vmem:[%s14466_s2 + $0x70] ss:$8 sps:$4 sm:$0xff]   ;;  %v9728_v46 = vld [vmem:[%s14466_s2 + $0x74] ss:$8 sps:$4 sm:$0xff]   ;;  %v9678_v47 = vld [vmem:[%s10497_s23 + $0x20] ss:$8 sps:$4 sm:$0xff]  }
  0x1c   : > { %v9679_v48 = vld [vmem:[%s10497_s23 + $0x34] ss:$8 sps:$4 sm:$0xff]   ;;  %v9730_v49 = vld [vmem:[%s14466_s2 + $0x170] ss:$8 sps:$4 sm:$0xff]   ;;  %v9682_v52 = vld [vmem:[%s10497_s23 + $0x44] ss:$8 sps:$4 sm:$0xff]  }
  0x1d   : > { %803 = vmatpush1.bf16.msra.mxu0 %v9638_v18  ;;  %v9732_v50 = vld [vmem:[%s14466_s2 + $0x174] ss:$8 sps:$4 sm:$0xff]   ;;  %v9681_v51 = vld [vmem:[%s10497_s23 + $0x30] ss:$8 sps:$4 sm:$0xff]   ;;  %v9736_v53 = vld [vmem:[%s14466_s2 + $0x60] ss:$8 sps:$4 sm:$0xff]  }
  0x1e   : > { %1237 = vmatpush1.bf16.msra.mxu1 %v9639_v19  ;;  %804 = vmatprep.subr.bf16.mxu0 %v9640_v20  ;;  %v9738_v54 = vld [vmem:[%s14466_s2 + $0x64] ss:$8 sps:$4 sm:$0xff]   ;;  %v9741_v55 = vld [vmem:[%s14466_s2 + $0x160] ss:$8 sps:$4 sm:$0xff]   ;;  %v9685_v58 = vld [vmem:[%s10497_s23 + $0x54] ss:$8 sps:$4 sm:$0xff]  }
  0x1f   : > { %1238 = vmatprep.subr.bf16.mxu1 %v9642_v21  ;;  %v9743_v56 = vld [vmem:[%s14466_s2 + $0x164] ss:$8 sps:$4 sm:$0xff]   ;;  %v9684_v57 = vld [vmem:[%s10497_s23 + $0x40] ss:$8 sps:$4 sm:$0xff]   ;;  %v9687_v59 = vld [vmem:[%s10497_s23 + $0x50] ss:$8 sps:$4 sm:$0xff]  }
  0x20   : > { %v9688_v60 = vld [vmem:[%s10497_s23 + $0x64] ss:$8 sps:$4 sm:$0xff]   ;;  %v9748_v61 = vld [vmem:[%s14466_s2 + $0x50] ss:$8 sps:$4 sm:$0xff]   ;;  %v9750_v62 = vld [vmem:[%s14466_s2 + $0x54] ss:$8 sps:$4 sm:$0xff]  }
  0x21   : > { %805 = vmatpush1.bf16.msra.mxu0 %v9644_v22  ;;  %v9751_v63 = vld [vmem:[%s14466_s2 + $0x150] ss:$8 sps:$4 sm:$0xff]   ;;  %v9753_v0 = vld [vmem:[%s14466_s2 + $0x154] ss:$8 sps:$4 sm:$0xff]   ;;  %v9690_v1 = vld [vmem:[%s10497_s23 + $0x60] ss:$8 sps:$4 sm:$0xff]  }
  0x22   : > { %1239 = vmatpush1.bf16.msra.mxu1 %v9645_v23  ;;  %806 = vmatprep.subr.bf16.mxu0 %v9646_v24  ;;  %v9691_v2 = vld [vmem:[%s10497_s23 + $0x74] ss:$8 sps:$4 sm:$0xff]   ;;  %v9693_v3 = vld [vmem:[%s10497_s23 + $0x70] ss:$8 sps:$4 sm:$0xff]   ;;  %v9694_v4 = vld [vmem:[%s10497_s23 + $0x84] ss:$8 sps:$4 sm:$0xff]  }
  0x23   : > { %1240 = vmatprep.subr.bf16.mxu1 %v9648_v25  ;;  %v9760_v5 = vld [vmem:[%s14466_s2 + $0x40] ss:$8 sps:$4 sm:$0xff]   ;;  %v9762_v6 = vld [vmem:[%s14466_s2 + $0x44] ss:$8 sps:$4 sm:$0xff]   ;;  %v9697_v10 = vld [vmem:[%s10497_s23 + $0x94] ss:$8 sps:$4 sm:$0xff]  }
  0x24   : > { %v9763_v7 = vld [vmem:[%s14466_s2 + $0x140] ss:$8 sps:$4 sm:$0xff]   ;;  %v9765_v8 = vld [vmem:[%s14466_s2 + $0x144] ss:$8 sps:$4 sm:$0xff]   ;;  %v9699_v11 = vld [vmem:[%s10497_s23 + $0x90] ss:$8 sps:$4 sm:$0xff]  }
  0x25   : > { %807 = vmatpush1.bf16.msra.mxu0 %v9650_v26  ;;  %v9696_v9 = vld [vmem:[%s10497_s23 + $0x80] ss:$8 sps:$4 sm:$0xff]   ;;  %v9700_v12 = vld [vmem:[%s10497_s23 + $0xa4] ss:$8 sps:$4 sm:$0xff]   ;;  %v9771_v13 = vld [vmem:[%s14466_s2 + $0x30] ss:$8 sps:$4 sm:$0xff]  }
  0x26   : > { %1241 = vmatpush1.bf16.msra.mxu1 %v9651_v27  ;;  %808 = vmatprep.subr.bf16.mxu0 %v9652_v28  ;;  %v9773_v14 = vld [vmem:[%s14466_s2 + $0x34] ss:$8 sps:$4 sm:$0xff]   ;;  %v9775_v15 = vld [vmem:[%s14466_s2 + $0x130] ss:$8 sps:$4 sm:$0xff]   ;;  %v9702_v17 = vld [vmem:[%s10497_s23 + $0xa0] ss:$8 sps:$4 sm:$0xff]  }
  0x27   : > { %1242 = vmatprep.subr.bf16.mxu1 %v9654_v29  ;;  %v9777_v16 = vld [vmem:[%s14466_s2 + $0x134] ss:$8 sps:$4 sm:$0xff]   ;;  %v9705_v19 = vld [vmem:[%s10497_s23 + $0xb0] ss:$8 sps:$4 sm:$0xff]   ;;  %v9783_v20 = vld [vmem:[%s14466_s2 + $0x24] ss:$8 sps:$4 sm:$0xff]  }
  0x28   : > { %v9703_v18 = vld [vmem:[%s10497_s23 + $0xb4] ss:$8 sps:$4 sm:$0xff]   ;;  %v9706_v21 = vld [vmem:[%s10497_s23 + $0xc4] ss:$8 sps:$4 sm:$0xff]   ;;  %v9781_v22 = vld [vmem:[%s14466_s2 + $0x20] ss:$8 sps:$4 sm:$0xff]  }
  0x29   : > { %809 = vmatpush1.bf16.msra.mxu0 %v9656_v30  ;;  %v9786_v23 = vld [vmem:[%s14466_s2 + $0x120] ss:$8 sps:$4 sm:$0xff]   ;;  %v9788_v24 = vld [vmem:[%s14466_s2 + $0x124] ss:$8 sps:$4 sm:$0xff]   ;;  %v9792_v25 = vld [vmem:[%s14466_s2 + $0x14] ss:$8 sps:$4 sm:$0xff]  }
  0x2a   : > { %1243 = vmatpush1.bf16.msra.mxu1 %v9657_v31  ;;  %822 = vmatprep.subr.bf16.mxu0 %v9658_v33  ;;  %v9790_v26 = vld [vmem:[%s14466_s2 + $0x10] ss:$8 sps:$4 sm:$0xff]   ;;  %v9708_v27 = vld [vmem:[%s10497_s23 + $0xc0] ss:$8 sps:$4 sm:$0xff]   ;;  %v9709_v28 = vld [vmem:[%s10497_s23 + $0xd4] ss:$8 sps:$4 sm:$0xff]  }
  0x2b   : > { %1256 = vmatprep.subr.bf16.mxu1 %v9660_v34  ;;  %v9795_v29 = vld [vmem:[%s14466_s2 + $0x4] ss:$8 sps:$4 sm:$0xff]   ;;  %v9793_v30 = vld [vmem:[%s14466_s2] ss:$8 sps:$4 sm:$0xff]   ;;  %v9798_v31 = vld [vmem:[%s14466_s2 + $0xf4] ss:$8 sps:$4 sm:$0xff]  }
  0x2c   : > { %v9796_v32 = vld [vmem:[%s14466_s2 + $0xf0] ss:$8 sps:$4 sm:$0xff]   ;;  %v9712_v34 = vld [vmem:[%s10497_s23 + $0xe4] ss:$8 sps:$4 sm:$0xff]   ;;  %p275_p4 = scmp.lt.s32.totalorder %s8397_s19, 3 }
  0x2d   : > { %823 = vmatpush2.bf16.msra.mxu0 %v9662_v35  ;;  %v9711_v33 = vld [vmem:[%s10497_s23 + $0xd0] ss:$8 sps:$4 sm:$0xff]   ;;  %v9804_v35 = vld [vmem:[%s14466_s2 + $0xe4] ss:$8 sps:$4 sm:$0xff]  }
  0x2e   : > { %1257 = vmatpush2.bf16.msra.mxu1 %v9663_v36  ;;  %824 = vmatprep.subr.bf16.mxu0 %v9664_v37  ;;  %v9799_v36 = vld [vmem:[%s14466_s2 + $0x110] ss:$8 sps:$4 sm:$0xff]   ;;  %v9801_v37 = vld [vmem:[%s14466_s2 + $0x114] ss:$8 sps:$4 sm:$0xff]   ;;  %s15159_s19 = smov (!%p275_p4, %s8397_s19), 3 }
  0x2f   : > { %1258 = vmatprep.subr.bf16.mxu1 %v9666_v38  ;;  %v9802_v38 = vld [vmem:[%s14466_s2 + $0xe0] ss:$8 sps:$4 sm:$0xff]   ;;  %s8398_s25 = sshll.u32 %s15159_s19, 3 }
  0x30   : > { %s278_s22 = scalar_lea.vmem %s14471_s7, %s8398_s25 }
  0x31   : > { %825 = vmatpush2.bf16.msra.mxu0 %v9668_v39  ;;  %v9807_v39 = vld [vmem:[%s14466_s2 + $0xd4] ss:$8 sps:$4 sm:$0xff]  }
  0x32   : > { %1259 = vmatpush2.bf16.msra.mxu1 %v9669_v40  ;;  %4118 = vmatprep.subr.bf16.mxu0 %v9728_v46  ;;  %v9805_v40 = vld [vmem:[%s14466_s2 + $0xd0] ss:$8 sps:$4 sm:$0xff]  }
  0x33   : > { %4291 = vmatprep.subr.bf16.mxu1 %v9732_v50  ;;  %v9811_v46 = vld [vmem:[%s14466_s2 + $0xb0] ss:$8 sps:$4 sm:$0xff]   ;;  %v9816_v50 = vld [vmem:[%s14466_s2 + $0x104] ss:$8 sps:$4 sm:$0xff]  }
  0x34   : > { %827 = vmatmul.mubr.bf16.vlgmr.msra.gmra.mxu0 %v9670_v41 }
  0x35   : > { %1261 = vmatmul.mubr.bf16.vlgmr.msra.gmra.mxu1 %v9670_v41  ;;  %8476 = vmatprep.mubr.msk.bf16.mxu0 %vm709_vm0, %v9673_v42  ;;  %v9714_v41 = vld [vmem:[%s10497_s23 + $0xe0] ss:$8 sps:$4 sm:$0xff]  }
  0x36   : > { %8544 = vmatprep.mubr.msk.bf16.mxu1 %vm709_vm0, %v9673_v42  ;;  %4119 = vmatpush1.bf16.msra.mxu0 %v9726_v45  ;;  %v9715_v42 = vld [vmem:[%s10497_s23 + $0xf4] ss:$8 sps:$4 sm:$0xff]  }
  0x37   : > { %4292 = vmatpush1.bf16.msra.mxu1 %v9730_v49  ;;  %4120 = vmatprep.subr.bf16.mxu0 %v9738_v54  ;;  %v9813_v45 = vld [vmem:[%s14466_s2 + $0xb4] ss:$8 sps:$4 sm:$0xff]   ;;  %v9814_v49 = vld [vmem:[%s14466_s2 + $0x100] ss:$8 sps:$4 sm:$0xff]   ;;  %v9820_v54 = vld [vmem:[%s14466_s2 + $0x90] ss:$8 sps:$4 sm:$0xff]  }
  0x38   : > { %4293 = vmatprep.subr.bf16.mxu1 %v9743_v56  ;;  %v9721_v56 = vld [vmem:[%s10497_s23 + $0x114] ss:$8 sps:$4 sm:$0xff]  }
  0x3a   : > { %4121 = vmatpush1.bf16.msra.mxu0 %v9736_v53  ;;  %v9822_v53 = vld [vmem:[%s14466_s2 + $0x94] ss:$8 sps:$4 sm:$0xff]  }
  0x3b   : > { %4294 = vmatpush1.bf16.msra.mxu1 %v9741_v55  ;;  %4122 = vmatprep.subr.bf16.mxu0 %v9750_v62  ;;  %v9720_v55 = vld [vmem:[%s10497_s23 + $0x100] ss:$8 sps:$4 sm:$0xff]   ;;  %v9828_v62 = vld [vmem:[%s14466_s2 + $0x1f4] ss:$8 sps:$4 sm:$0xff]  }
  0x3c   : > { %837 = vmatmul.mubr.bf16.gmra.mxu0 %v9675_v43  ;;  %4295 = vmatprep.subr.bf16.mxu1 %v9753_v0  ;;  %v9733_v0 = vld [vmem:[%s10497_s23 + $0x134] ss:$8 sps:$4 sm:$0xff]  }
  0x3d   : > { %1271 = vmatmul.mubr.bf16.gmra.mxu1 %v9675_v43  ;;  %8477 = vmatprep.mubr.msk.bf16.mxu0 %vm709_vm0, %v9676_v44  ;;  %v9810_v43 = vld [vmem:[%s14466_s2 + $0xc4] ss:$8 sps:$4 sm:$0xff]  }
  0x3e   : > { %8545 = vmatprep.mubr.msk.bf16.mxu1 %vm709_vm0, %v9676_v44  ;;  %4123 = vmatpush1.bf16.msra.mxu0 %v9748_v61  ;;  %v9808_v44 = vld [vmem:[%s14466_s2 + $0xc0] ss:$8 sps:$4 sm:$0xff]   ;;  %v9826_v61 = vld [vmem:[%s14466_s2 + $0x1f0] ss:$8 sps:$4 sm:$0xff]  }
  0x3f   : > { %4296 = vmatpush1.bf16.msra.mxu1 %v9751_v63  ;;  %4124 = vmatprep.subr.bf16.mxu0 %v9762_v6  ;;  %v9729_v63 = vld [vmem:[%s10497_s23 + $0x120] ss:$8 sps:$4 sm:$0xff]   ;;  %v9745_v6 = vld [vmem:[%s10497_s23 + $0x154] ss:$8 sps:$4 sm:$0xff]  }
  0x40   : > { %4297 = vmatprep.subr.bf16.mxu1 %v9765_v8  ;;  %v9754_v8 = vld [vmem:[%s10497_s23 + $0x164] ss:$8 sps:$4 sm:$0xff]  }
  0x42   : > { %4125 = vmatpush1.bf16.msra.mxu0 %v9760_v5  ;;  %v9744_v5 = vld [vmem:[%s10497_s23 + $0x140] ss:$8 sps:$4 sm:$0xff]  }
  0x43   : > { %4298 = vmatpush1.bf16.msra.mxu1 %v9763_v7  ;;  %4126 = vmatprep.subr.bf16.mxu0 %v9773_v14  ;;  %v9747_v7 = vld [vmem:[%s10497_s23 + $0x150] ss:$8 sps:$4 sm:$0xff]   ;;  %v9837_v14 = vld [vmem:[%s14466_s2 + $0x1c4] ss:$8 sps:$4 sm:$0xff]  }
  0x44   : > { %847 = vmatmul.mubr.bf16.gmra.mxu0 %v9678_v47  ;;  %4299 = vmatprep.subr.bf16.mxu1 %v9777_v16  ;;  %v9766_v16 = vld [vmem:[%s10497_s23 + $0x184] ss:$8 sps:$4 sm:$0xff]  }
  0x45   : > { %1281 = vmatmul.mubr.bf16.gmra.mxu1 %v9678_v47  ;;  %8478 = vmatprep.mubr.msk.bf16.mxu0 %vm709_vm0, %v9679_v48  ;;  %v9717_v47 = vld [vmem:[%s10497_s23 + $0xf0] ss:$8 sps:$4 sm:$0xff]  }
  0x46   : > { %8546 = vmatprep.mubr.msk.bf16.mxu1 %vm709_vm0, %v9679_v48  ;;  %4127 = vmatpush1.bf16.msra.mxu0 %v9771_v13  ;;  %v9718_v48 = vld [vmem:[%s10497_s23 + $0x104] ss:$8 sps:$4 sm:$0xff]   ;;  %v9835_v13 = vld [vmem:[%s14466_s2 + $0x1c0] ss:$8 sps:$4 sm:$0xff]  }
  0x47   : > { %4300 = vmatpush1.bf16.msra.mxu1 %v9775_v15  ;;  %4128 = vmatprep.subr.bf16.mxu0 %v9783_v20  ;;  %v9759_v15 = vld [vmem:[%s10497_s23 + $0x170] ss:$8 sps:$4 sm:$0xff]   ;;  %v9769_v20 = vld [vmem:[%s10497_s23 + $0x194] ss:$8 sps:$4 sm:$0xff]  }
  0x48   : > { %4301 = vmatprep.subr.bf16.mxu1 %v9788_v24 }
  0x4a   : > { %4129 = vmatpush1.bf16.msra.mxu0 %v9781_v22 }
  0x4b   : > { %4130 = vmatprep.subr.bf16.mxu0 %v9792_v25  ;;  %4302 = vmatpush1.bf16.msra.mxu1 %v9786_v23  ;;  %v9774_v25 = vld [vmem:[%s10497_s23 + $0x190] ss:$8 sps:$4 sm:$0xff]  }
  0x4c   : > { %857 = vmatmul.mubr.bf16.gmra.mxu0 %v9681_v51  ;;  %4303 = vmatprep.subr.bf16.mxu1 %v9801_v37  ;;  %v9780_v37 = vld [vmem:[%s10497_s23 + $0x1a0] ss:$8 sps:$4 sm:$0xff]  }
  0x4d   : > { %1291 = vmatmul.mubr.bf16.gmra.mxu1 %v9681_v51  ;;  %8479 = vmatprep.mubr.msk.bf16.mxu0 %vm709_vm0, %v9682_v52  ;;  %v9819_v51 = vld [vmem:[%s14466_s2 + $0xa4] ss:$8 sps:$4 sm:$0xff]  }
  0x4e   : > { %8547 = vmatprep.mubr.msk.bf16.mxu1 %vm709_vm0, %v9682_v52  ;;  %4131 = vmatpush1.bf16.msra.mxu0 %v9790_v26  ;;  %v9817_v52 = vld [vmem:[%s14466_s2 + $0xa0] ss:$8 sps:$4 sm:$0xff]   ;;  %v9778_v26 = vld [vmem:[%s10497_s23 + $0x1a4] ss:$8 sps:$4 sm:$0xff]  }
  0x4f   : > { %4132 = vmatprep.subr.bf16.mxu0 %v9795_v29  ;;  %4304 = vmatpush1.bf16.msra.mxu1 %v9799_v36 }
  0x50   : > { %4305 = vmatprep.subr.bf16.mxu1 %v9816_v50 }
  0x52   : > { %4133 = vmatpush1.bf16.msra.mxu0 %v9793_v30 }
  0x53   : > { %4134 = vmatprep.subr.bf16.mxu0 %v9798_v31  ;;  %4306 = vmatpush1.bf16.msra.mxu1 %v9814_v49  ;;  %v9841_v31 = vld [vmem:[%s14466_s2 + $0x1a0] ss:$8 sps:$4 sm:$0xff]  }
  0x54   : > { %867 = vmatmul.mubr.bf16.gmra.mxu0 %v9684_v57  ;;  %4307 = vmatprep.subr.bf16.mxu1 %v9828_v62 }
  0x55   : > { %1301 = vmatmul.mubr.bf16.gmra.mxu1 %v9684_v57  ;;  %8480 = vmatprep.mubr.msk.bf16.mxu0 %vm709_vm0, %v9685_v58  ;;  %v9825_v57 = vld [vmem:[%s14466_s2 + $0x84] ss:$8 sps:$4 sm:$0xff]  }
  0x56   : > { %8548 = vmatprep.mubr.msk.bf16.mxu1 %vm709_vm0, %v9685_v58  ;;  %4135 = vmatpush2.bf16.msra.mxu0 %v9796_v32  ;;  %v9823_v58 = vld [vmem:[%s14466_s2 + $0x80] ss:$8 sps:$4 sm:$0xff]   ;;  %v9843_v32 = vld [vmem:[%s14466_s2 + $0x1a4] ss:$8 sps:$4 sm:$0xff]  }
  0x57   : > { %4136 = vmatprep.subr.bf16.mxu0 %v9804_v35  ;;  %4308 = vmatpush2.bf16.msra.mxu1 %v9826_v61 }
  0x5a   : > { %4137 = vmatpush2.bf16.msra.mxu0 %v9802_v38  ;;  %v9784_v38 = vld [vmem:[%s10497_s23 + $0x1b4] ss:$8 sps:$4 sm:$0xff]  }
  0x5b   : > { %4138 = vmatprep.subr.bf16.mxu0 %v9807_v39 }
  0x5c   : > { %877 = vmatmul.mubr.bf16.gmra.mxu0 %v9687_v59 }
  0x5d   : > { %1311 = vmatmul.mubr.bf16.gmra.mxu1 %v9687_v59  ;;  %8481 = vmatprep.mubr.msk.bf16.mxu0 %vm709_vm0, %v9688_v60  ;;  %v9723_v59 = vld [vmem:[%s10497_s23 + $0x110] ss:$8 sps:$4 sm:$0xff]  }
  0x5e   : > { %8549 = vmatprep.mubr.msk.bf16.mxu1 %vm709_vm0, %v9688_v60  ;;  %4139 = vmatpush2.bf16.msra.mxu0 %v9805_v40  ;;  %v9724_v60 = vld [vmem:[%s10497_s23 + $0x124] ss:$8 sps:$4 sm:$0xff]  }
  0x5f   : > { %4140 = vmatprep.subr.bf16.mxu0 %v9810_v43 }
  0x62   : > { %4141 = vmatpush2.bf16.msra.mxu0 %v9808_v44 }
  0x63   : > { %4142 = vmatprep.subr.bf16.mxu0 %v9813_v45 }
  0x64   : > { %887 = vmatmul.mubr.bf16.gmra.mxu0 %v9690_v1 }
  0x65   : > { %1321 = vmatmul.mubr.bf16.gmra.mxu1 %v9690_v1  ;;  %8482 = vmatprep.mubr.msk.bf16.mxu0 %vm709_vm0, %v9691_v2  ;;  %v9735_v1 = vld [vmem:[%s10497_s23 + $0x130] ss:$8 sps:$4 sm:$0xff]  }
  0x66   : > { %8550 = vmatprep.mubr.msk.bf16.mxu1 %vm709_vm0, %v9691_v2  ;;  %4143 = vmatpush2.bf16.msra.mxu0 %v9811_v46  ;;  %v9739_v2 = vld [vmem:[%s10497_s23 + $0x144] ss:$8 sps:$4 sm:$0xff]  }
  0x67   : > { %4144 = vmatprep.subr.bf16.mxu0 %v9819_v51  ;;  %v10354_v51 = vmov 0  }
  0x6a   : > { %4145 = vmatpush2.bf16.msra.mxu0 %v9817_v52  ;;  %v10870_v52 = vcombine.high %v10354_v51, %v10354_v51 }
  0x6b   : > { %4146 = vmatprep.subr.bf16.mxu0 %v9822_v53  ;;  %v9844_v53 = vld [vmem:[%s14466_s2 + $0x190] ss:$8 sps:$4 sm:$0xff]  }
  0x6c   : > { %897 = vmatmul.mubr.bf16.gmra.mxu0 %v9693_v3  ;;  %14625 = vst [vmem:[#allocation5_spill] sm:$0xff] %v10870_v52 }
  0x6d   : > { %1331 = vmatmul.mubr.bf16.gmra.mxu1 %v9693_v3  ;;  %8483 = vmatprep.mubr.msk.bf16.mxu0 %vm709_vm0, %v9694_v4  ;;  %v9829_v3 = vld [vmem:[%s14466_s2 + $0x1e0] ss:$8 sps:$4 sm:$0xff]  }
  0x6e   : > { %8551 = vmatprep.mubr.msk.bf16.mxu1 %vm709_vm0, %v9694_v4  ;;  %4147 = vmatpush2.bf16.msra.mxu0 %v9820_v54  ;;  %v9831_v4 = vld [vmem:[%s14466_s2 + $0x1e4] ss:$8 sps:$4 sm:$0xff]   ;;  %v9846_v54 = vld [vmem:[%s14466_s2 + $0x194] ss:$8 sps:$4 sm:$0xff]  }
  0x6f   : > { %4148 = vmatprep.subr.bf16.mxu0 %v9825_v57  ;;  %4309 = vmatprep.subr.bf16.mxu1 %v9831_v4 }
  0x70   : > { %4310 = vmatpush2.bf16.msra.mxu1 %v9829_v3 }
  0x72   : > { %4149 = vmatpush2.bf16.msra.mxu0 %v9823_v58 }
  0x74   : > { %907 = vmatmul.mubr.bf16.gmra.mxu0 %v9696_v9 }
  0x75   : > { %1341 = vmatmul.mubr.bf16.gmra.mxu1 %v9696_v9  ;;  %8484 = vmatprep.mubr.msk.bf16.mxu0 %vm709_vm0, %v9697_v10  ;;  %v9832_v9 = vld [vmem:[%s14466_s2 + $0x1d0] ss:$8 sps:$4 sm:$0xff]  }
  0x76   : > { %8552 = vmatprep.mubr.msk.bf16.mxu1 %vm709_vm0, %v9697_v10  ;;  %v9834_v10 = vld [vmem:[%s14466_s2 + $0x1d4] ss:$8 sps:$4 sm:$0xff]  }
  0x77   : > { %4311 = vmatprep.subr.bf16.mxu1 %v9834_v10 }
  0x78   : > { %4312 = vmatpush2.bf16.msra.mxu1 %v9832_v9  ;;  %v9849_v9 = vld [vmem:[%s14466_s2 + $0x184] ss:$8 sps:$4 sm:$0xff]  }
  0x79   : > { %4313 = vmatprep.subr.bf16.mxu1 %v9837_v14 }
  0x7c   : > { %917 = vmatmul.mubr.bf16.gmra.mxu0 %v9699_v11  ;;  %4314 = vmatpush2.bf16.msra.mxu1 %v9835_v13 }
  0x7d   : > { %1351 = vmatmul.mubr.bf16.gmra.mxu1 %v9699_v11  ;;  %8485 = vmatprep.mubr.msk.bf16.mxu0 %vm709_vm0, %v9700_v12  ;;  %v9756_v11 = vld [vmem:[%s10497_s23 + $0x160] ss:$8 sps:$4 sm:$0xff]  }
  0x7e   : > { %8553 = vmatprep.mubr.msk.bf16.mxu1 %vm709_vm0, %v9700_v12  ;;  %v9757_v12 = vld [vmem:[%s10497_s23 + $0x174] ss:$8 sps:$4 sm:$0xff]  }
  0x84   : > { %927 = vmatmul.mubr.bf16.gmra.mxu0 %v9702_v17 }
  0x85   : > { %1361 = vmatmul.mubr.bf16.gmra.mxu1 %v9702_v17  ;;  %8486 = vmatprep.mubr.msk.bf16.mxu0 %vm709_vm0, %v9703_v18  ;;  %v9838_v17 = vld [vmem:[%s14466_s2 + $0x1b0] ss:$8 sps:$4 sm:$0xff]  }
  0x86   : > { %8554 = vmatprep.mubr.msk.bf16.mxu1 %vm709_vm0, %v9703_v18  ;;  %v9840_v18 = vld [vmem:[%s14466_s2 + $0x1b4] ss:$8 sps:$4 sm:$0xff]  }
  0x87   : > { %4315 = vmatprep.subr.bf16.mxu1 %v9840_v18 }
  0x88   : > { %4316 = vmatpush2.bf16.msra.mxu1 %v9838_v17  ;;  %v9852_v17 = vld [vmem:[%s14466_s2 + $0x274] ss:$8 sps:$4 sm:$0xff]  }
  0x89   : > { %4317 = vmatprep.subr.bf16.mxu1 %v9843_v32  ;;  %4464 = vmatprep.subr.bf16.mxu0 %v9852_v17  ;;  %v1683_v17 = vlaneseq }
  0x8c   : > { %937 = vmatmul.mubr.bf16.gmra.mxu0 %v9705_v19  ;;  %4318 = vmatpush2.bf16.msra.mxu1 %v9841_v31  ;;  %v9855_v31 = vld [vmem:[%s14466_s2 + $0x264] ss:$8 sps:$4 sm:$0xff]  }
  0x8d   : > { %1371 = vmatmul.mubr.bf16.gmra.mxu1 %v9705_v19  ;;  %8487 = vmatprep.mubr.msk.bf16.mxu0 %vm709_vm0, %v9706_v21  ;;  %v9768_v19 = vld [vmem:[%s10497_s23 + $0x180] ss:$8 sps:$4 sm:$0xff]  }
  0x8e   : > { %8555 = vmatprep.mubr.msk.bf16.mxu1 %vm709_vm0, %v9706_v21  ;;  %4319 = vmatprep.subr.bf16.mxu1 %v9846_v54  ;;  %v9861_v54 = vld [vmem:[%s14466_s2 + $0x254] ss:$8 sps:$4 sm:$0xff]  }
  0x90   : > { %4320 = vmatpush2.bf16.msra.mxu1 %v9844_v53 }
  0x91   : > { %4321 = vmatprep.subr.bf16.mxu1 %v9849_v9 }
  0x94   : > { %947 = vmatmul.mubr.bf16.gmra.mxu0 %v9708_v27 }
  0x95   : > { %1381 = vmatmul.mubr.bf16.gmra.mxu1 %v9708_v27  ;;  %8488 = vmatprep.mubr.msk.bf16.mxu0 %vm709_vm0, %v9709_v28 }
  0x96   : > { %8556 = vmatprep.mubr.msk.bf16.mxu1 %vm709_vm0, %v9709_v28 }
  0x9c   : > { %957 = vmatmul.mubr.bf16.gmra.mxu0 %v9711_v33 }
  0x9d   : > { %1391 = vmatmul.mubr.bf16.gmra.mxu1 %v9711_v33  ;;  %8489 = vmatprep.mubr.msk.bf16.mxu0 %vm709_vm0, %v9712_v34 }
  0x9e   : > { %8557 = vmatprep.mubr.msk.bf16.mxu1 %vm709_vm0, %v9712_v34 }
  0xa4   : > { %967 = vmatmul.mubr.bf16.gmra.mxu0 %v9714_v41 }
  0xa5   : > { %1401 = vmatmul.mubr.bf16.gmra.mxu1 %v9714_v41  ;;  %8490 = vmatprep.mubr.msk.bf16.mxu0 %vm709_vm0, %v9715_v42 }
  0xa6   : > { %8558 = vmatprep.mubr.msk.bf16.mxu1 %vm709_vm0, %v9715_v42 }
  0xac   : > { %977 = vmatmul.mubr.bf16.gmra.mxu0 %v9717_v47 }
  0xad   : > { %1411 = vmatmul.mubr.bf16.gmra.mxu1 %v9717_v47  ;;  %8491 = vmatprep.mubr.msk.bf16.mxu0 %vm709_vm0, %v9718_v48 }
  0xae   : > { %8559 = vmatprep.mubr.msk.bf16.mxu1 %vm709_vm0, %v9718_v48  ;;  %v9789_v48 = vld [vmem:[%s10497_s23 + $0x1b0] ss:$8 sps:$4 sm:$0xff]  }
  0xb4   : > { %987 = vmatmul.mubr.bf16.gmra.mxu0 %v9720_v55 }
  0xb5   : > { %1421 = vmatmul.mubr.bf16.gmra.mxu1 %v9720_v55  ;;  %8492 = vmatprep.mubr.msk.bf16.mxu0 %vm709_vm0, %v9721_v56 }
  0xb6   : > { %8560 = vmatprep.mubr.msk.bf16.mxu1 %vm709_vm0, %v9721_v56 }
  0xbc   : > { %997 = vmatmul.mubr.bf16.gmra.mxu0 %v9723_v59 }
  0xbd   : > { %1431 = vmatmul.mubr.bf16.gmra.mxu1 %v9723_v59  ;;  %8493 = vmatprep.mubr.msk.bf16.mxu0 %vm709_vm0, %v9724_v60 }
  0xbe   : > { %8561 = vmatprep.mubr.msk.bf16.mxu1 %vm709_vm0, %v9724_v60 }
  0xc4   : > { %1007 = vmatmul.mubr.bf16.gmra.mxu0 %v9729_v63 }
  0xc5   : > { %1441 = vmatmul.mubr.bf16.gmra.mxu1 %v9729_v63  ;;  %8494 = vmatprep.mubr.msk.bf16.mxu0 %vm709_vm0, %v9733_v0 }
  0xc6   : > { %8562 = vmatprep.mubr.msk.bf16.mxu1 %vm709_vm0, %v9733_v0  ;;  %v10898_v0 = vcombine.low %v10354_v51, %v10354_v51 }
  0xc8   : > { %14626 = vst [vmem:[#allocation6_spill] sm:$0xff] %v10898_v0 }
  0xcc   : > { %1017 = vmatmul.mubr.bf16.gmra.mxu0 %v9735_v1 }
  0xcd   : > { %1451 = vmatmul.mubr.bf16.gmra.mxu1 %v9735_v1  ;;  %8495 = vmatprep.mubr.msk.bf16.mxu0 %vm709_vm0, %v9739_v2 }
  0xce   : > { %8563 = vmatprep.mubr.msk.bf16.mxu1 %vm709_vm0, %v9739_v2 }
  0xd4   : > { %1027 = vmatmul.mubr.bf16.gmra.mxu0 %v9744_v5 }
  0xd5   : > { %1461 = vmatmul.mubr.bf16.gmra.mxu1 %v9744_v5  ;;  %8496 = vmatprep.mubr.msk.bf16.mxu0 %vm709_vm0, %v9745_v6  ;;  %v9864_v5 = vld [vmem:[%s14466_s2 + $0x244] ss:$8 sps:$4 sm:$0xff]  }
  0xd6   : > { %8564 = vmatprep.mubr.msk.bf16.mxu1 %vm709_vm0, %v9745_v6 }
  0xdc   : > { %1037 = vmatmul.mubr.bf16.gmra.mxu0 %v9747_v7 }
  0xdd   : > { %1471 = vmatmul.mubr.bf16.gmra.mxu1 %v9747_v7  ;;  %8497 = vmatprep.mubr.msk.bf16.mxu0 %vm709_vm0, %v9754_v8 }
  0xde   : > { %8565 = vmatprep.mubr.msk.bf16.mxu1 %vm709_vm0, %v9754_v8  ;;  %v9847_v8 = vld [vmem:[%s14466_s2 + $0x180] ss:$8 sps:$4 sm:$0xff]  }
  0xdf   : > { %4322 = vmatpush2.bf16.msra.mxu1 %v9847_v8 }
  0xe4   : > { %1047 = vmatmul.mubr.bf16.gmra.mxu0 %v9756_v11 }
  0xe5   : > { %1481 = vmatmul.mubr.bf16.gmra.mxu1 %v9756_v11  ;;  %8498 = vmatprep.mubr.msk.bf16.mxu0 %vm709_vm0, %v9757_v12 }
  0xe6   : > { %8566 = vmatprep.mubr.msk.bf16.mxu1 %vm709_vm0, %v9757_v12 }
  0xec   : > { %1057 = vmatmul.mubr.bf16.gmra.mxu0 %v9759_v15 }
  0xed   : > { %1491 = vmatmul.mubr.bf16.gmra.mxu1 %v9759_v15  ;;  %8499 = vmatprep.mubr.msk.bf16.mxu0 %vm709_vm0, %v9766_v16 }
  0xee   : > { %8567 = vmatprep.mubr.msk.bf16.mxu1 %vm709_vm0, %v9766_v16  ;;  %v9858_v16 = vld [vmem:[%s14466_s2 + $0x374] ss:$8 sps:$4 sm:$0xff]  }
  0xef   : > { %4637 = vmatprep.subr.bf16.mxu1 %v9858_v16  ;;  %v1653_v16 = vld [vmem:[%s14468_s4] sm:$0x3] }
  0xf4   : > { %v10807_v21 = vpop.f32.mrf.mxu0  ;;  %1067 = vmatmul.mubr.bf16.gmra.mxu0 %v9768_v19 }
  0xf5   : > { %v10809_v22 = vpop.f32.mrf.mxu1  ;;  %1501 = vmatmul.mubr.bf16.gmra.mxu1 %v9768_v19  ;;  %8500 = vmatprep.mubr.msk.bf16.mxu0 %vm709_vm0, %v9769_v20 }
  0xf6   : > { %8568 = vmatprep.mubr.msk.bf16.mxu1 %vm709_vm0, %v9769_v20  ;;  %v10813_v23 = vpop.f32.mrf.mxu0  ;;  %v9850_v20 = vld [vmem:[%s14466_s2 + $0x270] ss:$8 sps:$4 sm:$0xff]  }
  0xf7   : > { %v10815_v24 = vpop.f32.mrf.mxu1 }
  0xf8   : > { %v10819_v27 = vpop.f32.mrf.mxu0 }
  0xf9   : > { %v10821_v28 = vpop.f32.mrf.mxu1 }
  0xfa   : > { %v10823_v29 = vpop.f32.mrf.mxu0 }
  0xfb   : > { %v10825_v30 = vpop.f32.mrf.mxu1 }
  0xfc   : > { %v10833_v33 = vpop.f32.mrf.mxu0  ;;  %1077 = vmatmul.mubr.bf16.gmra.mxu0 %v9774_v25 }
  0xfd   : > { %v10835_v34 = vpop.f32.mrf.mxu1  ;;  %1511 = vmatmul.mubr.bf16.gmra.mxu1 %v9774_v25  ;;  %8501 = vmatprep.mubr.msk.bf16.mxu0 %vm709_vm0, %v9778_v26 }
  0xfe   : > { %8569 = vmatprep.mubr.msk.bf16.mxu1 %vm709_vm0, %v9778_v26  ;;  %v10839_v35 = vpop.f32.mrf.mxu0 }
  0xff   : > { %v10841_v36 = vpop.f32.mrf.mxu1 }
 0x100   : > { %v10845_v39 = vpop.f32.mrf.mxu0 }
 0x101   : > { %v10847_v40 = vpop.f32.mrf.mxu1 }
 0x102   : > { %v10849_v41 = vpop.f32.mrf.mxu0 }
 0x103   : > { %v10851_v42 = vpop.f32.mrf.mxu1 }
 0x104   : > { %v10853_v43 = vpop.f32.mrf.mxu0  ;;  %1087 = vmatmul.mubr.bf16.gmra.mxu0 %v9780_v37 }
 0x105   : > { %v10855_v44 = vpop.f32.mrf.mxu1  ;;  %1521 = vmatmul.mubr.bf16.gmra.mxu1 %v9780_v37  ;;  %8502 = vmatprep.mubr.msk.bf16.mxu0 %vm709_vm0, %v9784_v38 }
 0x106   : > { %8570 = vmatprep.mubr.msk.bf16.mxu1 %vm709_vm0, %v9784_v38  ;;  %v10861_v46 = vpop.f32.mrf.mxu0  ;;  %v9853_v38 = vld [vmem:[%s14466_s2 + $0x260] ss:$8 sps:$4 sm:$0xff]  }
 0x107   : > { %v10863_v47 = vpop.f32.mrf.mxu1 }
 0x108   : > { %v10866_v49 = vpop.f32.mrf.mxu0 }
 0x109   : > { %v10868_v50 = vpop.f32.mrf.mxu1 }
 0x10a   : > { %v10878_v55 = vpop.f32.mrf.mxu0 }
 0x10b   : > { %v10880_v56 = vpop.f32.mrf.mxu1 }
 0x10c   : > { %v10882_v57 = vpop.f32.mrf.mxu0  ;;  %1097 = vmatmul.mubr.bf16.gmra.mxu0 %v9789_v48 }
 0x10d   : > { %v10884_v58 = vpop.f32.mrf.mxu1  ;;  %1531 = vmatmul.mubr.bf16.gmra.mxu1 %v9789_v48  ;;  %4150 = vmatprep.mubr.bf16.mxu0 %v10870_v52 }
 0x10e   : > { %v10889_v60 = vpop.f32.mrf.mxu0  ;;  %4323 = vmatprep.mubr.bf16.mxu1 %v10870_v52 }
 0x10f   : > { %v10891_v61 = vpop.f32.mrf.mxu1 }
 0x110   : > { %v10894_v62 = vpop.f32.mrf.mxu0 }
 0x111   : > { %v10896_v63 = vpop.f32.mrf.mxu1 }
 0x112   : > { %v10900_v1 = vpop.f32.mrf.mxu0 }
 0x113   : > { %v10902_v2 = vpop.f32.mrf.mxu1 }
 0x114   : > { %v10904_v3 = vpop.f32.mrf.mxu0  ;;  %4151 = vmatmul.mubr.bf16.vlgmr.msra.gmra.mxu0 %v10898_v0 }
 0x115   : > { %v10906_v4 = vpop.f32.mrf.mxu1  ;;  %4324 = vmatmul.mubr.bf16.vlgmr.msra.gmra.mxu1 %v10898_v0  ;;  %4465 = vmatpush1.bf16.msra.mxu0 %v9850_v20  ;;  %v9859_v20 = vld [vmem:[%s14466_s2 + $0x250] ss:$8 sps:$4 sm:$0xff]   ;;  %v10991_v0 = vshrl.u32 %v1683_v17, 7  ;;  %v9870_v17 = vld [vmem:[%s14466_s2 + $0x234] ss:$8 sps:$4 sm:$0xff]  }
 0x116   : > { %v10911_v6 = vpop.f32.mrf.mxu0  ;;  %4466 = vmatprep.subr.bf16.mxu0 %v9855_v31 }
 0x117   : > { %v10913_v7 = vpop.f32.mrf.mxu1  ;;  %14635 = vst [vmem:[#allocation15_spill] sm:$0xff] %v10991_v0 }
 0x118   : > { %v10921_v10 = vpop.f32.mrf.mxu0 }
 0x119   : > { %v10923_v11 = vpop.f32.mrf.mxu1  ;;  %4467 = vmatpush1.bf16.msra.mxu0 %v9853_v38 }
 0x11a   : > { %v10925_v12 = vpop.f32.mrf.mxu0  ;;  %4468 = vmatprep.subr.bf16.mxu0 %v9861_v54  ;;  %v9862_v54 = vld [vmem:[%s14466_s2 + $0x240] ss:$8 sps:$4 sm:$0xff]  }
 0x11b   : > { %v10927_v13 = vpop.f32.mrf.mxu1 }
 0x11c   : > { %v10929_v14 = vpop.f32.mrf.mxu0 }
 0x11d   : > { %v10931_v15 = vpop.f32.mrf.mxu1  ;;  %4469 = vmatpush1.bf16.msra.mxu0 %v9859_v20  ;;  %v9856_v20 = vld [vmem:[%s14466_s2 + $0x370] ss:$8 sps:$4 sm:$0xff]  }
 0x11e   : > { %v10939_v18 = vpop.f32.mrf.mxu0  ;;  %4470 = vmatprep.subr.bf16.mxu0 %v9864_v5  ;;  %4638 = vmatpush1.bf16.msra.mxu1 %v9856_v20  ;;  %v9868_v5 = vld [vmem:[%s14466_s2 + $0x230] ss:$8 sps:$4 sm:$0xff]   ;;  %v1543_v20 = vmax.f32 %v10819_v27, %v10821_v28  ;;  %v9871_v27 = vld [vmem:[%s14466_s2 + $0x220] ss:$8 sps:$4 sm:$0xff]   ;;  %v1544_v28 = vmax.f32 %v10823_v29, %v10825_v30  ;;  %v9879_v29 = vld [vmem:[%s14466_s2 + $0x214] ss:$8 sps:$4 sm:$0xff]  }
 0x11f   : > { %v10941_v19 = vpop.f32.mrf.mxu1 }
 0x120   : > { %v10946_v25 = vpop.f32.mrf.mxu0 }
 0x121   : > { %v10948_v26 = vpop.f32.mrf.mxu1  ;;  %4471 = vmatpush1.bf16.msra.mxu0 %v9862_v54  ;;  %v1542_v54 = vmax.f32 %v10813_v23, %v10815_v24  ;;  %v9873_v24 = vld [vmem:[%s14466_s2 + $0x224] ss:$8 sps:$4 sm:$0xff]  }
 0x122   : > { %v10953_v32 = vpop.f32.mrf.mxu0  ;;  %4472 = vmatprep.subr.bf16.mxu0 %v9870_v17 }
 0x123   : > { %v10955_v37 = vpop.f32.mrf.mxu1 }
 0x124   : > { %v10960_v48 = vpop.f32.mrf.mxu0 }
 0x125   : > { %14627 = vst [vmem:[#allocation7_spill] sm:$0xff] %v10960_v48  ;;  %v10962_v51 = vpop.f32.mrf.mxu1  ;;  %4473 = vmatpush1.bf16.msra.mxu0 %v9868_v5 }
 0x126   : > { %14628 = vst [vmem:[#allocation8_spill] sm:$0xff] %v10962_v51  ;;  %v10969_v8 = vpop.f32.mrf.mxu0  ;;  %v14636_v51 = vsub.s32 1, %v10991_v0  ;;  %4474 = vmatprep.subr.bf16.mxu0 %v9873_v24  ;;  %v9877_v24 = vld [vmem:[%s14466_s2 + $0x210] ss:$8 sps:$4 sm:$0xff]  }
 0x127   : > { %14629 = vst [vmem:[#allocation9_spill] sm:$0xff] %v10969_v8  ;;  %v10971_v9 = vpop.f32.mrf.mxu1 }
 0x128   : > { %14630 = vst [vmem:[#allocation10_spill] sm:$0xff] %v10971_v9  ;;  %v10978_v38 = vpop.f32.mrf.mxu0  ;;  %v11021_v48 = vrot.slane %v1653_v16, %v14636_v51 }
 0x129   : > { %14631 = vst [vmem:[#allocation11_spill] sm:$0xff] %v10978_v38  ;;  %v10980_v53 = vpop.f32.mrf.mxu1  ;;  %4475 = vmatpush1.bf16.msra.mxu0 %v9871_v27  ;;  %v1545_v27 = vmax.f32 %v10833_v33, %v10835_v34  ;;  %v9880_v33 = vld [vmem:[%s14466_s2 + $0x200] ss:$8 sps:$4 sm:$0xff]   ;;  %v1548_v34 = vmax.f32 %v10849_v41, %v10851_v42 }
 0x12a   : > { %14632 = vst [vmem:[#allocation12_spill] sm:$0xff] %v10980_v53  ;;  %v10987_v59 = vpop.f32.mrf.mxu0  ;;  %4476 = vmatprep.subr.bf16.mxu0 %v9879_v29 }
 0x12b   : > { %14633 = vst [vmem:[#allocation13_spill] sm:$0xff] %v10987_v59  ;;  %v10989_v45 = vpop.f32.mrf.mxu1 }
 0x12c   : > { %14634 = vst [vmem:[#allocation14_spill] sm:$0xff] %v10989_v45  ;;  %v898_v31 = vpop.f32.mrf.mxu0 }
 0x12d   : > { %v1332_v52 = vpop.f32.mrf.mxu1  ;;  %4477 = vmatpush1.bf16.msra.mxu0 %v9877_v24 }
 0x12e   : > { %v1569_v38 = vmax.f32 %v898_v31, %v1332_v52  ;;  %v900_v45 = vpop.f32.mrf.mxu0  ;;  %v1541_v52 = vmax.f32 %v10807_v21, %v10809_v22 }
 0x12f   : > { %v1334_v9 = vpop.f32.mrf.mxu1 }
 0x130   : > { %v1570_v53 = vmax.f32 %v900_v45, %v1334_v9  ;;  %v902_v31 = vpop.f32.mrf.mxu0  ;;  %v1654_v45 = vmax.f32 %v1541_v52, %v1569_v38  ;;  %v14637_v9 = vsub.s32 0, %v10991_v0  ;;  %v9867_v38 = vld [vmem:[%s14466_s2 + $0x364] ss:$8 sps:$4 sm:$0xff]   ;;  %v9948_v0 = vld [vmem:[%s14466_s2 + $0x474] ss:$8 sps:$4 sm:$0xff]  }
 0x131   : > { %v1336_v59 = vpop.f32.mrf.mxu1  ;;  %4639 = vmatprep.subr.bf16.mxu1 %v9867_v38 }
 0x132   : > { %v1655_v8 = vmax.f32 %v1542_v54, %v1570_v53  ;;  %v1571_v23 = vmax.f32 %v902_v31, %v1336_v59  ;;  %v11028_v21 = vrot.slane %v1653_v16, %v14637_v9  ;;  %v904_v22 = vpop.f32.mrf.mxu0  ;;  %v9865_v53 = vld [vmem:[%s14466_s2 + $0x360] ss:$8 sps:$4 sm:$0xff]  }
 0x133   : > { %v1338_v17 = vpop.f32.mrf.mxu1  ;;  %4640 = vmatpush1.bf16.msra.mxu1 %v9865_v53 }
 0x134   : > { %v1656_v51 = vmax.f32 %v1543_v20, %v1571_v23  ;;  %v1572_v59 = vmax.f32 %v904_v22, %v1338_v17  ;;  %v908_v5 = vpop.f32.mrf.mxu0  ;;  %v1694_v16 = vadd.f32 %v11021_v48, %v1655_v8  ;;  %v1693_v30 = vadd.f32 %v11028_v21, %v1654_v45 }
 0x135   : > { %v1342_v54 = vpop.f32.mrf.mxu1  ;;  %v1546_v8 = vmax.f32 %v10839_v35, %v10841_v36  ;;  %v1547_v35 = vmax.f32 %v10845_v39, %v10847_v40 }
 0x136   : > { %v1695_v52 = vadd.f32 %v11028_v21, %v1656_v51  ;;  %v1657_v31 = vmax.f32 %v1544_v28, %v1572_v59  ;;  %v1573_v20 = vmax.f32 %v908_v5, %v1342_v54  ;;  %v910_v23 = vpop.f32.mrf.mxu0  ;;  %v1722_v59 = vmax.f32 %v1694_v16, 0.0  ;;  %v9882_v5 = vld [vmem:[%s14466_s2 + $0x204] ss:$8 sps:$4 sm:$0xff]  }
 0x137   : > { %v1344_v9 = vpop.f32.mrf.mxu1  ;;  %v1721_v36 = vmax.f32 %v1693_v30, 0.0  ;;  %4478 = vmatprep.subr.bf16.mxu0 %v9882_v5  ;;  %v9874_v30 = vld [vmem:[%s14466_s2 + $0x350] ss:$8 sps:$4 sm:$0xff]  }
 0x138   : > { %v1696_v22 = vadd.f32 %v11021_v48, %v1657_v31  ;;  %v1574_v17 = vmax.f32 %v910_v23, %v1344_v9  ;;  %v1723_v28 = vmax.f32 %v1695_v52, 0.0  ;;  %v912_v45 = vpop.f32.mrf.mxu0  ;;  %v1658_v54 = vmax.f32 %v1545_v27, %v1573_v20  ;;  %v9876_v20 = vld [vmem:[%s14466_s2 + $0x354] ss:$8 sps:$4 sm:$0xff]   ;;  %4479 = vmatpush1.bf16.msra.mxu0 %v9880_v33  ;;  %v9894_v33 = vld [vmem:[%s14466_s2 + $0x2e4] ss:$8 sps:$4 sm:$0xff]  }
 0x139   : > { %v1346_v51 = vpop.f32.mrf.mxu1  ;;  %4641 = vmatprep.subr.bf16.mxu1 %v9876_v20  ;;  %v9885_v20 = vld [vmem:[%s14466_s2 + $0x344] ss:$8 sps:$4 sm:$0xff]  }
 0x13a   : > { %v1724_v53 = vmax.f32 %v1696_v22, 0.0  ;;  %v1659_v38 = vmax.f32 %v1546_v8, %v1574_v17  ;;  %v1575_v31 = vmax.f32 %v912_v45, %v1346_v51  ;;  %v914_v29 = vpop.f32.mrf.mxu0  ;;  %v11067_v9 = vpack.c.bf16 %v1723_v28, %v1721_v36  ;;  %v9888_v8 = vld [vmem:[%s14466_s2 + $0x2f4] ss:$8 sps:$4 sm:$0xff]   ;;  %v9886_v45 = vld [vmem:[%s14466_s2 + $0x2f0] ss:$8 sps:$4 sm:$0xff]   ;;  %4642 = vmatpush1.bf16.msra.mxu1 %v9874_v30 }
 0x13b   : > { %v1348_v23 = vpop.f32.mrf.mxu1  ;;  %v1697_v22 = vadd.f32 %v11028_v21, %v1658_v54  ;;  %4480 = vmatprep.subr.bf16.mxu0 %v9888_v8  ;;  %v1551_v54 = vmax.f32 %v10866_v49, %v10868_v50  ;;  %v14641_v49 = vmax.f32 %v10853_v43, %v10855_v44  ;;  %v9883_v30 = vld [vmem:[%s14466_s2 + $0x340] ss:$8 sps:$4 sm:$0xff]   ;;  %4643 = vmatprep.subr.bf16.mxu1 %v9885_v20  ;;  %v9897_v44 = vld [vmem:[%s14466_s2 + $0x2d4] ss:$8 sps:$4 sm:$0xff]  }
 0x13c   : > { %v11065_v16 = vpack.c.bf16 %v1724_v53, %v1722_v59  ;;  %v1576_v52 = vmax.f32 %v914_v29, %v1348_v23  ;;  %14639 = vst [vmem:[#allocation17_spill] sm:$0xff] %v11067_v9  ;;  %v1660_v24 = vmax.f32 %v1547_v35, %v1575_v31  ;;  %v918_v39 = vpop.f32.mrf.mxu0  ;;  %v1698_v41 = vadd.f32 %v11021_v48, %v1659_v38 }
 0x13d   : > { %v1352_v40 = vpop.f32.mrf.mxu1  ;;  %v1550_v38 = vmax.f32 %v10861_v46, %v10863_v47  ;;  %4481 = vmatpush2.bf16.msra.mxu0 %v9886_v45  ;;  %v9892_v46 = vld [vmem:[%s14466_s2 + $0x2e0] ss:$8 sps:$4 sm:$0xff]  }
 0x13e   : > { %14638 = vst [vmem:[#allocation16_spill] sm:$0xff] %v11065_v16  ;;  %v1661_v42 = vmax.f32 %v1548_v34, %v1576_v52  ;;  %4160 = vmatprep.mubr.bf16.mxu0 %v11065_v16  ;;  %v1699_v17 = vadd.f32 %v11028_v21, %v1660_v24  ;;  %v920_v27 = vpop.f32.mrf.mxu0  ;;  %v1577_v59 = vmax.f32 %v918_v39, %v1352_v40  ;;  %v1726_v31 = vmax.f32 %v1698_v41, 0.0 }
 0x13f   : > { %v1354_v28 = vpop.f32.mrf.mxu1  ;;  %4161 = vmatmul.mubr.bf16.gmra.mxu0 %v11067_v9  ;;  %v1725_v34 = vmax.f32 %v1697_v22, 0.0  ;;  %4482 = vmatprep.subr.bf16.mxu0 %v9894_v33  ;;  %v1552_v41 = vmax.f32 %v10878_v55, %v10880_v56  ;;  %v9895_v56 = vld [vmem:[%s14466_s2 + $0x2d0] ss:$8 sps:$4 sm:$0xff]  }
 0x140   : > { %v1700_v51 = vadd.f32 %v11021_v48, %v1661_v42  ;;  %v1578_v53 = vmax.f32 %v920_v27, %v1354_v28  ;;  %v1727_v5 = vmax.f32 %v1699_v17, 0.0  ;;  %v922_v35 = vpop.f32.mrf.mxu0  ;;  %v1662_v50 = vmax.f32 %v14641_v49, %v1577_v59  ;;  %4644 = vmatpush1.bf16.msra.mxu1 %v9883_v30 }
 0x141   : > { %v1356_v36 = vpop.f32.mrf.mxu1  ;;  %4483 = vmatpush2.bf16.msra.mxu0 %v9892_v46  ;;  %v14643_v46 = vmax.f32 %v10882_v57, %v10884_v58  ;;  %v9906_v58 = vld [vmem:[%s14466_s2 + $0x2b4] ss:$8 sps:$4 sm:$0xff]  }
 0x142   : > { %v1728_v29 = vmax.f32 %v1700_v51, 0.0  ;;  %v1579_v23 = vmax.f32 %v922_v35, %v1356_v36  ;;  %v1663_v52 = vmax.f32 %v1550_v38, %v1578_v53  ;;  %v924_v24 = vpop.f32.mrf.mxu0  ;;  %v11110_v42 = vpack.c.bf16 %v1727_v5, %v1725_v34  ;;  %4484 = vmatprep.subr.bf16.mxu0 %v9897_v44 }
 0x143   : > { %v1358_v39 = vpop.f32.mrf.mxu1  ;;  %v1554_v51 = vmax.f32 %v10889_v60, %v10891_v61  ;;  %v1701_v59 = vadd.f32 %v11028_v21, %v1662_v50  ;;  %v9903_v60 = vld [vmem:[%s14466_s2 + $0x2c4] ss:$8 sps:$4 sm:$0xff]   ;;  %v1556_v61 = vmax.f32 %v10900_v1, %v10902_v2  ;;  %v9901_v1 = vld [vmem:[%s14466_s2 + $0x2c0] ss:$8 sps:$4 sm:$0xff]  }
 0x144   : > { %v11097_v47 = vpack.c.bf16 %v1728_v29, %v1726_v31  ;;  %v1664_v40 = vmax.f32 %v1551_v54, %v1579_v23  ;;  %14642 = vst [vmem:[#allocation19_spill] sm:$0xff] %v11110_v42  ;;  %v1580_v8 = vmax.f32 %v924_v24, %v1358_v39  ;;  %v928_v22 = vpop.f32.mrf.mxu0  ;;  %v1702_v27 = vadd.f32 %v11021_v48, %v1663_v52  ;;  %v9889_v39 = vld [vmem:[%s14466_s2 + $0x330] ss:$8 sps:$4 sm:$0xff]  }
 0x145   : > { %v1362_v17 = vpop.f32.mrf.mxu1  ;;  %4485 = vmatpush2.bf16.msra.mxu0 %v9895_v56  ;;  %v1555_v54 = vmax.f32 %v10894_v62, %v10896_v63  ;;  %v9891_v62 = vld [vmem:[%s14466_s2 + $0x334] ss:$8 sps:$4 sm:$0xff]   ;;  %v1729_v63 = vmax.f32 %v1701_v59, 0.0 }
 0x146   : > { %14640 = vst [vmem:[#allocation18_spill] sm:$0xff] %v11097_v47  ;;  %v1703_v43 = vadd.f32 %v11028_v21, %v1664_v40  ;;  %4170 = vmatprep.mubr.bf16.mxu0 %v11097_v47  ;;  %v1665_v28 = vmax.f32 %v1552_v41, %v1580_v8  ;;  %v930_v45 = vpop.f32.mrf.mxu0  ;;  %v1581_v53 = vmax.f32 %v928_v22, %v1362_v17  ;;  %v1730_v33 = vmax.f32 %v1702_v27, 0.0 }
 0x147   : > { %v1364_v55 = vpop.f32.mrf.mxu1  ;;  %4171 = vmatmul.mubr.bf16.gmra.mxu0 %v11110_v42  ;;  %4486 = vmatprep.subr.bf16.mxu0 %v9903_v60  ;;  %v1558_v17 = vmax.f32 %v10911_v6, %v10913_v7 }
 0x148   : > { %v1582_v38 = vmax.f32 %v930_v45, %v1364_v55  ;;  %v1704_v5 = vadd.f32 %v11021_v48, %v1665_v28  ;;  %v932_v35 = vpop.f32.mrf.mxu0  ;;  %v1731_v31 = vmax.f32 %v1703_v43, 0.0  ;;  %v1666_v49 = vmax.f32 %v14643_v46, %v1581_v53  ;;  %4645 = vmatprep.subr.bf16.mxu1 %v9891_v62  ;;  %v9904_v28 = vld [vmem:[%s14466_s2 + $0x2b0] ss:$8 sps:$4 sm:$0xff]  }
 0x149   : > { %v1366_v36 = vpop.f32.mrf.mxu1  ;;  %4646 = vmatpush1.bf16.msra.mxu1 %v9889_v39  ;;  %4487 = vmatpush2.bf16.msra.mxu0 %v9901_v1  ;;  %v9913_v1 = vld [vmem:[%s14466_s2 + $0x290] ss:$8 sps:$4 sm:$0xff]  }
 0x14a   : > { %v1667_v29 = vmax.f32 %v1554_v51, %v1582_v38  ;;  %v1583_v23 = vmax.f32 %v932_v35, %v1366_v36  ;;  %v1732_v34 = vmax.f32 %v1704_v5, 0.0  ;;  %v934_v52 = vpop.f32.mrf.mxu0  ;;  %v11148_v8 = vpack.c.bf16 %v1731_v31, %v1729_v63  ;;  %4488 = vmatprep.subr.bf16.mxu0 %v9906_v58  ;;  %v9898_v5 = vld [vmem:[%s14466_s2 + $0x320] ss:$8 sps:$4 sm:$0xff]   ;;  %v9900_v35 = vld [vmem:[%s14466_s2 + $0x324] ss:$8 sps:$4 sm:$0xff]  }
 0x14b   : > { %v1368_v24 = vpop.f32.mrf.mxu1  ;;  %v1705_v45 = vadd.f32 %v11028_v21, %v1666_v49  ;;  %v1559_v36 = vmax.f32 %v10921_v10, %v10923_v11  ;;  %4647 = vmatprep.subr.bf16.mxu1 %v9900_v35  ;;  %v1563_v58 = vmax.f32 %v10946_v25, %v10948_v26  ;;  %v14650_v26 = vmax.f32 %v10929_v14, %v10931_v15  ;;  %v9924_v14 = vld [vmem:[%s14466_s2 + $0x3f4] ss:$8 sps:$4 sm:$0xff]  }
 0x14c   : > { %v1668_v50 = vmax.f32 %v1555_v54, %v1583_v23  ;;  %v1584_v40 = vmax.f32 %v934_v52, %v1368_v24  ;;  %v11145_v2 = vpack.c.bf16 %v1732_v34, %v1730_v33  ;;  %v1706_v30 = vadd.f32 %v11021_v48, %v1667_v29  ;;  %v938_v20 = vpop.f32.mrf.mxu0  ;;  %14645 = vst [vmem:[#allocation21_spill] sm:$0xff] %v11148_v8  ;;  %v9912_v33 = vld [vmem:[%s14466_s2 + $0x2a4] ss:$8 sps:$4 sm:$0xff]  }
 0x14d   : > { %v1372_v41 = vpop.f32.mrf.mxu1  ;;  %4489 = vmatpush2.bf16.msra.mxu0 %v9904_v28  ;;  %v14646_v54 = vmax.f32 %v10904_v3, %v10906_v4  ;;  %v1560_v34 = vmax.f32 %v10925_v12, %v10927_v13  ;;  %v1733_v52 = vmax.f32 %v1705_v45, 0.0  ;;  %4648 = vmatpush1.bf16.msra.mxu1 %v9898_v5  ;;  %v9907_v12 = vld [vmem:[%s14466_s2 + $0x310] ss:$8 sps:$4 sm:$0xff]   ;;  %v9909_v13 = vld [vmem:[%s14466_s2 + $0x314] ss:$8 sps:$4 sm:$0xff]   ;;  %v1564_v5 = vmax.f32 %v10953_v32, %v10955_v37 }
 0x14e   : > { %14644 = vst [vmem:[#allocation20_spill] sm:$0xff] %v11145_v2  ;;  %v1707_v22 = vadd.f32 %v11028_v21, %v1668_v50  ;;  %v1669_v57 = vmax.f32 %v1556_v61, %v1584_v40  ;;  %v1585_v43 = vmax.f32 %v938_v20, %v1372_v41  ;;  %4180 = vmatprep.mubr.bf16.mxu0 %v11145_v2  ;;  %v940_v44 = vpop.f32.mrf.mxu0  ;;  %v1734_v51 = vmax.f32 %v1706_v30, 0.0  ;;  %v9910_v61 = vld [vmem:[%s14466_s2 + $0x2a0] ss:$8 sps:$4 sm:$0xff]   ;;  %v9915_v30 = vld [vmem:[%s14466_s2 + $0x294] ss:$8 sps:$4 sm:$0xff]  }
 0x14f   : > { %v1374_v27 = vpop.f32.mrf.mxu1  ;;  %4181 = vmatmul.mubr.bf16.gmra.mxu0 %v11148_v8  ;;  %4490 = vmatprep.subr.bf16.mxu0 %v9912_v33  ;;  %v9922_v37 = vld [vmem:[%s14466_s2 + $0x3f0] ss:$8 sps:$4 sm:$0xff]  }
 0x150   : > { %v1708_v55 = vadd.f32 %v11021_v48, %v1669_v57  ;;  %v1586_v56 = vmax.f32 %v940_v44, %v1374_v27  ;;  %v942_v59 = vpop.f32.mrf.mxu0  ;;  %v1735_v7 = vmax.f32 %v1707_v22, 0.0  ;;  %v1670_v31 = vmax.f32 %v14646_v54, %v1585_v43  ;;  %4649 = vmatprep.subr.bf16.mxu1 %v9909_v13 }
 0x151   : > { %v1376_v6 = vpop.f32.mrf.mxu1  ;;  %4491 = vmatpush2.bf16.msra.mxu0 %v9910_v61  ;;  %v1562_v57 = vmax.f32 %v10939_v18, %v10941_v19  ;;  %4650 = vmatpush1.bf16.msra.mxu1 %v9907_v12  ;;  %v9919_v18 = vld [vmem:[%s14466_s2 + $0x280] ss:$8 sps:$4 sm:$0xff]   ;;  %v9927_v12 = vld [vmem:[%s14466_s2 + $0x3e4] ss:$8 sps:$4 sm:$0xff]  }
 0x152   : > { %v1736_v53 = vmax.f32 %v1708_v55, 0.0  ;;  %v1671_v38 = vmax.f32 %v1558_v17, %v1586_v56  ;;  %v1587_v29 = vmax.f32 %v942_v59, %v1376_v6  ;;  %v944_v23 = vpop.f32.mrf.mxu0  ;;  %v11184_v39 = vpack.c.bf16 %v1735_v7, %v1733_v52  ;;  %4492 = vmatprep.subr.bf16.mxu0 %v9915_v30  ;;  %v9921_v55 = vld [vmem:[%s14466_s2 + $0x284] ss:$8 sps:$4 sm:$0xff]   ;;  %v14653_v52 = vld [vmem:[#allocation8_spill] sm:$0xff] }
 0x153   : > { %v1378_v60 = vpop.f32.mrf.mxu1  ;;  %v1709_v46 = vadd.f32 %v11028_v21, %v1670_v31  ;;  %v14658_v30 = vld [vmem:[#allocation14_spill] sm:$0xff] }
 0x154   : > { %v11182_v10 = vpack.c.bf16 %v1736_v53, %v1734_v51  ;;  %v1588_v11 = vmax.f32 %v944_v23, %v1378_v60  ;;  %v1672_v3 = vmax.f32 %v1559_v36, %v1587_v29  ;;  %v948_v4 = vpop.f32.mrf.mxu0  ;;  %14648 = vst [vmem:[#allocation23_spill] sm:$0xff] %v11184_v39  ;;  %v1710_v62 = vadd.f32 %v11021_v48, %v1671_v38  ;;  %v9916_v53 = vld [vmem:[%s14466_s2 + $0x300] ss:$8 sps:$4 sm:$0xff]   ;;  %v9918_v38 = vld [vmem:[%s14466_s2 + $0x304] ss:$8 sps:$4 sm:$0xff]  }
 0x155   : > { %v1382_v24 = vpop.f32.mrf.mxu1  ;;  %4493 = vmatpush2.bf16.msra.mxu0 %v9913_v1  ;;  %v1737_v19 = vmax.f32 %v1709_v46, 0.0  ;;  %4651 = vmatprep.subr.bf16.mxu1 %v9918_v38  ;;  %v14655_v46 = vld [vmem:[#allocation9_spill] sm:$0xff] }
 0x156   : > { %14647 = vst [vmem:[#allocation22_spill] sm:$0xff] %v11182_v10  ;;  %v1673_v63 = vmax.f32 %v1560_v34, %v1588_v11  ;;  %4190 = vmatprep.mubr.bf16.mxu0 %v11182_v10  ;;  %v1711_v49 = vadd.f32 %v11028_v21, %v1672_v3  ;;  %v950_v50 = vpop.f32.mrf.mxu0  ;;  %v1589_v41 = vmax.f32 %v948_v4, %v1382_v24  ;;  %v1738_v44 = vmax.f32 %v1710_v62, 0.0  ;;  %v14652_v34 = vld [vmem:[#allocation7_spill] sm:$0xff] }
 0x157   : > { %v1384_v40 = vpop.f32.mrf.mxu1  ;;  %4191 = vmatmul.mubr.bf16.gmra.mxu0 %v11184_v39  ;;  %4494 = vmatprep.subr.bf16.mxu0 %v9921_v55  ;;  %v14654_v11 = vmax.f32 %v14652_v34, %v14653_v52 }
 0x158   : > { %v1712_v20 = vadd.f32 %v11021_v48, %v1673_v63  ;;  %v1590_v22 = vmax.f32 %v950_v50, %v1384_v40  ;;  %v952_v17 = vpop.f32.mrf.mxu0  ;;  %v1739_v27 = vmax.f32 %v1711_v49, 0.0  ;;  %v1674_v6 = vmax.f32 %v14650_v26, %v1589_v41  ;;  %4652 = vmatpush1.bf16.msra.mxu1 %v9916_v53  ;;  %v14656_v49 = vld [vmem:[#allocation10_spill] sm:$0xff] }
 0x159   : > { %v1386_v43 = vpop.f32.mrf.mxu1  ;;  %4495 = vmatpush2.bf16.msra.mxu0 %v9919_v18  ;;  %4653 = vmatprep.subr.bf16.mxu1 %v9924_v14  ;;  %v14657_v50 = vmax.f32 %v14655_v46, %v14656_v49  ;;  %v9933_v46 = vld [vmem:[%s14466_s2 + $0x3c4] ss:$8 sps:$4 sm:$0xff]  }
 0x15a   : > { %v1740_v28 = vmax.f32 %v1712_v20, 0.0  ;;  %v1591_v45 = vmax.f32 %v952_v17, %v1386_v43  ;;  %v1675_v56 = vmax.f32 %v1562_v57, %v1590_v22  ;;  %v954_v51 = vpop.f32.mrf.mxu0  ;;  %v11230_v15 = vpack.c.bf16 %v1739_v27, %v1737_v19  ;;  %v14659_v20 = vld [vmem:[#allocation13_spill] sm:$0xff]  ;;  %4810 = vmatprep.subr.bf16.mxu0 %v9948_v0  ;;  %v9954_v0 = vld [vmem:[%s14466_s2 + $0x574] ss:$8 sps:$4 sm:$0xff]  }
 0x15b   : > { %v1388_v59 = vpop.f32.mrf.mxu1  ;;  %v1713_v33 = vadd.f32 %v11028_v21, %v1674_v6  ;;  %v1568_v41 = vmax.f32 %v14659_v20, %v14658_v30  ;;  %v9925_v43 = vld [vmem:[%s14466_s2 + $0x3e0] ss:$8 sps:$4 sm:$0xff]  }
 0x15c   : > { %v11214_v25 = vpack.c.bf16 %v1740_v28, %v1738_v44  ;;  %v1676_v7 = vmax.f32 %v1563_v58, %v1591_v45  ;;  %v1592_v35 = vmax.f32 %v954_v51, %v1388_v59  ;;  %v958_v36 = vpop.f32.mrf.mxu0  ;;  %14651 = vst [vmem:[#allocation25_spill] sm:$0xff] %v11230_v15  ;;  %v1714_v23 = vadd.f32 %v11021_v48, %v1675_v56  ;;  %v14660_v28 = vld [vmem:[#allocation11_spill] sm:$0xff]  ;;  %v14661_v45 = vld [vmem:[#allocation12_spill] sm:$0xff] }
 0x15d   : > { %v1392_v54 = vpop.f32.mrf.mxu1  ;;  %4654 = vmatpush2.bf16.msra.mxu1 %v9922_v37  ;;  %v1741_v44 = vmax.f32 %v1713_v33, 0.0  ;;  %v14662_v55 = vmax.f32 %v14660_v28, %v14661_v45 }
 0x15e   : > { %14649 = vst [vmem:[#allocation24_spill] sm:$0xff] %v11214_v25  ;;  %v1715_v31 = vadd.f32 %v11028_v21, %v1676_v7  ;;  %v1593_v29 = vmax.f32 %v958_v36, %v1392_v54  ;;  %4200 = vmatprep.mubr.bf16.mxu0 %v11214_v25  ;;  %v1677_v60 = vmax.f32 %v1564_v5, %v1592_v35  ;;  %v960_v61 = vpop.f32.mrf.mxu0  ;;  %v1742_v22 = vmax.f32 %v1714_v23, 0.0  ;;  %v9928_v23 = vld [vmem:[%s14466_s2 + $0x3d0] ss:$8 sps:$4 sm:$0xff]  }
 0x15f   : > { %v1394_v32 = vpop.f32.mrf.mxu1  ;;  %4201 = vmatmul.mubr.bf16.gmra.mxu0 %v11230_v15  ;;  %4655 = vmatprep.subr.bf16.mxu1 %v9927_v12 }
 0x160   : > { %v1678_v3 = vmax.f32 %v14654_v11, %v1593_v29  ;;  %v1594_v4 = vmax.f32 %v960_v61, %v1394_v32  ;;  %v1716_v24 = vadd.f32 %v11021_v48, %v1677_v60  ;;  %v962_v62 = vpop.f32.mrf.mxu0  ;;  %v1743_v13 = vmax.f32 %v1715_v31, 0.0  ;;  %v14665_v29 = vld [vmem:[#allocation5_spill] sm:$0xff]  ;;  %v9930_v60 = vld [vmem:[%s14466_s2 + $0x3d4] ss:$8 sps:$4 sm:$0xff]  }
 0x161   : > { %v1396_v63 = vpop.f32.mrf.mxu1  ;;  %4656 = vmatpush2.bf16.msra.mxu1 %v9925_v43 }
 0x162   : > { %v1679_v40 = vmax.f32 %v14657_v50, %v1594_v4  ;;  %v1595_v1 = vmax.f32 %v962_v62, %v1396_v63  ;;  %v1744_v57 = vmax.f32 %v1716_v24, 0.0  ;;  %v964_v58 = vpop.f32.mrf.mxu0  ;;  %v1717_v27 = vadd.f32 %v11028_v21, %v1678_v3  ;;  %4657 = vmatprep.subr.bf16.mxu1 %v9930_v60  ;;  %v14668_v62 = vld [vmem:[#allocation6_spill] sm:$0xff] }
 0x163   : > { %v1398_v17 = vpop.f32.mrf.mxu1  ;;  %v11265_v26 = vpack.c.bf16 %v1743_v13, %v1741_v44  ;;  %v9931_v13 = vld [vmem:[%s14466_s2 + $0x3c0] ss:$8 sps:$4 sm:$0xff]  }
 0x164   : > { %v1680_v56 = vmax.f32 %v14662_v55, %v1595_v1  ;;  %v1596_v51 = vmax.f32 %v964_v58, %v1398_v17  ;;  %v11259_v59 = vpack.c.bf16 %v1744_v57, %v1742_v22  ;;  %v11261_v18 = vpop.f32.mrf.mxu0  ;;  %v1718_v6 = vadd.f32 %v11021_v48, %v1679_v40  ;;  %v9934_v58 = vld [vmem:[%s14466_s2 + $0x3b0] ss:$8 sps:$4 sm:$0xff]   ;;  %v9936_v17 = vld [vmem:[%s14466_s2 + $0x3b4] ss:$8 sps:$4 sm:$0xff]  }
 0x165   : > { %v11263_v19 = vpop.f32.mrf.mxu1  ;;  %14664 = vst [vmem:[#allocation8_spill] sm:$0xff] %v11265_v26  ;;  %v1745_v35 = vmax.f32 %v1717_v27, 0.0  ;;  %4658 = vmatpush2.bf16.msra.mxu1 %v9928_v23 }
 0x166   : > { %14663 = vst [vmem:[#allocation7_spill] sm:$0xff] %v11259_v59  ;;  %v1719_v7 = vadd.f32 %v11028_v21, %v1680_v56  ;;  %v1681_v53 = vmax.f32 %v1568_v41, %v1596_v51  ;;  %4210 = vmatprep.mubr.bf16.mxu0 %v11259_v59  ;;  %v11270_v38 = vpop.f32.mrf.mxu0  ;;  %v1746_v61 = vmax.f32 %v1718_v6, 0.0  ;;  %4659 = vmatprep.subr.bf16.mxu1 %v9933_v46 }
 0x167   : > { %v11272_v5 = vpop.f32.mrf.mxu1  ;;  %4211 = vmatmul.mubr.bf16.gmra.mxu0 %v11265_v26 }
 0x168   : > { %v1747_v36 = vmax.f32 %v1719_v7, 0.0  ;;  %v1720_v54 = vadd.f32 %v11021_v48, %v1681_v53  ;;  %v11276_v14 = vpop.f32.mrf.mxu0  ;;  %4220 = vmatprep.mubr.bf16.mxu0 %v14665_v29  ;;  %v9937_v7 = vld [vmem:[%s14466_s2 + $0x3a0] ss:$8 sps:$4 sm:$0xff]   ;;  %v9939_v53 = vld [vmem:[%s14466_s2 + $0x3a4] ss:$8 sps:$4 sm:$0xff]  }
 0x169   : > { %v11278_v31 = vpop.f32.mrf.mxu1  ;;  %4660 = vmatpush2.bf16.msra.mxu1 %v9931_v13 }
 0x16a   : > { %v11287_v32 = vpack.c.bf16 %v1747_v36, %v1745_v35  ;;  %v1748_v37 = vmax.f32 %v1720_v54, 0.0  ;;  %v11289_v33 = vpop.f32.mrf.mxu0  ;;  %4661 = vmatprep.subr.bf16.mxu1 %v9936_v17  ;;  %v9942_v17 = vld [vmem:[%s14466_s2 + $0x394] ss:$8 sps:$4 sm:$0xff]   ;;  %v1599_v2 = vmax.f32 %v11276_v14, %v11278_v31 }
 0x16b   : > { %v11291_v34 = vpop.f32.mrf.mxu1 }
 0x16c   : > { %14666 = vst [vmem:[#allocation9_spill] sm:$0xff] %v11287_v32  ;;  %v11293_v52 = vpack.c.bf16 %v1748_v37, %v1746_v61  ;;  %v11295_v11 = vpop.f32.mrf.mxu0 }
 0x16d   : > { %v11297_v3 = vpop.f32.mrf.mxu1  ;;  %4662 = vmatpush2.bf16.msra.mxu1 %v9934_v58  ;;  %v9940_v58 = vld [vmem:[%s14466_s2 + $0x390] ss:$8 sps:$4 sm:$0xff]  }
 0x16e   : > { %14667 = vst [vmem:[#allocation10_spill] sm:$0xff] %v11293_v52  ;;  %v11299_v4 = vpop.f32.mrf.mxu0  ;;  %4663 = vmatprep.subr.bf16.mxu1 %v9939_v53 }
 0x16f   : > { %v11301_v24 = vpop.f32.mrf.mxu1  ;;  %4221 = vmatmul.mubr.bf16.gmra.mxu0 %v14668_v62 }
 0x170   : > { %v11304_v63 = vpop.f32.mrf.mxu0 }
 0x171   : > { %v11306_v12 = vpop.f32.mrf.mxu1  ;;  %4664 = vmatpush2.bf16.msra.mxu1 %v9937_v7 }
 0x172   : > { %v11314_v49 = vpop.f32.mrf.mxu0  ;;  %4665 = vmatprep.subr.bf16.mxu1 %v9942_v17  ;;  %v9943_v17 = vld [vmem:[%s14466_s2 + $0x380] ss:$8 sps:$4 sm:$0xff]  }
 0x173   : > { %v11316_v50 = vpop.f32.mrf.mxu1 }
 0x174   : > { %v11318_v40 = vpop.f32.mrf.mxu0 }
 0x175   : > { %v11320_v1 = vpop.f32.mrf.mxu1  ;;  %4666 = vmatpush2.bf16.msra.mxu1 %v9940_v58  ;;  %v9945_v58 = vld [vmem:[%s14466_s2 + $0x384] ss:$8 sps:$4 sm:$0xff]  }
 0x176   : > { %v11324_v20 = vpop.f32.mrf.mxu0  ;;  %4667 = vmatprep.subr.bf16.mxu1 %v9945_v58  ;;  %v1598_v58 = vmax.f32 %v11270_v38, %v11272_v5 }
 0x177   : > { %v11326_v41 = vpop.f32.mrf.mxu1 }
 0x178   : > { %v11328_v22 = vpop.f32.mrf.mxu0 }
 0x179   : > { %v11330_v57 = vpop.f32.mrf.mxu1  ;;  %4668 = vmatpush2.bf16.msra.mxu1 %v9943_v17 }
 0x17a   : > { %v11338_v43 = vpop.f32.mrf.mxu0  ;;  %5944 = vmatprep.subr.bf16.mxu1 %v9954_v0 }
 0x17b   : > { %v11340_v44 = vpop.f32.mrf.mxu1 }
 0x17c   : > { %v11342_v27 = vpop.f32.mrf.mxu0 }
 0x17d   : > { %v11344_v28 = vpop.f32.mrf.mxu1 }
 0x17e   : > { %v11348_v55 = vpop.f32.mrf.mxu0 }
 0x17f   : > { %v11350_v56 = vpop.f32.mrf.mxu1 }
 0x180   : > { %v11352_v51 = vpop.f32.mrf.mxu0 }
 0x181   : > { %v11354_v6 = vpop.f32.mrf.mxu1 }
 0x182   : > { %v11362_v35 = vpop.f32.mrf.mxu0 }
 0x183   : > { %v11364_v36 = vpop.f32.mrf.mxu1 }
 0x184   : > { %v11366_v54 = vpop.f32.mrf.mxu0 }
 0x185   : > { %v11368_v23 = vpop.f32.mrf.mxu1 }
 0x186   : > { %v11372_v61 = vpop.f32.mrf.mxu0 }
 0x187   : > { %v11374_v37 = vpop.f32.mrf.mxu1 }
 0x188   : > { %v11376_v13 = vpop.f32.mrf.mxu0 }
 0x189   : > { %v11378_v46 = vpop.f32.mrf.mxu1 }
 0x18a   : > { %v11386_v7 = vpop.f32.mrf.mxu0 }
 0x18b   : > { %v11388_v53 = vpop.f32.mrf.mxu1 }
 0x18c   : > { %v11390_v60 = vpop.f32.mrf.mxu0 }
 0x18d   : > { %v11392_v45 = vpop.f32.mrf.mxu1 }
 0x18e   : > { %14669 = vst [vmem:[#allocation14_spill] sm:$0xff] %v11392_v45  ;;  %v11399_v62 = vpop.f32.mrf.mxu0 }
 0x18f   : > { %v11401_v29 = vpop.f32.mrf.mxu1 }
 0x190   : > { %v11409_v32 = vpop.f32.mrf.mxu0 }
 0x191   : > { %v11411_v30 = vpop.f32.mrf.mxu1 }
 0x192   : > { %v11413_v52 = vpop.f32.mrf.mxu0 }
 0x193   : > { %14670 = vst [vmem:[#allocation13_spill] sm:$0xff] %v11413_v52  ;;  %v11415_v26 = vpop.f32.mrf.mxu1 }
 0x194   : > { %14671 = vst [vmem:[#allocation11_spill] sm:$0xff] %v11415_v26  ;;  %v11417_v59 = vpop.f32.mrf.mxu0 }
 0x195   : > { %14672 = vst [vmem:[#allocation12_spill] sm:$0xff] %v11417_v59  ;;  %v11419_v15 = vpop.f32.mrf.mxu1 }
 0x196   : > { %14673 = vst [vmem:[#allocation26_spill] sm:$0xff] %v11419_v15  ;;  %v11426_v39 = vpop.f32.mrf.mxu0 }
 0x197   : > { %14674 = vst [vmem:[#allocation27_spill] sm:$0xff] %v11426_v39  ;;  %v11428_v10 = vpop.f32.mrf.mxu1 }
 0x198   : > { %14675 = vst [vmem:[#allocation28_spill] sm:$0xff] %v11428_v10  ;;  %v11432_v17 = vpop.f32.mrf.mxu0  ;;  %v1597_v10 = vmax.f32 %v11261_v18, %v11263_v19 }
 0x199   : > { %14676 = vst [vmem:[#allocation29_spill] sm:$0xff] %v11432_v17  ;;  %v11434_v8 = vpop.f32.mrf.mxu1 }
 0x19a   : > { %14677 = vst [vmem:[#allocation30_spill] sm:$0xff] %v11434_v8  ;;  %v11438_v25 = vpop.f32.mrf.mxu0 }
 0x19b   : > { %14678 = vst [vmem:[#allocation31_spill] sm:$0xff] %v11438_v25  ;;  %v11440_v42 = vpop.f32.mrf.mxu1 }
 0x19c   : > { %14679 = vst [vmem:[#allocation32_spill] sm:$0xff] %v11440_v42  ;;  %v1038_v47 = vpop.f32.mrf.mxu0 }
 0x19d   : > { %v1472_v9 = vpop.f32.mrf.mxu1 }
 0x19e   : > { %v1625_v16 = vmax.f32 %v1038_v47, %v1472_v9  ;;  %v1040_v15 = vpop.f32.mrf.mxu0  ;;  %v1600_v9 = vmax.f32 %v11289_v33, %v11291_v34 }
 0x19f   : > { %v1474_v59 = vpop.f32.mrf.mxu1 }
 0x1a0   : > { %v1626_v0 = vmax.f32 %v1040_v15, %v1474_v59  ;;  %v1042_v39 = vpop.f32.mrf.mxu0  ;;  %v1851_v42 = vmax.f32 %v1597_v10, %v1625_v16  ;;  %v1602_v16 = vmax.f32 %v11299_v4, %v11301_v24  ;;  %v1604_v24 = vmax.f32 %v11314_v49, %v11316_v50 }
 0x1a1   : > { %v1476_v52 = vpop.f32.mrf.mxu1 }
 0x1a2   : > { %v1852_v25 = vmax.f32 %v1598_v58, %v1626_v0  ;;  %v1627_v8 = vmax.f32 %v1042_v39, %v1476_v52  ;;  %v1044_v17 = vpop.f32.mrf.mxu0  ;;  %v1879_v5 = vadd.f32 %v1851_v42, %v11028_v21  ;;  %v1603_v42 = vmax.f32 %v11304_v63, %v11306_v12 }
 0x1a3   : > { %v1478_v26 = vpop.f32.mrf.mxu1 }
 0x1a4   : > { %v1853_v47 = vmax.f32 %v1599_v2, %v1627_v8  ;;  %v1628_v45 = vmax.f32 %v1044_v17, %v1478_v26  ;;  %v1048_v38 = vpop.f32.mrf.mxu0  ;;  %v1880_v59 = vadd.f32 %v1852_v25, %v11021_v48  ;;  %v1601_v2 = vmax.f32 %v11295_v11, %v11297_v3 }
 0x1a5   : > { %v1482_v15 = vpop.f32.mrf.mxu1  ;;  %v1907_v58 = vmax.f32 %v1879_v5, 0.0 }
 0x1a6   : > { %v1881_v18 = vadd.f32 %v1853_v47, %v11028_v21  ;;  %v1854_v19 = vmax.f32 %v1600_v9, %v1628_v45  ;;  %v1629_v14 = vmax.f32 %v1048_v38, %v1482_v15  ;;  %v1050_v31 = vpop.f32.mrf.mxu0  ;;  %v1908_v34 = vmax.f32 %v1880_v59, 0.0 }
 0x1a7   : > { %v1484_v39 = vpop.f32.mrf.mxu1 }
 0x1a8   : > { %v1882_v10 = vadd.f32 %v1854_v19, %v11021_v48  ;;  %v1630_v33 = vmax.f32 %v1050_v31, %v1484_v39  ;;  %v1909_v8 = vmax.f32 %v1881_v18, 0.0  ;;  %v1052_v26 = vpop.f32.mrf.mxu0  ;;  %v1855_v17 = vmax.f32 %v1601_v2, %v1629_v14 }
 0x1a9   : > { %v1486_v25 = vpop.f32.mrf.mxu1  ;;  %v1606_v39 = vmax.f32 %v11324_v20, %v11326_v41  ;;  %v1607_v2 = vmax.f32 %v11328_v22, %v11330_v57  ;;  %v1608_v41 = vmax.f32 %v11338_v43, %v11340_v44  ;;  %v1610_v43 = vmax.f32 %v11348_v55, %v11350_v56 }
 0x1aa   : > { %v1910_v52 = vmax.f32 %v1882_v10, 0.0  ;;  %v1856_v45 = vmax.f32 %v1602_v16, %v1630_v33  ;;  %v1631_v0 = vmax.f32 %v1052_v26, %v1486_v25  ;;  %v1054_v9 = vpop.f32.mrf.mxu0  ;;  %v11464_v3 = vpack.c.bf16 %v1909_v8, %v1907_v58 }
 0x1ab   : > { %v1488_v4 = vpop.f32.mrf.mxu1  ;;  %v1883_v63 = vadd.f32 %v1855_v17, %v11028_v21  ;;  %v14683_v17 = vmax.f32 %v11318_v40, %v11320_v1 }
 0x1ac   : > { %v11462_v47 = vpack.c.bf16 %v1910_v52, %v1908_v34  ;;  %v1632_v11 = vmax.f32 %v1054_v9, %v1488_v4  ;;  %14681 = vst [vmem:[#allocation34_spill] sm:$0xff] %v11464_v3  ;;  %v1857_v38 = vmax.f32 %v1603_v42, %v1631_v0  ;;  %v1058_v15 = vpop.f32.mrf.mxu0  ;;  %v1884_v18 = vadd.f32 %v1856_v45, %v11021_v48 }
 0x1ad   : > { %v1492_v59 = vpop.f32.mrf.mxu1  ;;  %v1911_v34 = vmax.f32 %v1883_v63, 0.0 }
 0x1ae   : > { %14680 = vst [vmem:[#allocation33_spill] sm:$0xff] %v11462_v47  ;;  %v1858_v19 = vmax.f32 %v1604_v24, %v1632_v11  ;;  %4230 = vmatprep.mubr.bf16.mxu0 %v11462_v47  ;;  %4333 = vmatprep.mubr.bf16.mxu1 %v11462_v47  ;;  %v1885_v12 = vadd.f32 %v1857_v38, %v11028_v21  ;;  %v1060_v49 = vpop.f32.mrf.mxu0  ;;  %v1912_v8 = vmax.f32 %v1884_v18, 0.0 }
 0x1af   : > { %v1494_v50 = vpop.f32.mrf.mxu1  ;;  %4231 = vmatmul.mubr.bf16.gmra.mxu0 %v11464_v3  ;;  %4334 = vmatmul.mubr.bf16.gmra.mxu1 %v11464_v3  ;;  %v1633_v14 = vmax.f32 %v1058_v15, %v1492_v59 }
 0x1b0   : > { %v1886_v5 = vadd.f32 %v1858_v19, %v11021_v48  ;;  %v1634_v31 = vmax.f32 %v1060_v49, %v1494_v50  ;;  %v1913_v16 = vmax.f32 %v1885_v12, 0.0  ;;  %v1062_v10 = vpop.f32.mrf.mxu0  ;;  %v1611_v12 = vmax.f32 %v11352_v51, %v11354_v6 }
 0x1b1   : > { %v1496_v33 = vpop.f32.mrf.mxu1  ;;  %v1859_v0 = vmax.f32 %v14683_v17, %v1633_v14  ;;  %v1612_v14 = vmax.f32 %v11362_v35, %v11364_v36 }
 0x1b2   : > { %v1914_v26 = vmax.f32 %v1886_v5, 0.0  ;;  %v1635_v25 = vmax.f32 %v1062_v10, %v1496_v33  ;;  %v1860_v52 = vmax.f32 %v1606_v39, %v1634_v31  ;;  %v1064_v45 = vpop.f32.mrf.mxu0  ;;  %v11485_v9 = vpack.c.bf16 %v1913_v16, %v1911_v34 }
 0x1b3   : > { %v1498_v42 = vpop.f32.mrf.mxu1  ;;  %v1887_v44 = vadd.f32 %v1859_v0, %v11028_v21  ;;  %v14685_v10 = vmax.f32 %v11342_v27, %v11344_v28 }
 0x1b4   : > { %v11478_v58 = vpack.c.bf16 %v1914_v26, %v1912_v8  ;;  %v1861_v20 = vmax.f32 %v1607_v2, %v1635_v25  ;;  %14684 = vst [vmem:[#allocation36_spill] sm:$0xff] %v11485_v9  ;;  %v1636_v22 = vmax.f32 %v1064_v45, %v1498_v42  ;;  %v1068_v57 = vpop.f32.mrf.mxu0  ;;  %v1888_v11 = vadd.f32 %v1860_v52, %v11021_v48 }
 0x1b5   : > { %v1502_v4 = vpop.f32.mrf.mxu1  ;;  %v1915_v16 = vmax.f32 %v1887_v44, 0.0  ;;  %v1614_v52 = vmax.f32 %v11372_v61, %v11374_v37 }
 0x1b6   : > { %14682 = vst [vmem:[#allocation35_spill] sm:$0xff] %v11478_v58  ;;  %v1889_v24 = vadd.f32 %v1861_v20, %v11028_v21  ;;  %4240 = vmatprep.mubr.bf16.mxu0 %v11478_v58  ;;  %4343 = vmatprep.mubr.bf16.mxu1 %v11478_v58  ;;  %v1862_v38 = vmax.f32 %v1608_v41, %v1636_v22  ;;  %v1070_v40 = vpop.f32.mrf.mxu0  ;;  %v1916_v31 = vmax.f32 %v1888_v11, 0.0 }
 0x1b7   : > { %v1504_v1 = vpop.f32.mrf.mxu1  ;;  %4241 = vmatmul.mubr.bf16.gmra.mxu0 %v11485_v9  ;;  %4344 = vmatmul.mubr.bf16.gmra.mxu1 %v11485_v9  ;;  %v1637_v15 = vmax.f32 %v1068_v57, %v1502_v4  ;;  %v1615_v4 = vmax.f32 %v11376_v13, %v11378_v46 }
 0x1b8   : > { %v1638_v59 = vmax.f32 %v1070_v40, %v1504_v1  ;;  %v1890_v18 = vadd.f32 %v1862_v38, %v11021_v48  ;;  %v1072_v19 = vpop.f32.mrf.mxu0  ;;  %v1917_v49 = vmax.f32 %v1889_v24, 0.0  ;;  %v14688_v24 = vmax.f32 %v11366_v54, %v11368_v23 }
 0x1b9   : > { %v1506_v63 = vpop.f32.mrf.mxu1  ;;  %v1863_v33 = vmax.f32 %v14685_v10, %v1637_v15 }
 0x1ba   : > { %v1864_v50 = vmax.f32 %v1610_v43, %v1638_v59  ;;  %v1639_v5 = vmax.f32 %v1072_v19, %v1506_v63  ;;  %v1918_v39 = vmax.f32 %v1890_v18, 0.0  ;;  %v1074_v55 = vpop.f32.mrf.mxu0  ;;  %v11506_v25 = vpack.c.bf16 %v1917_v49, %v1915_v16 }
 0x1bb   : > { %v1508_v56 = vpop.f32.mrf.mxu1  ;;  %v1891_v42 = vadd.f32 %v1863_v33, %v11028_v21  ;;  %v1616_v43 = vmax.f32 %v11386_v7, %v11388_v53 }
 0x1bc   : > { %v1865_v2 = vmax.f32 %v1611_v12, %v1639_v5  ;;  %v1640_v8 = vmax.f32 %v1074_v55, %v1508_v56  ;;  %v11504_v26 = vpack.c.bf16 %v1918_v39, %v1916_v31  ;;  %v1078_v51 = vpop.f32.mrf.mxu0  ;;  %14687 = vst [vmem:[#allocation38_spill] sm:$0xff] %v11506_v25  ;;  %v1892_v34 = vadd.f32 %v1864_v50, %v11021_v48 }
 0x1bd   : > { %v1512_v6 = vpop.f32.mrf.mxu1  ;;  %v1919_v44 = vmax.f32 %v1891_v42, 0.0  ;;  %v1619_v31 = vmax.f32 %v11409_v32, %v11411_v30 }
 0x1be   : > { %14686 = vst [vmem:[#allocation37_spill] sm:$0xff] %v11504_v26  ;;  %v1893_v35 = vadd.f32 %v1865_v2, %v11028_v21  ;;  %v1866_v36 = vmax.f32 %v1612_v14, %v1640_v8  ;;  %v1641_v45 = vmax.f32 %v1078_v51, %v1512_v6  ;;  %4250 = vmatprep.mubr.bf16.mxu0 %v11504_v26  ;;  %v1080_v27 = vpop.f32.mrf.mxu0  ;;  %v1920_v22 = vmax.f32 %v1892_v34, 0.0 }
 0x1bf   : > { %4353 = vmatprep.mubr.bf16.mxu1 %v11504_v26  ;;  %v1514_v28 = vpop.f32.mrf.mxu1  ;;  %4251 = vmatmul.mubr.bf16.gmra.mxu0 %v11506_v25  ;;  %v1618_v14 = vmax.f32 %v11399_v62, %v11401_v29  ;;  %v14694_v62 = vld [vmem:[#allocation11_spill] sm:$0xff] }
 0x1c0   : > { %v1894_v17 = vadd.f32 %v1866_v36, %v11021_v48  ;;  %v1642_v0 = vmax.f32 %v1080_v27, %v1514_v28  ;;  %4354 = vmatmul.mubr.bf16.gmra.mxu1 %v11506_v25  ;;  %v1082_v20 = vpop.f32.mrf.mxu0  ;;  %v1921_v61 = vmax.f32 %v1893_v35, 0.0  ;;  %v1867_v11 = vmax.f32 %v14688_v24, %v1641_v45  ;;  %v14692_v35 = vld [vmem:[#allocation14_spill] sm:$0xff]  ;;  %v14695_v45 = vld [vmem:[#allocation13_spill] sm:$0xff] }
 0x1c1   : > { %v1516_v41 = vpop.f32.mrf.mxu1  ;;  %v14693_v36 = vmax.f32 %v11390_v60, %v14692_v35  ;;  %v1620_v32 = vmax.f32 %v14695_v45, %v14694_v62  ;;  %v9955_v45 = vld [vmem:[%s14466_s2 + $0x450] ss:$8 sps:$4 sm:$0xff]  }
 0x1c2   : > { %v1922_v37 = vmax.f32 %v1894_v17, 0.0  ;;  %v1868_v57 = vmax.f32 %v1614_v52, %v1642_v0  ;;  %v1643_v38 = vmax.f32 %v1082_v20, %v1516_v41  ;;  %v1084_v40 = vpop.f32.mrf.mxu0  ;;  %v11527_v12 = vpack.c.bf16 %v1921_v61, %v1919_v44 }
 0x1c3   : > { %v1518_v1 = vpop.f32.mrf.mxu1  ;;  %v1895_v54 = vadd.f32 %v1867_v11, %v11028_v21 }
 0x1c4   : > { %v11525_v15 = vpack.c.bf16 %v1922_v37, %v1920_v22  ;;  %v1644_v59 = vmax.f32 %v1084_v40, %v1518_v1  ;;  %v1869_v18 = vmax.f32 %v1615_v4, %v1643_v38  ;;  %v1088_v19 = vpop.f32.mrf.mxu0  ;;  %14690 = vst [vmem:[#allocation40_spill] sm:$0xff] %v11527_v12  ;;  %v1896_v13 = vadd.f32 %v1868_v57, %v11021_v48  ;;  %v14697_v37 = vld [vmem:[#allocation12_spill] sm:$0xff]  ;;  %v14698_v57 = vld [vmem:[#allocation26_spill] sm:$0xff] }
 0x1c5   : > { %v1522_v63 = vpop.f32.mrf.mxu1  ;;  %v1923_v6 = vmax.f32 %v1895_v54, 0.0  ;;  %v14699_v4 = vmax.f32 %v14697_v37, %v14698_v57  ;;  %v9967_v37 = vld [vmem:[%s14466_s2 + $0x420] ss:$8 sps:$4 sm:$0xff]   ;;  %v9975_v57 = vld [vmem:[%s14466_s2 + $0x414] ss:$8 sps:$4 sm:$0xff]  }
 0x1c6   : > { %14689 = vst [vmem:[#allocation39_spill] sm:$0xff] %v11525_v15  ;;  %v1870_v46 = vmax.f32 %v1616_v43, %v1644_v59  ;;  %4260 = vmatprep.mubr.bf16.mxu0 %v11525_v15  ;;  %4363 = vmatprep.mubr.bf16.mxu1 %v11525_v15  ;;  %v1897_v23 = vadd.f32 %v1869_v18, %v11028_v21  ;;  %v1090_v7 = vpop.f32.mrf.mxu0  ;;  %v1924_v56 = vmax.f32 %v1896_v13, 0.0  ;;  %v14701_v13 = vld [vmem:[#allocation30_spill] sm:$0xff] }
 0x1c7   : > { %v1524_v53 = vpop.f32.mrf.mxu1  ;;  %v1645_v50 = vmax.f32 %v1088_v19, %v1522_v63  ;;  %4261 = vmatmul.mubr.bf16.gmra.mxu0 %v11527_v12  ;;  %v14700_v63 = vld [vmem:[#allocation29_spill] sm:$0xff] }
 0x1c8   : > { %v1898_v49 = vadd.f32 %v1870_v46, %v11021_v48  ;;  %v1646_v5 = vmax.f32 %v1090_v7, %v1524_v53  ;;  %4364 = vmatmul.mubr.bf16.gmra.mxu1 %v11527_v12  ;;  %v1092_v39 = vpop.f32.mrf.mxu0  ;;  %v1925_v16 = vmax.f32 %v1897_v23, 0.0  ;;  %v14702_v46 = vmax.f32 %v14700_v63, %v14701_v13  ;;  %v14717_v63 = vld [vmem:[#allocation7_spill] sm:$0xff]  ;;  %v9988_v13 = vld [vmem:[%s14466_s2 + $0x4e0] ss:$8 sps:$4 sm:$0xff]  }
 0x1c9   : > { %v1526_v55 = vpop.f32.mrf.mxu1  ;;  %v1871_v52 = vmax.f32 %v14693_v36, %v1645_v50 }
 0x1ca   : > { %v1926_v10 = vmax.f32 %v1898_v49, 0.0  ;;  %v1647_v33 = vmax.f32 %v1092_v39, %v1526_v55  ;;  %v1872_v2 = vmax.f32 %v1618_v14, %v1646_v5  ;;  %v1094_v8 = vpop.f32.mrf.mxu0  ;;  %v11548_v42 = vpack.c.bf16 %v1925_v16, %v1923_v6  ;;  %v14705_v14 = vld [vmem:[#allocation16_spill] sm:$0xff]  ;;  %v9949_v6 = vld [vmem:[%s14466_s2 + $0x460] ss:$8 sps:$4 sm:$0xff]  }
 0x1cb   : > { %v1528_v51 = vpop.f32.mrf.mxu1  ;;  %v1899_v61 = vadd.f32 %v1871_v52, %v11028_v21  ;;  %v9946_v55 = vld [vmem:[%s14466_s2 + $0x470] ss:$8 sps:$4 sm:$0xff]   ;;  %v9957_v52 = vld [vmem:[%s14466_s2 + $0x454] ss:$8 sps:$4 sm:$0xff]  }
 0x1cc   : > { %v11541_v34 = vpack.c.bf16 %v1926_v10, %v1924_v56  ;;  %v1873_v29 = vmax.f32 %v1619_v31, %v1647_v33  ;;  %v1648_v30 = vmax.f32 %v1094_v8, %v1528_v51  ;;  %v1098_v27 = vpop.f32.mrf.mxu0  ;;  %14696 = vst [vmem:[#allocation14_spill] sm:$0xff] %v11548_v42  ;;  %v1900_v20 = vadd.f32 %v1872_v2, %v11021_v48  ;;  %v9951_v10 = vld [vmem:[%s14466_s2 + $0x464] ss:$8 sps:$4 sm:$0xff]  }
 0x1cd   : > { %v1532_v28 = vpop.f32.mrf.mxu1  ;;  %v1927_v18 = vmax.f32 %v1899_v61, 0.0  ;;  %v14707_v2 = vld [vmem:[#allocation17_spill] sm:$0xff]  ;;  %v14708_v8 = vld [vmem:[#allocation18_spill] sm:$0xff] }
 0x1ce   : > { %14691 = vst [vmem:[#allocation41_spill] sm:$0xff] %v11541_v34  ;;  %v1901_v17 = vadd.f32 %v1873_v29, %v11028_v21  ;;  %v1649_v0 = vmax.f32 %v1098_v27, %v1532_v28  ;;  %4270 = vmatprep.mubr.bf16.mxu0 %v11541_v34  ;;  %4373 = vmatprep.mubr.bf16.mxu1 %v11541_v34  ;;  %v11554_v41 = vpop.f32.mrf.mxu0  ;;  %v1928_v44 = vmax.f32 %v1900_v20, 0.0  ;;  %v14710_v27 = vld [vmem:[#allocation20_spill] sm:$0xff]  ;;  %v9958_v28 = vld [vmem:[%s14466_s2 + $0x440] ss:$8 sps:$4 sm:$0xff]  }
 0x1cf   : > { %v1874_v60 = vmax.f32 %v1620_v32, %v1648_v30  ;;  %v11556_v22 = vpop.f32.mrf.mxu1  ;;  %4271 = vmatmul.mubr.bf16.gmra.mxu0 %v11548_v42  ;;  %v9960_v32 = vld [vmem:[%s14466_s2 + $0x444] ss:$8 sps:$4 sm:$0xff]   ;;  %v14709_v30 = vld [vmem:[#allocation19_spill] sm:$0xff] }
 0x1d0   : > { %v1875_v24 = vmax.f32 %v14699_v4, %v1649_v0  ;;  %4374 = vmatmul.mubr.bf16.gmra.mxu1 %v11548_v42  ;;  %v1102_v38 = vpop.f32.mrf.mxu0  ;;  %v1929_v1 = vmax.f32 %v1901_v17, 0.0  ;;  %v9966_v17 = vld [vmem:[%s14466_s2 + $0x434] ss:$8 sps:$4 sm:$0xff]   ;;  %v9964_v0 = vld [vmem:[%s14466_s2 + $0x430] ss:$8 sps:$4 sm:$0xff]   ;;  %v14712_v61 = vld [vmem:[#allocation22_spill] sm:$0xff] }
 0x1d1   : > { %v1902_v11 = vadd.f32 %v1874_v60, %v11021_v48  ;;  %v1536_v40 = vpop.f32.mrf.mxu1  ;;  %v9969_v20 = vld [vmem:[%s14466_s2 + $0x424] ss:$8 sps:$4 sm:$0xff]   ;;  %v9973_v4 = vld [vmem:[%s14466_s2 + $0x410] ss:$8 sps:$4 sm:$0xff]  }
 0x1d2   : > { %v1651_v43 = vmax.f32 %v1102_v38, %v1536_v40  ;;  %v1903_v19 = vadd.f32 %v1875_v24, %v11028_v21  ;;  %v11571_v7 = vpack.c.bf16 %v1929_v1, %v1927_v18  ;;  %v11578_v5 = vpop.f32.mrf.mxu0  ;;  %v14711_v60 = vld [vmem:[#allocation21_spill] sm:$0xff]  ;;  %v14714_v38 = vld [vmem:[#allocation24_spill] sm:$0xff] }
 0x1d3   : > { %v1930_v59 = vmax.f32 %v1902_v11, 0.0  ;;  %v9978_v24 = vld [vmem:[%s14466_s2 + $0x404] ss:$8 sps:$4 sm:$0xff]   ;;  %v14713_v11 = vld [vmem:[#allocation23_spill] sm:$0xff]  ;;  %v9976_v40 = vld [vmem:[%s14466_s2 + $0x400] ss:$8 sps:$4 sm:$0xff]  }
 0x1d4   : > { %v1877_v54 = vmax.f32 %v14702_v46, %v1651_v43  ;;  %14704 = vst [vmem:[#allocation13_spill] sm:$0xff] %v11571_v7  ;;  %v1931_v49 = vmax.f32 %v1903_v19, 0.0  ;;  %v4152_v39 = vpop.f32.mrf.mxu0  ;;  %v9984_v1 = vld [vmem:[%s14466_s2 + $0x4f4] ss:$8 sps:$4 sm:$0xff]   ;;  %v14716_v18 = vld [vmem:[#allocation25_spill] sm:$0xff] }
 0x1d5   : > { %v11569_v23 = vpack.c.bf16 %v1930_v59, %v1928_v44  ;;  %v9982_v44 = vld [vmem:[%s14466_s2 + $0x4f0] ss:$8 sps:$4 sm:$0xff]   ;;  %v9990_v59 = vld [vmem:[%s14466_s2 + $0x4e4] ss:$8 sps:$4 sm:$0xff]   ;;  %v9993_v46 = vld [vmem:[%s14466_s2 + $0x4d4] ss:$8 sps:$4 sm:$0xff]  }
 0x1d6   : > { %v1905_v53 = vadd.f32 %v1877_v54, %v11028_v21  ;;  %v11584_v21 = vpop.f32.mrf.mxu1  ;;  %v4154_v16 = vpop.f32.mrf.mxu0 }
 0x1d7   : > { %14703 = vst [vmem:[#allocation11_spill] sm:$0xff] %v11569_v23  ;;  %4280 = vmatprep.mubr.bf16.mxu0 %v11569_v23  ;;  %4383 = vmatprep.mubr.bf16.mxu1 %v11569_v23 }
 0x1d8   : > { %v1933_v50 = vmax.f32 %v1905_v53, 0.0  ;;  %4281 = vmatmul.mubr.bf16.gmra.mxu0 %v11571_v7  ;;  %4384 = vmatmul.mubr.bf16.gmra.mxu1 %v11571_v7  ;;  %v4325_v56 = vpop.f32.mrf.mxu1  ;;  %v4156_v36 = vpop.f32.mrf.mxu0  ;;  %v9991_v53 = vld [vmem:[%s14466_s2 + $0x4d0] ss:$8 sps:$4 sm:$0xff]  }
 0x1d9   : > { %4393 = vmatprep.mubr.bf16.mxu1 %v14705_v14  ;;  %4496 = vmatprep.mubr.bf16.mxu0 %v14705_v14  ;;  %v11592_v33 = vadd.f32 %v4325_v56, %v4152_v39  ;;  %v9997_v56 = vld [vmem:[%s14466_s2 + $0x4c0] ss:$8 sps:$4 sm:$0xff]  }
 0x1da   : > { %v11582_v31 = vpack.c.bf16 %v1933_v50, %v1931_v49  ;;  %v4327_v51 = vpop.f32.mrf.mxu1  ;;  %v11656_v43 = vpop.f32.mrf.mxu0  ;;  %v9999_v49 = vld [vmem:[%s14466_s2 + $0x4c4] ss:$8 sps:$4 sm:$0xff]   ;;  %v14718_v50 = vld [vmem:[#allocation8_spill] sm:$0xff] }
 0x1db   : > { %v11601_v35 = vadd.f32 %v4327_v51, %v4154_v16  ;;  %14715 = vst [vmem:[#allocation26_spill] sm:$0xff] %v11656_v43  ;;  %v10002_v16 = vld [vmem:[%s14466_s2 + $0x4b4] ss:$8 sps:$4 sm:$0xff]   ;;  %v10000_v51 = vld [vmem:[%s14466_s2 + $0x4b0] ss:$8 sps:$4 sm:$0xff]  }
 0x1dc   : > { %14706 = vst [vmem:[#allocation12_spill] sm:$0xff] %v11582_v31  ;;  %v4329_v29 = vpop.f32.mrf.mxu1  ;;  %v10078_v43 = vld [vmem:[%s14466_s2 + $0x6f0] ss:$8 sps:$4 sm:$0xff]  }
 0x1dd   : > { %v11606_v62 = vadd.f32 %v4329_v29, %v4156_v36  ;;  %v14720_v36 = vld [vmem:[#allocation9_spill] sm:$0xff] }
 0x1de   : > { %v10006_v29 = vld [vmem:[%s14466_s2 + $0x4a0] ss:$8 sps:$4 sm:$0xff]  }
 0x1e0   : > { %4394 = vmatmul.mubr.bf16.gmra.mxu1 %v14707_v2  ;;  %4497 = vmatmul.mubr.bf16.vlgmr.msra.gmra.mxu0 %v14707_v2 }
 0x1e1   : > { %4403 = vmatprep.mubr.bf16.mxu1 %v14708_v8  ;;  %4506 = vmatprep.mubr.bf16.mxu0 %v14708_v8 }
 0x1e2   : > { %4811 = vmatpush1.bf16.msra.mxu0 %v9946_v55  ;;  %v14719_v55 = vld [vmem:[#allocation10_spill] sm:$0xff] }
 0x1e3   : > { %4812 = vmatprep.subr.bf16.mxu0 %v9951_v10 }
 0x1e6   : > { %4813 = vmatpush1.bf16.msra.mxu0 %v9949_v6  ;;  %v10008_v6 = vld [vmem:[%s14466_s2 + $0x4a4] ss:$8 sps:$4 sm:$0xff]  }
 0x1e7   : > { %4814 = vmatprep.subr.bf16.mxu0 %v9957_v52 }
 0x1e8   : > { %4404 = vmatmul.mubr.bf16.gmra.mxu1 %v14709_v30  ;;  %4507 = vmatmul.mubr.bf16.gmra.mxu0 %v14709_v30 }
 0x1e9   : > { %4413 = vmatprep.mubr.bf16.mxu1 %v14710_v27  ;;  %4516 = vmatprep.mubr.bf16.mxu0 %v14710_v27 }
 0x1ea   : > { %4815 = vmatpush1.bf16.msra.mxu0 %v9955_v45  ;;  %v10011_v45 = vld [vmem:[%s14466_s2 + $0x494] ss:$8 sps:$4 sm:$0xff]  }
 0x1eb   : > { %4816 = vmatprep.subr.bf16.mxu0 %v9960_v32 }
 0x1ee   : > { %4817 = vmatpush1.bf16.msra.mxu0 %v9958_v28  ;;  %v9952_v28 = vld [vmem:[%s14466_s2 + $0x570] ss:$8 sps:$4 sm:$0xff]  }
 0x1ef   : > { %4818 = vmatprep.subr.bf16.mxu0 %v9966_v17  ;;  %v9963_v17 = vld [vmem:[%s14466_s2 + $0x564] ss:$8 sps:$4 sm:$0xff]  }
 0x1f0   : > { %4414 = vmatmul.mubr.bf16.gmra.mxu1 %v14711_v60  ;;  %4517 = vmatmul.mubr.bf16.gmra.mxu0 %v14711_v60 }
 0x1f1   : > { %4423 = vmatprep.mubr.bf16.mxu1 %v14712_v61  ;;  %4526 = vmatprep.mubr.bf16.mxu0 %v14712_v61 }
 0x1f2   : > { %4819 = vmatpush1.bf16.msra.mxu0 %v9964_v0  ;;  %v10009_v0 = vld [vmem:[%s14466_s2 + $0x490] ss:$8 sps:$4 sm:$0xff]  }
 0x1f3   : > { %4820 = vmatprep.subr.bf16.mxu0 %v9969_v20  ;;  %v10017_v20 = vld [vmem:[%s14466_s2 + $0x484] ss:$8 sps:$4 sm:$0xff]  }
 0x1f6   : > { %4821 = vmatpush1.bf16.msra.mxu0 %v9967_v37 }
 0x1f7   : > { %4822 = vmatprep.subr.bf16.mxu0 %v9975_v57  ;;  %v9961_v57 = vld [vmem:[%s14466_s2 + $0x560] ss:$8 sps:$4 sm:$0xff]  }
 0x1f8   : > { %4424 = vmatmul.mubr.bf16.gmra.mxu1 %v14713_v11  ;;  %4527 = vmatmul.mubr.bf16.gmra.mxu0 %v14713_v11 }
 0x1f9   : > { %4433 = vmatprep.mubr.bf16.mxu1 %v14714_v38  ;;  %4536 = vmatprep.mubr.bf16.mxu0 %v14714_v38 }
 0x1fa   : > { %4823 = vmatpush1.bf16.msra.mxu0 %v9973_v4  ;;  %v9972_v4 = vld [vmem:[%s14466_s2 + $0x554] ss:$8 sps:$4 sm:$0xff]  }
 0x1fb   : > { %4824 = vmatprep.subr.bf16.mxu0 %v9978_v24  ;;  %v10015_v24 = vld [vmem:[%s14466_s2 + $0x480] ss:$8 sps:$4 sm:$0xff]  }
 0x1fe   : > { %4825 = vmatpush1.bf16.msra.mxu0 %v9976_v40 }
 0x1ff   : > { %4826 = vmatprep.subr.bf16.mxu0 %v9984_v1  ;;  %v11666_v19 = vpop.f32.mrf.mxu0  ;;  %v9970_v1 = vld [vmem:[%s14466_s2 + $0x550] ss:$8 sps:$4 sm:$0xff]  }
 0x200   : > { %4434 = vmatmul.mubr.bf16.gmra.mxu1 %v14716_v18  ;;  %4537 = vmatmul.mubr.bf16.gmra.mxu0 %v14716_v18 }
 0x201   : > { %4443 = vmatprep.mubr.bf16.mxu1 %v14717_v63  ;;  %4546 = vmatprep.mubr.bf16.mxu0 %v14717_v63  ;;  %v11676_v54 = vpop.f32.mrf.mxu0 }
 0x202   : > { %4827 = vmatpush2.bf16.msra.mxu0 %v9982_v44  ;;  %v10044_v44 = vld [vmem:[%s14466_s2 + $0x674] ss:$8 sps:$4 sm:$0xff]  }
 0x203   : > { %4828 = vmatprep.subr.bf16.mxu0 %v9990_v59  ;;  %v11686_v39 = vpop.f32.mrf.mxu0  ;;  %v9981_v59 = vld [vmem:[%s14466_s2 + $0x544] ss:$8 sps:$4 sm:$0xff]  }
 0x205   : > { %v11696_v10 = vpop.f32.mrf.mxu0 }
 0x206   : > { %4829 = vmatpush2.bf16.msra.mxu0 %v9988_v13 }
 0x207   : > { %4830 = vmatprep.subr.bf16.mxu0 %v9993_v46  ;;  %v11706_v52 = vpop.f32.mrf.mxu0  ;;  %v9979_v46 = vld [vmem:[%s14466_s2 + $0x540] ss:$8 sps:$4 sm:$0xff]  }
 0x208   : > { %4444 = vmatmul.mubr.bf16.gmra.mxu1 %v14718_v50  ;;  %4547 = vmatmul.mubr.bf16.gmra.mxu0 %v14718_v50 }
 0x209   : > { %4453 = vmatprep.mubr.bf16.mxu1 %v14719_v55  ;;  %4556 = vmatprep.mubr.bf16.mxu0 %v14719_v55  ;;  %v11716_v32 = vpop.f32.mrf.mxu0 }
 0x20a   : > { %4831 = vmatpush2.bf16.msra.mxu0 %v9991_v53  ;;  %v9987_v53 = vld [vmem:[%s14466_s2 + $0x534] ss:$8 sps:$4 sm:$0xff]  }
 0x20b   : > { %4832 = vmatprep.subr.bf16.mxu0 %v9999_v49  ;;  %v11732_v37 = vpop.f32.mrf.mxu0 }
 0x20d   : > { %v11745_v40 = vpop.f32.mrf.mxu0 }
 0x20e   : > { %4833 = vmatpush2.bf16.msra.mxu0 %v9997_v56  ;;  %v9985_v56 = vld [vmem:[%s14466_s2 + $0x530] ss:$8 sps:$4 sm:$0xff]  }
 0x20f   : > { %4834 = vmatprep.subr.bf16.mxu0 %v10002_v16  ;;  %v11758_v13 = vpop.f32.mrf.mxu0  ;;  %v9996_v16 = vld [vmem:[%s14466_s2 + $0x524] ss:$8 sps:$4 sm:$0xff]  }
 0x210   : > { %4454 = vmatmul.mubr.bf16.gmra.mxu1 %v14720_v36  ;;  %4557 = vmatmul.mubr.bf16.gmra.mxu0 %v14720_v36 }
 0x211   : > { %4566 = vmatprep.mubr.bf16.mxu0 %v11462_v47  ;;  %4669 = vmatprep.mubr.bf16.mxu1 %v11462_v47  ;;  %v11768_v49 = vpop.f32.mrf.mxu0  ;;  %v10104_v47 = vld [vmem:[%s14466_s2 + $0x6a4] ss:$8 sps:$4 sm:$0xff]  }
 0x212   : > { %4835 = vmatpush2.bf16.msra.mxu0 %v10000_v51  ;;  %14721 = vst [vmem:[#allocation29_spill] sm:$0xff] %v11768_v49 }
 0x213   : > { %4836 = vmatprep.subr.bf16.mxu0 %v10008_v6  ;;  %v11778_v51 = vpop.f32.mrf.mxu0  ;;  %v9994_v6 = vld [vmem:[%s14466_s2 + $0x520] ss:$8 sps:$4 sm:$0xff]  }
 0x214   : > { %14722 = vst [vmem:[#allocation30_spill] sm:$0xff] %v11778_v51  ;;  %v10107_v51 = vld [vmem:[%s14466_s2 + $0x694] ss:$8 sps:$4 sm:$0xff]  }
 0x216   : > { %4837 = vmatpush2.bf16.msra.mxu0 %v10006_v29  ;;  %v10005_v29 = vld [vmem:[%s14466_s2 + $0x514] ss:$8 sps:$4 sm:$0xff]  }
 0x217   : > { %4838 = vmatprep.subr.bf16.mxu0 %v10011_v45  ;;  %v11788_v45 = vpop.f32.mrf.mxu0 }
 0x218   : > { %4567 = vmatmul.mubr.bf16.gmra.mxu0 %v11464_v3  ;;  %4670 = vmatmul.mubr.bf16.vlgmr.msra.gmra.mxu1 %v11464_v3  ;;  %14723 = vst [vmem:[#allocation42_spill] sm:$0xff] %v11788_v45 }
 0x219   : > { %5945 = vmatpush1.bf16.msra.mxu1 %v9952_v28  ;;  %4576 = vmatprep.mubr.bf16.mxu0 %v11478_v58  ;;  %v10003_v28 = vld [vmem:[%s14466_s2 + $0x510] ss:$8 sps:$4 sm:$0xff]  }
 0x21a   : > { %4679 = vmatprep.mubr.bf16.mxu1 %v11478_v58  ;;  %5946 = vmatprep.subr.bf16.mxu1 %v9963_v17  ;;  %v1652_v17 = vmax.f32 %v11578_v5, %v11584_v21  ;;  %v10012_v5 = vld [vmem:[%s14466_s2 + $0x500] ss:$8 sps:$4 sm:$0xff]  }
 0x21b   : > { %4839 = vmatpush2.bf16.msra.mxu0 %v10009_v0  ;;  %v10014_v0 = vld [vmem:[%s14466_s2 + $0x504] ss:$8 sps:$4 sm:$0xff]  }
 0x21c   : > { %4840 = vmatprep.subr.bf16.mxu0 %v10017_v20  ;;  %v14724_v20 = vld [vmem:[#allocation32_spill] sm:$0xff] }
 0x21d   : > { %5947 = vmatpush1.bf16.msra.mxu1 %v9961_v57  ;;  %v14725_v57 = vld [vmem:[#allocation31_spill] sm:$0xff] }
 0x21e   : > { %5948 = vmatprep.subr.bf16.mxu1 %v9972_v4  ;;  %v1624_v4 = vmax.f32 %v14725_v57, %v14724_v20  ;;  %v10026_v20 = vld [vmem:[%s14466_s2 + $0x5d4] ss:$8 sps:$4 sm:$0xff]  }
 0x21f   : > { %4841 = vmatpush2.bf16.msra.mxu0 %v10015_v24  ;;  %v1650_v24 = vmax.f32 %v11554_v41, %v11556_v22 }
 0x220   : > { %4577 = vmatmul.mubr.bf16.gmra.mxu0 %v11485_v9  ;;  %4680 = vmatmul.mubr.bf16.gmra.mxu1 %v11485_v9  ;;  %v1878_v21 = vmax.f32 %v1624_v4, %v1652_v17  ;;  %v10021_v17 = vld [vmem:[%s14466_s2 + $0x5e0] ss:$8 sps:$4 sm:$0xff]  }
 0x221   : > { %4586 = vmatprep.mubr.bf16.mxu0 %v11504_v26  ;;  %4689 = vmatprep.mubr.bf16.mxu1 %v11504_v26 }
 0x222   : > { %5949 = vmatpush1.bf16.msra.mxu1 %v9970_v1  ;;  %6117 = vmatprep.subr.bf16.mxu0 %v10044_v44  ;;  %v11804_v1 = vpop.f32.mrf.mxu0  ;;  %v10020_v44 = vld [vmem:[%s14466_s2 + $0x5f4] ss:$8 sps:$4 sm:$0xff]  }
 0x223   : > { %5950 = vmatprep.subr.bf16.mxu1 %v9981_v59  ;;  %14726 = vst [vmem:[#allocation32_spill] sm:$0xff] %v11804_v1  ;;  %v14727_v59 = vld [vmem:[#allocation27_spill] sm:$0xff]  ;;  %v14748_v1 = vld [vmem:[#allocation6_spill] sm:$0xff] }
 0x226   : > { %5951 = vmatpush1.bf16.msra.mxu1 %v9979_v46  ;;  %v14728_v46 = vld [vmem:[#allocation28_spill] sm:$0xff] }
 0x227   : > { %5952 = vmatprep.subr.bf16.mxu1 %v9987_v53  ;;  %v14729_v41 = vmax.f32 %v14727_v59, %v14728_v46  ;;  %v11817_v53 = vpop.f32.mrf.mxu0  ;;  %v10032_v59 = vld [vmem:[%s14466_s2 + $0x5b4] ss:$8 sps:$4 sm:$0xff]  }
 0x228   : > { %4587 = vmatmul.mubr.bf16.gmra.mxu0 %v11506_v25  ;;  %4690 = vmatmul.mubr.bf16.gmra.mxu1 %v11506_v25  ;;  %14730 = vst [vmem:[#allocation31_spill] sm:$0xff] %v11817_v53 }
 0x229   : > { %4596 = vmatprep.mubr.bf16.mxu0 %v11525_v15  ;;  %4699 = vmatprep.mubr.bf16.mxu1 %v11525_v15  ;;  %v1876_v22 = vmax.f32 %v14729_v41, %v1650_v24  ;;  %v10030_v41 = vld [vmem:[%s14466_s2 + $0x5b0] ss:$8 sps:$4 sm:$0xff]  }
 0x22a   : > { %5953 = vmatpush1.bf16.msra.mxu1 %v9985_v56  ;;  %v10018_v56 = vld [vmem:[%s14466_s2 + $0x5f0] ss:$8 sps:$4 sm:$0xff]  }
 0x22b   : > { %5954 = vmatprep.subr.bf16.mxu1 %v9996_v16  ;;  %v1906_v16 = vadd.f32 %v1878_v21, %v11021_v48 }
 0x22e   : > { %5955 = vmatpush1.bf16.msra.mxu1 %v9994_v6  ;;  %v10023_v6 = vld [vmem:[%s14466_s2 + $0x5e4] ss:$8 sps:$4 sm:$0xff]  }
 0x22f   : > { %5956 = vmatprep.subr.bf16.mxu1 %v10005_v29  ;;  %v1904_v29 = vadd.f32 %v1876_v22, %v11021_v48  ;;  %v10024_v48 = vld [vmem:[%s14466_s2 + $0x5d0] ss:$8 sps:$4 sm:$0xff]   ;;  %v10035_v22 = vld [vmem:[%s14466_s2 + $0x5a4] ss:$8 sps:$4 sm:$0xff]  }
 0x230   : > { %4597 = vmatmul.mubr.bf16.gmra.mxu0 %v11527_v12  ;;  %4700 = vmatmul.mubr.bf16.gmra.mxu1 %v11527_v12 }
 0x231   : > { %4606 = vmatprep.mubr.bf16.mxu0 %v11541_v34  ;;  %4709 = vmatprep.mubr.bf16.mxu1 %v11541_v34  ;;  %v1932_v57 = vmax.f32 %v1904_v29, 0.0 }
 0x232   : > { %5957 = vmatpush1.bf16.msra.mxu1 %v10003_v28  ;;  %v11829_v28 = vpop.f32.mrf.mxu0 }
 0x233   : > { %5958 = vmatprep.subr.bf16.mxu1 %v10014_v0  ;;  %14731 = vst [vmem:[#allocation27_spill] sm:$0xff] %v11829_v28  ;;  %v1934_v0 = vmax.f32 %v1906_v16, 0.0  ;;  %v10033_v16 = vld [vmem:[%s14466_s2 + $0x5a0] ss:$8 sps:$4 sm:$0xff]  }
 0x234   : > { %v11839_v4 = vpop.f32.mrf.mxu0 }
 0x235   : > { %14732 = vst [vmem:[#allocation28_spill] sm:$0xff] %v11839_v4  ;;  %v11844_v24 = vpack.c.bf16 %v1934_v0, %v1932_v57  ;;  %v10042_v0 = vld [vmem:[%s14466_s2 + $0x670] ss:$8 sps:$4 sm:$0xff]   ;;  %v10047_v57 = vld [vmem:[%s14466_s2 + $0x664] ss:$8 sps:$4 sm:$0xff]  }
 0x236   : > { %5959 = vmatpush1.bf16.msra.mxu1 %v10012_v5  ;;  %v10029_v5 = vld [vmem:[%s14466_s2 + $0x5c4] ss:$8 sps:$4 sm:$0xff]   ;;  %v11851_v21 = vpop.f32.mrf.mxu0 }
 0x237   : > { %5960 = vmatprep.subr.bf16.mxu1 %v10020_v44  ;;  %14733 = vst [vmem:[#allocation43_spill] sm:$0xff] %v11844_v24  ;;  %14734 = vst [vmem:[#allocation44_spill] sm:$0xff] %v11851_v21  ;;  %v10027_v44 = vld [vmem:[%s14466_s2 + $0x5c0] ss:$8 sps:$4 sm:$0xff]  }
 0x238   : > { %4607 = vmatmul.mubr.bf16.gmra.mxu0 %v11548_v42  ;;  %4710 = vmatmul.mubr.bf16.gmra.mxu1 %v11548_v42  ;;  %v11861_v46 = vpop.f32.mrf.mxu0 }
 0x239   : > { %4616 = vmatprep.mubr.bf16.mxu0 %v11569_v23  ;;  %4719 = vmatprep.mubr.bf16.mxu1 %v11569_v23  ;;  %14735 = vst [vmem:[#allocation45_spill] sm:$0xff] %v11861_v46  ;;  %v14746_v46 = vld [vmem:[#allocation5_spill] sm:$0xff] }
 0x23a   : > { %5961 = vmatpush2.bf16.msra.mxu1 %v10018_v56  ;;  %v11871_v56 = vpop.f32.mrf.mxu0 }
 0x23b   : > { %5962 = vmatprep.subr.bf16.mxu1 %v10023_v6  ;;  %14736 = vst [vmem:[#allocation46_spill] sm:$0xff] %v11871_v56  ;;  %v10038_v6 = vld [vmem:[%s14466_s2 + $0x594] ss:$8 sps:$4 sm:$0xff]  }
 0x23c   : > { %v11881_v29 = vpop.f32.mrf.mxu0 }
 0x23d   : > { %14737 = vst [vmem:[#allocation47_spill] sm:$0xff] %v11881_v29 }
 0x23e   : > { %5963 = vmatpush2.bf16.msra.mxu1 %v10021_v17  ;;  %v10036_v17 = vld [vmem:[%s14466_s2 + $0x590] ss:$8 sps:$4 sm:$0xff]  }
 0x23f   : > { %5964 = vmatprep.subr.bf16.mxu1 %v10026_v20  ;;  %v10041_v20 = vld [vmem:[%s14466_s2 + $0x584] ss:$8 sps:$4 sm:$0xff]  }
 0x240   : > { %4617 = vmatmul.mubr.bf16.gmra.mxu0 %v11571_v7  ;;  %4720 = vmatmul.mubr.bf16.gmra.mxu1 %v11571_v7 }
 0x241   : > { %4626 = vmatprep.mubr.bf16.mxu0 %v11844_v24  ;;  %4729 = vmatprep.mubr.bf16.mxu1 %v11844_v24 }
 0x242   : > { %5965 = vmatpush2.bf16.msra.mxu1 %v10024_v48  ;;  %v11897_v48 = vpop.f32.mrf.mxu0 }
 0x243   : > { %5966 = vmatprep.subr.bf16.mxu1 %v10029_v5  ;;  %14738 = vst [vmem:[#allocation48_spill] sm:$0xff] %v11897_v48  ;;  %v10039_v5 = vld [vmem:[%s14466_s2 + $0x580] ss:$8 sps:$4 sm:$0xff]  }
 0x246   : > { %5967 = vmatpush2.bf16.msra.mxu1 %v10027_v44  ;;  %v10045_v44 = vld [vmem:[%s14466_s2 + $0x660] ss:$8 sps:$4 sm:$0xff]  }
 0x247   : > { %5968 = vmatprep.subr.bf16.mxu1 %v10032_v59  ;;  %v10050_v59 = vld [vmem:[%s14466_s2 + $0x774] ss:$8 sps:$4 sm:$0xff]  }
 0x248   : > { %4627 = vmatmul.mubr.bf16.gmra.mxu0 %v11582_v31  ;;  %4730 = vmatmul.mubr.bf16.gmra.mxu1 %v11582_v31 }
 0x249   : > { %4739 = vmatprep.mubr.bf16.mxu1 %v14708_v8  ;;  %4842 = vmatprep.mubr.bf16.mxu0 %v14708_v8 }
 0x24a   : > { %5969 = vmatpush2.bf16.msra.mxu1 %v10030_v41  ;;  %v10053_v41 = vld [vmem:[%s14466_s2 + $0x654] ss:$8 sps:$4 sm:$0xff]  }
 0x24b   : > { %5970 = vmatprep.subr.bf16.mxu1 %v10035_v22  ;;  %v11913_v22 = vpop.f32.mrf.mxu0 }
 0x24c   : > { %14739 = vst [vmem:[#allocation49_spill] sm:$0xff] %v11913_v22 }
 0x24e   : > { %5971 = vmatpush2.bf16.msra.mxu1 %v10033_v16  ;;  %v10051_v16 = vld [vmem:[%s14466_s2 + $0x650] ss:$8 sps:$4 sm:$0xff]  }
 0x24f   : > { %5972 = vmatprep.subr.bf16.mxu1 %v10038_v6  ;;  %v10056_v6 = vld [vmem:[%s14466_s2 + $0x644] ss:$8 sps:$4 sm:$0xff]  }
 0x250   : > { %4740 = vmatmul.mubr.bf16.gmra.mxu1 %v14709_v30  ;;  %4843 = vmatmul.mubr.bf16.vlgmr.msra.gmra.mxu0 %v14709_v30 }
 0x251   : > { %4749 = vmatprep.mubr.bf16.mxu1 %v14710_v27  ;;  %4852 = vmatprep.mubr.bf16.mxu0 %v14710_v27 }
 0x252   : > { %5973 = vmatpush2.bf16.msra.mxu1 %v10036_v17  ;;  %6118 = vmatpush1.bf16.msra.mxu0 %v10042_v0  ;;  %v11923_v17 = vpop.f32.mrf.mxu0  ;;  %v10054_v0 = vld [vmem:[%s14466_s2 + $0x640] ss:$8 sps:$4 sm:$0xff]  }
 0x253   : > { %5974 = vmatprep.subr.bf16.mxu1 %v10041_v20  ;;  %6119 = vmatprep.subr.bf16.mxu0 %v10047_v57  ;;  %14740 = vst [vmem:[#allocation50_spill] sm:$0xff] %v11923_v17  ;;  %v10062_v20 = vld [vmem:[%s14466_s2 + $0x634] ss:$8 sps:$4 sm:$0xff]  }
 0x254   : > { %v11933_v57 = vpop.f32.mrf.mxu0  ;;  %v10089_v17 = vld [vmem:[%s14466_s2 + $0x6d4] ss:$8 sps:$4 sm:$0xff]  }
 0x255   : > { %14741 = vst [vmem:[#allocation51_spill] sm:$0xff] %v11933_v57 }
 0x256   : > { %5975 = vmatpush2.bf16.msra.mxu1 %v10039_v5  ;;  %6120 = vmatpush1.bf16.msra.mxu0 %v10045_v44  ;;  %v10060_v5 = vld [vmem:[%s14466_s2 + $0x630] ss:$8 sps:$4 sm:$0xff]   ;;  %v11938_v44 = vpop.f32.mrf.mxu0 }
 0x257   : > { %6290 = vmatprep.subr.bf16.mxu1 %v10050_v59  ;;  %6121 = vmatprep.subr.bf16.mxu0 %v10053_v41  ;;  %14742 = vst [vmem:[#allocation52_spill] sm:$0xff] %v11938_v44  ;;  %v10065_v59 = vld [vmem:[%s14466_s2 + $0x624] ss:$8 sps:$4 sm:$0xff]   ;;  %v10063_v41 = vld [vmem:[%s14466_s2 + $0x620] ss:$8 sps:$4 sm:$0xff]  }
 0x258   : > { %4750 = vmatmul.mubr.bf16.gmra.mxu1 %v14711_v60  ;;  %4853 = vmatmul.mubr.bf16.gmra.mxu0 %v14711_v60 }
 0x259   : > { %4759 = vmatprep.mubr.bf16.mxu1 %v14712_v61  ;;  %4862 = vmatprep.mubr.bf16.mxu0 %v14712_v61 }
 0x25a   : > { %6122 = vmatpush1.bf16.msra.mxu0 %v10051_v16  ;;  %v11950_v16 = vpop.f32.mrf.mxu0 }
 0x25b   : > { %6123 = vmatprep.subr.bf16.mxu0 %v10056_v6  ;;  %14743 = vst [vmem:[#allocation53_spill] sm:$0xff] %v11950_v16  ;;  %v10071_v6 = vld [vmem:[%s14466_s2 + $0x614] ss:$8 sps:$4 sm:$0xff]  }
 0x25e   : > { %6124 = vmatpush1.bf16.msra.mxu0 %v10054_v0  ;;  %v10069_v0 = vld [vmem:[%s14466_s2 + $0x610] ss:$8 sps:$4 sm:$0xff]  }
 0x25f   : > { %6125 = vmatprep.subr.bf16.mxu0 %v10062_v20  ;;  %v11958_v20 = vpop.f32.mrf.mxu0 }
 0x260   : > { %4760 = vmatmul.mubr.bf16.gmra.mxu1 %v14713_v11  ;;  %4863 = vmatmul.mubr.bf16.gmra.mxu0 %v14713_v11  ;;  %14744 = vst [vmem:[#allocation54_spill] sm:$0xff] %v11958_v20  ;;  %v11975_v20 = vpop.f32.mrf.mxu1 }
 0x261   : > { %4769 = vmatprep.mubr.bf16.mxu1 %v14714_v38  ;;  %4872 = vmatprep.mubr.bf16.mxu0 %v14714_v38  ;;  %14745 = vst [vmem:[#allocation55_spill] sm:$0xff] %v11975_v20 }
 0x262   : > { %6126 = vmatpush1.bf16.msra.mxu0 %v10060_v5  ;;  %v10074_v5 = vld [vmem:[%s14466_s2 + $0x604] ss:$8 sps:$4 sm:$0xff]  }
 0x263   : > { %6127 = vmatprep.subr.bf16.mxu0 %v10065_v59  ;;  %v10072_v59 = vld [vmem:[%s14466_s2 + $0x600] ss:$8 sps:$4 sm:$0xff]  }
 0x266   : > { %6128 = vmatpush1.bf16.msra.mxu0 %v10063_v41  ;;  %v11970_v41 = vpop.f32.mrf.mxu0 }
 0x267   : > { %6129 = vmatprep.subr.bf16.mxu0 %v10071_v6  ;;  %v10080_v6 = vld [vmem:[%s14466_s2 + $0x6f4] ss:$8 sps:$4 sm:$0xff]  }
 0x268   : > { %4770 = vmatmul.mubr.bf16.gmra.mxu1 %v14716_v18  ;;  %4873 = vmatmul.mubr.bf16.gmra.mxu0 %v14716_v18 }
 0x269   : > { %4779 = vmatprep.mubr.bf16.mxu1 %v14717_v63  ;;  %4882 = vmatprep.mubr.bf16.mxu0 %v14717_v63 }
 0x26a   : > { %6130 = vmatpush1.bf16.msra.mxu0 %v10069_v0 }
 0x26b   : > { %6131 = vmatprep.subr.bf16.mxu0 %v10074_v5  ;;  %v10086_v5 = vld [vmem:[%s14466_s2 + $0x6e4] ss:$8 sps:$4 sm:$0xff]  }
 0x26e   : > { %6132 = vmatpush1.bf16.msra.mxu0 %v10072_v59 }
 0x26f   : > { %v11980_v16 = vpop.f32.mrf.mxu0  ;;  %v11982_v0 = vpop.f32.mrf.mxu1  ;;  %6133 = vmatprep.subr.bf16.mxu0 %v10080_v6  ;;  %v10084_v6 = vld [vmem:[%s14466_s2 + $0x6e0] ss:$8 sps:$4 sm:$0xff]  }
 0x270   : > { %4780 = vmatmul.mubr.bf16.gmra.mxu1 %v14718_v50  ;;  %4883 = vmatmul.mubr.bf16.gmra.mxu0 %v14718_v50 }
 0x271   : > { %4789 = vmatprep.mubr.bf16.mxu1 %v14719_v55  ;;  %4892 = vmatprep.mubr.bf16.mxu0 %v14719_v55  ;;  %v11991_v59 = vpop.f32.mrf.mxu0  ;;  %v11993_v20 = vpop.f32.mrf.mxu1 }
 0x272   : > { %6134 = vmatpush2.bf16.msra.mxu0 %v10078_v43  ;;  %v10087_v43 = vld [vmem:[%s14466_s2 + $0x6d0] ss:$8 sps:$4 sm:$0xff]  }
 0x273   : > { %v11998_v44 = vpop.f32.mrf.mxu0  ;;  %v12000_v57 = vpop.f32.mrf.mxu1  ;;  %6135 = vmatprep.subr.bf16.mxu0 %v10086_v5  ;;  %v10095_v5 = vld [vmem:[%s14466_s2 + $0x6c4] ss:$8 sps:$4 sm:$0xff]  }
 0x275   : > { %v12005_v22 = vpop.f32.mrf.mxu0  ;;  %v12007_v55 = vpop.f32.mrf.mxu1 }
 0x276   : > { %6136 = vmatpush2.bf16.msra.mxu0 %v10084_v6 }
 0x277   : > { %v12012_v48 = vpop.f32.mrf.mxu0  ;;  %v12014_v29 = vpop.f32.mrf.mxu1  ;;  %6137 = vmatprep.subr.bf16.mxu0 %v10089_v17  ;;  %v10093_v17 = vld [vmem:[%s14466_s2 + $0x6c0] ss:$8 sps:$4 sm:$0xff]  }
 0x278   : > { %4790 = vmatmul.mubr.bf16.gmra.mxu1 %v14720_v36  ;;  %4893 = vmatmul.mubr.bf16.gmra.mxu0 %v14720_v36  ;;  %v10098_v36 = vld [vmem:[%s14466_s2 + $0x6b4] ss:$8 sps:$4 sm:$0xff]  }
 0x279   : > { %v12021_v56 = vpop.f32.mrf.mxu0  ;;  %v12023_v6 = vpop.f32.mrf.mxu1  ;;  %4799 = vmatprep.mubr.bf16.mxu1 %v14746_v46  ;;  %4902 = vmatprep.mubr.bf16.mxu0 %v14746_v46 }
 0x27a   : > { %6138 = vmatpush2.bf16.msra.mxu0 %v10087_v43  ;;  %v10096_v43 = vld [vmem:[%s14466_s2 + $0x6b0] ss:$8 sps:$4 sm:$0xff]  }
 0x27b   : > { %v12030_v3 = vpop.f32.mrf.mxu0  ;;  %v12032_v21 = vpop.f32.mrf.mxu1  ;;  %6139 = vmatprep.subr.bf16.mxu0 %v10095_v5 }
 0x27d   : > { %v12037_v4 = vpop.f32.mrf.mxu0  ;;  %v12039_v28 = vpop.f32.mrf.mxu1 }
 0x27e   : > { %6140 = vmatpush2.bf16.msra.mxu0 %v10093_v17 }
 0x27f   : > { %6141 = vmatprep.subr.bf16.mxu0 %v10098_v36  ;;  %v12047_v53 = vpop.f32.mrf.mxu0  ;;  %v10102_v36 = vld [vmem:[%s14466_s2 + $0x6a0] ss:$8 sps:$4 sm:$0xff]  }
 0x280   : > { %14747 = vst [vmem:[#allocation56_spill] sm:$0xff] %v12047_v53  ;;  %v12049_v5 = vpop.f32.mrf.mxu1  ;;  %4800 = vmatmul.mubr.bf16.gmra.mxu1 %v14748_v1  ;;  %4903 = vmatmul.mubr.bf16.gmra.mxu0 %v14748_v1 }
 0x281   : > { %4912 = vmatprep.mubr.bf16.mxu0 %v11478_v58  ;;  %5976 = vmatprep.mubr.bf16.mxu1 %v14746_v46  ;;  %v12055_v17 = vpop.f32.mrf.mxu0  ;;  %v10048_v58 = vld [vmem:[%s14466_s2 + $0x770] ss:$8 sps:$4 sm:$0xff]  }
 0x282   : > { %14749 = vst [vmem:[#allocation57_spill] sm:$0xff] %v12055_v17  ;;  %v12057_v45 = vpop.f32.mrf.mxu1  ;;  %6142 = vmatpush2.bf16.msra.mxu0 %v10096_v43 }
 0x283   : > { %14750 = vst [vmem:[#allocation58_spill] sm:$0xff] %v12057_v45  ;;  %6143 = vmatprep.subr.bf16.mxu0 %v10104_v47  ;;  %v12065_v53 = vpop.f32.mrf.mxu0  ;;  %v10059_v47 = vld [vmem:[%s14466_s2 + $0x764] ss:$8 sps:$4 sm:$0xff]   ;;  %v10105_v45 = vld [vmem:[%s14466_s2 + $0x690] ss:$8 sps:$4 sm:$0xff]  }
 0x284   : > { %14751 = vst [vmem:[#allocation59_spill] sm:$0xff] %v12065_v53  ;;  %v12067_v49 = vpop.f32.mrf.mxu1 }
 0x285   : > { %14752 = vst [vmem:[#allocation60_spill] sm:$0xff] %v12067_v49  ;;  %v12072_v17 = vpop.f32.mrf.mxu0 }
 0x286   : > { %14753 = vst [vmem:[#allocation61_spill] sm:$0xff] %v12072_v17  ;;  %v12074_v43 = vpop.f32.mrf.mxu1  ;;  %6144 = vmatpush2.bf16.msra.mxu0 %v10102_v36  ;;  %v10113_v17 = vld [vmem:[%s14466_s2 + $0x684] ss:$8 sps:$4 sm:$0xff]   ;;  %v10057_v36 = vld [vmem:[%s14466_s2 + $0x760] ss:$8 sps:$4 sm:$0xff]  }
 0x287   : > { %6145 = vmatprep.subr.bf16.mxu0 %v10107_v51  ;;  %v12082_v53 = vpop.f32.mrf.mxu0 }
 0x288   : > { %14754 = vst [vmem:[#allocation62_spill] sm:$0xff] %v12082_v53  ;;  %v12084_v49 = vpop.f32.mrf.mxu1  ;;  %4913 = vmatmul.mubr.bf16.gmra.mxu0 %v11485_v9  ;;  %5977 = vmatmul.mubr.bf16.vlgmr.msra.gmra.mxu1 %v14748_v1  ;;  %v10068_v9 = vld [vmem:[%s14466_s2 + $0x754] ss:$8 sps:$4 sm:$0xff]  }
 0x289   : > { %14755 = vst [vmem:[#allocation63_spill] sm:$0xff] %v12084_v49  ;;  %6291 = vmatpush1.bf16.msra.mxu1 %v10048_v58  ;;  %4922 = vmatprep.mubr.bf16.mxu0 %v11504_v26  ;;  %v12096_v51 = vpop.f32.mrf.mxu0  ;;  %v10111_v58 = vld [vmem:[%s14466_s2 + $0x680] ss:$8 sps:$4 sm:$0xff]  }
 0x28a   : > { %5986 = vmatprep.mubr.bf16.mxu1 %v14705_v14  ;;  %14756 = vst [vmem:[#allocation64_spill] sm:$0xff] %v12096_v51  ;;  %v12098_v53 = vpop.f32.mrf.mxu1  ;;  %6292 = vmatprep.subr.bf16.mxu1 %v10059_v47  ;;  %v10066_v47 = vld [vmem:[%s14466_s2 + $0x750] ss:$8 sps:$4 sm:$0xff]  }
 0x28b   : > { %6146 = vmatpush2.bf16.msra.mxu0 %v10105_v45  ;;  %v12106_v26 = vpop.f32.mrf.mxu0  ;;  %v10140_v45 = vld [vmem:[%s14466_s2 + $0x874] ss:$8 sps:$4 sm:$0xff]  }
 0x28c   : > { %14757 = vst [vmem:[#allocation65_spill] sm:$0xff] %v12106_v26  ;;  %v12108_v49 = vpop.f32.mrf.mxu1  ;;  %6147 = vmatprep.subr.bf16.mxu0 %v10113_v17  ;;  %v10077_v26 = vld [vmem:[%s14466_s2 + $0x744] ss:$8 sps:$4 sm:$0xff]  }
 0x28d   : > { %6293 = vmatpush1.bf16.msra.mxu1 %v10057_v36  ;;  %v12110_v14 = vpop.f32.mrf.mxu0 }
 0x28e   : > { %14758 = vst [vmem:[#allocation66_spill] sm:$0xff] %v12110_v14  ;;  %v12112_v51 = vpop.f32.mrf.mxu1  ;;  %6294 = vmatprep.subr.bf16.mxu1 %v10068_v9 }
 0x28f   : > { %6148 = vmatpush2.bf16.msra.mxu0 %v10111_v58  ;;  %v12123_v17 = vpop.f32.mrf.mxu0  ;;  %v10075_v58 = vld [vmem:[%s14466_s2 + $0x740] ss:$8 sps:$4 sm:$0xff]  }
 0x290   : > { %14759 = vst [vmem:[#allocation67_spill] sm:$0xff] %v12123_v17  ;;  %v12125_v36 = vpop.f32.mrf.mxu1  ;;  %4923 = vmatmul.mubr.bf16.gmra.mxu0 %v11506_v25  ;;  %5987 = vmatmul.mubr.bf16.gmra.mxu1 %v14707_v2  ;;  %v10083_v25 = vld [vmem:[%s14466_s2 + $0x734] ss:$8 sps:$4 sm:$0xff]  }
 0x291   : > { %4932 = vmatprep.mubr.bf16.mxu0 %v11525_v15  ;;  %5996 = vmatprep.mubr.bf16.mxu1 %v14708_v8  ;;  %v12131_v9 = vpop.f32.mrf.mxu0 }
 0x292   : > { %14760 = vst [vmem:[#allocation68_spill] sm:$0xff] %v12131_v9  ;;  %v12133_v14 = vpop.f32.mrf.mxu1  ;;  %6295 = vmatpush1.bf16.msra.mxu1 %v10066_v47  ;;  %6463 = vmatprep.subr.bf16.mxu0 %v10140_v45  ;;  %v10081_v47 = vld [vmem:[%s14466_s2 + $0x730] ss:$8 sps:$4 sm:$0xff]  }
 0x293   : > { %6296 = vmatprep.subr.bf16.mxu1 %v10077_v26  ;;  %v12141_v2 = vpop.f32.mrf.mxu0  ;;  %v10092_v26 = vld [vmem:[%s14466_s2 + $0x724] ss:$8 sps:$4 sm:$0xff]  }
 0x294   : > { %v12143_v15 = vpop.f32.mrf.mxu1 }
 0x295   : > { %v12145_v8 = vpop.f32.mrf.mxu0 }
 0x296   : > { %14761 = vst [vmem:[#allocation69_spill] sm:$0xff] %v12145_v8  ;;  %v12147_v9 = vpop.f32.mrf.mxu1  ;;  %6297 = vmatpush1.bf16.msra.mxu1 %v10075_v58 }
 0x297   : > { %6298 = vmatprep.subr.bf16.mxu1 %v10083_v25  ;;  %v10090_v25 = vld [vmem:[%s14466_s2 + $0x720] ss:$8 sps:$4 sm:$0xff]  }
 0x298   : > { %v12155_v45 = vpop.f32.mrf.mxu0  ;;  %v12157_v17 = vpop.f32.mrf.mxu1  ;;  %4933 = vmatmul.mubr.bf16.gmra.mxu0 %v11527_v12  ;;  %5997 = vmatmul.mubr.bf16.gmra.mxu1 %v14709_v30  ;;  %v10101_v12 = vld [vmem:[%s14466_s2 + $0x714] ss:$8 sps:$4 sm:$0xff]  }
 0x299   : > { %14762 = vst [vmem:[#allocation70_spill] sm:$0xff] %v12155_v45  ;;  %4942 = vmatprep.mubr.bf16.mxu0 %v11541_v34  ;;  %6006 = vmatprep.mubr.bf16.mxu1 %v14710_v27 }
 0x29a   : > { %v12163_v58 = vpop.f32.mrf.mxu0  ;;  %v12165_v8 = vpop.f32.mrf.mxu1  ;;  %6299 = vmatpush1.bf16.msra.mxu1 %v10081_v47  ;;  %v10099_v47 = vld [vmem:[%s14466_s2 + $0x710] ss:$8 sps:$4 sm:$0xff]  }
 0x29b   : > { %14763 = vst [vmem:[#allocation71_spill] sm:$0xff] %v12163_v58  ;;  %14764 = vst [vmem:[#allocation72_spill] sm:$0xff] %v12165_v8  ;;  %6300 = vmatprep.subr.bf16.mxu1 %v10092_v26  ;;  %v10110_v26 = vld [vmem:[%s14466_s2 + $0x704] ss:$8 sps:$4 sm:$0xff]  }
 0x29c   : > { %v12173_v45 = vpop.f32.mrf.mxu0  ;;  %v12175_v30 = vpop.f32.mrf.mxu1 }
 0x29d   : > { %14765 = vst [vmem:[#allocation73_spill] sm:$0xff] %v12173_v45 }
 0x29e   : > { %v12177_v34 = vpop.f32.mrf.mxu0  ;;  %v12179_v27 = vpop.f32.mrf.mxu1  ;;  %6301 = vmatpush1.bf16.msra.mxu1 %v10090_v25 }
 0x29f   : > { %14766 = vst [vmem:[#allocation74_spill] sm:$0xff] %v12177_v34  ;;  %6302 = vmatprep.subr.bf16.mxu1 %v10101_v12 }
 0x2a0   : > { %v12187_v58 = vpop.f32.mrf.mxu1  ;;  %v4498_v8 = vpop.f32.mrf.mxu0  ;;  %4943 = vmatmul.mubr.bf16.gmra.mxu0 %v11548_v42  ;;  %6007 = vmatmul.mubr.bf16.gmra.mxu1 %v14711_v60 }
 0x2a1   : > { %14767 = vst [vmem:[#allocation75_spill] sm:$0xff] %v12187_v58  ;;  %v12192_v34 = vadd.f32 %v4498_v8, %v11592_v33  ;;  %4952 = vmatprep.mubr.bf16.mxu0 %v11569_v23  ;;  %6016 = vmatprep.mubr.bf16.mxu1 %v14712_v61  ;;  %v10108_v58 = vld [vmem:[%s14466_s2 + $0x700] ss:$8 sps:$4 sm:$0xff]   ;;  %v10116_v33 = vld [vmem:[%s14466_s2 + $0x7f4] ss:$8 sps:$4 sm:$0xff]  }
 0x2a2   : > { %v12196_v25 = vpop.f32.mrf.mxu1  ;;  %v4500_v12 = vpop.f32.mrf.mxu0  ;;  %6303 = vmatpush1.bf16.msra.mxu1 %v10099_v47 }
 0x2a3   : > { %v12202_v45 = vadd.f32 %v4500_v12, %v11601_v35  ;;  %6304 = vmatprep.subr.bf16.mxu1 %v10110_v26  ;;  %v10114_v35 = vld [vmem:[%s14466_s2 + $0x7f0] ss:$8 sps:$4 sm:$0xff]   ;;  %v4336_v26 = vadd.f32 %v11982_v0, %v11666_v19  ;;  %v10117_v0 = vld [vmem:[%s14466_s2 + $0x7e0] ss:$8 sps:$4 sm:$0xff]  }
 0x2a4   : > { %v12207_v8 = vpop.f32.mrf.mxu1  ;;  %v4502_v60 = vpop.f32.mrf.mxu0 }
 0x2a5   : > { %v12210_v61 = vadd.f32 %v4502_v60, %v11606_v62  ;;  %v10119_v62 = vld [vmem:[%s14466_s2 + $0x7e4] ss:$8 sps:$4 sm:$0xff]  }
 0x2a6   : > { %v4401_v23 = vpop.f32.mrf.mxu1  ;;  %v12212_v47 = vpop.f32.mrf.mxu0  ;;  %6305 = vmatpush1.bf16.msra.mxu1 %v10108_v58  ;;  %v4338_v58 = vadd.f32 %v11993_v20, %v11676_v54 }
 0x2a7   : > { %14768 = vst [vmem:[#allocation76_spill] sm:$0xff] %v12210_v61  ;;  %v12220_v12 = vadd.f32 %v4401_v23, %v11970_v41  ;;  %6306 = vmatprep.subr.bf16.mxu1 %v10116_v33  ;;  %v4340_v33 = vadd.f32 %v12000_v57, %v11686_v39 }
 0x2a8   : > { %v4405_v60 = vpop.f32.mrf.mxu1  ;;  %v4508_v42 = vpop.f32.mrf.mxu0  ;;  %4953 = vmatmul.mubr.bf16.gmra.mxu0 %v11571_v7  ;;  %6017 = vmatmul.mubr.bf16.gmra.mxu1 %v14713_v11 }
 0x2a9   : > { %v12230_v61 = vadd.f32 %v4405_v60, %v11980_v16  ;;  %v12232_v19 = vadd.f32 %v4508_v42, %v4336_v26  ;;  %4962 = vmatprep.mubr.bf16.mxu0 %v11844_v24  ;;  %6026 = vmatprep.mubr.bf16.mxu1 %v14714_v38  ;;  %v10122_v42 = vld [vmem:[%s14466_s2 + $0x7d4] ss:$8 sps:$4 sm:$0xff]  }
 0x2aa   : > { %v4407_v23 = vpop.f32.mrf.mxu1  ;;  %v4510_v41 = vpop.f32.mrf.mxu0  ;;  %6307 = vmatpush2.bf16.msra.mxu1 %v10114_v35  ;;  %v4342_v35 = vadd.f32 %v12007_v55, %v11696_v10  ;;  %v10125_v55 = vld [vmem:[%s14466_s2 + $0x7c4] ss:$8 sps:$4 sm:$0xff]  }
 0x2ab   : > { %v12242_v54 = vadd.f32 %v4407_v23, %v11991_v59  ;;  %v12244_v16 = vadd.f32 %v4510_v41, %v4338_v58  ;;  %6308 = vmatprep.subr.bf16.mxu1 %v10119_v62  ;;  %v10120_v59 = vld [vmem:[%s14466_s2 + $0x7d0] ss:$8 sps:$4 sm:$0xff]   ;;  %v4346_v62 = vadd.f32 %v12014_v29, %v11706_v52  ;;  %v4348_v41 = vadd.f32 %v12023_v6, %v11716_v32  ;;  %v10128_v6 = vld [vmem:[%s14466_s2 + $0x7b4] ss:$8 sps:$4 sm:$0xff]  }
 0x2ac   : > { %v4409_v20 = vpop.f32.mrf.mxu1  ;;  %v4512_v26 = vpop.f32.mrf.mxu0 }
 0x2ad   : > { %v12252_v60 = vadd.f32 %v4409_v20, %v11998_v44  ;;  %v12254_v24 = vadd.f32 %v4512_v26, %v4340_v33  ;;  %v10123_v33 = vld [vmem:[%s14466_s2 + $0x7c0] ss:$8 sps:$4 sm:$0xff]  }
 0x2ae   : > { %v4411_v39 = vpop.f32.mrf.mxu1  ;;  %v4514_v57 = vpop.f32.mrf.mxu0  ;;  %6309 = vmatpush2.bf16.msra.mxu1 %v10117_v0 }
 0x2af   : > { %v12262_v58 = vadd.f32 %v4411_v39, %v12005_v22  ;;  %v12264_v23 = vadd.f32 %v4514_v57, %v4342_v35  ;;  %6310 = vmatprep.subr.bf16.mxu1 %v10122_v42  ;;  %v4350_v42 = vadd.f32 %v12032_v21, %v11732_v37  ;;  %v4352_v35 = vadd.f32 %v12039_v28, %v11745_v40 }
 0x2b0   : > { %v4415_v10 = vpop.f32.mrf.mxu1  ;;  %v4518_v44 = vpop.f32.mrf.mxu0  ;;  %4963 = vmatmul.mubr.bf16.gmra.mxu0 %v11582_v31  ;;  %6027 = vmatmul.mubr.bf16.gmra.mxu1 %v14716_v18  ;;  %v10135_v31 = vld [vmem:[%s14466_s2 + $0x780] ss:$8 sps:$4 sm:$0xff]  }
 0x2b1   : > { %v12274_v52 = vadd.f32 %v4415_v10, %v12012_v48  ;;  %v12276_v29 = vadd.f32 %v4518_v44, %v4346_v62  ;;  %6036 = vmatprep.mubr.bf16.mxu1 %v14717_v63  ;;  %4972 = vmatprep.mubr.bf16.mxu0 %v14746_v46  ;;  %v14769_v10 = vld [vmem:[#allocation29_spill] sm:$0xff]  ;;  %v14770_v44 = vld [vmem:[#allocation58_spill] sm:$0xff] }
 0x2b2   : > { %v4417_v22 = vpop.f32.mrf.mxu1  ;;  %v4520_v0 = vpop.f32.mrf.mxu0  ;;  %6311 = vmatpush2.bf16.msra.mxu1 %v10120_v59  ;;  %v4356_v59 = vadd.f32 %v12049_v5, %v11758_v13  ;;  %v14771_v13 = vld [vmem:[#allocation56_spill] sm:$0xff]  ;;  %v14788_v18 = vld [vmem:[#allocation66_spill] sm:$0xff] }
 0x2b3   : > { %v12286_v32 = vadd.f32 %v4417_v22, %v12021_v56  ;;  %v12288_v48 = vadd.f32 %v4520_v0, %v4348_v41  ;;  %6312 = vmatprep.subr.bf16.mxu1 %v10125_v55  ;;  %v10126_v56 = vld [vmem:[%s14466_s2 + $0x7b0] ss:$8 sps:$4 sm:$0xff]   ;;  %v4358_v41 = vadd.f32 %v14770_v44, %v14769_v10 }
 0x2b4   : > { %v4419_v20 = vpop.f32.mrf.mxu1  ;;  %v4522_v26 = vpop.f32.mrf.mxu0  ;;  %v14776_v10 = vld [vmem:[#allocation59_spill] sm:$0xff] }
 0x2b5   : > { %v12296_v39 = vadd.f32 %v4419_v20, %v12030_v3  ;;  %v12298_v57 = vadd.f32 %v4522_v26, %v4350_v42  ;;  %v10131_v3 = vld [vmem:[%s14466_s2 + $0x7a4] ss:$8 sps:$4 sm:$0xff]  }
 0x2b6   : > { %v4421_v37 = vpop.f32.mrf.mxu1  ;;  %v4524_v21 = vpop.f32.mrf.mxu0  ;;  %6313 = vmatpush2.bf16.msra.mxu1 %v10123_v33  ;;  %v10129_v33 = vld [vmem:[%s14466_s2 + $0x7a0] ss:$8 sps:$4 sm:$0xff]  }
 0x2b7   : > { %v12306_v62 = vadd.f32 %v4421_v37, %v12037_v4  ;;  %v12308_v55 = vadd.f32 %v4524_v21, %v4352_v35  ;;  %6314 = vmatprep.subr.bf16.mxu1 %v10128_v6  ;;  %v14772_v42 = vld [vmem:[#allocation30_spill] sm:$0xff]  ;;  %v14773_v6 = vld [vmem:[#allocation60_spill] sm:$0xff]  ;;  %v14774_v26 = vld [vmem:[#allocation57_spill] sm:$0xff] }
 0x2b8   : > { %v4425_v40 = vpop.f32.mrf.mxu1  ;;  %v4528_v28 = vpop.f32.mrf.mxu0  ;;  %4973 = vmatmul.mubr.bf16.gmra.mxu0 %v14748_v1  ;;  %6037 = vmatmul.mubr.bf16.gmra.mxu1 %v14718_v50  ;;  %v4360_v20 = vadd.f32 %v14773_v6, %v14772_v42  ;;  %v10134_v21 = vld [vmem:[%s14466_s2 + $0x794] ss:$8 sps:$4 sm:$0xff]  }
 0x2b9   : > { %v12318_v5 = vadd.f32 %v4425_v40, %v14771_v13  ;;  %v12320_v4 = vadd.f32 %v4528_v28, %v4356_v59  ;;  %6046 = vmatprep.mubr.bf16.mxu1 %v14746_v46  ;;  %6149 = vmatprep.mubr.bf16.mxu0 %v14746_v46  ;;  %v14778_v6 = vld [vmem:[#allocation63_spill] sm:$0xff]  ;;  %v14785_v50 = vld [vmem:[#allocation28_spill] sm:$0xff] }
 0x2ba   : > { %v4427_v22 = vpop.f32.mrf.mxu1  ;;  %v4530_v0 = vpop.f32.mrf.mxu0  ;;  %6315 = vmatpush2.bf16.msra.mxu1 %v10126_v56  ;;  %v14775_v56 = vld [vmem:[#allocation42_spill] sm:$0xff] }
 0x2bb   : > { %v12330_v35 = vadd.f32 %v4427_v22, %v14774_v26  ;;  %v12332_v37 = vadd.f32 %v4530_v0, %v4358_v41  ;;  %6316 = vmatprep.subr.bf16.mxu1 %v10131_v3  ;;  %v4362_v28 = vadd.f32 %v12074_v43, %v14775_v56  ;;  %v10132_v3 = vld [vmem:[%s14466_s2 + $0x790] ss:$8 sps:$4 sm:$0xff]   ;;  %v14779_v43 = vld [vmem:[#allocation61_spill] sm:$0xff] }
 0x2bc   : > { %v4429_v59 = vpop.f32.mrf.mxu1  ;;  %v4532_v40 = vpop.f32.mrf.mxu0  ;;  %v10138_v41 = vld [vmem:[%s14466_s2 + $0x870] ss:$8 sps:$4 sm:$0xff]  }
 0x2bd   : > { %v12340_v44 = vadd.f32 %v4429_v59, %v14776_v10  ;;  %v12342_v13 = vadd.f32 %v4532_v40, %v4360_v20  ;;  %v14777_v0 = vld [vmem:[#allocation32_spill] sm:$0xff]  ;;  %v10143_v20 = vld [vmem:[%s14466_s2 + $0x864] ss:$8 sps:$4 sm:$0xff]  }
 0x2be   : > { %v4431_v42 = vpop.f32.mrf.mxu1  ;;  %v4534_v22 = vpop.f32.mrf.mxu0  ;;  %6317 = vmatpush2.bf16.msra.mxu1 %v10129_v33  ;;  %v4366_v26 = vadd.f32 %v14778_v6, %v14777_v0  ;;  %v10137_v33 = vld [vmem:[%s14466_s2 + $0x784] ss:$8 sps:$4 sm:$0xff]   ;;  %v14780_v0 = vld [vmem:[#allocation31_spill] sm:$0xff] }
 0x2bf   : > { %v12353_v56 = vadd.f32 %v4431_v42, %v14779_v43  ;;  %v12355_v59 = vadd.f32 %v4534_v22, %v4362_v28  ;;  %6318 = vmatprep.subr.bf16.mxu1 %v10134_v21  ;;  %v4368_v42 = vadd.f32 %v12098_v53, %v14780_v0  ;;  %v14781_v28 = vld [vmem:[#allocation62_spill] sm:$0xff]  ;;  %v14782_v6 = vld [vmem:[#allocation33_spill] sm:$0xff] }
 0x2c0   : > { %v4435_v40 = vpop.f32.mrf.mxu1  ;;  %v4538_v10 = vpop.f32.mrf.mxu0  ;;  %6047 = vmatmul.mubr.bf16.gmra.mxu1 %v14748_v1  ;;  %6150 = vmatmul.mubr.bf16.vlgmr.msra.gmra.mxu0 %v14748_v1  ;;  %v10141_v53 = vld [vmem:[%s14466_s2 + $0x860] ss:$8 sps:$4 sm:$0xff]  }
 0x2c1   : > { %v12368_v22 = vadd.f32 %v4435_v40, %v14781_v28  ;;  %v12370_v21 = vadd.f32 %v4538_v10, %v4366_v26  ;;  %6056 = vmatprep.mubr.bf16.mxu1 %v14782_v6  ;;  %6159 = vmatprep.mubr.bf16.mxu0 %v14782_v6  ;;  %v14783_v40 = vld [vmem:[#allocation27_spill] sm:$0xff]  ;;  %v14784_v10 = vld [vmem:[#allocation64_spill] sm:$0xff] }
 0x2c2   : > { %v4437_v43 = vpop.f32.mrf.mxu1  ;;  %v4540_v46 = vpop.f32.mrf.mxu0  ;;  %6319 = vmatpush2.bf16.msra.mxu1 %v10132_v3  ;;  %6464 = vmatpush1.bf16.msra.mxu0 %v10138_v41  ;;  %v4370_v26 = vadd.f32 %v12108_v49, %v14783_v40  ;;  %v10146_v3 = vld [vmem:[%s14466_s2 + $0x974] ss:$8 sps:$4 sm:$0xff]   ;;  %v4372_v49 = vadd.f32 %v12112_v51, %v14785_v50  ;;  %v14786_v40 = vld [vmem:[#allocation65_spill] sm:$0xff] }
 0x2c3   : > { %v12383_v0 = vadd.f32 %v4437_v43, %v14784_v10  ;;  %v12385_v28 = vadd.f32 %v4540_v46, %v4368_v42  ;;  %6320 = vmatprep.subr.bf16.mxu1 %v10137_v33  ;;  %6465 = vmatprep.subr.bf16.mxu0 %v10143_v20  ;;  %v10149_v41 = vld [vmem:[%s14466_s2 + $0x854] ss:$8 sps:$4 sm:$0xff]   ;;  %v10147_v42 = vld [vmem:[%s14466_s2 + $0x850] ss:$8 sps:$4 sm:$0xff]  }
 0x2c4   : > { %v4439_v1 = vpop.f32.mrf.mxu1  ;;  %v4542_v6 = vpop.f32.mrf.mxu0  ;;  %v14787_v10 = vld [vmem:[#allocation44_spill] sm:$0xff] }
 0x2c5   : > { %v12396_v43 = vadd.f32 %v4439_v1, %v14786_v40  ;;  %v12398_v46 = vadd.f32 %v4542_v6, %v4370_v26  ;;  %v4376_v63 = vadd.f32 %v12125_v36, %v14787_v10  ;;  %v10152_v1 = vld [vmem:[%s14466_s2 + $0x844] ss:$8 sps:$4 sm:$0xff]   ;;  %v14791_v26 = vld [vmem:[#allocation67_spill] sm:$0xff] }
 0x2c6   : > { %v4441_v33 = vpop.f32.mrf.mxu1  ;;  %v4544_v20 = vpop.f32.mrf.mxu0  ;;  %6321 = vmatpush2.bf16.msra.mxu1 %v10135_v31  ;;  %6466 = vmatpush1.bf16.msra.mxu0 %v10141_v53  ;;  %v14789_v6 = vld [vmem:[#allocation34_spill] sm:$0xff]  ;;  %v14790_v53 = vld [vmem:[#allocation45_spill] sm:$0xff] }
 0x2c7   : > { %v12406_v38 = vadd.f32 %v4441_v33, %v14788_v18  ;;  %v12408_v50 = vadd.f32 %v4544_v20, %v4372_v49  ;;  %6636 = vmatprep.subr.bf16.mxu1 %v10146_v3  ;;  %6467 = vmatprep.subr.bf16.mxu0 %v10149_v41  ;;  %v4378_v36 = vadd.f32 %v12133_v14, %v14790_v53  ;;  %v14792_v3 = vld [vmem:[#allocation35_spill] sm:$0xff]  ;;  %v10150_v33 = vld [vmem:[%s14466_s2 + $0x840] ss:$8 sps:$4 sm:$0xff]   ;;  %v14794_v14 = vld [vmem:[#allocation68_spill] sm:$0xff] }
 0x2c8   : > { %v4445_v31 = vpop.f32.mrf.mxu1  ;;  %v4548_v51 = vpop.f32.mrf.mxu0  ;;  %6057 = vmatmul.mubr.bf16.gmra.mxu1 %v14789_v6  ;;  %6160 = vmatmul.mubr.bf16.gmra.mxu0 %v14789_v6  ;;  %v14793_v20 = vld [vmem:[#allocation46_spill] sm:$0xff] }
 0x2c9   : > { %v12418_v18 = vadd.f32 %v4445_v31, %v14791_v26  ;;  %v12420_v49 = vadd.f32 %v4548_v51, %v4376_v63  ;;  %6066 = vmatprep.mubr.bf16.mxu1 %v14792_v3  ;;  %6169 = vmatprep.mubr.bf16.mxu0 %v14792_v3  ;;  %v4380_v10 = vadd.f32 %v12143_v15, %v14793_v20  ;;  %v10158_v63 = vld [vmem:[%s14466_s2 + $0x834] ss:$8 sps:$4 sm:$0xff]   ;;  %v14798_v20 = vld [vmem:[#allocation69_spill] sm:$0xff] }
 0x2ca   : > { %v4447_v41 = vpop.f32.mrf.mxu1  ;;  %v4550_v40 = vpop.f32.mrf.mxu0  ;;  %6468 = vmatpush1.bf16.msra.mxu0 %v10147_v42  ;;  %v14796_v42 = vld [vmem:[#allocation47_spill] sm:$0xff] }
 0x2cb   : > { %v12430_v53 = vadd.f32 %v4447_v41, %v14794_v14  ;;  %v12432_v31 = vadd.f32 %v4550_v40, %v4378_v36  ;;  %6469 = vmatprep.subr.bf16.mxu0 %v10152_v1  ;;  %v4382_v3 = vadd.f32 %v12147_v9, %v14796_v42  ;;  %v10156_v1 = vld [vmem:[%s14466_s2 + $0x830] ss:$8 sps:$4 sm:$0xff]  }
 0x2cc   : > { %v4449_v51 = vpop.f32.mrf.mxu1  ;;  %v4552_v26 = vpop.f32.mrf.mxu0  ;;  %v14797_v36 = vld [vmem:[#allocation48_spill] sm:$0xff] }
 0x2cd   : > { %14795 = vst [vmem:[#allocation29_spill] sm:$0xff] %v12432_v31  ;;  %v12440_v6 = vadd.f32 %v4449_v51, %v12141_v2  ;;  %v12442_v11 = vadd.f32 %v4552_v26, %v4380_v10  ;;  %v4386_v40 = vadd.f32 %v12157_v17, %v14797_v36  ;;  %v10161_v2 = vld [vmem:[%s14466_s2 + $0x824] ss:$8 sps:$4 sm:$0xff]   ;;  %v14803_v26 = vld [vmem:[#allocation72_spill] sm:$0xff] }
 0x2ce   : > { %v4451_v15 = vpop.f32.mrf.mxu1  ;;  %v4554_v41 = vpop.f32.mrf.mxu0  ;;  %6470 = vmatpush1.bf16.msra.mxu0 %v10150_v33  ;;  %v14801_v33 = vld [vmem:[#allocation36_spill] sm:$0xff]  ;;  %v14802_v51 = vld [vmem:[#allocation49_spill] sm:$0xff]  ;;  %v14804_v17 = vld [vmem:[#allocation70_spill] sm:$0xff] }
 0x2cf   : > { %v12450_v14 = vadd.f32 %v4451_v15, %v14798_v20  ;;  %v12452_v31 = vadd.f32 %v4554_v41, %v4382_v3  ;;  %6471 = vmatprep.subr.bf16.mxu0 %v10158_v63  ;;  %v4388_v42 = vadd.f32 %v14803_v26, %v14802_v51  ;;  %v14807_v3 = vld [vmem:[#allocation37_spill] sm:$0xff]  ;;  %v14809_v51 = vld [vmem:[#allocation71_spill] sm:$0xff] }
 0x2d0   : > { %v4455_v9 = vpop.f32.mrf.mxu1  ;;  %v4558_v10 = vpop.f32.mrf.mxu0  ;;  %6067 = vmatmul.mubr.bf16.gmra.mxu1 %v14801_v33  ;;  %6170 = vmatmul.mubr.bf16.gmra.mxu0 %v14801_v33  ;;  %v10159_v20 = vld [vmem:[%s14466_s2 + $0x820] ss:$8 sps:$4 sm:$0xff]  }
 0x2d1   : > { %14799 = vst [vmem:[#allocation58_spill] sm:$0xff] %v12450_v14  ;;  %14800 = vst [vmem:[#allocation56_spill] sm:$0xff] %v12452_v31  ;;  %v12462_v36 = vadd.f32 %v4455_v9, %v14804_v17  ;;  %v12464_v15 = vadd.f32 %v4558_v10, %v4386_v40  ;;  %6076 = vmatprep.mubr.bf16.mxu1 %v14807_v3  ;;  %6179 = vmatprep.mubr.bf16.mxu0 %v14807_v3  ;;  %v14808_v33 = vld [vmem:[#allocation50_spill] sm:$0xff]  ;;  %v10167_v40 = vld [vmem:[%s14466_s2 + $0x814] ss:$8 sps:$4 sm:$0xff]  }
 0x2d2   : > { %v4457_v63 = vpop.f32.mrf.mxu1  ;;  %v4560_v41 = vpop.f32.mrf.mxu0  ;;  %6472 = vmatpush1.bf16.msra.mxu0 %v10156_v1  ;;  %v4390_v31 = vadd.f32 %v12175_v30, %v14808_v33  ;;  %v14812_v1 = vld [vmem:[#allocation51_spill] sm:$0xff] }
 0x2d3   : > { %14805 = vst [vmem:[#allocation30_spill] sm:$0xff] %v12462_v36  ;;  %14806 = vst [vmem:[#allocation60_spill] sm:$0xff] %v12464_v15  ;;  %v12474_v26 = vadd.f32 %v4457_v63, %v14809_v51  ;;  %v12476_v9 = vadd.f32 %v4560_v41, %v4388_v42  ;;  %6473 = vmatprep.subr.bf16.mxu0 %v10161_v2  ;;  %v4392_v3 = vadd.f32 %v12179_v27, %v14812_v1  ;;  %v14813_v15 = vld [vmem:[#allocation73_spill] sm:$0xff]  ;;  %v10165_v2 = vld [vmem:[%s14466_s2 + $0x810] ss:$8 sps:$4 sm:$0xff]  }
 0x2d4   : > { %v4459_v10 = vpop.f32.mrf.mxu1  ;;  %v4562_v17 = vpop.f32.mrf.mxu0  ;;  %v14814_v42 = vld [vmem:[#allocation52_spill] sm:$0xff]  ;;  %v14815_v63 = vld [vmem:[#allocation75_spill] sm:$0xff]  ;;  %v14816_v51 = vld [vmem:[#allocation74_spill] sm:$0xff] }
 0x2d5   : > { %14810 = vst [vmem:[#allocation57_spill] sm:$0xff] %v12474_v26  ;;  %14811 = vst [vmem:[#allocation42_spill] sm:$0xff] %v12476_v9  ;;  %v12484_v36 = vadd.f32 %v4459_v10, %v14813_v15  ;;  %v12486_v14 = vadd.f32 %v4562_v17, %v4390_v31  ;;  %v4396_v41 = vadd.f32 %v14815_v63, %v14814_v42  ;;  %v10170_v27 = vld [vmem:[%s14466_s2 + $0x804] ss:$8 sps:$4 sm:$0xff]   ;;  %v10168_v42 = vld [vmem:[%s14466_s2 + $0x800] ss:$8 sps:$4 sm:$0xff]  }
 0x2d6   : > { %v4461_v30 = vpop.f32.mrf.mxu1  ;;  %v4564_v33 = vpop.f32.mrf.mxu0  ;;  %6474 = vmatpush1.bf16.msra.mxu0 %v10159_v20  ;;  %v14817_v20 = vld [vmem:[#allocation38_spill] sm:$0xff]  ;;  %v14818_v10 = vld [vmem:[#allocation53_spill] sm:$0xff] }
 0x2d7   : > { %v12494_v9 = vadd.f32 %v4461_v30, %v14816_v51  ;;  %v12496_v26 = vadd.f32 %v4564_v33, %v4392_v3  ;;  %6475 = vmatprep.subr.bf16.mxu0 %v10167_v40  ;;  %v4398_v17 = vadd.f32 %v12196_v25, %v14818_v10  ;;  %v14820_v3 = vld [vmem:[#allocation39_spill] sm:$0xff]  ;;  %v14821_v63 = vld [vmem:[#allocation26_spill] sm:$0xff] }
 0x2d8   : > { %v4568_v31 = vpop.f32.mrf.mxu0  ;;  %v4671_v15 = vpop.f32.mrf.mxu1  ;;  %6077 = vmatmul.mubr.bf16.gmra.mxu1 %v14817_v20  ;;  %6180 = vmatmul.mubr.bf16.gmra.mxu0 %v14817_v20  ;;  %v14822_v51 = vld [vmem:[#allocation55_spill] sm:$0xff]  ;;  %v14823_v25 = vld [vmem:[#allocation54_spill] sm:$0xff] }
 0x2d9   : > { %v12505_v1 = vadd.f32 %v4568_v31, %v4396_v41  ;;  %v12508_v30 = vadd.f32 %v4671_v15, %v12192_v34  ;;  %6086 = vmatprep.mubr.bf16.mxu1 %v14820_v3  ;;  %6189 = vmatprep.mubr.bf16.mxu0 %v14820_v3  ;;  %v4332_v20 = vadd.f32 %v14822_v51, %v14821_v63  ;;  %v14824_v63 = vld [vmem:[#allocation76_spill] sm:$0xff] }
 0x2da   : > { %v4570_v40 = vpop.f32.mrf.mxu0  ;;  %v4673_v33 = vpop.f32.mrf.mxu1  ;;  %6476 = vmatpush1.bf16.msra.mxu0 %v10165_v2  ;;  %v4400_v41 = vadd.f32 %v12207_v8, %v14823_v25  ;;  %v10176_v2 = vld [vmem:[%s14466_s2 + $0x8f4] ss:$8 sps:$4 sm:$0xff]  }
 0x2db   : > { %14819 = vst [vmem:[#allocation59_spill] sm:$0xff] %v12508_v30  ;;  %v12519_v31 = vadd.f32 %v4570_v40, %v4398_v17  ;;  %v12522_v34 = vadd.f32 %v4673_v33, %v12202_v45  ;;  %6477 = vmatprep.subr.bf16.mxu0 %v10170_v27  ;;  %v4505_v3 = vadd.f32 %v12212_v47, %v4332_v20  ;;  %v10174_v45 = vld [vmem:[%s14466_s2 + $0x8f0] ss:$8 sps:$4 sm:$0xff]   ;;  %v10182_v47 = vld [vmem:[%s14466_s2 + $0x8e4] ss:$8 sps:$4 sm:$0xff]  }
 0x2dc   : > { %v4572_v15 = vpop.f32.mrf.mxu0  ;;  %v4675_v10 = vpop.f32.mrf.mxu1  ;;  %v14825_v25 = vld [vmem:[#allocation40_spill] sm:$0xff] }
 0x2dd   : > { %v12528_v30 = vadd.f32 %v4572_v15, %v4400_v41  ;;  %v12531_v51 = vadd.f32 %v4675_v10, %v14824_v63  ;;  %v10180_v15 = vld [vmem:[%s14466_s2 + $0x8e0] ss:$8 sps:$4 sm:$0xff]  }
 0x2de   : > { %v4574_v8 = vpop.f32.mrf.mxu0  ;;  %v4677_v17 = vpop.f32.mrf.mxu1  ;;  %6478 = vmatpush1.bf16.msra.mxu0 %v10168_v42 }
 0x2df   : > { %v12537_v27 = vadd.f32 %v4574_v8, %v12220_v12  ;;  %v12539_v40 = vadd.f32 %v4677_v17, %v4505_v3  ;;  %6479 = vmatprep.subr.bf16.mxu0 %v10176_v2  ;;  %v14826_v12 = vld [vmem:[#allocation41_spill] sm:$0xff] }
 0x2e0   : > { %v4578_v20 = vpop.f32.mrf.mxu0  ;;  %v4681_v33 = vpop.f32.mrf.mxu1  ;;  %6087 = vmatmul.mubr.bf16.gmra.mxu1 %v14825_v25  ;;  %6190 = vmatmul.mubr.bf16.gmra.mxu0 %v14825_v25  ;;  %v14842_v25 = vld [vmem:[#allocation60_spill] sm:$0xff] }
 0x2e1   : > { %v12547_v42 = vadd.f32 %v4578_v20, %v12230_v61  ;;  %v12550_v41 = vadd.f32 %v4681_v33, %v12232_v19  ;;  %6096 = vmatprep.mubr.bf16.mxu1 %v14826_v12  ;;  %6199 = vmatprep.mubr.bf16.mxu0 %v14826_v12  ;;  %v10185_v19 = vld [vmem:[%s14466_s2 + $0x8d4] ss:$8 sps:$4 sm:$0xff]  }
 0x2e2   : > { %v4580_v3 = vpop.f32.mrf.mxu0  ;;  %v4683_v2 = vpop.f32.mrf.mxu1  ;;  %6480 = vmatpush2.bf16.msra.mxu0 %v10174_v45 }
 0x2e3   : > { %v12558_v10 = vadd.f32 %v4580_v3, %v12242_v54  ;;  %v12561_v61 = vadd.f32 %v4683_v2, %v12244_v16  ;;  %6481 = vmatprep.subr.bf16.mxu0 %v10182_v47  ;;  %v10183_v54 = vld [vmem:[%s14466_s2 + $0x8d0] ss:$8 sps:$4 sm:$0xff]   ;;  %v14827_v2 = vld [vmem:[#allocation14_spill] sm:$0xff] }
 0x2e4   : > { %v4582_v63 = vpop.f32.mrf.mxu0  ;;  %v4685_v8 = vpop.f32.mrf.mxu1 }
 0x2e5   : > { %v12567_v17 = vadd.f32 %v4582_v63, %v12252_v60  ;;  %v12570_v45 = vadd.f32 %v4685_v8, %v12254_v24  ;;  %v10191_v60 = vld [vmem:[%s14466_s2 + $0x8c4] ss:$8 sps:$4 sm:$0xff]   ;;  %v14828_v63 = vld [vmem:[#allocation11_spill] sm:$0xff]  ;;  %v10189_v8 = vld [vmem:[%s14466_s2 + $0x8c0] ss:$8 sps:$4 sm:$0xff]  }
 0x2e6   : > { %v4584_v20 = vpop.f32.mrf.mxu0  ;;  %v4687_v33 = vpop.f32.mrf.mxu1  ;;  %6482 = vmatpush2.bf16.msra.mxu0 %v10180_v15 }
 0x2e7   : > { %v12576_v16 = vadd.f32 %v4584_v20, %v12262_v58  ;;  %v12579_v47 = vadd.f32 %v4687_v33, %v12264_v23  ;;  %6483 = vmatprep.subr.bf16.mxu0 %v10185_v19 }
 0x2e8   : > { %v4588_v24 = vpop.f32.mrf.mxu0  ;;  %v4691_v3 = vpop.f32.mrf.mxu1  ;;  %6097 = vmatmul.mubr.bf16.gmra.mxu1 %v14827_v2  ;;  %6200 = vmatmul.mubr.bf16.gmra.mxu0 %v14827_v2 }
 0x2e9   : > { %v12587_v15 = vadd.f32 %v4588_v24, %v12274_v52  ;;  %v12590_v58 = vadd.f32 %v4691_v3, %v12276_v29  ;;  %6106 = vmatprep.mubr.bf16.mxu1 %v14828_v63  ;;  %6209 = vmatprep.mubr.bf16.mxu0 %v14828_v63  ;;  %v10194_v29 = vld [vmem:[%s14466_s2 + $0x8b4] ss:$8 sps:$4 sm:$0xff]  }
 0x2ea   : > { %v4590_v23 = vpop.f32.mrf.mxu0  ;;  %v4693_v19 = vpop.f32.mrf.mxu1  ;;  %6484 = vmatpush2.bf16.msra.mxu0 %v10183_v54 }
 0x2eb   : > { %v12598_v20 = vadd.f32 %v4590_v23, %v12286_v32  ;;  %v12601_v52 = vadd.f32 %v4693_v19, %v12288_v48  ;;  %6485 = vmatprep.subr.bf16.mxu0 %v10191_v60  ;;  %v10192_v32 = vld [vmem:[%s14466_s2 + $0x8b0] ss:$8 sps:$4 sm:$0xff]  }
 0x2ec   : > { %v4592_v33 = vpop.f32.mrf.mxu0  ;;  %v4695_v24 = vpop.f32.mrf.mxu1 }
 0x2ed   : > { %v12607_v3 = vadd.f32 %v4592_v33, %v12296_v39  ;;  %v12610_v54 = vadd.f32 %v4695_v24, %v12298_v57  ;;  %v10200_v39 = vld [vmem:[%s14466_s2 + $0x8a4] ss:$8 sps:$4 sm:$0xff]  }
 0x2ee   : > { %v4594_v63 = vpop.f32.mrf.mxu0  ;;  %v4697_v2 = vpop.f32.mrf.mxu1  ;;  %6486 = vmatpush2.bf16.msra.mxu0 %v10189_v8  ;;  %v10198_v8 = vld [vmem:[%s14466_s2 + $0x8a0] ss:$8 sps:$4 sm:$0xff]  }
 0x2ef   : > { %v12616_v48 = vadd.f32 %v4594_v63, %v12306_v62  ;;  %v12619_v60 = vadd.f32 %v4697_v2, %v12308_v55  ;;  %6487 = vmatprep.subr.bf16.mxu0 %v10194_v29  ;;  %v14829_v63 = vld [vmem:[#allocation16_spill] sm:$0xff] }
 0x2f0   : > { %v4598_v57 = vpop.f32.mrf.mxu0  ;;  %v4701_v23 = vpop.f32.mrf.mxu1  ;;  %6107 = vmatmul.mubr.bf16.gmra.mxu1 %v11571_v7  ;;  %6210 = vmatmul.mubr.bf16.gmra.mxu0 %v11571_v7 }
 0x2f1   : > { %v12627_v19 = vadd.f32 %v4598_v57, %v12318_v5  ;;  %v12630_v62 = vadd.f32 %v4701_v23, %v12320_v4  ;;  %6219 = vmatprep.mubr.bf16.mxu0 %v14829_v63  ;;  %6322 = vmatprep.mubr.bf16.mxu1 %v14829_v63  ;;  %v10203_v4 = vld [vmem:[%s14466_s2 + $0x894] ss:$8 sps:$4 sm:$0xff]  }
 0x2f2   : > { %v4600_v55 = vpop.f32.mrf.mxu0  ;;  %v4703_v2 = vpop.f32.mrf.mxu1  ;;  %6488 = vmatpush2.bf16.msra.mxu0 %v10192_v32 }
 0x2f3   : > { %v12638_v29 = vadd.f32 %v4600_v55, %v12330_v35  ;;  %v12641_v5 = vadd.f32 %v4703_v2, %v12332_v37  ;;  %6489 = vmatprep.subr.bf16.mxu0 %v10200_v39  ;;  %v10144_v35 = vld [vmem:[%s14466_s2 + $0x970] ss:$8 sps:$4 sm:$0xff]   ;;  %v10155_v39 = vld [vmem:[%s14466_s2 + $0x964] ss:$8 sps:$4 sm:$0xff]  }
 0x2f4   : > { %v4602_v33 = vpop.f32.mrf.mxu0  ;;  %v4705_v24 = vpop.f32.mrf.mxu1 }
 0x2f5   : > { %v12647_v57 = vadd.f32 %v4602_v33, %v12340_v44  ;;  %v12650_v32 = vadd.f32 %v4705_v24, %v12342_v13  ;;  %v10201_v13 = vld [vmem:[%s14466_s2 + $0x890] ss:$8 sps:$4 sm:$0xff]   ;;  %v14830_v33 = vld [vmem:[#allocation17_spill] sm:$0xff]  ;;  %v14831_v24 = vld [vmem:[#allocation18_spill] sm:$0xff] }
 0x2f6   : > { %v4604_v23 = vpop.f32.mrf.mxu0  ;;  %v4707_v37 = vpop.f32.mrf.mxu1  ;;  %6490 = vmatpush2.bf16.msra.mxu0 %v10198_v8  ;;  %v10209_v8 = vld [vmem:[%s14466_s2 + $0x884] ss:$8 sps:$4 sm:$0xff]  }
 0x2f7   : > { %v12659_v63 = vadd.f32 %v4604_v23, %v12353_v56  ;;  %v12662_v44 = vadd.f32 %v4707_v37, %v12355_v59  ;;  %6491 = vmatprep.subr.bf16.mxu0 %v10203_v4  ;;  %v10153_v4 = vld [vmem:[%s14466_s2 + $0x960] ss:$8 sps:$4 sm:$0xff]  }
 0x2f8   : > { %v4608_v55 = vpop.f32.mrf.mxu0  ;;  %v4711_v2 = vpop.f32.mrf.mxu1  ;;  %6220 = vmatmul.mubr.bf16.gmra.mxu0 %v14830_v33  ;;  %6323 = vmatmul.mubr.bf16.vlgmr.msra.gmra.mxu1 %v14830_v33 }
 0x2f9   : > { %v12673_v56 = vadd.f32 %v4608_v55, %v12368_v22  ;;  %v12676_v59 = vadd.f32 %v4711_v2, %v12370_v21  ;;  %6637 = vmatpush1.bf16.msra.mxu1 %v10144_v35  ;;  %6229 = vmatprep.mubr.bf16.mxu0 %v14831_v24  ;;  %v10164_v22 = vld [vmem:[%s14466_s2 + $0x954] ss:$8 sps:$4 sm:$0xff]   ;;  %v10207_v35 = vld [vmem:[%s14466_s2 + $0x880] ss:$8 sps:$4 sm:$0xff]  }
 0x2fa   : > { %6332 = vmatprep.mubr.bf16.mxu1 %v14831_v24  ;;  %v4610_v23 = vpop.f32.mrf.mxu0  ;;  %v4713_v37 = vpop.f32.mrf.mxu1  ;;  %6638 = vmatprep.subr.bf16.mxu1 %v10155_v39 }
 0x2fb   : > { %v12687_v55 = vadd.f32 %v4610_v23, %v12383_v0  ;;  %v12690_v21 = vadd.f32 %v4713_v37, %v12385_v28  ;;  %6492 = vmatpush2.bf16.msra.mxu0 %v10201_v13  ;;  %v10162_v28 = vld [vmem:[%s14466_s2 + $0x950] ss:$8 sps:$4 sm:$0xff]  }
 0x2fc   : > { %v4612_v2 = vpop.f32.mrf.mxu0  ;;  %v4715_v33 = vpop.f32.mrf.mxu1  ;;  %6493 = vmatprep.subr.bf16.mxu0 %v10209_v8 }
 0x2fd   : > { %v12696_v39 = vadd.f32 %v4612_v2, %v12396_v43  ;;  %v12699_v24 = vadd.f32 %v4715_v33, %v12398_v46  ;;  %6639 = vmatpush1.bf16.msra.mxu1 %v10153_v4  ;;  %v10173_v43 = vld [vmem:[%s14466_s2 + $0x944] ss:$8 sps:$4 sm:$0xff]   ;;  %v14832_v4 = vld [vmem:[#allocation19_spill] sm:$0xff] }
 0x2fe   : > { %v4614_v0 = vpop.f32.mrf.mxu0  ;;  %v4717_v23 = vpop.f32.mrf.mxu1  ;;  %6640 = vmatprep.subr.bf16.mxu1 %v10164_v22  ;;  %v14833_v22 = vld [vmem:[#allocation20_spill] sm:$0xff] }
 0x2ff   : > { %v12705_v13 = vadd.f32 %v4614_v0, %v12406_v38  ;;  %v12708_v37 = vadd.f32 %v4717_v23, %v12408_v50  ;;  %6494 = vmatpush2.bf16.msra.mxu0 %v10207_v35  ;;  %v10171_v35 = vld [vmem:[%s14466_s2 + $0x940] ss:$8 sps:$4 sm:$0xff]  }
 0x300   : > { %v4618_v46 = vpop.f32.mrf.mxu0  ;;  %v4721_v8 = vpop.f32.mrf.mxu1  ;;  %6230 = vmatmul.mubr.bf16.gmra.mxu0 %v14832_v4  ;;  %6333 = vmatmul.mubr.bf16.gmra.mxu1 %v14832_v4  ;;  %v14834_v23 = vld [vmem:[#allocation29_spill] sm:$0xff] }
 0x301   : > { %v12716_v2 = vadd.f32 %v4618_v46, %v12418_v18  ;;  %v12719_v38 = vadd.f32 %v4721_v8, %v12420_v49  ;;  %6239 = vmatprep.mubr.bf16.mxu0 %v14833_v22  ;;  %6342 = vmatprep.mubr.bf16.mxu1 %v14833_v22  ;;  %v10179_v49 = vld [vmem:[%s14466_s2 + $0x934] ss:$8 sps:$4 sm:$0xff]  }
 0x302   : > { %v4620_v50 = vpop.f32.mrf.mxu0  ;;  %v4723_v33 = vpop.f32.mrf.mxu1  ;;  %6641 = vmatpush1.bf16.msra.mxu1 %v10162_v28 }
 0x303   : > { %v12727_v0 = vadd.f32 %v4620_v50, %v12430_v53  ;;  %v12730_v18 = vadd.f32 %v4723_v33, %v14834_v23  ;;  %6642 = vmatprep.subr.bf16.mxu1 %v10173_v43  ;;  %v10177_v53 = vld [vmem:[%s14466_s2 + $0x930] ss:$8 sps:$4 sm:$0xff]   ;;  %v14835_v43 = vld [vmem:[#allocation58_spill] sm:$0xff] }
 0x304   : > { %v4622_v46 = vpop.f32.mrf.mxu0  ;;  %v4725_v8 = vpop.f32.mrf.mxu1  ;;  %v14837_v33 = vld [vmem:[#allocation56_spill] sm:$0xff] }
 0x305   : > { %v12736_v22 = vadd.f32 %v4622_v46, %v12440_v6  ;;  %v12739_v28 = vadd.f32 %v4725_v8, %v12442_v11  ;;  %v10188_v6 = vld [vmem:[%s14466_s2 + $0x924] ss:$8 sps:$4 sm:$0xff]  }
 0x306   : > { %v4624_v4 = vpop.f32.mrf.mxu0  ;;  %v4727_v7 = vpop.f32.mrf.mxu1  ;;  %6643 = vmatpush1.bf16.msra.mxu1 %v10171_v35  ;;  %v14839_v8 = vld [vmem:[#allocation21_spill] sm:$0xff]  ;;  %v14840_v35 = vld [vmem:[#allocation30_spill] sm:$0xff] }
 0x307   : > { %v12745_v50 = vadd.f32 %v4624_v4, %v14835_v43  ;;  %v12748_v23 = vadd.f32 %v4727_v7, %v14837_v33  ;;  %6644 = vmatprep.subr.bf16.mxu1 %v10179_v49  ;;  %v14844_v43 = vld [vmem:[#allocation22_spill] sm:$0xff] }
 0x308   : > { %v4628_v11 = vpop.f32.mrf.mxu0  ;;  %v4731_v46 = vpop.f32.mrf.mxu1  ;;  %6240 = vmatmul.mubr.bf16.gmra.mxu0 %v14839_v8  ;;  %6343 = vmatmul.mubr.bf16.gmra.mxu1 %v14839_v8  ;;  %v10186_v33 = vld [vmem:[%s14466_s2 + $0x920] ss:$8 sps:$4 sm:$0xff]  }
 0x309   : > { %14836 = vst [vmem:[#allocation32_spill] sm:$0xff] %v12745_v50  ;;  %14838 = vst [vmem:[#allocation63_spill] sm:$0xff] %v12748_v23  ;;  %v12756_v12 = vadd.f32 %v4628_v11, %v14840_v35  ;;  %v12759_v4 = vadd.f32 %v4731_v46, %v14842_v25  ;;  %6249 = vmatprep.mubr.bf16.mxu0 %v14844_v43  ;;  %6352 = vmatprep.mubr.bf16.mxu1 %v14844_v43  ;;  %v14845_v23 = vld [vmem:[#allocation57_spill] sm:$0xff]  ;;  %v14846_v8 = vld [vmem:[#allocation42_spill] sm:$0xff] }
 0x30a   : > { %v4630_v7 = vpop.f32.mrf.mxu0  ;;  %v4733_v49 = vpop.f32.mrf.mxu1  ;;  %6645 = vmatpush1.bf16.msra.mxu1 %v10177_v53  ;;  %v10197_v25 = vld [vmem:[%s14466_s2 + $0x914] ss:$8 sps:$4 sm:$0xff]  }
 0x30b   : > { %14841 = vst [vmem:[#allocation61_spill] sm:$0xff] %v12756_v12  ;;  %14843 = vst [vmem:[#allocation31_spill] sm:$0xff] %v12759_v4  ;;  %v12767_v50 = vadd.f32 %v4630_v7, %v14845_v23  ;;  %v12770_v11 = vadd.f32 %v4733_v49, %v14846_v8  ;;  %6646 = vmatprep.subr.bf16.mxu1 %v10188_v6  ;;  %v10195_v23 = vld [vmem:[%s14466_s2 + $0x910] ss:$8 sps:$4 sm:$0xff]  }
 0x30c   : > { %v4632_v46 = vpop.f32.mrf.mxu0  ;;  %v4735_v35 = vpop.f32.mrf.mxu1  ;;  %v14847_v49 = vld [vmem:[#allocation23_spill] sm:$0xff] }
 0x30d   : > { %v12776_v43 = vadd.f32 %v4632_v46, %v12484_v36  ;;  %v12779_v53 = vadd.f32 %v4735_v35, %v12486_v14  ;;  %v10206_v36 = vld [vmem:[%s14466_s2 + $0x904] ss:$8 sps:$4 sm:$0xff]   ;;  %v14848_v46 = vld [vmem:[#allocation59_spill] sm:$0xff] }
 0x30e   : > { %v4634_v4 = vpop.f32.mrf.mxu0  ;;  %v4737_v12 = vpop.f32.mrf.mxu1  ;;  %6647 = vmatpush1.bf16.msra.mxu1 %v10186_v33 }
 0x30f   : > { %v12785_v6 = vadd.f32 %v4634_v4, %v12494_v9  ;;  %v12788_v8 = vadd.f32 %v4737_v12, %v12496_v26  ;;  %6648 = vmatprep.subr.bf16.mxu1 %v10197_v25  ;;  %v14850_v4 = vld [vmem:[#allocation24_spill] sm:$0xff]  ;;  %v10204_v25 = vld [vmem:[%s14466_s2 + $0x900] ss:$8 sps:$4 sm:$0xff]  }
 0x310   : > { %v4741_v14 = vpop.f32.mrf.mxu1  ;;  %v4844_v7 = vpop.f32.mrf.mxu0  ;;  %6250 = vmatmul.mubr.bf16.gmra.mxu0 %v14847_v49  ;;  %6353 = vmatmul.mubr.bf16.gmra.mxu1 %v14847_v49 }
 0x311   : > { %v12796_v33 = vadd.f32 %v4741_v14, %v12505_v1  ;;  %v12799_v9 = vadd.f32 %v4844_v7, %v14848_v46  ;;  %6259 = vmatprep.mubr.bf16.mxu0 %v14850_v4  ;;  %6362 = vmatprep.mubr.bf16.mxu1 %v14850_v4  ;;  %v10212_v14 = vld [vmem:[%s14466_s2 + $0x9f4] ss:$8 sps:$4 sm:$0xff]  }
 0x312   : > { %v4743_v26 = vpop.f32.mrf.mxu1  ;;  %v4846_v12 = vpop.f32.mrf.mxu0  ;;  %6649 = vmatpush1.bf16.msra.mxu1 %v10195_v23 }
 0x313   : > { %14849 = vst [vmem:[#allocation62_spill] sm:$0xff] %v12799_v9  ;;  %v12807_v35 = vadd.f32 %v4743_v26, %v12519_v31  ;;  %v12810_v1 = vadd.f32 %v4846_v12, %v12522_v34  ;;  %6650 = vmatprep.subr.bf16.mxu1 %v10206_v36  ;;  %v10210_v31 = vld [vmem:[%s14466_s2 + $0x9f0] ss:$8 sps:$4 sm:$0xff]   ;;  %v14854_v12 = vld [vmem:[#allocation25_spill] sm:$0xff] }
 0x314   : > { %v4745_v7 = vpop.f32.mrf.mxu1  ;;  %v4848_v46 = vpop.f32.mrf.mxu0 }
 0x315   : > { %14851 = vst [vmem:[#allocation27_spill] sm:$0xff] %v12810_v1  ;;  %v12816_v9 = vadd.f32 %v4745_v7, %v12528_v30  ;;  %v12819_v23 = vadd.f32 %v4848_v46, %v12531_v51  ;;  %v10215_v30 = vld [vmem:[%s14466_s2 + $0x9e4] ss:$8 sps:$4 sm:$0xff]  }
 0x316   : > { %v4747_v4 = vpop.f32.mrf.mxu1  ;;  %v4850_v49 = vpop.f32.mrf.mxu0  ;;  %6651 = vmatpush1.bf16.msra.mxu1 %v10204_v25 }
 0x317   : > { %14852 = vst [vmem:[#allocation64_spill] sm:$0xff] %v12819_v23  ;;  %v12825_v34 = vadd.f32 %v4747_v4, %v12537_v27  ;;  %v12828_v36 = vadd.f32 %v4850_v49, %v12539_v40  ;;  %6652 = vmatprep.subr.bf16.mxu1 %v10212_v14  ;;  %v14856_v4 = vld [vmem:[#allocation7_spill] sm:$0xff]  ;;  %v10213_v14 = vld [vmem:[%s14466_s2 + $0x9e0] ss:$8 sps:$4 sm:$0xff]  }
 0x318   : > { %v4751_v51 = vpop.f32.mrf.mxu1  ;;  %v4854_v26 = vpop.f32.mrf.mxu0  ;;  %6260 = vmatmul.mubr.bf16.gmra.mxu0 %v14854_v12  ;;  %6363 = vmatmul.mubr.bf16.gmra.mxu1 %v14854_v12 }
 0x319   : > { %14853 = vst [vmem:[#allocation28_spill] sm:$0xff] %v12828_v36  ;;  %v12836_v25 = vadd.f32 %v4751_v51, %v12547_v42  ;;  %v12839_v27 = vadd.f32 %v4854_v26, %v12550_v41  ;;  %6269 = vmatprep.mubr.bf16.mxu0 %v14856_v4  ;;  %6372 = vmatprep.mubr.bf16.mxu1 %v14856_v4  ;;  %v10218_v41 = vld [vmem:[%s14466_s2 + $0x9d4] ss:$8 sps:$4 sm:$0xff]  }
 0x31a   : > { %v4753_v40 = vpop.f32.mrf.mxu1  ;;  %v4856_v49 = vpop.f32.mrf.mxu0  ;;  %6653 = vmatpush2.bf16.msra.mxu1 %v10210_v31 }
 0x31b   : > { %14855 = vst [vmem:[#allocation65_spill] sm:$0xff] %v12839_v27  ;;  %v12847_v7 = vadd.f32 %v4753_v40, %v12558_v10  ;;  %v12850_v42 = vadd.f32 %v4856_v49, %v12561_v61  ;;  %6654 = vmatprep.subr.bf16.mxu1 %v10215_v30  ;;  %v10216_v10 = vld [vmem:[%s14466_s2 + $0x9d0] ss:$8 sps:$4 sm:$0xff]  }
 0x31c   : > { %v4755_v46 = vpop.f32.mrf.mxu1  ;;  %v4858_v51 = vpop.f32.mrf.mxu0  ;;  %v14860_v49 = vld [vmem:[#allocation8_spill] sm:$0xff] }
 0x31d   : > { %14857 = vst [vmem:[#allocation44_spill] sm:$0xff] %v12850_v42  ;;  %v12856_v26 = vadd.f32 %v4755_v46, %v12567_v17  ;;  %v12859_v31 = vadd.f32 %v4858_v51, %v12570_v45  ;;  %v10221_v17 = vld [vmem:[%s14466_s2 + $0x9c4] ss:$8 sps:$4 sm:$0xff]  }
 0x31e   : > { %v4757_v27 = vpop.f32.mrf.mxu1  ;;  %v4860_v36 = vpop.f32.mrf.mxu0  ;;  %6655 = vmatpush2.bf16.msra.mxu1 %v10213_v14 }
 0x31f   : > { %14858 = vst [vmem:[#allocation66_spill] sm:$0xff] %v12859_v31  ;;  %v12865_v61 = vadd.f32 %v4757_v27, %v12576_v16  ;;  %v12868_v30 = vadd.f32 %v4860_v36, %v12579_v47  ;;  %6656 = vmatprep.subr.bf16.mxu1 %v10218_v41  ;;  %v14862_v27 = vld [vmem:[#allocation10_spill] sm:$0xff] }
 0x320   : > { %v4761_v45 = vpop.f32.mrf.mxu1  ;;  %v4864_v40 = vpop.f32.mrf.mxu0  ;;  %6270 = vmatmul.mubr.bf16.gmra.mxu0 %v14860_v49  ;;  %6373 = vmatmul.mubr.bf16.gmra.mxu1 %v14860_v49  ;;  %v10219_v41 = vld [vmem:[%s14466_s2 + $0x9c0] ss:$8 sps:$4 sm:$0xff]  }
 0x321   : > { %14859 = vst [vmem:[#allocation45_spill] sm:$0xff] %v12868_v30  ;;  %v12876_v14 = vadd.f32 %v4761_v45, %v12587_v15  ;;  %v12879_v16 = vadd.f32 %v4864_v40, %v12590_v58  ;;  %6279 = vmatprep.mubr.bf16.mxu0 %v14862_v27  ;;  %6382 = vmatprep.mubr.bf16.mxu1 %v14862_v27  ;;  %v10224_v58 = vld [vmem:[%s14466_s2 + $0x9b4] ss:$8 sps:$4 sm:$0xff]  }
 0x322   : > { %v4763_v47 = vpop.f32.mrf.mxu1  ;;  %v4866_v36 = vpop.f32.mrf.mxu0  ;;  %6657 = vmatpush2.bf16.msra.mxu1 %v10216_v10 }
 0x323   : > { %14861 = vst [vmem:[#allocation67_spill] sm:$0xff] %v12879_v16  ;;  %v12887_v46 = vadd.f32 %v4763_v47, %v12598_v20  ;;  %v12890_v15 = vadd.f32 %v4866_v36, %v12601_v52  ;;  %6658 = vmatprep.subr.bf16.mxu1 %v10221_v17  ;;  %v10222_v20 = vld [vmem:[%s14466_s2 + $0x9b0] ss:$8 sps:$4 sm:$0xff]   ;;  %v14866_v36 = vld [vmem:[#allocation9_spill] sm:$0xff] }
 0x324   : > { %v4765_v51 = vpop.f32.mrf.mxu1  ;;  %v4868_v45 = vpop.f32.mrf.mxu0 }
 0x325   : > { %14863 = vst [vmem:[#allocation46_spill] sm:$0xff] %v12890_v15  ;;  %v12896_v40 = vadd.f32 %v4765_v51, %v12607_v3  ;;  %v12899_v10 = vadd.f32 %v4868_v45, %v12610_v54  ;;  %v10227_v3 = vld [vmem:[%s14466_s2 + $0x9a4] ss:$8 sps:$4 sm:$0xff]  }
 0x326   : > { %v4767_v16 = vpop.f32.mrf.mxu1  ;;  %v4870_v30 = vpop.f32.mrf.mxu0  ;;  %6659 = vmatpush2.bf16.msra.mxu1 %v10219_v41 }
 0x327   : > { %14864 = vst [vmem:[#allocation68_spill] sm:$0xff] %v12899_v10  ;;  %v12905_v52 = vadd.f32 %v4767_v16, %v12616_v48  ;;  %v12908_v17 = vadd.f32 %v4870_v30, %v12619_v60  ;;  %6660 = vmatprep.subr.bf16.mxu1 %v10224_v58  ;;  %v14868_v16 = vld [vmem:[#allocation33_spill] sm:$0xff] }
 0x328   : > { %v4771_v54 = vpop.f32.mrf.mxu1  ;;  %v4874_v47 = vpop.f32.mrf.mxu0  ;;  %6280 = vmatmul.mubr.bf16.gmra.mxu0 %v14866_v36  ;;  %6383 = vmatmul.mubr.bf16.gmra.mxu1 %v14866_v36  ;;  %v10225_v58 = vld [vmem:[%s14466_s2 + $0x9a0] ss:$8 sps:$4 sm:$0xff]  }
 0x329   : > { %14865 = vst [vmem:[#allocation47_spill] sm:$0xff] %v12908_v17  ;;  %v12916_v41 = vadd.f32 %v4771_v54, %v12627_v19  ;;  %v12919_v48 = vadd.f32 %v4874_v47, %v12630_v62  ;;  %6392 = vmatprep.mubr.bf16.mxu1 %v14868_v16  ;;  %6495 = vmatprep.mubr.bf16.mxu0 %v14868_v16  ;;  %v10230_v62 = vld [vmem:[%s14466_s2 + $0x994] ss:$8 sps:$4 sm:$0xff]  }
 0x32a   : > { %v4773_v60 = vpop.f32.mrf.mxu1  ;;  %v4876_v30 = vpop.f32.mrf.mxu0  ;;  %6661 = vmatpush2.bf16.msra.mxu1 %v10222_v20 }
 0x32b   : > { %14867 = vst [vmem:[#allocation48_spill] sm:$0xff] %v12919_v48  ;;  %v12927_v51 = vadd.f32 %v4773_v60, %v12638_v29  ;;  %v12930_v19 = vadd.f32 %v4876_v30, %v12641_v5  ;;  %6662 = vmatprep.subr.bf16.mxu1 %v10227_v3  ;;  %v10228_v29 = vld [vmem:[%s14466_s2 + $0x990] ss:$8 sps:$4 sm:$0xff]   ;;  %v14872_v30 = vld [vmem:[#allocation34_spill] sm:$0xff] }
 0x32c   : > { %v4775_v45 = vpop.f32.mrf.mxu1  ;;  %v4878_v54 = vpop.f32.mrf.mxu0 }
 0x32d   : > { %14869 = vst [vmem:[#allocation69_spill] sm:$0xff] %v12930_v19  ;;  %v12936_v47 = vadd.f32 %v4775_v45, %v12647_v57  ;;  %v12939_v20 = vadd.f32 %v4878_v54, %v12650_v32  ;;  %v10233_v57 = vld [vmem:[%s14466_s2 + $0x984] ss:$8 sps:$4 sm:$0xff]   ;;  %v14874_v45 = vld [vmem:[#allocation35_spill] sm:$0xff] }
 0x32e   : > { %v4777_v16 = vpop.f32.mrf.mxu1  ;;  %v4880_v48 = vpop.f32.mrf.mxu0  ;;  %6663 = vmatpush2.bf16.msra.mxu1 %v10225_v58 }
 0x32f   : > { %14870 = vst [vmem:[#allocation49_spill] sm:$0xff] %v12939_v20  ;;  %v12945_v5 = vadd.f32 %v4777_v16, %v12659_v63  ;;  %v12948_v3 = vadd.f32 %v4880_v48, %v12662_v44  ;;  %6664 = vmatprep.subr.bf16.mxu1 %v10230_v62  ;;  %v10231_v62 = vld [vmem:[%s14466_s2 + $0x980] ss:$8 sps:$4 sm:$0xff]   ;;  %v14915_v20 = vld [vmem:[#allocation12_spill] sm:$0xff] }
 0x330   : > { %v4781_v32 = vpop.f32.mrf.mxu1  ;;  %v4884_v60 = vpop.f32.mrf.mxu0  ;;  %6393 = vmatmul.mubr.bf16.gmra.mxu1 %v14872_v30  ;;  %6496 = vmatmul.mubr.bf16.vlgmr.msra.gmra.mxu0 %v14872_v30 }
 0x331   : > { %14871 = vst [vmem:[#allocation72_spill] sm:$0xff] %v12948_v3  ;;  %v12956_v58 = vadd.f32 %v4781_v32, %v12673_v56  ;;  %v12959_v63 = vadd.f32 %v4884_v60, %v12676_v59  ;;  %6402 = vmatprep.mubr.bf16.mxu1 %v14874_v45  ;;  %6505 = vmatprep.mubr.bf16.mxu0 %v14874_v45 }
 0x332   : > { %v4783_v44 = vpop.f32.mrf.mxu1  ;;  %v4886_v48 = vpop.f32.mrf.mxu0  ;;  %6665 = vmatpush2.bf16.msra.mxu1 %v10228_v29 }
 0x333   : > { %14873 = vst [vmem:[#allocation70_spill] sm:$0xff] %v12959_v63  ;;  %v12967_v54 = vadd.f32 %v4783_v44, %v12687_v55  ;;  %v12970_v56 = vadd.f32 %v4886_v48, %v12690_v21  ;;  %6666 = vmatprep.subr.bf16.mxu1 %v10233_v57  ;;  %v14878_v57 = vld [vmem:[#allocation36_spill] sm:$0xff]  ;;  %v14880_v48 = vld [vmem:[#allocation37_spill] sm:$0xff] }
 0x334   : > { %v4785_v59 = vpop.f32.mrf.mxu1  ;;  %v4888_v16 = vpop.f32.mrf.mxu0 }
 0x335   : > { %14875 = vst [vmem:[#allocation50_spill] sm:$0xff] %v12970_v56  ;;  %v12973_v32 = vadd.f32 %v4785_v59, %v12696_v39  ;;  %v12976_v60 = vadd.f32 %v4888_v16, %v12699_v24  ;;  %v14908_v56 = vld [vmem:[#allocation13_spill] sm:$0xff] }
 0x336   : > { %v4787_v29 = vpop.f32.mrf.mxu1  ;;  %v4890_v30 = vpop.f32.mrf.mxu0  ;;  %6667 = vmatpush2.bf16.msra.mxu1 %v10231_v62 }
 0x337   : > { %14876 = vst [vmem:[#allocation71_spill] sm:$0xff] %v12976_v60  ;;  %v12979_v63 = vadd.f32 %v4787_v29, %v12705_v13  ;;  %v12982_v55 = vadd.f32 %v4890_v30, %v12708_v37 }
 0x338   : > { %v4791_v21 = vpop.f32.mrf.mxu1  ;;  %v4894_v44 = vpop.f32.mrf.mxu0  ;;  %6403 = vmatmul.mubr.bf16.gmra.mxu1 %v14878_v57  ;;  %6506 = vmatmul.mubr.bf16.gmra.mxu0 %v14878_v57 }
 0x339   : > { %14877 = vst [vmem:[#allocation51_spill] sm:$0xff] %v12982_v55  ;;  %v12987_v39 = vadd.f32 %v4791_v21, %v12716_v2  ;;  %v12990_v24 = vadd.f32 %v4894_v44, %v12719_v38  ;;  %6412 = vmatprep.mubr.bf16.mxu1 %v14880_v48  ;;  %6515 = vmatprep.mubr.bf16.mxu0 %v14880_v48  ;;  %v14883_v44 = vld [vmem:[#allocation32_spill] sm:$0xff]  ;;  %v14884_v55 = vld [vmem:[#allocation63_spill] sm:$0xff] }
 0x33a   : > { %v4793_v13 = vpop.f32.mrf.mxu1  ;;  %v4896_v62 = vpop.f32.mrf.mxu0 }
 0x33b   : > { %14879 = vst [vmem:[#allocation73_spill] sm:$0xff] %v12990_v24  ;;  %v12995_v37 = vadd.f32 %v4793_v13, %v12727_v0  ;;  %v12998_v59 = vadd.f32 %v4896_v62, %v12730_v18  ;;  %v14886_v18 = vld [vmem:[#allocation38_spill] sm:$0xff]  ;;  %v14887_v62 = vld [vmem:[#allocation61_spill] sm:$0xff] }
 0x33c   : > { %v4795_v16 = vpop.f32.mrf.mxu1  ;;  %v4898_v29 = vpop.f32.mrf.mxu0 }
 0x33d   : > { %14881 = vst [vmem:[#allocation52_spill] sm:$0xff] %v12998_v59  ;;  %v13001_v2 = vadd.f32 %v4795_v16, %v12736_v22  ;;  %v13004_v38 = vadd.f32 %v4898_v29, %v12739_v28  ;;  %v14888_v16 = vld [vmem:[#allocation31_spill] sm:$0xff] }
 0x33e   : > { %v4797_v30 = vpop.f32.mrf.mxu1  ;;  %v4900_v21 = vpop.f32.mrf.mxu0  ;;  %v14890_v29 = vld [vmem:[#allocation39_spill] sm:$0xff] }
 0x33f   : > { %14882 = vst [vmem:[#allocation75_spill] sm:$0xff] %v13004_v38  ;;  %v13007_v24 = vadd.f32 %v4797_v30, %v14883_v44  ;;  %v13010_v60 = vadd.f32 %v4900_v21, %v14884_v55 }
 0x340   : > { %v4801_v0 = vpop.f32.mrf.mxu1  ;;  %v4904_v13 = vpop.f32.mrf.mxu0  ;;  %6413 = vmatmul.mubr.bf16.gmra.mxu1 %v14886_v18  ;;  %6516 = vmatmul.mubr.bf16.gmra.mxu0 %v14886_v18 }
 0x341   : > { %14885 = vst [vmem:[#allocation74_spill] sm:$0xff] %v13010_v60  ;;  %v13015_v22 = vadd.f32 %v4801_v0, %v14887_v62  ;;  %v13018_v28 = vadd.f32 %v4904_v13, %v14888_v16  ;;  %6422 = vmatprep.mubr.bf16.mxu1 %v14890_v29  ;;  %6525 = vmatprep.mubr.bf16.mxu0 %v14890_v29 }
 0x342   : > { %v4803_v30 = vpop.f32.mrf.mxu1  ;;  %v4906_v44 = vpop.f32.mrf.mxu0 }
 0x343   : > { %14889 = vst [vmem:[#allocation53_spill] sm:$0xff] %v13018_v28  ;;  %v13023_v55 = vadd.f32 %v4803_v30, %v12767_v50  ;;  %v13026_v21 = vadd.f32 %v4906_v44, %v12770_v11  ;;  %v14894_v11 = vld [vmem:[#allocation40_spill] sm:$0xff] }
 0x344   : > { %v4805_v60 = vpop.f32.mrf.mxu1  ;;  %v4908_v38 = vpop.f32.mrf.mxu0 }
 0x345   : > { %14891 = vst [vmem:[#allocation26_spill] sm:$0xff] %v13026_v21  ;;  %v13029_v0 = vadd.f32 %v4805_v60, %v12776_v43  ;;  %v13032_v13 = vadd.f32 %v4908_v38, %v12779_v53  ;;  %v14896_v53 = vld [vmem:[#allocation41_spill] sm:$0xff] }
 0x346   : > { %v4807_v62 = vpop.f32.mrf.mxu1  ;;  %v4910_v16 = vpop.f32.mrf.mxu0 }
 0x347   : > { %14892 = vst [vmem:[#allocation55_spill] sm:$0xff] %v13032_v13  ;;  %v13035_v28 = vadd.f32 %v4807_v62, %v12785_v6  ;;  %v13038_v59 = vadd.f32 %v4910_v16, %v12788_v8  ;;  %v14901_v13 = vld [vmem:[#allocation14_spill] sm:$0xff] }
 0x348   : > { %v4914_v50 = vpop.f32.mrf.mxu0  ;;  %v13040_v30 = vpop.f32.mrf.mxu1  ;;  %6423 = vmatmul.mubr.bf16.gmra.mxu1 %v14894_v11  ;;  %6526 = vmatmul.mubr.bf16.gmra.mxu0 %v14894_v11 }
 0x349   : > { %14893 = vst [vmem:[#allocation54_spill] sm:$0xff] %v13038_v59  ;;  %v13045_v43 = vadd.f32 %v4914_v50, %v12796_v33  ;;  %6432 = vmatprep.mubr.bf16.mxu1 %v14896_v53  ;;  %6535 = vmatprep.mubr.bf16.mxu0 %v14896_v53 }
 0x34a   : > { %v4916_v60 = vpop.f32.mrf.mxu0  ;;  %v13049_v6 = vpop.f32.mrf.mxu1 }
 0x34b   : > { %14895 = vst [vmem:[#allocation76_spill] sm:$0xff] %v13045_v43  ;;  %v13052_v8 = vadd.f32 %v4916_v60, %v12807_v35  ;;  %v14903_v60 = vld [vmem:[#allocation11_spill] sm:$0xff] }
 0x34c   : > { %v4918_v38 = vpop.f32.mrf.mxu0  ;;  %v13054_v44 = vpop.f32.mrf.mxu1 }
 0x34d   : > { %14897 = vst [vmem:[#allocation16_spill] sm:$0xff] %v13052_v8  ;;  %v13057_v62 = vadd.f32 %v4918_v38, %v12816_v9 }
 0x34e   : > { %v4920_v16 = vpop.f32.mrf.mxu0  ;;  %v13059_v59 = vpop.f32.mrf.mxu1 }
 0x34f   : > { %14898 = vst [vmem:[#allocation17_spill] sm:$0xff] %v13057_v62  ;;  %14899 = vst [vmem:[#allocation29_spill] sm:$0xff] %v13059_v59  ;;  %v13062_v33 = vadd.f32 %v4920_v16, %v12825_v34 }
 0x350   : > { %v4924_v50 = vpop.f32.mrf.mxu0  ;;  %v13064_v43 = vpop.f32.mrf.mxu1  ;;  %6433 = vmatmul.mubr.bf16.gmra.mxu1 %v14901_v13  ;;  %6536 = vmatmul.mubr.bf16.gmra.mxu0 %v14901_v13 }
 0x351   : > { %14900 = vst [vmem:[#allocation58_spill] sm:$0xff] %v13062_v33  ;;  %v13069_v35 = vadd.f32 %v4924_v50, %v12836_v25  ;;  %6442 = vmatprep.mubr.bf16.mxu1 %v14903_v60  ;;  %6545 = vmatprep.mubr.bf16.mxu0 %v14903_v60 }
 0x352   : > { %v4926_v9 = vpop.f32.mrf.mxu0  ;;  %v13073_v38 = vpop.f32.mrf.mxu1 }
 0x353   : > { %14902 = vst [vmem:[#allocation56_spill] sm:$0xff] %v13069_v35  ;;  %v13076_v34 = vadd.f32 %v4926_v9, %v12847_v7  ;;  %v14910_v9 = vld [vmem:[#allocation43_spill] sm:$0xff] }
 0x354   : > { %v4928_v16 = vpop.f32.mrf.mxu0  ;;  %v13078_v33 = vpop.f32.mrf.mxu1 }
 0x355   : > { %14904 = vst [vmem:[#allocation30_spill] sm:$0xff] %v13076_v34  ;;  %v13081_v62 = vadd.f32 %v4928_v16, %v12856_v26 }
 0x356   : > { %v4930_v8 = vpop.f32.mrf.mxu0  ;;  %v13083_v21 = vpop.f32.mrf.mxu1 }
 0x357   : > { %14905 = vst [vmem:[#allocation60_spill] sm:$0xff] %v13081_v62  ;;  %14906 = vst [vmem:[#allocation57_spill] sm:$0xff] %v13083_v21  ;;  %v13086_v25 = vadd.f32 %v4930_v8, %v12865_v61 }
 0x358   : > { %v4934_v50 = vpop.f32.mrf.mxu0  ;;  %v13088_v35 = vpop.f32.mrf.mxu1  ;;  %6443 = vmatmul.mubr.bf16.gmra.mxu1 %v14908_v56  ;;  %6546 = vmatmul.mubr.bf16.gmra.mxu0 %v14908_v56 }
 0x359   : > { %14907 = vst [vmem:[#allocation42_spill] sm:$0xff] %v13086_v25  ;;  %v13093_v7 = vadd.f32 %v4934_v50, %v12876_v14  ;;  %6452 = vmatprep.mubr.bf16.mxu1 %v14910_v9  ;;  %6555 = vmatprep.mubr.bf16.mxu0 %v14910_v9 }
 0x35a   : > { %v4936_v26 = vpop.f32.mrf.mxu0  ;;  %v13097_v16 = vpop.f32.mrf.mxu1 }
 0x35b   : > { %14909 = vst [vmem:[#allocation59_spill] sm:$0xff] %v13093_v7  ;;  %v13100_v61 = vadd.f32 %v4936_v26, %v12887_v46  ;;  %v14917_v26 = vld [vmem:[#allocation18_spill] sm:$0xff] }
 0x35c   : > { %v4938_v8 = vpop.f32.mrf.mxu0  ;;  %v13102_v25 = vpop.f32.mrf.mxu1 }
 0x35d   : > { %14911 = vst [vmem:[#allocation25_spill] sm:$0xff] %v13100_v61  ;;  %v13105_v62 = vadd.f32 %v4938_v8, %v12896_v40 }
 0x35e   : > { %v4940_v34 = vpop.f32.mrf.mxu0  ;;  %v13107_v3 = vpop.f32.mrf.mxu1 }
 0x35f   : > { %14912 = vst [vmem:[#allocation7_spill] sm:$0xff] %v13105_v62  ;;  %14913 = vst [vmem:[#allocation8_spill] sm:$0xff] %v13107_v3  ;;  %v13110_v14 = vadd.f32 %v4940_v34, %v12905_v52 }
 0x360   : > { %v4944_v50 = vpop.f32.mrf.mxu0  ;;  %v13112_v7 = vpop.f32.mrf.mxu1  ;;  %6453 = vmatmul.mubr.bf16.gmra.mxu1 %v14915_v20  ;;  %6556 = vmatmul.mubr.bf16.gmra.mxu0 %v14915_v20 }
 0x361   : > { %14914 = vst [vmem:[#allocation10_spill] sm:$0xff] %v13110_v14  ;;  %v13117_v46 = vadd.f32 %v4944_v50, %v12916_v41  ;;  %6565 = vmatprep.mubr.bf16.mxu0 %v14917_v26  ;;  %6668 = vmatprep.mubr.bf16.mxu1 %v14917_v26 }
 0x362   : > { %v4946_v40 = vpop.f32.mrf.mxu0  ;;  %v13121_v8 = vpop.f32.mrf.mxu1 }
 0x363   : > { %14916 = vst [vmem:[#allocation9_spill] sm:$0xff] %v13117_v46  ;;  %v13124_v52 = vadd.f32 %v4946_v40, %v12927_v51  ;;  %v14921_v46 = vld [vmem:[#allocation19_spill] sm:$0xff]  ;;  %v14923_v40 = vld [vmem:[#allocation20_spill] sm:$0xff] }
 0x364   : > { %v4948_v34 = vpop.f32.mrf.mxu0  ;;  %v13126_v14 = vpop.f32.mrf.mxu1 }
 0x365   : > { %14918 = vst [vmem:[#allocation33_spill] sm:$0xff] %v13124_v52  ;;  %v13129_v62 = vadd.f32 %v4948_v34, %v12936_v47 }
 0x366   : > { %v4950_v61 = vpop.f32.mrf.mxu0  ;;  %v13131_v19 = vpop.f32.mrf.mxu1 }
 0x367   : > { %14919 = vst [vmem:[#allocation34_spill] sm:$0xff] %v13129_v62  ;;  %v13134_v41 = vadd.f32 %v4950_v61, %v12945_v5 }
 0x368   : > { %v4954_v50 = vpop.f32.mrf.mxu0  ;;  %v13136_v26 = vpop.f32.mrf.mxu1  ;;  %6566 = vmatmul.mubr.bf16.gmra.mxu0 %v14921_v46  ;;  %6669 = vmatmul.mubr.bf16.vlgmr.msra.gmra.mxu1 %v14921_v46 }
 0x369   : > { %14920 = vst [vmem:[#allocation35_spill] sm:$0xff] %v13134_v41  ;;  %v13141_v51 = vadd.f32 %v4954_v50, %v12956_v58  ;;  %6575 = vmatprep.mubr.bf16.mxu0 %v14923_v40  ;;  %6678 = vmatprep.mubr.bf16.mxu1 %v14923_v40 }
 0x36a   : > { %v4956_v47 = vpop.f32.mrf.mxu0  ;;  %v13145_v34 = vpop.f32.mrf.mxu1 }
 0x36b   : > { %14922 = vst [vmem:[#allocation36_spill] sm:$0xff] %v13141_v51  ;;  %v13148_v5 = vadd.f32 %v4956_v47, %v12967_v54  ;;  %v14927_v51 = vld [vmem:[#allocation21_spill] sm:$0xff]  ;;  %v14929_v47 = vld [vmem:[#allocation22_spill] sm:$0xff] }
 0x36c   : > { %v4958_v61 = vpop.f32.mrf.mxu0  ;;  %v13150_v41 = vpop.f32.mrf.mxu1 }
 0x36d   : > { %14924 = vst [vmem:[#allocation37_spill] sm:$0xff] %v13148_v5  ;;  %v13153_v62 = vadd.f32 %v4958_v61, %v12973_v32 }
 0x36e   : > { %v4960_v46 = vpop.f32.mrf.mxu0  ;;  %v13155_v52 = vpop.f32.mrf.mxu1 }
 0x36f   : > { %14925 = vst [vmem:[#allocation32_spill] sm:$0xff] %v13153_v62  ;;  %v13158_v58 = vadd.f32 %v4960_v46, %v12979_v63 }
 0x370   : > { %v4964_v50 = vpop.f32.mrf.mxu0  ;;  %v13160_v40 = vpop.f32.mrf.mxu1  ;;  %6576 = vmatmul.mubr.bf16.gmra.mxu0 %v14927_v51  ;;  %6679 = vmatmul.mubr.bf16.gmra.mxu1 %v14927_v51 }
 0x371   : > { %14926 = vst [vmem:[#allocation63_spill] sm:$0xff] %v13158_v58  ;;  %v13165_v54 = vadd.f32 %v4964_v50, %v12987_v39  ;;  %6585 = vmatprep.mubr.bf16.mxu0 %v14929_v47  ;;  %6688 = vmatprep.mubr.bf16.mxu1 %v14929_v47 }
 0x372   : > { %v4966_v32 = vpop.f32.mrf.mxu0  ;;  %v13169_v61 = vpop.f32.mrf.mxu1 }
 0x373   : > { %14928 = vst [vmem:[#allocation38_spill] sm:$0xff] %v13165_v54  ;;  %v13172_v63 = vadd.f32 %v4966_v32, %v12995_v37  ;;  %v14933_v54 = vld [vmem:[#allocation23_spill] sm:$0xff]  ;;  %v14935_v32 = vld [vmem:[#allocation24_spill] sm:$0xff] }
 0x374   : > { %v4968_v46 = vpop.f32.mrf.mxu0  ;;  %v13174_v58 = vpop.f32.mrf.mxu1 }
 0x375   : > { %14930 = vst [vmem:[#allocation61_spill] sm:$0xff] %v13172_v63  ;;  %v13177_v62 = vadd.f32 %v4968_v46, %v13001_v2 }
 0x376   : > { %v4970_v51 = vpop.f32.mrf.mxu0  ;;  %v13179_v5 = vpop.f32.mrf.mxu1 }
 0x377   : > { %14931 = vst [vmem:[#allocation31_spill] sm:$0xff] %v13177_v62  ;;  %v13182_v39 = vadd.f32 %v4970_v51, %v13007_v24 }
 0x378   : > { %v4974_v50 = vpop.f32.mrf.mxu0  ;;  %v13184_v47 = vpop.f32.mrf.mxu1  ;;  %6586 = vmatmul.mubr.bf16.gmra.mxu0 %v14933_v54  ;;  %6689 = vmatmul.mubr.bf16.gmra.mxu1 %v14933_v54 }
 0x379   : > { %14932 = vst [vmem:[#allocation39_spill] sm:$0xff] %v13182_v39  ;;  %v13189_v37 = vadd.f32 %v4974_v50, %v13015_v22  ;;  %6595 = vmatprep.mubr.bf16.mxu0 %v14935_v32  ;;  %6698 = vmatprep.mubr.bf16.mxu1 %v14935_v32 }
 0x37a   : > { %v4976_v2 = vpop.f32.mrf.mxu0  ;;  %v13193_v46 = vpop.f32.mrf.mxu1 }
 0x37b   : > { %14934 = vst [vmem:[#allocation40_spill] sm:$0xff] %v13189_v37  ;;  %v13196_v24 = vadd.f32 %v4976_v2, %v13023_v55 }
 0x37c   : > { %v4978_v51 = vpop.f32.mrf.mxu0  ;;  %v13198_v39 = vpop.f32.mrf.mxu1 }
 0x37d   : > { %14936 = vst [vmem:[#allocation41_spill] sm:$0xff] %v13196_v24  ;;  %v13201_v62 = vadd.f32 %v4978_v51, %v13029_v0  ;;  %v10234_v51 = vld [vmem:[%s14467_s3 + $0x78] sm:$0xff]  }
 0x37e   : > { %v4980_v54 = vpop.f32.mrf.mxu0  ;;  %v13203_v63 = vpop.f32.mrf.mxu1  ;;  %9446 = vmatprep.subr.bf16.mxu0 %v10234_v51 }
 0x37f   : > { %14937 = vst [vmem:[#allocation14_spill] sm:$0xff] %v13201_v62  ;;  %v13206_v22 = vadd.f32 %v4980_v54, %v13035_v28 }
 0x380   : > { %v13208_v50 = vpop.f32.mrf.mxu1  ;;  %v6151_v32 = vpop.f32.mrf.mxu0  ;;  %6596 = vmatmul.mubr.bf16.gmra.mxu0 %v14854_v12  ;;  %6699 = vmatmul.mubr.bf16.gmra.mxu1 %v14854_v12 }
 0x381   : > { %14938 = vst [vmem:[#allocation11_spill] sm:$0xff] %v13206_v22  ;;  %v13213_v55 = vadd.f32 %v6151_v32, %v13040_v30  ;;  %6605 = vmatprep.mubr.bf16.mxu0 %v14856_v4  ;;  %6708 = vmatprep.mubr.bf16.mxu1 %v14856_v4  ;;  %v10235_v4 = vld [vmem:[%s14467_s3 + $0x38] sm:$0xff]  }
 0x382   : > { %v13217_v0 = vpop.f32.mrf.mxu1  ;;  %v6153_v2 = vpop.f32.mrf.mxu0  ;;  %9447 = vmatpush3.bf16.msra.mxu0 %v10235_v4 }
 0x383   : > { %v13220_v28 = vadd.f32 %v6153_v2, %v13049_v6 }
 0x384   : > { %v13225_v54 = vpop.f32.mrf.mxu1  ;;  %v6155_v12 = vpop.f32.mrf.mxu0 }
 0x385   : > { %v13228_v30 = vadd.f32 %v6155_v12, %v13054_v44 }
 0x386   : > { %v13233_v32 = vpop.f32.mrf.mxu1  ;;  %v13235_v22 = vpop.f32.mrf.mxu0 }
 0x387   : > { %14939 = vst [vmem:[#allocation13_spill] sm:$0xff] %v13235_v22 }
 0x388   : > { %v13237_v6 = vpop.f32.mrf.mxu1  ;;  %v6161_v2 = vpop.f32.mrf.mxu0  ;;  %6606 = vmatmul.mubr.bf16.gmra.mxu0 %v14860_v49  ;;  %6709 = vmatmul.mubr.bf16.gmra.mxu1 %v14860_v49 }
 0x389   : > { %v13242_v44 = vadd.f32 %v6161_v2, %v13064_v43  ;;  %6615 = vmatprep.mubr.bf16.mxu0 %v14862_v27  ;;  %6718 = vmatprep.mubr.bf16.mxu1 %v14862_v27 }
 0x38a   : > { %v13246_v51 = vpop.f32.mrf.mxu1  ;;  %v6163_v12 = vpop.f32.mrf.mxu0 }
 0x38b   : > { %v13249_v62 = vadd.f32 %v6163_v12, %v13073_v38  ;;  %v14941_v38 = vld [vmem:[#allocation5_spill] sm:$0xff] }
 0x38c   : > { %v13251_v4 = vpop.f32.mrf.mxu1  ;;  %v6165_v24 = vpop.f32.mrf.mxu0 }
 0x38d   : > { %v13254_v37 = vadd.f32 %v6165_v24, %v13078_v33  ;;  %v10236_v33 = vld [vmem:[%s14467_s3 + $0x70] sm:$0xff]  }
 0x38e   : > { %v13256_v49 = vpop.f32.mrf.mxu1  ;;  %v13258_v43 = vpop.f32.mrf.mxu0  ;;  %9448 = vmatprep.subr.bf16.mxu0 %v10236_v33 }
 0x38f   : > { %14940 = vst [vmem:[#allocation43_spill] sm:$0xff] %v13258_v43 }
 0x390   : > { %v13260_v2 = vpop.f32.mrf.mxu1  ;;  %v6171_v17 = vpop.f32.mrf.mxu0  ;;  %6616 = vmatmul.mubr.bf16.gmra.mxu0 %v14866_v36  ;;  %6719 = vmatmul.mubr.bf16.gmra.mxu1 %v14866_v36 }
 0x391   : > { %v13265_v27 = vadd.f32 %v6171_v17, %v13088_v35  ;;  %6625 = vmatprep.mubr.bf16.mxu0 %v14941_v38  ;;  %6728 = vmatprep.mubr.bf16.mxu1 %v14941_v38  ;;  %v10237_v17 = vld [vmem:[%s14467_s3 + $0x30] sm:$0xff]  }
 0x392   : > { %v13272_v24 = vpop.f32.mrf.mxu1  ;;  %v6173_v12 = vpop.f32.mrf.mxu0  ;;  %9449 = vmatpush3.bf16.msra.mxu0 %v10237_v17 }
 0x393   : > { %v13275_v10 = vadd.f32 %v6173_v12, %v13097_v16  ;;  %v14943_v12 = vld [vmem:[#allocation6_spill] sm:$0xff] }
 0x394   : > { %v13280_v36 = vpop.f32.mrf.mxu1  ;;  %v6175_v35 = vpop.f32.mrf.mxu0 }
 0x395   : > { %v13283_v15 = vadd.f32 %v6175_v35, %v13102_v25 }
 0x396   : > { %v13285_v3 = vpop.f32.mrf.mxu1  ;;  %v13287_v31 = vpop.f32.mrf.mxu0 }
 0x397   : > { %14942 = vst [vmem:[#allocation12_spill] sm:$0xff] %v13287_v31 }
 0x398   : > { %v13289_v42 = vpop.f32.mrf.mxu1  ;;  %v6181_v16 = vpop.f32.mrf.mxu0  ;;  %6626 = vmatmul.mubr.bf16.gmra.mxu0 %v14943_v12  ;;  %6729 = vmatmul.mubr.bf16.gmra.mxu1 %v14943_v12 }
 0x399   : > { %v13294_v33 = vadd.f32 %v6181_v16, %v13112_v7  ;;  %6738 = vmatprep.mubr.bf16.mxu1 %v14874_v45  ;;  %v10238_v45 = vld [vmem:[%s14467_s3 + $0x68] sm:$0xff]  }
 0x39a   : > { %v13297_v43 = vpop.f32.mrf.mxu1  ;;  %v6183_v25 = vpop.f32.mrf.mxu0  ;;  %9450 = vmatprep.subr.bf16.mxu0 %v10238_v45 }
 0x39b   : > { %v13300_v17 = vadd.f32 %v6183_v25, %v13121_v8 }
 0x39c   : > { %v13302_v35 = vpop.f32.mrf.mxu1  ;;  %v6185_v31 = vpop.f32.mrf.mxu0 }
 0x39d   : > { %v13305_v21 = vadd.f32 %v6185_v31, %v13126_v14  ;;  %v10239_v31 = vld [vmem:[%s14467_s3 + $0x28] sm:$0xff]   ;;  %v10240_v14 = vld [vmem:[%s14467_s3 + $0xf8] sm:$0xff]  }
 0x39e   : > { %v13307_v23 = vpop.f32.mrf.mxu1  ;;  %v13309_v1 = vpop.f32.mrf.mxu0  ;;  %9451 = vmatpush3.bf16.msra.mxu0 %v10239_v31  ;;  %9468 = vmatprep.subr.bf16.mxu1 %v10240_v14 }
 0x3a0   : > { %v13314_v7 = vpop.f32.mrf.mxu1  ;;  %v6191_v16 = vpop.f32.mrf.mxu0  ;;  %6739 = vmatmul.mubr.bf16.gmra.mxu1 %v14878_v57  ;;  %v10241_v57 = vld [vmem:[%s14467_s3 + $0xb8] sm:$0xff]  }
 0x3a1   : > { %v13318_v8 = vadd.f32 %v6191_v16, %v13136_v26  ;;  %6748 = vmatprep.mubr.bf16.mxu1 %v14880_v48  ;;  %9469 = vmatpush3.bf16.msra.mxu1 %v10241_v57 }
 0x3a2   : > { %v13327_v25 = vpop.f32.mrf.mxu1  ;;  %v6193_v22 = vpop.f32.mrf.mxu0 }
 0x3a3   : > { %14944 = vst [vmem:[#allocation18_spill] sm:$0xff] %v13318_v8  ;;  %14945 = vst [vmem:[#allocation19_spill] sm:$0xff] %v13327_v25  ;;  %v13330_v59 = vadd.f32 %v6193_v22, %v13145_v34 }
 0x3a4   : > { %v13335_v48 = vpop.f32.mrf.mxu1  ;;  %v6195_v26 = vpop.f32.mrf.mxu0 }
 0x3a5   : > { %v13338_v45 = vadd.f32 %v6195_v26, %v13150_v41 }
 0x3a6   : > { %v13340_v16 = vpop.f32.mrf.mxu1  ;;  %v6197_v25 = vpop.f32.mrf.mxu0 }
 0x3a7   : > { %v13343_v8 = vadd.f32 %v6197_v25, %v13155_v52 }
 0x3a8   : > { %v13345_v34 = vpop.f32.mrf.mxu1  ;;  %v6201_v22 = vpop.f32.mrf.mxu0  ;;  %6749 = vmatmul.mubr.bf16.gmra.mxu1 %v14886_v18 }
 0x3a9   : > { %14946 = vst [vmem:[#allocation20_spill] sm:$0xff] %v13345_v34  ;;  %v13349_v31 = vadd.f32 %v6201_v22, %v13160_v40  ;;  %6758 = vmatprep.mubr.bf16.mxu1 %v14890_v29  ;;  %v10242_v29 = vld [vmem:[%s14467_s3 + $0x60] sm:$0xff]  }
 0x3aa   : > { %v13352_v14 = vpop.f32.mrf.mxu1  ;;  %v6203_v41 = vpop.f32.mrf.mxu0  ;;  %9452 = vmatprep.subr.bf16.mxu0 %v10242_v29 }
 0x3ab   : > { %v13355_v57 = vadd.f32 %v6203_v41, %v13169_v61 }
 0x3ac   : > { %v13357_v26 = vpop.f32.mrf.mxu1  ;;  %v6205_v52 = vpop.f32.mrf.mxu0 }
 0x3ad   : > { %v13360_v25 = vadd.f32 %v6205_v52, %v13174_v58  ;;  %v10244_v58 = vld [vmem:[%s14467_s3 + $0xf0] sm:$0xff]  }
 0x3ae   : > { %v13362_v34 = vpop.f32.mrf.mxu1  ;;  %v6207_v18 = vpop.f32.mrf.mxu0  ;;  %9470 = vmatprep.subr.bf16.mxu1 %v10244_v58 }
 0x3af   : > { %v13365_v40 = vadd.f32 %v6207_v18, %v13179_v5  ;;  %v10243_v5 = vld [vmem:[%s14467_s3 + $0x20] sm:$0xff]  }
 0x3b0   : > { %v13370_v22 = vpop.f32.mrf.mxu1  ;;  %v6211_v61 = vpop.f32.mrf.mxu0  ;;  %6759 = vmatmul.mubr.bf16.gmra.mxu1 %v14894_v11  ;;  %9453 = vmatpush3.bf16.msra.mxu0 %v10243_v5  ;;  %v10245_v11 = vld [vmem:[%s14467_s3 + $0xb0] sm:$0xff]  }
 0x3b1   : > { %14947 = vst [vmem:[#allocation21_spill] sm:$0xff] %v13370_v22  ;;  %v13374_v41 = vadd.f32 %v6211_v61, %v13184_v47  ;;  %6768 = vmatprep.mubr.bf16.mxu1 %v14896_v53  ;;  %9471 = vmatpush3.bf16.msra.mxu1 %v10245_v11 }
 0x3b2   : > { %v13383_v52 = vpop.f32.mrf.mxu1  ;;  %v6213_v18 = vpop.f32.mrf.mxu0 }
 0x3b3   : > { %14948 = vst [vmem:[#allocation22_spill] sm:$0xff] %v13374_v41  ;;  %14949 = vst [vmem:[#allocation23_spill] sm:$0xff] %v13383_v52  ;;  %v13386_v22 = vadd.f32 %v6213_v18, %v13193_v46 }
 0x3b4   : > { %v13391_v53 = vpop.f32.mrf.mxu1  ;;  %v6215_v47 = vpop.f32.mrf.mxu0 }
 0x3b5   : > { %v13394_v29 = vadd.f32 %v6215_v47, %v13198_v39 }
 0x3b6   : > { %v13396_v61 = vpop.f32.mrf.mxu1  ;;  %v6217_v52 = vpop.f32.mrf.mxu0 }
 0x3b7   : > { %v13399_v41 = vadd.f32 %v6217_v52, %v13203_v63 }
 0x3b8   : > { %v6221_v46 = vpop.f32.mrf.mxu0  ;;  %v6324_v5 = vpop.f32.mrf.mxu1  ;;  %6769 = vmatmul.mubr.bf16.gmra.mxu1 %v14901_v13 }
 0x3b9   : > { %14950 = vst [vmem:[#allocation24_spill] sm:$0xff] %v13399_v41  ;;  %v13403_v58 = vadd.f32 %v6221_v46, %v13208_v50  ;;  %v13406_v18 = vadd.f32 %v6324_v5, %v13213_v55  ;;  %6778 = vmatprep.mubr.bf16.mxu1 %v14903_v60  ;;  %v10246_v60 = vld [vmem:[%s14467_s3 + $0x58] sm:$0xff]  }
 0x3ba   : > { %v6223_v39 = vpop.f32.mrf.mxu0  ;;  %v6326_v11 = vpop.f32.mrf.mxu1  ;;  %9454 = vmatprep.subr.bf16.mxu0 %v10246_v60 }
 0x3bb   : > { %v13410_v47 = vadd.f32 %v6223_v39, %v13217_v0  ;;  %v13413_v63 = vadd.f32 %v6326_v11, %v13220_v28  ;;  %v10247_v28 = vld [vmem:[%s14467_s3 + $0x18] sm:$0xff]  }
 0x3bc   : > { %v6225_v52 = vpop.f32.mrf.mxu0  ;;  %v6328_v41 = vpop.f32.mrf.mxu1  ;;  %9455 = vmatpush3.bf16.msra.mxu0 %v10247_v28 }
 0x3bd   : > { %v13416_v13 = vadd.f32 %v6225_v52, %v13225_v54  ;;  %v13419_v50 = vadd.f32 %v6328_v41, %v13228_v30  ;;  %v10248_v54 = vld [vmem:[%s14467_s3 + $0xe8] sm:$0xff]  }
 0x3be   : > { %v6227_v55 = vpop.f32.mrf.mxu0  ;;  %v13424_v46 = vpop.f32.mrf.mxu1  ;;  %9472 = vmatprep.subr.bf16.mxu1 %v10248_v54 }
 0x3bf   : > { %v13427_v0 = vadd.f32 %v6227_v55, %v13233_v32  ;;  %v10249_v32 = vld [vmem:[%s14467_s3 + $0xa8] sm:$0xff]  }
 0x3c0   : > { %v6231_v30 = vpop.f32.mrf.mxu0  ;;  %v6334_v41 = vpop.f32.mrf.mxu1  ;;  %6779 = vmatmul.mubr.bf16.gmra.mxu1 %v14908_v56 }
 0x3c1   : > { %v13437_v5 = vadd.f32 %v6231_v30, %v13237_v6  ;;  %v13440_v39 = vadd.f32 %v6334_v41, %v13242_v44  ;;  %6788 = vmatprep.mubr.bf16.mxu1 %v14910_v9  ;;  %9473 = vmatpush3.bf16.msra.mxu1 %v10249_v32 }
 0x3c2   : > { %v6233_v11 = vpop.f32.mrf.mxu0  ;;  %v6336_v52 = vpop.f32.mrf.mxu1 }
 0x3c3   : > { %v13447_v60 = vadd.f32 %v6233_v11, %v13246_v51  ;;  %v13450_v56 = vadd.f32 %v6336_v52, %v13249_v62 }
 0x3c4   : > { %v6235_v6 = vpop.f32.mrf.mxu0  ;;  %v6338_v44 = vpop.f32.mrf.mxu1 }
 0x3c5   : > { %v13453_v55 = vadd.f32 %v6235_v6, %v13251_v4  ;;  %v13456_v9 = vadd.f32 %v6338_v44, %v13254_v37 }
 0x3c6   : > { %v6237_v28 = vpop.f32.mrf.mxu0  ;;  %v13458_v30 = vpop.f32.mrf.mxu1 }
 0x3c7   : > { %v13461_v54 = vadd.f32 %v6237_v28, %v13256_v49 }
 0x3c8   : > { %v6241_v51 = vpop.f32.mrf.mxu0  ;;  %v6344_v41 = vpop.f32.mrf.mxu1  ;;  %6789 = vmatmul.mubr.bf16.gmra.mxu1 %v14915_v20  ;;  %v10250_v20 = vld [vmem:[%s14467_s3 + $0x50] sm:$0xff]  }
 0x3c9   : > { %v13465_v62 = vadd.f32 %v6241_v51, %v13260_v2  ;;  %v13468_v32 = vadd.f32 %v6344_v41, %v13265_v27  ;;  %6798 = vmatprep.mubr.bf16.mxu1 %v14941_v38  ;;  %9456 = vmatprep.subr.bf16.mxu0 %v10250_v20  ;;  %v10251_v38 = vld [vmem:[%s14467_s3 + $0x10] sm:$0xff]  }
 0x3ca   : > { %v6243_v37 = vpop.f32.mrf.mxu0  ;;  %v6346_v4 = vpop.f32.mrf.mxu1  ;;  %9457 = vmatpush3.bf16.msra.mxu0 %v10251_v38 }
 0x3cb   : > { %v13472_v11 = vadd.f32 %v6243_v37, %v13272_v24  ;;  %v13475_v49 = vadd.f32 %v6346_v4, %v13275_v10  ;;  %v10252_v10 = vld [vmem:[%s14467_s3 + $0xe0] sm:$0xff]  }
 0x3cc   : > { %v6245_v52 = vpop.f32.mrf.mxu0  ;;  %v6348_v2 = vpop.f32.mrf.mxu1  ;;  %9474 = vmatprep.subr.bf16.mxu1 %v10252_v10 }
 0x3cd   : > { %v13481_v6 = vadd.f32 %v6245_v52, %v13280_v36  ;;  %v13484_v27 = vadd.f32 %v6348_v2, %v13283_v15  ;;  %v10253_v15 = vld [vmem:[%s14467_s3 + $0xa0] sm:$0xff]  }
 0x3ce   : > { %v6247_v24 = vpop.f32.mrf.mxu0  ;;  %v13492_v44 = vpop.f32.mrf.mxu1  ;;  %9475 = vmatpush3.bf16.msra.mxu1 %v10253_v15 }
 0x3cf   : > { %v13495_v28 = vadd.f32 %v6247_v24, %v13285_v3 }
 0x3d0   : > { %v6251_v36 = vpop.f32.mrf.mxu0  ;;  %v6354_v51 = vpop.f32.mrf.mxu1  ;;  %6799 = vmatmul.mubr.bf16.gmra.mxu1 %v14943_v12  ;;  %v6188_v12 = vadd.f32 %v13309_v1, %v13131_v19  ;;  %v10254_v19 = vld [vmem:[%s14467_s3 + $0x48] sm:$0xff]  }
 0x3d1   : > { %v13502_v41 = vadd.f32 %v6251_v36, %v13289_v42  ;;  %v13505_v37 = vadd.f32 %v6354_v51, %v13294_v33  ;;  %9458 = vmatprep.subr.bf16.mxu0 %v10254_v19 }
 0x3d2   : > { %v6253_v4 = vpop.f32.mrf.mxu0  ;;  %v6356_v3 = vpop.f32.mrf.mxu1 }
 0x3d3   : > { %v13508_v20 = vadd.f32 %v6253_v4, %v13297_v43  ;;  %v13511_v52 = vadd.f32 %v6356_v3, %v13300_v17  ;;  %v14952_v4 = vld [vmem:[#allocation18_spill] sm:$0xff]  ;;  %v14953_v3 = vld [vmem:[#allocation19_spill] sm:$0xff] }
 0x3d4   : > { %v6255_v2 = vpop.f32.mrf.mxu0  ;;  %v6358_v38 = vpop.f32.mrf.mxu1 }
 0x3d5   : > { %v13516_v42 = vadd.f32 %v6255_v2, %v13302_v35  ;;  %v13519_v33 = vadd.f32 %v6358_v38, %v13305_v21  ;;  %v10256_v38 = vld [vmem:[%s14467_s3 + $0xd8] sm:$0xff]  }
 0x3d6   : > { %v6257_v10 = vpop.f32.mrf.mxu0  ;;  %v6360_v24 = vpop.f32.mrf.mxu1  ;;  %9476 = vmatprep.subr.bf16.mxu1 %v10256_v38 }
 0x3d7   : > { %v13522_v15 = vadd.f32 %v6257_v10, %v13307_v23  ;;  %v13524_v43 = vadd.f32 %v6360_v24, %v6188_v12 }
 0x3d8   : > { %v6261_v17 = vpop.f32.mrf.mxu0  ;;  %v6364_v36 = vpop.f32.mrf.mxu1 }
 0x3d9   : > { %14951 = vst [vmem:[#allocation5_spill] sm:$0xff] %v13524_v43  ;;  %v13527_v51 = vadd.f32 %v6261_v17, %v13314_v7  ;;  %v13530_v1 = vadd.f32 %v6364_v36, %v14952_v4  ;;  %v10255_v7 = vld [vmem:[%s14467_s3 + $0x8] sm:$0xff]  }
 0x3da   : > { %v6263_v21 = vpop.f32.mrf.mxu0  ;;  %v6366_v35 = vpop.f32.mrf.mxu1  ;;  %9459 = vmatpush3.bf16.msra.mxu0 %v10255_v7 }
 0x3db   : > { %v13536_v2 = vadd.f32 %v6263_v21, %v14953_v3  ;;  %v13539_v23 = vadd.f32 %v6366_v35, %v13330_v59  ;;  %v10257_v59 = vld [vmem:[%s14467_s3 + $0x98] sm:$0xff]  }
 0x3dc   : > { %v6265_v12 = vpop.f32.mrf.mxu0  ;;  %v6368_v10 = vpop.f32.mrf.mxu1  ;;  %9477 = vmatpush3.bf16.msra.mxu1 %v10257_v59  ;;  %v14956_v3 = vld [vmem:[#allocation20_spill] sm:$0xff] }
 0x3dd   : > { %14954 = vst [vmem:[#allocation6_spill] sm:$0xff] %v13539_v23  ;;  %v13548_v24 = vadd.f32 %v6265_v12, %v13335_v48  ;;  %v13551_v17 = vadd.f32 %v6368_v10, %v13338_v45 }
 0x3de   : > { %v6267_v36 = vpop.f32.mrf.mxu0  ;;  %v6370_v4 = vpop.f32.mrf.mxu1 }
 0x3df   : > { %v13557_v19 = vadd.f32 %v6267_v36, %v13340_v16  ;;  %v13560_v21 = vadd.f32 %v6370_v4, %v13343_v8 }
 0x3e0   : > { %v6271_v48 = vpop.f32.mrf.mxu0  ;;  %v6374_v35 = vpop.f32.mrf.mxu1 }
 0x3e1   : > { %14955 = vst [vmem:[#allocation18_spill] sm:$0xff] %v13560_v21  ;;  %v13563_v45 = vadd.f32 %v6271_v48, %v14956_v3  ;;  %v13566_v7 = vadd.f32 %v6374_v35, %v13349_v31 }
 0x3e2   : > { %v6273_v38 = vpop.f32.mrf.mxu0  ;;  %v6376_v12 = vpop.f32.mrf.mxu1 }
 0x3e3   : > { %v13569_v10 = vadd.f32 %v6273_v38, %v13352_v14  ;;  %v13572_v16 = vadd.f32 %v6376_v12, %v13355_v57  ;;  %v14959_v57 = vld [vmem:[#allocation21_spill] sm:$0xff] }
 0x3e4   : > { %v6275_v36 = vpop.f32.mrf.mxu0  ;;  %v6378_v8 = vpop.f32.mrf.mxu1 }
 0x3e5   : > { %14957 = vst [vmem:[#allocation19_spill] sm:$0xff] %v13572_v16  ;;  %v13575_v59 = vadd.f32 %v6275_v36, %v13357_v26  ;;  %v13578_v4 = vadd.f32 %v6378_v8, %v13360_v25  ;;  %v14960_v16 = vld [vmem:[#allocation22_spill] sm:$0xff]  ;;  %v14961_v25 = vld [vmem:[#allocation23_spill] sm:$0xff] }
 0x3e6   : > { %v6277_v48 = vpop.f32.mrf.mxu0  ;;  %v6380_v3 = vpop.f32.mrf.mxu1 }
 0x3e7   : > { %v13581_v31 = vadd.f32 %v6277_v48, %v13362_v34  ;;  %v13584_v35 = vadd.f32 %v6380_v3, %v13365_v40 }
 0x3e8   : > { %v6281_v14 = vpop.f32.mrf.mxu0  ;;  %v6384_v38 = vpop.f32.mrf.mxu1 }
 0x3e9   : > { %14958 = vst [vmem:[#allocation20_spill] sm:$0xff] %v13584_v35  ;;  %v13587_v12 = vadd.f32 %v6281_v14, %v14959_v57  ;;  %v13590_v21 = vadd.f32 %v6384_v38, %v14960_v16  ;;  %v10258_v16 = vld [vmem:[%s14467_s3 + $0x40] sm:$0xff]   ;;  %v10260_v38 = vld [vmem:[%s14467_s3 + $0xd0] sm:$0xff]  }
 0x3ea   : > { %v6283_v26 = vpop.f32.mrf.mxu0  ;;  %v6386_v36 = vpop.f32.mrf.mxu1  ;;  %9460 = vmatprep.subr.bf16.mxu0 %v10258_v16  ;;  %9478 = vmatprep.subr.bf16.mxu1 %v10260_v38 }
 0x3eb   : > { %v13593_v8 = vadd.f32 %v6283_v26, %v14961_v25  ;;  %v13596_v23 = vadd.f32 %v6386_v36, %v13386_v22  ;;  %v14962_v26 = vld [vmem:[#allocation24_spill] sm:$0xff] }
 0x3ec   : > { %v6285_v34 = vpop.f32.mrf.mxu0  ;;  %v6388_v48 = vpop.f32.mrf.mxu1 }
 0x3ed   : > { %v13599_v40 = vadd.f32 %v6285_v34, %v13391_v53  ;;  %v13602_v3 = vadd.f32 %v6388_v48, %v13394_v29  ;;  %v10259_v53 = vld [vmem:[%s14467_s3] sm:$0xff]   ;;  %v10261_v29 = vld [vmem:[%s14467_s3 + $0x90] sm:$0xff]  }
 0x3ee   : > { %v6287_v14 = vpop.f32.mrf.mxu0  ;;  %v6390_v57 = vpop.f32.mrf.mxu1  ;;  %9461 = vmatpush3.bf16.msra.mxu0 %v10259_v53  ;;  %9479 = vmatpush3.bf16.msra.mxu1 %v10261_v29 }
 0x3ef   : > { %v13611_v22 = vadd.f32 %v6287_v14, %v13396_v61  ;;  %v13614_v36 = vadd.f32 %v6390_v57, %v14962_v26  ;;  %v10262_v57 = vld [vmem:[%s14467_s3 + $0xc8] sm:$0xff]   ;;  %v10263_v26 = vld [vmem:[%s14467_s3 + $0x178] sm:$0xff]  }
 0x3f0   : > { %v6394_v25 = vpop.f32.mrf.mxu1  ;;  %v13622_v34 = vpop.f32.mrf.mxu0  ;;  %9480 = vmatprep.subr.bf16.mxu1 %v10262_v57  ;;  %9490 = vmatprep.subr.bf16.mxu0 %v10263_v26  ;;  %v10268_v57 = vld [vmem:[%s14467_s3 + $0x80] sm:$0xff]  }
 0x3f1   : > { %v13625_v48 = vadd.f32 %v6394_v25, %v13403_v58  ;;  %v10264_v58 = vld [vmem:[%s14467_s3 + $0x88] sm:$0xff]  }
 0x3f2   : > { %v6396_v61 = vpop.f32.mrf.mxu1  ;;  %v13627_v14 = vpop.f32.mrf.mxu0  ;;  %9481 = vmatpush3.bf16.msra.mxu1 %v10264_v58 }
 0x3f3   : > { %14963 = vst [vmem:[#allocation21_spill] sm:$0xff] %v13625_v48  ;;  %v13636_v35 = vadd.f32 %v6396_v61, %v13410_v47  ;;  %v10266_v47 = vld [vmem:[%s14467_s3 + $0xc0] sm:$0xff]  }
 0x3f4   : > { %v6398_v16 = vpop.f32.mrf.mxu1  ;;  %v13641_v38 = vpop.f32.mrf.mxu0  ;;  %9482 = vmatprep.subr.bf16.mxu1 %v10266_v47 }
 0x3f5   : > { %14964 = vst [vmem:[#allocation22_spill] sm:$0xff] %v13636_v35  ;;  %v13644_v53 = vadd.f32 %v6398_v16, %v13416_v13  ;;  %v10271_v16 = vld [vmem:[%s14467_s3 + $0x1f8] sm:$0xff]  }
 0x3f6   : > { %v6400_v29 = vpop.f32.mrf.mxu1  ;;  %v13646_v25 = vpop.f32.mrf.mxu0  ;;  %9483 = vmatpush3.bf16.msra.mxu1 %v10268_v57 }
 0x3f7   : > { %14965 = vst [vmem:[#allocation23_spill] sm:$0xff] %v13644_v53  ;;  %v13649_v48 = vadd.f32 %v6400_v29, %v13427_v0  ;;  %9512 = vmatprep.subr.bf16.mxu1 %v10271_v16 }
 0x3f8   : > { %v6404_v61 = vpop.f32.mrf.mxu1  ;;  %v13654_v35 = vpop.f32.mrf.mxu0 }
 0x3f9   : > { %14966 = vst [vmem:[#allocation24_spill] sm:$0xff] %v13649_v48  ;;  %v13660_v13 = vadd.f32 %v6404_v61, %v13437_v5 }
 0x3fa   : > { %v6406_v26 = vpop.f32.mrf.mxu1  ;;  %v13662_v58 = vpop.f32.mrf.mxu0 }
 0x3fb   : > { %14967 = vst [vmem:[#allocation77_spill] sm:$0xff] %v13660_v13  ;;  %v13665_v0 = vadd.f32 %v6406_v26, %v13447_v60 }
 0x3fc   : > { %v6408_v29 = vpop.f32.mrf.mxu1  ;;  %v13670_v48 = vpop.f32.mrf.mxu0 }
 0x3fd   : > { %14968 = vst [vmem:[#allocation78_spill] sm:$0xff] %v13665_v0  ;;  %v13673_v53 = vadd.f32 %v6408_v29, %v13453_v55 }
 0x3fe   : > { %v6410_v5 = vpop.f32.mrf.mxu1  ;;  %v13675_v47 = vpop.f32.mrf.mxu0 }
 0x3ff   : > { %14969 = vst [vmem:[#allocation79_spill] sm:$0xff] %v13673_v53  ;;  %v13678_v61 = vadd.f32 %v6410_v5, %v13461_v54 }
 0x400   : > { %v6414_v57 = vpop.f32.mrf.mxu1  ;;  %v6517_v60 = vpop.f32.mrf.mxu0 }
 0x401   : > { %v13681_v26 = vadd.f32 %v6414_v57, %v13465_v62  ;;  %v13684_v0 = vadd.f32 %v6517_v60, %v13468_v32 }
 0x402   : > { %v6416_v13 = vpop.f32.mrf.mxu1  ;;  %v13686_v43 = vpop.f32.mrf.mxu0 }
 0x403   : > { %14970 = vst [vmem:[#allocation80_spill] sm:$0xff] %v13681_v26  ;;  %v13689_v55 = vadd.f32 %v6416_v13, %v13472_v11 }
 0x404   : > { %v6418_v16 = vpop.f32.mrf.mxu1  ;;  %v6521_v29 = vpop.f32.mrf.mxu0 }
 0x405   : > { %v13692_v53 = vadd.f32 %v6418_v16, %v13481_v6  ;;  %v13695_v54 = vadd.f32 %v6521_v29, %v13484_v27 }
 0x406   : > { %v6420_v5 = vpop.f32.mrf.mxu1  ;;  %v13697_v62 = vpop.f32.mrf.mxu0 }
 0x407   : > { %14971 = vst [vmem:[#allocation81_spill] sm:$0xff] %v13692_v53  ;;  %v13700_v32 = vadd.f32 %v6420_v5, %v13495_v28 }
 0x408   : > { %v6424_v57 = vpop.f32.mrf.mxu1  ;;  %v6527_v60 = vpop.f32.mrf.mxu0 }
 0x409   : > { %v13703_v26 = vadd.f32 %v6424_v57, %v13502_v41  ;;  %v13706_v11 = vadd.f32 %v6527_v60, %v13505_v37 }
 0x40a   : > { %v6426_v13 = vpop.f32.mrf.mxu1  ;;  %v13708_v6 = vpop.f32.mrf.mxu0 }
 0x40b   : > { %14972 = vst [vmem:[#allocation82_spill] sm:$0xff] %v13703_v26  ;;  %v13711_v27 = vadd.f32 %v6426_v13, %v13508_v20 }
 0x40c   : > { %v6428_v16 = vpop.f32.mrf.mxu1  ;;  %v6531_v29 = vpop.f32.mrf.mxu0 }
 0x40d   : > { %v13714_v53 = vadd.f32 %v6428_v16, %v13516_v42  ;;  %v13717_v28 = vadd.f32 %v6531_v29, %v13519_v33 }
 0x40e   : > { %v6430_v5 = vpop.f32.mrf.mxu1  ;;  %v13719_v41 = vpop.f32.mrf.mxu0 }
 0x40f   : > { %14973 = vst [vmem:[#allocation83_spill] sm:$0xff] %v13714_v53  ;;  %v13722_v37 = vadd.f32 %v6430_v5, %v13522_v15 }
 0x410   : > { %v6434_v57 = vpop.f32.mrf.mxu1  ;;  %v6537_v60 = vpop.f32.mrf.mxu0 }
 0x411   : > { %14974 = vst [vmem:[#allocation84_spill] sm:$0xff] %v13722_v37  ;;  %v13725_v26 = vadd.f32 %v6434_v57, %v13527_v51  ;;  %v13728_v20 = vadd.f32 %v6537_v60, %v13530_v1 }
 0x412   : > { %v6436_v13 = vpop.f32.mrf.mxu1  ;;  %v13730_v42 = vpop.f32.mrf.mxu0 }
 0x413   : > { %14975 = vst [vmem:[#allocation85_spill] sm:$0xff] %v13725_v26  ;;  %v13733_v33 = vadd.f32 %v6436_v13, %v13536_v2 }
 0x414   : > { %v6438_v16 = vpop.f32.mrf.mxu1  ;;  %v6541_v29 = vpop.f32.mrf.mxu0 }
 0x415   : > { %14976 = vst [vmem:[#allocation86_spill] sm:$0xff] %v13733_v33  ;;  %v13736_v53 = vadd.f32 %v6438_v16, %v13548_v24  ;;  %v13739_v15 = vadd.f32 %v6541_v29, %v13551_v17 }
 0x416   : > { %v6440_v5 = vpop.f32.mrf.mxu1  ;;  %v13741_v51 = vpop.f32.mrf.mxu0 }
 0x417   : > { %14977 = vst [vmem:[#allocation87_spill] sm:$0xff] %v13736_v53  ;;  %v13744_v1 = vadd.f32 %v6440_v5, %v13557_v19 }
 0x418   : > { %v6444_v57 = vpop.f32.mrf.mxu1  ;;  %v6547_v60 = vpop.f32.mrf.mxu0 }
 0x419   : > { %14978 = vst [vmem:[#allocation88_spill] sm:$0xff] %v13744_v1  ;;  %v13747_v26 = vadd.f32 %v6444_v57, %v13563_v45  ;;  %v13750_v2 = vadd.f32 %v6547_v60, %v13566_v7 }
 0x41a   : > { %v6446_v13 = vpop.f32.mrf.mxu1  ;;  %v13752_v24 = vpop.f32.mrf.mxu0 }
 0x41b   : > { %14979 = vst [vmem:[#allocation89_spill] sm:$0xff] %v13747_v26  ;;  %v13755_v17 = vadd.f32 %v6446_v13, %v13569_v10 }
 0x41c   : > { %v6448_v16 = vpop.f32.mrf.mxu1  ;;  %v6551_v29 = vpop.f32.mrf.mxu0 }
 0x41d   : > { %14980 = vst [vmem:[#allocation90_spill] sm:$0xff] %v13755_v17  ;;  %v13758_v53 = vadd.f32 %v6448_v16, %v13575_v59  ;;  %v13761_v19 = vadd.f32 %v6551_v29, %v13578_v4 }
 0x41e   : > { %v6450_v5 = vpop.f32.mrf.mxu1  ;;  %v13763_v45 = vpop.f32.mrf.mxu0 }
 0x41f   : > { %14981 = vst [vmem:[#allocation91_spill] sm:$0xff] %v13758_v53  ;;  %v13766_v7 = vadd.f32 %v6450_v5, %v13581_v31 }
 0x420   : > { %v6454_v57 = vpop.f32.mrf.mxu1  ;;  %v6557_v60 = vpop.f32.mrf.mxu0 }
 0x421   : > { %14982 = vst [vmem:[#allocation92_spill] sm:$0xff] %v13766_v7  ;;  %v13769_v26 = vadd.f32 %v6454_v57, %v13587_v12  ;;  %v13772_v10 = vadd.f32 %v6557_v60, %v13590_v21  ;;  %v6498_v21 = vadd.f32 %v13622_v34, %v13406_v18  ;;  %v14993_v34 = vld [vmem:[#allocation43_spill] sm:$0xff] }
 0x422   : > { %v6456_v13 = vpop.f32.mrf.mxu1  ;;  %v6559_v59 = vpop.f32.mrf.mxu0 }
 0x423   : > { %14983 = vst [vmem:[#allocation93_spill] sm:$0xff] %v13769_v26  ;;  %v13775_v16 = vadd.f32 %v6456_v13, %v13593_v8  ;;  %v13778_v4 = vadd.f32 %v6559_v59, %v13596_v23  ;;  %v14987_v59 = vld [vmem:[#allocation29_spill] sm:$0xff] }
 0x424   : > { %v6458_v29 = vpop.f32.mrf.mxu1  ;;  %v6561_v53 = vpop.f32.mrf.mxu0 }
 0x425   : > { %14984 = vst [vmem:[#allocation94_spill] sm:$0xff] %v13775_v16  ;;  %v13781_v31 = vadd.f32 %v6458_v29, %v13599_v40  ;;  %v13784_v5 = vadd.f32 %v6561_v53, %v13602_v3  ;;  %v14988_v40 = vld [vmem:[#allocation13_spill] sm:$0xff]  ;;  %v6500_v3 = vadd.f32 %v13627_v14, %v13413_v63  ;;  %v14990_v63 = vld [vmem:[#allocation27_spill] sm:$0xff]  ;;  %v14998_v16 = vld [vmem:[#allocation8_spill] sm:$0xff] }
 0x426   : > { %v6460_v12 = vpop.f32.mrf.mxu1  ;;  %v6563_v57 = vpop.f32.mrf.mxu0  ;;  %v6158_v29 = vadd.f32 %v14988_v40, %v14987_v59  ;;  %v6512_v40 = vadd.f32 %v13670_v48, %v13456_v9  ;;  %v14997_v9 = vld [vmem:[#allocation66_spill] sm:$0xff] }
 0x427   : > { %14985 = vst [vmem:[#allocation95_spill] sm:$0xff] %v13781_v31  ;;  %v13789_v60 = vadd.f32 %v6460_v12, %v13611_v22  ;;  %v13792_v8 = vadd.f32 %v6563_v57, %v13614_v36  ;;  %v6502_v22 = vadd.f32 %v13641_v38, %v13419_v50  ;;  %v14989_v36 = vld [vmem:[#allocation62_spill] sm:$0xff]  ;;  %v14991_v38 = vld [vmem:[#allocation64_spill] sm:$0xff] }
 0x428   : > { %v13794_v23 = vpop.f32.mrf.mxu0  ;;  %v6670_v13 = vpop.f32.mrf.mxu1  ;;  %v6331_v18 = vadd.f32 %v13424_v46, %v6158_v29  ;;  %v6508_v46 = vadd.f32 %v13654_v35, %v13440_v39 }
 0x429   : > { %14986 = vst [vmem:[#allocation96_spill] sm:$0xff] %v13789_v60  ;;  %v13800_v53 = vadd.f32 %v6670_v13, %v6498_v21 }
 0x42a   : > { %v6672_v31 = vpop.f32.mrf.mxu1  ;;  %v13807_v12 = vpop.f32.mrf.mxu0  ;;  %v6504_v59 = vadd.f32 %v13646_v25, %v6331_v18  ;;  %v6510_v18 = vadd.f32 %v13662_v58, %v13450_v56  ;;  %v14996_v58 = vld [vmem:[#allocation44_spill] sm:$0xff] }
 0x42b   : > { %v13809_v57 = vadd.f32 %v6672_v31, %v6500_v3  ;;  %v14992_v3 = vld [vmem:[#allocation57_spill] sm:$0xff] }
 0x42c   : > { %v6674_v60 = vpop.f32.mrf.mxu1  ;;  %v13818_v50 = vpop.f32.mrf.mxu0  ;;  %v6168_v25 = vadd.f32 %v14993_v34, %v14992_v3 }
 0x42d   : > { %v13814_v21 = vadd.f32 %v6674_v60, %v6502_v22  ;;  %v14994_v60 = vld [vmem:[#allocation28_spill] sm:$0xff] }
 0x42e   : > { %v6676_v13 = vpop.f32.mrf.mxu1  ;;  %v6341_v35 = vadd.f32 %v13458_v30, %v6168_v25 }
 0x42f   : > { %v13822_v29 = vadd.f32 %v6676_v13, %v6504_v59  ;;  %v13835_v59 = vpop.f32.mrf.mxu0  ;;  %v14995_v13 = vld [vmem:[#allocation65_spill] sm:$0xff] }
 0x430   : > { %v6680_v31 = vpop.f32.mrf.mxu1  ;;  %v6514_v56 = vadd.f32 %v13675_v47, %v6341_v35  ;;  %v6520_v47 = vadd.f32 %v13686_v43, %v13475_v49  ;;  %v15000_v35 = vld [vmem:[#allocation45_spill] sm:$0xff]  ;;  %v15002_v49 = vld [vmem:[#allocation46_spill] sm:$0xff]  ;;  %v15008_v43 = vld [vmem:[#allocation48_spill] sm:$0xff] }
 0x431   : > { %v13830_v14 = vadd.f32 %v6680_v31, %v6508_v46  ;;  %v13846_v30 = vpop.f32.mrf.mxu0 }
 0x432   : > { %v6682_v39 = vpop.f32.mrf.mxu1 }
 0x433   : > { %v13839_v34 = vadd.f32 %v6682_v39, %v6510_v18  ;;  %v14999_v18 = vld [vmem:[#allocation12_spill] sm:$0xff]  ;;  %v13862_v17 = vpop.f32.mrf.mxu0 }
 0x434   : > { %v6684_v3 = vpop.f32.mrf.mxu1  ;;  %v6178_v39 = vadd.f32 %v14999_v18, %v14998_v16 }
 0x435   : > { %v13844_v31 = vadd.f32 %v6684_v3, %v6512_v40 }
 0x436   : > { %v6686_v22 = vpop.f32.mrf.mxu1  ;;  %v6351_v7 = vadd.f32 %v13492_v44, %v6178_v39  ;;  %v15004_v44 = vld [vmem:[#allocation68_spill] sm:$0xff] }
 0x437   : > { %v13850_v25 = vadd.f32 %v6686_v22, %v6514_v56  ;;  %v15001_v22 = vld [vmem:[#allocation67_spill] sm:$0xff] }
 0x438   : > { %v6690_v26 = vpop.f32.mrf.mxu1  ;;  %v6524_v18 = vadd.f32 %v13697_v62, %v6351_v7 }
 0x439   : > { %v13859_v40 = vadd.f32 %v6690_v26, %v13684_v0  ;;  %v13874_v26 = vpop.f32.mrf.mxu0 }
 0x43a   : > { %v6692_v3 = vpop.f32.mrf.mxu1 }
 0x43b   : > { %v13866_v48 = vadd.f32 %v6692_v3, %v6520_v47  ;;  %v6530_v47 = vadd.f32 %v13708_v6, %v13511_v52 }
 0x43c   : > { %v6694_v16 = vpop.f32.mrf.mxu1 }
 0x43d   : > { %v13872_v46 = vadd.f32 %v6694_v16, %v13695_v54  ;;  %v13887_v16 = vpop.f32.mrf.mxu0 }
 0x43e   : > { %v6696_v0 = vpop.f32.mrf.mxu1 }
 0x43f   : > { %15003 = vst [vmem:[#allocation29_spill] sm:$0xff] %v13872_v46  ;;  %v13878_v1 = vadd.f32 %v6696_v0, %v6524_v18  ;;  %v15010_v0 = vld [vmem:[#allocation5_spill] sm:$0xff] }
 0x440   : > { %v6700_v56 = vpop.f32.mrf.mxu1  ;;  %v6534_v39 = vadd.f32 %v13719_v41, %v15010_v0 }
 0x441   : > { %15005 = vst [vmem:[#allocation13_spill] sm:$0xff] %v13878_v1  ;;  %v13885_v3 = vadd.f32 %v6700_v56, %v13706_v11  ;;  %v13900_v56 = vpop.f32.mrf.mxu0  ;;  %v15013_v1 = vld [vmem:[#allocation49_spill] sm:$0xff] }
 0x442   : > { %v6702_v54 = vpop.f32.mrf.mxu1 }
 0x443   : > { %15007 = vst [vmem:[#allocation62_spill] sm:$0xff] %v13885_v3  ;;  %v13891_v37 = vadd.f32 %v6702_v54, %v6530_v47  ;;  %v15015_v54 = vld [vmem:[#allocation6_spill] sm:$0xff] }
 0x444   : > { %v6704_v18 = vpop.f32.mrf.mxu1  ;;  %v6540_v33 = vadd.f32 %v13730_v42, %v15015_v54 }
 0x445   : > { %15009 = vst [vmem:[#allocation27_spill] sm:$0xff] %v13891_v37  ;;  %v13898_v7 = vadd.f32 %v6704_v18, %v13717_v28  ;;  %v13913_v18 = vpop.f32.mrf.mxu0  ;;  %v15018_v37 = vld [vmem:[#allocation70_spill] sm:$0xff] }
 0x446   : > { %v6706_v11 = vpop.f32.mrf.mxu1 }
 0x447   : > { %15012 = vst [vmem:[#allocation64_spill] sm:$0xff] %v13898_v7  ;;  %v13904_v46 = vadd.f32 %v6706_v11, %v6534_v39  ;;  %v15020_v11 = vld [vmem:[#allocation18_spill] sm:$0xff] }
 0x448   : > { %v6710_v47 = vpop.f32.mrf.mxu1  ;;  %v6544_v62 = vadd.f32 %v13741_v51, %v15020_v11 }
 0x449   : > { %15014 = vst [vmem:[#allocation57_spill] sm:$0xff] %v13904_v46  ;;  %v13911_v6 = vadd.f32 %v6710_v47, %v13728_v20  ;;  %v13926_v47 = vpop.f32.mrf.mxu0  ;;  %v15023_v46 = vld [vmem:[#allocation71_spill] sm:$0xff] }
 0x44a   : > { %v6712_v28 = vpop.f32.mrf.mxu1 }
 0x44b   : > { %15017 = vst [vmem:[#allocation43_spill] sm:$0xff] %v13911_v6  ;;  %v13917_v3 = vadd.f32 %v6712_v28, %v6540_v33  ;;  %v15025_v28 = vld [vmem:[#allocation19_spill] sm:$0xff] }
 0x44c   : > { %v6714_v39 = vpop.f32.mrf.mxu1  ;;  %v6550_v52 = vadd.f32 %v13752_v24, %v15025_v28 }
 0x44d   : > { %15019 = vst [vmem:[#allocation28_spill] sm:$0xff] %v13917_v3  ;;  %v13924_v0 = vadd.f32 %v6714_v39, %v13739_v15  ;;  %v13939_v39 = vpop.f32.mrf.mxu0 }
 0x44e   : > { %v6716_v20 = vpop.f32.mrf.mxu1 }
 0x44f   : > { %15022 = vst [vmem:[#allocation65_spill] sm:$0xff] %v13924_v0  ;;  %v13930_v7 = vadd.f32 %v6716_v20, %v6544_v62  ;;  %v15030_v20 = vld [vmem:[#allocation20_spill] sm:$0xff] }
 0x450   : > { %v6720_v33 = vpop.f32.mrf.mxu1  ;;  %v6554_v41 = vadd.f32 %v13763_v45, %v15030_v20 }
 0x451   : > { %15024 = vst [vmem:[#allocation44_spill] sm:$0xff] %v13930_v7  ;;  %v13937_v54 = vadd.f32 %v6720_v33, %v13750_v2  ;;  %v13952_v33 = vpop.f32.mrf.mxu0 }
 0x452   : > { %v6722_v15 = vpop.f32.mrf.mxu1 }
 0x453   : > { %15027 = vst [vmem:[#allocation66_spill] sm:$0xff] %v13937_v54  ;;  %v13943_v6 = vadd.f32 %v6722_v15, %v6550_v52  ;;  %v13963_v28 = vpop.f32.mrf.mxu0  ;;  %v15048_v15 = vld [vmem:[#allocation15_spill] sm:$0xff]  ;;  %v15053_v54 = vld [vmem:[#allocation77_spill] sm:$0xff] }
 0x454   : > { %v6724_v62 = vpop.f32.mrf.mxu1 }
 0x455   : > { %15029 = vst [vmem:[#allocation8_spill] sm:$0xff] %v13943_v6  ;;  %v13950_v11 = vadd.f32 %v6724_v62, %v13761_v19  ;;  %v15049_v19 = vsub.s32 0, %v15048_v15 }
 0x456   : > { %v6726_v2 = vpop.f32.mrf.mxu1 }
 0x457   : > { %15032 = vst [vmem:[#allocation12_spill] sm:$0xff] %v13950_v11  ;;  %v13956_v0 = vadd.f32 %v6726_v2, %v6554_v41  ;;  %v15052_v2 = vld [vmem:[#allocation16_spill] sm:$0xff] }
 0x458   : > { %v6730_v52 = vpop.f32.mrf.mxu1 }
 0x459   : > { %15034 = vst [vmem:[#allocation45_spill] sm:$0xff] %v13956_v0  ;;  %v13961_v45 = vadd.f32 %v6730_v52, %v13772_v10  ;;  %v15041_v0 = vld [vmem:[#allocation21_spill] sm:$0xff]  ;;  %v13977_v52 = vpop.f32.mrf.mxu0 }
 0x45a   : > { %v6732_v20 = vpop.f32.mrf.mxu1  ;;  %v6568_v10 = vadd.f32 %v13794_v23, %v15041_v0  ;;  %v6893_v23 = vld [vmem:[%s14469_s5] sm:$0x3] }
 0x45b   : > { %15036 = vst [vmem:[#allocation67_spill] sm:$0xff] %v13961_v45  ;;  %v13968_v6 = vadd.f32 %v6732_v20, %v13778_v4  ;;  %v15044_v20 = vld [vmem:[#allocation22_spill] sm:$0xff]  ;;  %v13993_v11 = vpop.f32.mrf.mxu0 }
 0x45c   : > { %v6734_v24 = vpop.f32.mrf.mxu1  ;;  %v6570_v45 = vadd.f32 %v13807_v12, %v15044_v20  ;;  %v13998_v12 = vrot.slane %v6893_v23, %v15049_v19  ;;  %v15054_v19 = vmax.f32 %v14990_v63, %v13809_v57 }
 0x45d   : > { %15038 = vst [vmem:[#allocation46_spill] sm:$0xff] %v13968_v6  ;;  %v13973_v51 = vadd.f32 %v6734_v24, %v13784_v5  ;;  %v15046_v6 = vld [vmem:[#allocation23_spill] sm:$0xff]  ;;  %v15050_v5 = vld [vmem:[#allocation24_spill] sm:$0xff] }
 0x45e   : > { %v6736_v42 = vpop.f32.mrf.mxu1  ;;  %v6572_v41 = vadd.f32 %v13818_v50, %v15046_v6 }
 0x45f   : > { %15040 = vst [vmem:[#allocation68_spill] sm:$0xff] %v13973_v51  ;;  %v13982_v62 = vadd.f32 %v6736_v42, %v13792_v8  ;;  %v15047_v8 = vld [vmem:[#allocation76_spill] sm:$0xff] }
 0x460   : > { %v6740_v4 = vpop.f32.mrf.mxu1 }
 0x461   : > { %15043 = vst [vmem:[#allocation48_spill] sm:$0xff] %v13982_v62  ;;  %v6741_v24 = vadd.f32 %v6740_v4, %v6568_v10  ;;  %v6574_v10 = vadd.f32 %v13835_v59, %v15050_v5  ;;  %v15051_v4 = vmax.f32 %v14989_v36, %v13800_v53  ;;  %v15056_v36 = vsub.s32 1, %v15048_v15 }
 0x462   : > { %v6742_v0 = vpop.f32.mrf.mxu1 }
 0x463   : > { %v6837_v42 = vmax.f32 %v15047_v8, %v6741_v24  ;;  %v6743_v51 = vadd.f32 %v6742_v0, %v6570_v45  ;;  %v6578_v24 = vadd.f32 %v13846_v30, %v15053_v54  ;;  %v14008_v45 = vpop.f32.mrf.mxu0  ;;  %v15055_v8 = vld [vmem:[#allocation17_spill] sm:$0xff]  ;;  %v15058_v30 = vmax.f32 %v14991_v38, %v13814_v21 }
 0x464   : > { %v6744_v20 = vpop.f32.mrf.mxu1 }
 0x465   : > { %v6865_v62 = vmax.f32 %v15051_v4, %v6837_v42  ;;  %v6838_v7 = vmax.f32 %v15052_v2, %v6743_v51  ;;  %v6745_v50 = vadd.f32 %v6744_v20, %v6572_v41  ;;  %v14017_v51 = vrot.slane %v6893_v23, %v15056_v36  ;;  %v15057_v41 = vld [vmem:[#allocation78_spill] sm:$0xff] }
 0x466   : > { %v6746_v6 = vpop.f32.mrf.mxu1  ;;  %v6580_v2 = vadd.f32 %v13862_v17, %v15057_v41  ;;  %v15059_v42 = vld [vmem:[#allocation58_spill] sm:$0xff]  ;;  %v15061_v23 = vmax.f32 %v14994_v60, %v13822_v29  ;;  %v15062_v17 = vld [vmem:[#allocation56_spill] sm:$0xff]  ;;  %v6584_v36 = vadd.f32 %v13887_v16, %v13678_v61 }
 0x467   : > { %v6866_v0 = vmax.f32 %v15054_v19, %v6838_v7  ;;  %v6839_v3 = vmax.f32 %v15055_v8, %v6745_v50  ;;  %v6747_v59 = vadd.f32 %v6746_v6, %v6574_v10  ;;  %v6905_v5 = vadd.f32 %v13998_v12, %v6865_v62  ;;  %v15060_v7 = vld [vmem:[#allocation79_spill] sm:$0xff]  ;;  %v14027_v62 = vpop.f32.mrf.mxu0  ;;  %v15064_v8 = vld [vmem:[#allocation30_spill] sm:$0xff]  ;;  %v15065_v41 = vld [vmem:[#allocation80_spill] sm:$0xff] }
 0x468   : > { %v6750_v53 = vpop.f32.mrf.mxu1  ;;  %v6582_v20 = vadd.f32 %v13874_v26, %v15060_v7  ;;  %v15063_v26 = vmax.f32 %v14995_v13, %v13830_v14  ;;  %v15067_v13 = vld [vmem:[#allocation60_spill] sm:$0xff]  ;;  %v6590_v7 = vadd.f32 %v13913_v18, %v13689_v55  ;;  %v15071_v18 = vld [vmem:[#allocation59_spill] sm:$0xff] }
 0x469   : > { %v6867_v54 = vmax.f32 %v15058_v30, %v6839_v3  ;;  %v6840_v57 = vmax.f32 %v15059_v42, %v6747_v59  ;;  %v6751_v63 = vadd.f32 %v6750_v53, %v6578_v24  ;;  %v6933_v21 = vmax.f32 %v6905_v5, 0.0 }
 0x46a   : > { %v6752_v10 = vpop.f32.mrf.mxu1  ;;  %v6906_v3 = vadd.f32 %v14017_v51, %v6866_v0  ;;  %v6588_v5 = vadd.f32 %v13900_v56, %v15065_v41  ;;  %v15066_v30 = vmax.f32 %v14996_v58, %v13839_v34  ;;  %v15068_v56 = vmax.f32 %v14997_v9, %v13844_v31  ;;  %v10267_v9 = vld [vmem:[%s14467_s3 + $0x170] sm:$0xff]  }
 0x46b   : > { %v6907_v15 = vadd.f32 %v13998_v12, %v6867_v54  ;;  %v6868_v4 = vmax.f32 %v15061_v23, %v6840_v57  ;;  %v6841_v50 = vmax.f32 %v15062_v17, %v6751_v63  ;;  %v6753_v6 = vadd.f32 %v6752_v10, %v6580_v2  ;;  %v14044_v2 = vpop.f32.mrf.mxu0  ;;  %v15070_v17 = vld [vmem:[#allocation81_spill] sm:$0xff] }
 0x46c   : > { %v6754_v38 = vpop.f32.mrf.mxu1  ;;  %v6934_v61 = vmax.f32 %v6906_v3, 0.0  ;;  %v15072_v3 = vmax.f32 %v15000_v35, %v13850_v25  ;;  %v10269_v25 = vld [vmem:[%s14467_s3 + $0x130] sm:$0xff]  }
 0x46d   : > { %v6935_v24 = vmax.f32 %v6907_v15, 0.0  ;;  %v6869_v19 = vmax.f32 %v15063_v26, %v6841_v50  ;;  %v6842_v59 = vmax.f32 %v15064_v8, %v6753_v6  ;;  %v6755_v53 = vadd.f32 %v6754_v38, %v6582_v20  ;;  %v15069_v15 = vld [vmem:[#allocation42_spill] sm:$0xff]  ;;  %v14062_v6 = vpop.f32.mrf.mxu0 }
 0x46e   : > { %v6756_v29 = vpop.f32.mrf.mxu1  ;;  %v6908_v60 = vadd.f32 %v14017_v51, %v6868_v4  ;;  %v10265_v4 = vld [vmem:[%s14467_s3 + $0x138] sm:$0xff]   ;;  %v6592_v50 = vadd.f32 %v13926_v47, %v15070_v17  ;;  %v15073_v8 = vmax.f32 %v15001_v22, %v13859_v40 }
 0x46f   : > { %v9432_v0 = vpack.c.bf16 %v6935_v24, %v6933_v21  ;;  %v6870_v14 = vmax.f32 %v15066_v30, %v6842_v59  ;;  %v6843_v54 = vmax.f32 %v15067_v13, %v6755_v53  ;;  %v6909_v42 = vadd.f32 %v13998_v12, %v6869_v19  ;;  %v15074_v53 = vld [vmem:[#allocation25_spill] sm:$0xff]  ;;  %v14085_v40 = vpop.f32.mrf.mxu0  ;;  %v15077_v13 = vld [vmem:[#allocation7_spill] sm:$0xff] }
 0x470   : > { %v6757_v57 = vadd.f32 %v6756_v29, %v6584_v36  ;;  %v6760_v63 = vpop.f32.mrf.mxu1  ;;  %v6936_v16 = vmax.f32 %v6908_v60, 0.0  ;;  %v6594_v60 = vadd.f32 %v13939_v39, %v13700_v32  ;;  %v10270_v39 = vld [vmem:[%s14467_s3 + $0x168] sm:$0xff]  }
 0x471   : > { %v6871_v20 = vmax.f32 %v15068_v56, %v6843_v54  ;;  %v6761_v10 = vadd.f32 %v6760_v63, %v6588_v5  ;;  %v6937_v38 = vmax.f32 %v6909_v42, 0.0  ;;  %v6910_v47 = vadd.f32 %v14017_v51, %v6870_v14  ;;  %v15075_v5 = vld [vmem:[#allocation82_spill] sm:$0xff] }
 0x472   : > { %v6844_v23 = vmax.f32 %v15069_v15, %v6757_v57  ;;  %v6762_v34 = vpop.f32.mrf.mxu1  ;;  %v9433_v58 = vpack.c.bf16 %v6936_v16, %v6934_v61  ;;  %v6598_v30 = vadd.f32 %v13952_v33, %v15075_v5  ;;  %v6600_v61 = vadd.f32 %v13963_v28, %v13711_v27  ;;  %v15078_v16 = vld [vmem:[#allocation29_spill] sm:$0xff]  ;;  %v15080_v56 = vld [vmem:[#allocation10_spill] sm:$0xff]  ;;  %v14109_v28 = vpop.f32.mrf.mxu0 }
 0x473   : > { %v6911_v55 = vadd.f32 %v13998_v12, %v6871_v20  ;;  %v6845_v21 = vmax.f32 %v15071_v18, %v6761_v10  ;;  %v6763_v31 = vadd.f32 %v6762_v34, %v6590_v7  ;;  %v6938_v63 = vmax.f32 %v6910_v47, 0.0  ;;  %v10273_v34 = vld [vmem:[%s14467_s3 + $0x1b8] sm:$0xff]   ;;  %v15086_v47 = vld [vmem:[#allocation62_spill] sm:$0xff]  ;;  %v15090_v5 = vld [vmem:[#allocation85_spill] sm:$0xff] }
 0x474   : > { %v6872_v24 = vmax.f32 %v15072_v3, %v6844_v23  ;;  %8078 = vmatprep.mubr.bf16.mxu0 %v9433_v58  ;;  %v6764_v26 = vpop.f32.mrf.mxu1  ;;  %v10272_v23 = vld [vmem:[%s14467_s3 + $0x128] sm:$0xff]   ;;  %v15081_v58 = vld [vmem:[#allocation83_spill] sm:$0xff] }
 0x475   : > { %v6939_v19 = vmax.f32 %v6911_v55, 0.0  ;;  %v6873_v59 = vmax.f32 %v15073_v8, %v6845_v21  ;;  %v6846_v36 = vmax.f32 %v15074_v53, %v6763_v31  ;;  %v6765_v29 = vadd.f32 %v6764_v26, %v6592_v50  ;;  %8079 = vmatmul.mubr.bf16.vlgmr.msra.gmra.mxu0 %v9432_v0  ;;  %v10274_v55 = vld [vmem:[%s14467_s3 + $0x160] sm:$0xff]   ;;  %v15083_v21 = vld [vmem:[#allocation47_spill] sm:$0xff] }
 0x476   : > { %9491 = vmatpush3.bf16.msra.mxu0 %v10265_v4  ;;  %v6766_v41 = vpop.f32.mrf.mxu1  ;;  %v6912_v35 = vadd.f32 %v14017_v51, %v6872_v24  ;;  %v15076_v0 = vmax.f32 %v15002_v49, %v13866_v48  ;;  %v15079_v48 = vmax.f32 %v15004_v44, %v15078_v16  ;;  %v6602_v27 = vadd.f32 %v13977_v52, %v15081_v58  ;;  %v15082_v4 = vld [vmem:[#allocation9_spill] sm:$0xff]  ;;  %v10275_v52 = vld [vmem:[%s14467_s3 + $0x1f0] sm:$0xff]  }
 0x477   : > { %v9434_v22 = vpack.c.bf16 %v6939_v19, %v6937_v38  ;;  %v6847_v32 = vmax.f32 %v15077_v13, %v6765_v29  ;;  %9492 = vmatprep.subr.bf16.mxu0 %v10267_v9  ;;  %v6913_v54 = vadd.f32 %v13998_v12, %v6873_v59  ;;  %v6767_v42 = vadd.f32 %v6766_v41, %v6594_v60  ;;  %v15084_v31 = vld [vmem:[#allocation13_spill] sm:$0xff]  ;;  %v15089_v29 = vld [vmem:[#allocation84_spill] sm:$0xff] }
 0x478   : > { %v6874_v14 = vmax.f32 %v15076_v0, %v6846_v36  ;;  %v6770_v57 = vpop.f32.mrf.mxu1  ;;  %v6940_v33 = vmax.f32 %v6912_v35, 0.0  ;;  %v15085_v9 = vmax.f32 %v15083_v21, %v15084_v31  ;;  %v15087_v19 = vmax.f32 %v15008_v43, %v15086_v47  ;;  %v15088_v59 = vld [vmem:[#allocation33_spill] sm:$0xff]  ;;  %v10277_v35 = vld [vmem:[%s14467_s3 + $0x1b0] sm:$0xff]   ;;  %v15101_v31 = vld [vmem:[#allocation72_spill] sm:$0xff] }
 0x479   : > { %v6875_v49 = vmax.f32 %v15079_v48, %v6847_v32  ;;  %v6771_v7 = vadd.f32 %v6770_v57, %v6598_v30  ;;  %v6848_v20 = vmax.f32 %v15080_v56, %v6767_v42  ;;  %v6941_v18 = vmax.f32 %v6913_v54, 0.0  ;;  %v10278_v42 = vld [vmem:[%s14467_s3 + $0x158] sm:$0xff]   ;;  %v10279_v57 = vld [vmem:[%s14467_s3 + $0x1e8] sm:$0xff]  }
 0x47a   : > { %9493 = vmatpush3.bf16.msra.mxu0 %v10269_v25  ;;  %v6772_v10 = vpop.f32.mrf.mxu1  ;;  %v9435_v15 = vpack.c.bf16 %v6940_v33, %v6938_v63  ;;  %v6914_v24 = vadd.f32 %v14017_v51, %v6874_v14  ;;  %v6604_v60 = vadd.f32 %v13993_v11, %v15089_v29  ;;  %v10276_v25 = vld [vmem:[%s14467_s3 + $0x120] sm:$0xff]   ;;  %v6608_v30 = vadd.f32 %v14008_v45, %v15090_v5  ;;  %v15092_v14 = vld [vmem:[#allocation27_spill] sm:$0xff]  ;;  %v15095_v48 = vld [vmem:[#allocation86_spill] sm:$0xff] }
 0x47b   : > { %v6915_v44 = vadd.f32 %v13998_v12, %v6875_v49  ;;  %v6849_v17 = vmax.f32 %v15082_v4, %v6771_v7  ;;  %v6773_v50 = vadd.f32 %v6772_v10, %v6600_v61  ;;  %9494 = vmatprep.subr.bf16.mxu0 %v10270_v39  ;;  %v6876_v38 = vmax.f32 %v15085_v9, %v6848_v20  ;;  %v15091_v11 = vld [vmem:[#allocation69_spill] sm:$0xff]  ;;  %v15094_v39 = vld [vmem:[#allocation34_spill] sm:$0xff]  ;;  %v15096_v7 = vld [vmem:[#allocation64_spill] sm:$0xff] }
 0x47c   : > { %8119 = vmatprep.mubr.bf16.mxu1 %v9435_v15  ;;  %v6774_v3 = vpop.f32.mrf.mxu1  ;;  %v15093_v13 = vmax.f32 %v15091_v11, %v15092_v14  ;;  %v6942_v61 = vmax.f32 %v6914_v24, 0.0  ;;  %v6610_v49 = vadd.f32 %v14027_v62, %v15095_v48  ;;  %v15097_v56 = vmax.f32 %v15013_v1, %v15096_v7  ;;  %v15098_v15 = vld [vmem:[#allocation87_spill] sm:$0xff]  ;;  %v10280_v4 = vld [vmem:[%s14467_s3 + $0x118] sm:$0xff]   ;;  %v10281_v62 = vld [vmem:[%s14467_s3 + $0x1a8] sm:$0xff]  }
 0x47d   : > { %v6943_v26 = vmax.f32 %v6915_v44, 0.0  ;;  %v6877_v8 = vmax.f32 %v15087_v19, %v6849_v17  ;;  %v6850_v53 = vmax.f32 %v15088_v59, %v6773_v50  ;;  %v6775_v36 = vadd.f32 %v6774_v3, %v6602_v27  ;;  %8120 = vmatmul.mubr.bf16.vlgmr.msra.gmra.mxu1 %v9434_v22  ;;  %v14138_v22 = vpop.f32.mrf.mxu0  ;;  %v15100_v50 = vld [vmem:[#allocation36_spill] sm:$0xff]  ;;  %v15102_v9 = vld [vmem:[#allocation57_spill] sm:$0xff]  ;;  %v15104_v19 = vld [vmem:[#allocation43_spill] sm:$0xff] }
 0x47e   : > { %9495 = vmatpush3.bf16.msra.mxu0 %v10272_v23  ;;  %9513 = vmatpush3.bf16.msra.mxu1 %v10273_v34  ;;  %v6776_v41 = vpop.f32.mrf.mxu1  ;;  %v6916_v43 = vadd.f32 %v14017_v51, %v6876_v38  ;;  %v6612_v23 = vadd.f32 %v14044_v2, %v15098_v15  ;;  %v15099_v34 = vld [vmem:[#allocation35_spill] sm:$0xff]  ;;  %v15103_v38 = vmax.f32 %v15101_v31, %v15102_v9  ;;  %v10283_v24 = vld [vmem:[%s14467_s3 + $0x1e0] sm:$0xff]   ;;  %v15113_v48 = vld [vmem:[#allocation90_spill] sm:$0xff] }
 0x47f   : > { %v14140_v0 = vpack.c.bf16 %v6943_v26, %v6941_v18  ;;  %v6878_v32 = vmax.f32 %v15093_v13, %v6850_v53  ;;  %v6851_v54 = vmax.f32 %v15094_v39, %v6775_v36  ;;  %9496 = vmatprep.subr.bf16.mxu0 %v10274_v55  ;;  %v6917_v45 = vadd.f32 %v13998_v12, %v6877_v8  ;;  %v14167_v1 = vpop.f32.mrf.mxu0  ;;  %v10282_v18 = vld [vmem:[%s14467_s3 + $0x150] sm:$0xff]   ;;  %v15106_v53 = vld [vmem:[#allocation37_spill] sm:$0xff]  ;;  %v15109_v13 = vld [vmem:[#allocation50_spill] sm:$0xff] }
 0x480   : > { %v6777_v63 = vadd.f32 %v6776_v41, %v6604_v60  ;;  %9514 = vmatprep.subr.bf16.mxu1 %v10275_v52  ;;  %v6780_v33 = vpop.f32.mrf.mxu1  ;;  %v6944_v16 = vmax.f32 %v6916_v43, 0.0  ;;  %v15105_v8 = vmax.f32 %v15018_v37, %v15104_v19  ;;  %v15107_v60 = vld [vmem:[#allocation88_spill] sm:$0xff]  ;;  %v10284_v5 = vld [vmem:[%s14467_s3 + $0x110] sm:$0xff]   ;;  %v10285_v37 = vld [vmem:[%s14467_s3 + $0x1a0] sm:$0xff]  }
 0x481   : > { %v6879_v20 = vmax.f32 %v15097_v56, %v6851_v54  ;;  %v6781_v10 = vadd.f32 %v6780_v33, %v6608_v30  ;;  %v6945_v21 = vmax.f32 %v6917_v45, 0.0  ;;  %v6918_v26 = vadd.f32 %v14017_v51, %v6878_v32  ;;  %v6627_v11 = vpop.f32.mrf.mxu0  ;;  %v15112_v54 = vld [vmem:[#allocation32_spill] sm:$0xff]  ;;  %v15114_v7 = vld [vmem:[#allocation65_spill] sm:$0xff]  ;;  %v15116_v15 = vld [vmem:[#allocation91_spill] sm:$0xff] }
 0x482   : > { %v6852_v58 = vmax.f32 %v15099_v34, %v6777_v63  ;;  %9497 = vmatpush3.bf16.msra.mxu0 %v10276_v25  ;;  %9515 = vmatpush3.bf16.msra.mxu1 %v10277_v35  ;;  %v6782_v27 = vpop.f32.mrf.mxu1  ;;  %v9437_v44 = vpack.c.bf16 %v6944_v16, %v6942_v61  ;;  %v6614_v41 = vadd.f32 %v14062_v6, %v15107_v60  ;;  %v15108_v25 = vld [vmem:[#allocation89_spill] sm:$0xff]  ;;  %v10287_v45 = vld [vmem:[%s14467_s3 + $0x1d8] sm:$0xff]   ;;  %v15117_v34 = vld [vmem:[#allocation63_spill] sm:$0xff] }
 0x483   : > { %v6919_v17 = vadd.f32 %v13998_v12, %v6879_v20  ;;  %v6853_v2 = vmax.f32 %v15100_v50, %v6781_v10  ;;  %v6783_v55 = vadd.f32 %v6782_v27, %v6610_v49  ;;  %9498 = vmatprep.subr.bf16.mxu0 %v10278_v42  ;;  %9516 = vmatprep.subr.bf16.mxu1 %v10279_v57  ;;  %v10286_v57 = vld [vmem:[%s14467_s3 + $0x148] sm:$0xff]   ;;  %v6946_v61 = vmax.f32 %v6918_v26, 0.0  ;;  %v15122_v26 = vld [vmem:[#allocation73_spill] sm:$0xff] }
 0x484   : > { %v6880_v3 = vmax.f32 %v15103_v38, %v6852_v58  ;;  %8160 = vmatprep.mubr.bf16.mxu0 %v9437_v44  ;;  %v6784_v52 = vpop.f32.mrf.mxu1  ;;  %v6618_v35 = vadd.f32 %v14085_v40, %v15108_v25  ;;  %v15110_v40 = vld [vmem:[#allocation28_spill] sm:$0xff]  ;;  %v6620_v49 = vadd.f32 %v14109_v28, %v15113_v48  ;;  %v15115_v56 = vmax.f32 %v15023_v46, %v15114_v7  ;;  %v6629_v46 = vpop.f32.mrf.mxu0 }
 0x485   : > { %v6947_v47 = vmax.f32 %v6919_v17, 0.0  ;;  %v6881_v59 = vmax.f32 %v15105_v8, %v6853_v2  ;;  %v6854_v36 = vmax.f32 %v15106_v53, %v6783_v55  ;;  %v6785_v29 = vadd.f32 %v6784_v52, %v6612_v23  ;;  %v10289_v28 = vld [vmem:[%s14467_s3 + $0x198] sm:$0xff]   ;;  %v15118_v17 = vld [vmem:[#allocation38_spill] sm:$0xff]  ;;  %v10290_v2 = vld [vmem:[%s14467_s3 + $0x140] sm:$0xff]  }
 0x486   : > { %9499 = vmatpush3.bf16.msra.mxu0 %v10280_v4  ;;  %9517 = vmatpush3.bf16.msra.mxu1 %v10281_v62  ;;  %v6786_v43 = vpop.f32.mrf.mxu1  ;;  %v6920_v30 = vadd.f32 %v14017_v51, %v6880_v3  ;;  %v15111_v32 = vmax.f32 %v15109_v13, %v15110_v40  ;;  %v6622_v23 = vadd.f32 %v14138_v22, %v15116_v15  ;;  %v10288_v4 = vld [vmem:[%s14467_s3 + $0x108] sm:$0xff]   ;;  %v10291_v3 = vld [vmem:[%s14467_s3 + $0x1d0] sm:$0xff]   ;;  %v15128_v13 = vld [vmem:[#allocation52_spill] sm:$0xff] }
 0x487   : > { %v14196_v14 = vpack.c.bf16 %v6947_v47, %v6945_v21  ;;  %v6921_v6 = vadd.f32 %v13998_v12, %v6881_v59  ;;  %v6855_v42 = vmax.f32 %v15112_v54, %v6785_v29  ;;  %9500 = vmatprep.subr.bf16.mxu0 %v10282_v18  ;;  %v6787_v63 = vadd.f32 %v6786_v43, %v6614_v41  ;;  %v15119_v18 = vld [vmem:[#allocation51_spill] sm:$0xff]  ;;  %v15120_v21 = vld [vmem:[#allocation44_spill] sm:$0xff]  ;;  %v15123_v47 = vld [vmem:[#allocation66_spill] sm:$0xff] }
 0x488   : > { %v6882_v39 = vmax.f32 %v15111_v32, %v6854_v36  ;;  %9518 = vmatprep.subr.bf16.mxu1 %v10283_v24  ;;  %v6790_v33 = vpop.f32.mrf.mxu1  ;;  %v6948_v16 = vmax.f32 %v6920_v30, 0.0  ;;  %v15121_v31 = vmax.f32 %v15119_v18, %v15120_v21  ;;  %v15124_v19 = vmax.f32 %v15122_v26, %v15123_v47  ;;  %v15125_v59 = vld [vmem:[#allocation61_spill] sm:$0xff]  ;;  %v15126_v29 = vld [vmem:[#allocation92_spill] sm:$0xff]  ;;  %v6631_v30 = vpop.f32.mrf.mxu0  ;;  %v15136_v15 = vld [vmem:[#allocation95_spill] sm:$0xff] }
 0x489   : > { %v6883_v20 = vmax.f32 %v15115_v56, %v6855_v42  ;;  %v6791_v10 = vadd.f32 %v6790_v33, %v6618_v35  ;;  %v6856_v58 = vmax.f32 %v15117_v34, %v6787_v63  ;;  %v6949_v55 = vmax.f32 %v6921_v6, 0.0  ;;  %v15127_v41 = vld [vmem:[#allocation93_spill] sm:$0xff]  ;;  %v10294_v42 = vld [vmem:[%s14467_s3 + $0x1c8] sm:$0xff]   ;;  %v15134_v7 = vld [vmem:[#allocation12_spill] sm:$0xff] }
 0x48a   : > { %9501 = vmatpush3.bf16.msra.mxu0 %v10284_v5  ;;  %9519 = vmatpush3.bf16.msra.mxu1 %v10285_v37  ;;  %v6792_v27 = vpop.f32.mrf.mxu1  ;;  %v9439_v44 = vpack.c.bf16 %v6948_v16, %v6946_v61  ;;  %v6922_v52 = vadd.f32 %v14017_v51, %v6882_v39  ;;  %v6624_v60 = vadd.f32 %v14167_v1, %v15126_v29  ;;  %v10292_v43 = vld [vmem:[%s14467_s3 + $0x100] sm:$0xff]   ;;  %v10293_v5 = vld [vmem:[%s14467_s3 + $0x190] sm:$0xff]   ;;  %v15132_v16 = vld [vmem:[#allocation94_spill] sm:$0xff] }
 0x48b   : > { %v6923_v62 = vadd.f32 %v13998_v12, %v6883_v20  ;;  %v6857_v50 = vmax.f32 %v15118_v17, %v6791_v10  ;;  %v6793_v22 = vadd.f32 %v6792_v27, %v6620_v49  ;;  %9502 = vmatprep.subr.bf16.mxu0 %v10286_v57  ;;  %9520 = vmatprep.subr.bf16.mxu1 %v10287_v45  ;;  %v15131_v39 = vld [vmem:[#allocation31_spill] sm:$0xff]  ;;  %v10295_v57 = vld [vmem:[%s14467_s3 + $0x278] sm:$0xff]   ;;  %v15140_v18 = vld [vmem:[#allocation45_spill] sm:$0xff] }
 0x48c   : > { %v6884_v9 = vmax.f32 %v15121_v31, %v6856_v58  ;;  %8201 = vmatprep.mubr.bf16.mxu1 %v9439_v44  ;;  %v6794_v38 = vpop.f32.mrf.mxu1  ;;  %v6628_v25 = vadd.f32 %v6627_v11, %v15127_v41  ;;  %v15129_v11 = vld [vmem:[#allocation8_spill] sm:$0xff]  ;;  %v6950_v33 = vmax.f32 %v6922_v52, 0.0  ;;  %v6630_v48 = vadd.f32 %v6629_v46, %v15132_v16  ;;  %v15133_v49 = vld [vmem:[#allocation75_spill] sm:$0xff]  ;;  %v10296_v44 = vld [vmem:[%s14467_s3 + $0x188] sm:$0xff]   ;;  %v6633_v46 = vpop.f32.mrf.mxu0 }
 0x48d   : > { %v6951_v24 = vmax.f32 %v6923_v62, 0.0  ;;  %v6885_v8 = vmax.f32 %v15124_v19, %v6857_v50  ;;  %v6858_v53 = vmax.f32 %v15125_v59, %v6793_v22  ;;  %v6795_v36 = vadd.f32 %v6794_v38, %v6622_v23  ;;  %v15137_v34 = vld [vmem:[#allocation39_spill] sm:$0xff]  ;;  %v15138_v17 = vld [vmem:[#allocation40_spill] sm:$0xff]  ;;  %v10298_v38 = vld [vmem:[%s14467_s3 + $0x1c0] sm:$0xff]  }
 0x48e   : > { %9503 = vmatpush3.bf16.msra.mxu0 %v10288_v4  ;;  %9521 = vmatpush3.bf16.msra.mxu1 %v10289_v28  ;;  %v6796_v35 = vpop.f32.mrf.mxu1  ;;  %v6924_v37 = vadd.f32 %v14017_v51, %v6884_v9  ;;  %v15130_v40 = vmax.f32 %v15128_v13, %v15129_v11  ;;  %v15135_v56 = vmax.f32 %v15133_v49, %v15134_v7  ;;  %v10297_v4 = vld [vmem:[%s14467_s3 + $0x238] sm:$0xff]   ;;  %v15142_v26 = vld [vmem:[#allocation53_spill] sm:$0xff]  ;;  %v15143_v47 = vld [vmem:[#allocation67_spill] sm:$0xff] }
 0x48f   : > { %v14249_v6 = vpack.c.bf16 %v6951_v24, %v6949_v55  ;;  %v6925_v1 = vadd.f32 %v13998_v12, %v6885_v8  ;;  %v6859_v54 = vmax.f32 %v15131_v39, %v6795_v36  ;;  %9504 = vmatprep.subr.bf16.mxu0 %v10290_v2  ;;  %v6797_v45 = vadd.f32 %v6796_v35, %v6624_v60  ;;  %v15139_v55 = vld [vmem:[#allocation74_spill] sm:$0xff]  ;;  %v15145_v59 = vld [vmem:[#allocation41_spill] sm:$0xff]  ;;  %v15146_v29 = vld [vmem:[#allocation96_spill] sm:$0xff] }
 0x490   : > { %v6886_v32 = vmax.f32 %v15130_v40, %v6858_v53  ;;  %9522 = vmatprep.subr.bf16.mxu1 %v10291_v3  ;;  %v6800_v63 = vpop.f32.mrf.mxu1  ;;  %v6952_v61 = vmax.f32 %v6924_v37, 0.0  ;;  %v6632_v23 = vadd.f32 %v6631_v30, %v15136_v15  ;;  %v15141_v21 = vmax.f32 %v15139_v55, %v15140_v18  ;;  %v10299_v3 = vld [vmem:[%s14467_s3 + $0x270] sm:$0xff]   ;;  %v15147_v37 = vld [vmem:[#allocation26_spill] sm:$0xff]  ;;  %v10303_v39 = vld [vmem:[%s14467_s3 + $0x2f8] sm:$0xff]  }
 0x491   : > { %v6887_v20 = vmax.f32 %v15135_v56, %v6859_v54  ;;  %v6801_v10 = vadd.f32 %v6800_v63, %v6628_v25  ;;  %v6860_v58 = vmax.f32 %v15137_v34, %v6797_v45  ;;  %v6953_v2 = vmax.f32 %v6925_v1, 0.0  ;;  %v10300_v25 = vld [vmem:[%s14467_s3 + $0x180] sm:$0xff]   ;;  %v10301_v35 = vld [vmem:[%s14467_s3 + $0x230] sm:$0xff]   ;;  %v15148_v30 = vld [vmem:[#allocation46_spill] sm:$0xff] }
 0x492   : > { %9505 = vmatpush3.bf16.msra.mxu0 %v10292_v43  ;;  %9523 = vmatpush3.bf16.msra.mxu1 %v10293_v5  ;;  %v6802_v27 = vpop.f32.mrf.mxu1  ;;  %v9441_v28 = vpack.c.bf16 %v6952_v61, %v6950_v33  ;;  %v6926_v52 = vadd.f32 %v14017_v51, %v6886_v32  ;;  %v15144_v19 = vmax.f32 %v15142_v26, %v15143_v47  ;;  %v15150_v11 = vld [vmem:[#allocation14_spill] sm:$0xff]  ;;  %v15151_v45 = vld [vmem:[#allocation55_spill] sm:$0xff]  ;;  %v15152_v63 = vld [vmem:[#allocation68_spill] sm:$0xff] }
 0x493   : > { %v6927_v62 = vadd.f32 %v13998_v12, %v6887_v20  ;;  %v6861_v50 = vmax.f32 %v15138_v17, %v6801_v10  ;;  %v6803_v22 = vadd.f32 %v6802_v27, %v6630_v48  ;;  %9524 = vmatprep.subr.bf16.mxu1 %v10294_v42  ;;  %9534 = vmatprep.subr.bf16.mxu0 %v10295_v57  ;;  %v10302_v32 = vld [vmem:[%s14467_s3 + $0x268] sm:$0xff]   ;;  %v15154_v48 = vld [vmem:[#allocation11_spill] sm:$0xff]  ;;  %v10305_v56 = vld [vmem:[%s14467_s3 + $0x2b8] sm:$0xff]  }
 0x494   : > { %v6888_v31 = vmax.f32 %v15141_v21, %v6860_v58  ;;  %v6804_v9 = vpop.f32.mrf.mxu1  ;;  %v6634_v60 = vadd.f32 %v6633_v46, %v15146_v29  ;;  %v15149_v1 = vmax.f32 %v15147_v37, %v15148_v30  ;;  %v6954_v42 = vmax.f32 %v6926_v52, 0.0  ;;  %v10304_v7 = vld [vmem:[%s14467_s3 + $0x228] sm:$0xff]   ;;  %v10306_v15 = vld [vmem:[%s14467_s3 + $0x260] sm:$0xff]   ;;  %v15156_v34 = vld [vmem:[#allocation48_spill] sm:$0xff] }
 0x495   : > { %v6955_v24 = vmax.f32 %v6927_v62, 0.0  ;;  %v6889_v8 = vmax.f32 %v15144_v19, %v6861_v50  ;;  %v6862_v53 = vmax.f32 %v15145_v59, %v6803_v22  ;;  %8161 = vmatmul.mubr.bf16.vlgmr.msra.gmra.mxu0 %v14140_v0  ;;  %v6805_v36 = vadd.f32 %v6804_v9, %v6632_v23  ;;  %v15155_v23 = vld [vmem:[#allocation54_spill] sm:$0xff]  ;;  %v10309_v46 = vld [vmem:[%s14467_s3 + $0x2b0] sm:$0xff]   ;;  %v10319_v52 = vld [vmem:[%s14467_s3 + $0x2d8] sm:$0xff]  }
 0x496   : > { %9525 = vmatpush3.bf16.msra.mxu1 %v10296_v44  ;;  %9535 = vmatpush3.bf16.msra.mxu0 %v10297_v4  ;;  %v6806_v41 = vpop.f32.mrf.mxu1  ;;  %v6928_v43 = vadd.f32 %v14017_v51, %v6888_v31  ;;  %v15153_v33 = vmax.f32 %v15151_v45, %v15152_v63  ;;  %v15157_v58 = vmax.f32 %v15155_v23, %v15156_v34  ;;  %v10307_v44 = vld [vmem:[%s14467_s3 + $0x2f0] sm:$0xff]   ;;  %v10311_v50 = vld [vmem:[%s14467_s3 + $0x2e8] sm:$0xff]   ;;  %v10315_v31 = vld [vmem:[%s14467_s3 + $0x2e0] sm:$0xff]  }
 0x497   : > { %v14299_v5 = vpack.c.bf16 %v6955_v24, %v6953_v2  ;;  %v6929_v0 = vadd.f32 %v13998_v12, %v6889_v8  ;;  %v6890_v13 = vmax.f32 %v15149_v1, %v6862_v53  ;;  %v6863_v40 = vmax.f32 %v15150_v11, %v6805_v36  ;;  %8242 = vmatprep.mubr.bf16.mxu0 %v9441_v28  ;;  %v10313_v55 = vld [vmem:[%s14467_s3 + $0x2a8] sm:$0xff]   ;;  %v10314_v21 = vld [vmem:[%s14467_s3 + $0x250] sm:$0xff]   ;;  %v10321_v26 = vld [vmem:[%s14467_s3 + $0x298] sm:$0xff]  }
 0x498   : > { %v6807_v54 = vadd.f32 %v6806_v41, %v6634_v60  ;;  %9526 = vmatprep.subr.bf16.mxu1 %v10298_v38  ;;  %9536 = vmatprep.subr.bf16.mxu0 %v10299_v3  ;;  %v6956_v57 = vmax.f32 %v6928_v43, 0.0  ;;  %v10316_v9 = vld [vmem:[%s14467_s3 + $0x210] sm:$0xff]   ;;  %v10317_v38 = vld [vmem:[%s14467_s3 + $0x2a0] sm:$0xff]   ;;  %v10318_v3 = vld [vmem:[%s14467_s3 + $0x248] sm:$0xff]  }
 0x499   : > { %v6891_v61 = vmax.f32 %v15153_v33, %v6863_v40  ;;  %v6930_v16 = vadd.f32 %v14017_v51, %v6890_v13  ;;  %v6957_v4 = vmax.f32 %v6929_v0, 0.0  ;;  %v10320_v24 = vld [vmem:[%s14467_s3 + $0x208] sm:$0xff]   ;;  %v10322_v47 = vld [vmem:[%s14467_s3 + $0x240] sm:$0xff]   ;;  %v10323_v19 = vld [vmem:[%s14467_s3 + $0x2d0] sm:$0xff]  }
 0x49a   : > { %v6864_v49 = vmax.f32 %v15154_v48, %v6807_v54  ;;  %9527 = vmatpush3.bf16.msra.mxu1 %v10300_v25  ;;  %9537 = vmatpush3.bf16.msra.mxu0 %v10301_v35  ;;  %v9443_v20 = vpack.c.bf16 %v6956_v57, %v6954_v42  ;;  %v10324_v8 = vld [vmem:[%s14467_s3 + $0x200] sm:$0xff]   ;;  %v10325_v59 = vld [vmem:[%s14467_s3 + $0x290] sm:$0xff]   ;;  %v10326_v53 = vld [vmem:[%s14467_s3 + $0x2c8] sm:$0xff]  }
 0x49b   : > { %v6931_v10 = vadd.f32 %v13998_v12, %v6891_v61  ;;  %9538 = vmatprep.subr.bf16.mxu0 %v10302_v32  ;;  %9556 = vmatprep.subr.bf16.mxu1 %v10303_v39  ;;  %v10308_v12 = vld [vmem:[%s14467_s3 + $0x220] sm:$0xff]   ;;  %v6958_v22 = vmax.f32 %v6930_v16, 0.0  ;;  %v10327_v36 = vld [vmem:[%s14467_s3 + $0x378] sm:$0xff]   ;;  %v10328_v29 = vld [vmem:[%s14467_s3 + $0x288] sm:$0xff]  }
 0x49c   : > { %v6892_v27 = vmax.f32 %v15157_v58, %v6864_v49  ;;  %v10329_v60 = vld [vmem:[%s14467_s3 + $0x338] sm:$0xff]   ;;  %v10330_v41 = vld [vmem:[%s14467_s3 + $0x2c0] sm:$0xff]   ;;  %v10331_v25 = vld [vmem:[%s14467_s3 + $0x370] sm:$0xff]  }
 0x49d   : > { %v6959_v28 = vmax.f32 %v6931_v10, 0.0  ;;  %8202 = vmatmul.mubr.bf16.vlgmr.msra.gmra.mxu1 %v14196_v14  ;;  %v10310_v14 = vld [vmem:[%s14467_s3 + $0x258] sm:$0xff]   ;;  %v10332_v35 = vld [vmem:[%s14467_s3 + $0x280] sm:$0xff]   ;;  %v10333_v43 = vld [vmem:[%s14467_s3 + $0x330] sm:$0xff]  }
 0x49e   : > { %9539 = vmatpush3.bf16.msra.mxu0 %v10304_v7  ;;  %9557 = vmatpush3.bf16.msra.mxu1 %v10305_v56  ;;  %v6932_v62 = vadd.f32 %v14017_v51, %v6892_v27  ;;  %v10312_v51 = vld [vmem:[%s14467_s3 + $0x218] sm:$0xff]   ;;  %v10334_v0 = vld [vmem:[%s14467_s3 + $0x368] sm:$0xff]   ;;  %v10336_v37 = vld [vmem:[%s14467_s3 + $0x360] sm:$0xff]  }
 0x49f   : > { %v14341_v17 = vpack.c.bf16 %v6959_v28, %v6957_v4  ;;  %8283 = vmatprep.mubr.bf16.mxu1 %v9443_v20  ;;  %9540 = vmatprep.subr.bf16.mxu0 %v10306_v15  ;;  %v10337_v30 = vld [vmem:[%s14467_s3 + $0x320] sm:$0xff]   ;;  %v10338_v1 = vld [vmem:[%s14467_s3 + $0x358] sm:$0xff]   ;;  %v10341_v11 = vld [vmem:[%s14467_s3 + $0x310] sm:$0xff]  }
 0x4a0   : > { %9558 = vmatprep.subr.bf16.mxu1 %v10307_v44  ;;  %v6960_v2 = vmax.f32 %v6932_v62, 0.0  ;;  %v10339_v13 = vld [vmem:[%s14467_s3 + $0x318] sm:$0xff]   ;;  %v10342_v40 = vld [vmem:[%s14467_s3 + $0x348] sm:$0xff]   ;;  %v10344_v39 = vld [vmem:[%s14467_s3 + $0x340] sm:$0xff]  }
 0x4a1   : > { %v10343_v32 = vld [vmem:[%s14467_s3 + $0x308] sm:$0xff]   ;;  %v10345_v54 = vld [vmem:[%s14467_s3 + $0x300] sm:$0xff]  }
 0x4a2   : > { %9541 = vmatpush3.bf16.msra.mxu0 %v10308_v12  ;;  %9559 = vmatpush3.bf16.msra.mxu1 %v10309_v46  ;;  %v9445_v18 = vpack.c.bf16 %v6960_v2, %v6958_v22  ;;  %v9233_v4 = vld [vmem:[%s14470_s6] ss:$0 sm:$0xff] }
 0x4a3   : > { %9542 = vmatprep.subr.bf16.mxu0 %v10310_v14  ;;  %9560 = vmatprep.subr.bf16.mxu1 %v10311_v50 }
 0x4a6   : > { %9543 = vmatpush3.bf16.msra.mxu0 %v10312_v51  ;;  %9561 = vmatpush3.bf16.msra.mxu1 %v10313_v55 }
 0x4a7   : > { %9544 = vmatprep.subr.bf16.mxu0 %v10314_v21  ;;  %9562 = vmatprep.subr.bf16.mxu1 %v10315_v31 }
 0x4aa   : > { %9545 = vmatpush3.bf16.msra.mxu0 %v10316_v9  ;;  %9563 = vmatpush3.bf16.msra.mxu1 %v10317_v38 }
 0x4ab   : > { %9546 = vmatprep.subr.bf16.mxu0 %v10318_v3  ;;  %9564 = vmatprep.subr.bf16.mxu1 %v10319_v52 }
 0x4ae   : > { %9547 = vmatpush3.bf16.msra.mxu0 %v10320_v24  ;;  %9565 = vmatpush3.bf16.msra.mxu1 %v10321_v26 }
 0x4af   : > { %9548 = vmatprep.subr.bf16.mxu0 %v10322_v47  ;;  %9566 = vmatprep.subr.bf16.mxu1 %v10323_v19 }
 0x4b2   : > { %9549 = vmatpush3.bf16.msra.mxu0 %v10324_v8  ;;  %9567 = vmatpush3.bf16.msra.mxu1 %v10325_v59 }
 0x4b3   : > { %9568 = vmatprep.subr.bf16.mxu1 %v10326_v53  ;;  %9578 = vmatprep.subr.bf16.mxu0 %v10327_v36 }
 0x4b5   : > { %8243 = vmatmul.mubr.bf16.vlgmr.msra.gmra.mxu0 %v14249_v6  ;;  %v10335_v6 = vld [vmem:[%s14467_s3 + $0x328] sm:$0xff]  }
 0x4b6   : > { %9569 = vmatpush3.bf16.msra.mxu1 %v10328_v29  ;;  %9579 = vmatpush3.bf16.msra.mxu0 %v10329_v60 }
 0x4b7   : > { %8324 = vmatprep.mubr.bf16.mxu0 %v9445_v18  ;;  %9570 = vmatprep.subr.bf16.mxu1 %v10330_v41 }
 0x4b8   : > { %9580 = vmatprep.subr.bf16.mxu0 %v10331_v25 }
 0x4ba   : > { %9571 = vmatpush3.bf16.msra.mxu1 %v10332_v35  ;;  %9581 = vmatpush3.bf16.msra.mxu0 %v10333_v43 }
 0x4bb   : > { %9582 = vmatprep.subr.bf16.mxu0 %v10334_v0 }
 0x4bd   : > { %8284 = vmatmul.mubr.bf16.vlgmr.msra.gmra.mxu1 %v14299_v5  ;;  %v10340_v5 = vld [vmem:[%s14467_s3 + $0x350] sm:$0xff]  }
 0x4be   : > { %9583 = vmatpush3.bf16.msra.mxu0 %v10335_v6 }
 0x4bf   : > { %9584 = vmatprep.subr.bf16.mxu0 %v10336_v37 }
 0x4c2   : > { %9585 = vmatpush3.bf16.msra.mxu0 %v10337_v30 }
 0x4c3   : > { %9586 = vmatprep.subr.bf16.mxu0 %v10338_v1 }
 0x4c6   : > { %9587 = vmatpush3.bf16.msra.mxu0 %v10339_v13 }
 0x4c7   : > { %9588 = vmatprep.subr.bf16.mxu0 %v10340_v5 }
 0x4ca   : > { %9589 = vmatpush3.bf16.msra.mxu0 %v10341_v11 }
 0x4cb   : > { %9590 = vmatprep.subr.bf16.mxu0 %v10342_v40 }
 0x4ce   : > { %9591 = vmatpush3.bf16.msra.mxu0 %v10343_v32 }
 0x4cf   : > { %9592 = vmatprep.subr.bf16.mxu0 %v10344_v39 }
 0x4d2   : > { %9593 = vmatpush3.bf16.msra.mxu0 %v10345_v54 }
 0x4d5   : > { %8325 = vmatmul.mubr.bf16.vlgmr.msra.gmra.mxu0 %v14341_v17 }
 0x535   : > { %v9462_v42 = vpop.f32.mrf.mxu0 }
 0x537   : > { %v9463_v45 = vpop.f32.mrf.mxu0 }
 0x538   : > { %v9464_v44 = vadd.f32 %v9463_v45, %v9462_v42 }
 0x539   : > { %v9465_v33 = vpop.f32.mrf.mxu0 }
 0x53a   : > { %v8081_v62 = vadd.f32 %v9464_v44, %v9233_v4 }
 0x53b   : > { %v9466_v16 = vpop.f32.mrf.mxu0 }
 0x53c   : > { %v9467_v17 = vadd.f32 %v9466_v16, %v9465_v33 }
 0x53d   : > { %v9484_v57 = vpop.f32.mrf.mxu1 }
 0x53e   : > { %v8084_v18 = vadd.f32 %v9467_v17, %v9233_v4 }
 0x53f   : > { %v9485_v63 = vpop.f32.mrf.mxu1 }
 0x540   : > { %v9486_v12 = vadd.f32 %v9485_v63, %v9484_v57 }
 0x541   : > { %v9487_v61 = vpop.f32.mrf.mxu1 }
 0x542   : > { %v8122_v22 = vadd.f32 %v9486_v12, %v8081_v62 }
 0x543   : > { %v9488_v48 = vpop.f32.mrf.mxu1 }
 0x544   : > { %v9489_v2 = vadd.f32 %v9488_v48, %v9487_v61 }
 0x546   : > { %v8125_v3 = vadd.f32 %v9489_v2, %v8084_v18 }
 0x555   : > { %v9506_v49 = vpop.f32.mrf.mxu0 }
 0x557   : > { %v9507_v56 = vpop.f32.mrf.mxu0 }
 0x558   : > { %v9508_v14 = vadd.f32 %v9507_v56, %v9506_v49 }
 0x559   : > { %v9509_v10 = vpop.f32.mrf.mxu0 }
 0x55a   : > { %v8163_v21 = vadd.f32 %v9508_v14, %v8122_v22 }
 0x55b   : > { %v9510_v23 = vpop.f32.mrf.mxu0 }
 0x55c   : > { %v9511_v31 = vadd.f32 %v9510_v23, %v9509_v10 }
 0x55d   : > { %v9528_v7 = vpop.f32.mrf.mxu1 }
 0x55e   : > { %v8166_v8 = vadd.f32 %v9511_v31, %v8125_v3 }
 0x55f   : > { %v9529_v20 = vpop.f32.mrf.mxu1 }
 0x560   : > { %v9530_v51 = vadd.f32 %v9529_v20, %v9528_v7 }
 0x561   : > { %v9531_v15 = vpop.f32.mrf.mxu1 }
 0x562   : > { %v8204_v52 = vadd.f32 %v9530_v51, %v8163_v21 }
 0x563   : > { %v9532_v34 = vpop.f32.mrf.mxu1 }
 0x564   : > { %v9533_v24 = vadd.f32 %v9532_v34, %v9531_v15 }
 0x566   : > { %v8207_v29 = vadd.f32 %v9533_v24, %v8166_v8 }
 0x575   : > { %v9550_v58 = vpop.f32.mrf.mxu0 }
 0x577   : > { %v9551_v28 = vpop.f32.mrf.mxu0 }
 0x578   : > { %v9552_v9 = vadd.f32 %v9551_v28, %v9550_v58 }
 0x579   : > { %v9553_v50 = vpop.f32.mrf.mxu0 }
 0x57a   : > { %v8245_v59 = vadd.f32 %v9552_v9, %v8204_v52 }
 0x57b   : > { %v9554_v38 = vpop.f32.mrf.mxu0 }
 0x57c   : > { %v9555_v53 = vadd.f32 %v9554_v38, %v9553_v50 }
 0x57d   : > { %v9572_v27 = vpop.f32.mrf.mxu1 }
 0x57e   : > { %v8248_v43 = vadd.f32 %v9555_v53, %v8207_v29 }
 0x57f   : > { %v9573_v46 = vpop.f32.mrf.mxu1 }
 0x580   : > { %v9574_v26 = vadd.f32 %v9573_v46, %v9572_v27 }
 0x581   : > { %v9575_v55 = vpop.f32.mrf.mxu1 }
 0x582   : > { %v8286_v60 = vadd.f32 %v9574_v26, %v8245_v59 }
 0x583   : > { %v9576_v47 = vpop.f32.mrf.mxu1 }
 0x584   : > { %v9577_v41 = vadd.f32 %v9576_v47, %v9575_v55 }
 0x586   : > { %v8289_v37 = vadd.f32 %v9577_v41, %v8248_v43 }
 0x595   : > { %v9594_v19 = vpop.f32.mrf.mxu0 }
 0x597   : > { %v9595_v36 = vpop.f32.mrf.mxu0 }
 0x598   : > { %v9596_v25 = vadd.f32 %v9595_v36, %v9594_v19 }
 0x599   : > { %v9597_v35 = vpop.f32.mrf.mxu0 }
 0x59a   : > { %v8327_v0 = vadd.f32 %v9596_v25, %v8286_v60 }
 0x59b   : > { %v9598_v6 = vpop.f32.mrf.mxu0 }
 0x59c   : > { %8333 = vst [vmem:[%s278_s22] sm:$0xff] %v8327_v0  ;;  %v9599_v30 = vadd.f32 %v9598_v6, %v9597_v35 }
 0x59e   : > { %v8330_v1 = vadd.f32 %v9599_v30, %v8289_v37 }
 0x5a0   : > { %8334 = vst [vmem:[%s278_s22 + $0x8] sm:$0xff] %v8330_v1 }
 0x5a1 PF: > { %s17_s24 = sadd.s32 1, %s10352_s24  }
 0x5a2   : > { %p14_p5 = scmp.ge.s32.totalorder %s17_s24, 4  }
 0x5a4   :  { %16 = sbr.rel (!%p14_p5) target bundleno = 1 (0x1), region = 81 }

</bundles_post_ra>
